<compile_context>
chip_gen: v5e
topology: v5e:2x2
jax: 0.10.0
libtpu: 0.0.40
codegen_flags: <defaults>
</compile_context>

<pallas_src>
import math
import jax
import jax.numpy as jnp
from jax.experimental import pallas as pl
from jax.experimental.pallas import tpu as pltpu

LRELU_SLOPE = 0.01            # nn.LeakyReLU() default
EPS = 1e-6                    # Feature eps


def _detect_vmem_limit():
    try:
        cap = int(pltpu.get_tpu_info().vmem_capacity_bytes)
    except Exception:
        cap = 128 * 1024 * 1024
    # leave headroom under physical VMEM: ~100 MiB on v5e/v6e, ~51 MiB on v7x
    return int(min(cap * 0.8, 100 * 1024 * 1024))


VMEM_LIMIT_BYTES = _detect_vmem_limit()


# ----------------------------------------------------------------------------
# in-kernel helpers (traced inside the kernel bodies)
# ----------------------------------------------------------------------------
def _lrelu(x):
    return jnp.where(x >= 0, x, LRELU_SLOPE * x)


def _fill_pad1(pad_ref, x, mode):
    """Write x (H, W, C) into pad_ref (H+2, W+2, C) with 1-pixel padding.

    mode='reflect' -> ReflectionPad2d(1); mode='edge' -> replicate (used by the
    upsample kernel for clamped neighbour indices).  Pure sliced VMEM stores;
    the padded copy never touches HBM."""
    H, W = x.shape[0], x.shape[1]
    r = 1 if mode == "reflect" else 0
    pad_ref[1:H + 1, 1:W + 1, :] = x
    pad_ref[0:1, 1:W + 1, :] = x[r:r + 1]
    pad_ref[H + 1:H + 2, 1:W + 1, :] = x[H - 1 - r:H - r]
    # left / right columns (read back rows already written -> corners correct)
    pad_ref[:, 0:1, :] = pad_ref[:, 1 + r:2 + r, :]
    pad_ref[:, W + 1:W + 2, :] = pad_ref[:, W - r:W + 1 - r, :]


def _conv3x3_from_pad(pad_ref, w_ref, H, W):
    """3x3 valid conv over the bf16 padded scratch.

    Only the 3 expensive W-axis (sublane) shifts are materialized (one slab per
    kx); the 9 taps slice the slabs along the leading row axis, which is cheap.
    bf16 MXU operands, f32 accumulation, no per-tap casts."""
    Cout = w_ref.shape[3]
    acc = jnp.zeros((H * W, Cout), jnp.float32)
    slabs = [pad_ref[:, kx:kx + W, :] for kx in range(3)]     # (H+2, W, Cin) bf16
    for ky in range(3):
        for kx in range(3):
            patch = slabs[kx][ky:ky + H].reshape(H * W, -1)
            acc = acc + jnp.dot(patch, w_ref[ky, kx],
                                preferred_element_type=jnp.float32)
    return acc


def _channel_stats(x, n):
    """Per-channel mean / (unbiased std + eps) over the spatial axis in ONE
    pass: var = (sum(x^2) - n*mean^2) / (n - 1).  Matches torch.std(dim=2)
    default (unbiased) and Feature's `std + eps`.  Assumes n > 1."""
    s = jnp.sum(x, axis=0, keepdims=True)
    sq = jnp.sum(x * x, axis=0, keepdims=True)
    mean = s * (1.0 / n)
    var = (sq - n * mean * mean) * (1.0 / (n - 1))
    std = jnp.sqrt(jnp.maximum(var, 0.0)) + EPS
    return mean, std


# ----------------------------------------------------------------------------
# K1: 2x bilinear upsample (align_corners=False), channels-last, pure VPU
# ----------------------------------------------------------------------------
def upsample2x(x_nhwc):
    """Returns (B, H, 2, W, 2C) bf16: axis 2 is the output-row parity and the
    output-column parity is folded onto the channel axis.  The wrapper's
    reshape to (B, 2H, 2W, C) is an exact row-major view, so the kernel does
    four contiguous sub-block stores and no interleave work."""
    B, H, W, C = x_nhwc.shape

    def kernel(x_ref, o_ref, pad_ref):
        x = x_ref[0]                                           # (H, W, C) f32
        _fill_pad1(pad_ref, x, mode="edge")                    # clamped halo
        xc = pad_ref[1:H + 1, 1:W + 1, :]
        xu = pad_ref[0:H, 1:W + 1, :]
        xd = pad_ref[2:H + 2, 1:W + 1, :]
        xl = pad_ref[1:H + 1, 0:W, :]
        xr = pad_ref[1:H + 1, 2:W + 2, :]
        xul = pad_ref[0:H, 0:W, :]
        xur = pad_ref[0:H, 2:W + 2, :]
        xdl = pad_ref[2:H + 2, 0:W, :]
        xdr = pad_ref[2:H + 2, 2:W + 2, :]
        # even output = .25*prev + .75*cur, odd = .75*cur + .25*next (per axis)
        p00 = 0.5625 * xc + 0.1875 * xu + 0.1875 * xl + 0.0625 * xul
        p01 = 0.5625 * xc + 0.1875 * xu + 0.1875 * xr + 0.0625 * xur
        p10 = 0.5625 * xc + 0.1875 * xd + 0.1875 * xl + 0.0625 * xdl
        p11 = 0.5625 * xc + 0.1875 * xd + 0.1875 * xr + 0.0625 * xdr
        o_ref[0, :, 0, :, 0:C] = p00.astype(jnp.bfloat16)      # (even row, even col)
        o_ref[0, :, 0, :, C:2 * C] = p01.astype(jnp.bfloat16)  # (even row, odd  col)
        o_ref[0, :, 1, :, 0:C] = p10.astype(jnp.bfloat16)      # (odd  row, even col)
        o_ref[0, :, 1, :, C:2 * C] = p11.astype(jnp.bfloat16)  # (odd  row, odd  col)

    return pl.pallas_call(
        kernel,
        out_shape=jax.ShapeDtypeStruct((B, H, 2, W, 2 * C), jnp.bfloat16),
        grid=(B,),
        in_specs=[pl.BlockSpec((1, H, W, C), lambda b: (b, 0, 0, 0))],
        out_specs=pl.BlockSpec((1, H, 2, W, 2 * C), lambda b: (b, 0, 0, 0, 0)),
        scratch_shapes=[pltpu.VMEM((H + 2, W + 2, C), jnp.float32)],
        compiler_params=pltpu.CompilerParams(
            dimension_semantics=("parallel",),
            vmem_limit_bytes=VMEM_LIMIT_BYTES),
    )(x_nhwc)


# ----------------------------------------------------------------------------
# K2: fully fused  res=conv3(up);  out = style2(conv2(lrelu(style1(conv1(
#     lrelu(up)))))) + res   -- per image, nothing intermediate touches HBM
# ----------------------------------------------------------------------------
def fused_block(up_nhwc, m1, s1, m2, s2, w1_bf16, w2_bf16, w3_bf16):
    B, Hu, Wu, Cin = up_nhwc.shape
    Cout = w3_bf16.shape[1]
    N = Hu * Wu

    def kernel(x_ref, m1_ref, s1_ref, m2_ref, s2_ref,
               w1_ref, w2_ref, w3_ref, o_ref, pad_ref):
        up = x_ref[0]                                          # (Hu, Wu, Cin) bf16
        # conv1(reflect_pad(leaky_relu(up)))  -- bf16 pad scratch, f32 accum
        _fill_pad1(pad_ref, _lrelu(up), mode="reflect")
        acc1 = _conv3x3_from_pad(pad_ref, w1_ref, Hu, Wu)      # (N, Cin) f32
        # style1 (Feature): fold modulation into a single FMA per element
        mean1, std1 = _channel_stats(acc1, N)
        scale1 = s1_ref[0] / std1
        shift1 = m1_ref[0] - mean1 * scale1
        y = _lrelu(acc1 * scale1 + shift1)                     # (N, Cin) f32
        # conv2(reflect_pad(y))  -- reuse the same bf16 pad scratch
        _fill_pad1(pad_ref, y.reshape(Hu, Wu, Cin).astype(jnp.bfloat16),
                   mode="reflect")
        acc2 = _conv3x3_from_pad(pad_ref, w2_ref, Hu, Wu)      # (N, Cout) f32
        # style2
        mean2, std2 = _channel_stats(acc2, N)
        scale2 = s2_ref[0] / std2
        shift2 = m2_ref[0] - mean2 * scale2
        # residual 1x1 conv directly on the (un-activated) bf16 input block
        res = jnp.dot(x_ref[0].reshape(N, Cin), w3_ref[...],
                      preferred_element_type=jnp.float32)      # (N, Cout) f32
        o_ref[...] = (acc2 * scale2 + shift2 + res).reshape(1, Hu, Wu, Cout)

    return pl.pallas_call(
        kernel,
        out_shape=jax.ShapeDtypeStruct((B, Hu, Wu, Cout), jnp.float32),
        grid=(B,),
        in_specs=[
            pl.BlockSpec((1, Hu, Wu, Cin), lambda b: (b, 0, 0, 0)),
            pl.BlockSpec((1, 1, Cin), lambda b: (b, 0, 0)),
            pl.BlockSpec((1, 1, Cin), lambda b: (b, 0, 0)),
            pl.BlockSpec((1, 1, Cout), lambda b: (b, 0, 0)),
            pl.BlockSpec((1, 1, Cout), lambda b: (b, 0, 0)),
            pl.BlockSpec((3, 3, Cin, Cin), lambda b: (0, 0, 0, 0)),
            pl.BlockSpec((3, 3, Cin, Cout), lambda b: (0, 0, 0, 0)),
            pl.BlockSpec((Cin, Cout), lambda b: (0, 0)),
        ],
        out_specs=pl.BlockSpec((1, Hu, Wu, Cout), lambda b: (b, 0, 0, 0)),
        scratch_shapes=[pltpu.VMEM((Hu + 2, Wu + 2, Cin), jnp.bfloat16)],
        compiler_params=pltpu.CompilerParams(
            dimension_semantics=("parallel",),
            vmem_limit_bytes=VMEM_LIMIT_BYTES),
    )(up_nhwc, m1, s1, m2, s2, w1_bf16, w2_bf16, w3_bf16)


# ----------------------------------------------------------------------------
# parameter setup (glue / synthetic weights mimicking the PyTorch init)
# ----------------------------------------------------------------------------
def spectral_normalize(w, key, n_iter=50):
    """Divide w by its largest singular value (power iteration, random init)."""
    wm = w.reshape(w.shape[0], -1)
    ku, kv = jax.random.split(key)
    u = jax.random.normal(ku, (wm.shape[0],), jnp.float32)
    v = jax.random.normal(kv, (wm.shape[1],), jnp.float32)
    for _ in range(n_iter):
        u = wm @ v
        u = u / (jnp.linalg.norm(u) + 1e-12)
        v = wm.T @ u
        v = v / (jnp.linalg.norm(v) + 1e-12)
    sigma = u @ (wm @ v)
    return w / sigma


def init_params(key, in_ch, out_ch, zdim=512):
    ks = jax.random.split(key, 10)
    # Conv weights (PyTorch OIHW), _weights_init scaling + spectral norm.
    w1 = jax.random.normal(ks[0], (in_ch, in_ch, 3, 3), jnp.float32)
    w1 = spectral_normalize(w1 / math.sqrt(in_ch * in_ch * 9), ks[7])
    w2 = jax.random.normal(ks[1], (out_ch, in_ch, 3, 3), jnp.float32)
    w2 = spectral_normalize(w2 / math.sqrt(out_ch * in_ch * 9), ks[8])
    w3 = jax.random.normal(ks[2], (out_ch, in_ch, 1, 1), jnp.float32)
    w3 = spectral_normalize(w3 / math.sqrt(out_ch * in_ch), ks[9])

    scale = 1.0 / math.sqrt(zdim)  # EqualLinear scale, lr_mul = 1
    return {
        "conv1_w": jnp.transpose(w1, (2, 3, 1, 0)).astype(jnp.bfloat16),   # HWIO
        "conv2_w": jnp.transpose(w2, (2, 3, 1, 0)).astype(jnp.bfloat16),   # HWIO
        "conv3_w": jnp.transpose(w3[:, :, 0, 0], (1, 0)).astype(jnp.bfloat16),
        "s1_w1T": (jax.random.normal(ks[3], (in_ch, zdim)) * scale).T.astype(jnp.float32),
        "s1_w2T": (jax.random.normal(ks[4], (in_ch, zdim)) * scale).T.astype(jnp.float32),
        "s2_w1T": (jax.random.normal(ks[5], (out_ch, zdim)) * scale).T.astype(jnp.float32),
        "s2_w2T": (jax.random.normal(ks[6], (out_ch, zdim)) * scale).T.astype(jnp.float32),
        "s1_b1": jnp.zeros((in_ch,), jnp.float32),
        "s1_b2": jnp.zeros((in_ch,), jnp.float32),
        "s2_b1": jnp.zeros((out_ch,), jnp.float32),
        "s2_b2": jnp.zeros((out_ch,), jnp.float32),
    }


# ----------------------------------------------------------------------------
# UpBlock forward
# ----------------------------------------------------------------------------
def upblock_forward(x_nchw, z, params):
    B, Cin, H, W = x_nchw.shape
    # channels-last; this transpose only touches the small pre-upsample tensor.
    x = jnp.transpose(x_nchw, (0, 2, 3, 1)).astype(jnp.float32)
    zf = z.astype(jnp.float32)

    # EqualLinear affines (bias==0, lr_mul==1): tiny (B,512)@(512,C) matmuls,
    # hoisted out of the kernels (per-batch, per-channel scalars).
    m1 = (zf @ params["s1_w1T"] + params["s1_b1"])[:, None, :]
    s1 = (zf @ params["s1_w2T"] + params["s1_b2"])[:, None, :]
    m2 = (zf @ params["s2_w1T"] + params["s2_b1"])[:, None, :]
    s2 = (zf @ params["s2_w2T"] + params["s2_b2"])[:, None, :]

    # K1: upsample; parity-decomposed output -> free row-major reshape to NHWC.
    up5 = upsample2x(x)                                  # (B, H, 2, W, 2Cin) bf16
    up = up5.reshape(B, 2 * H, 2 * W, Cin)               # exact row-major view

    # K2: 1x1 residual + lrelu + reflect-pad + conv1 + style1 + lrelu +
    #     reflect-pad + conv2 + style2 + residual add, all fused per image.
    out = fused_block(up, m1, s1, m2, s2,
                      params["conv1_w"], params["conv2_w"], params["conv3_w"])

    # TODO(synk): a stack of UpBlocks should stay NHWC end-to-end; this final
    # transpose only exists to match the PyTorch NCHW interface.
    return jnp.transpose(out, (0, 3, 1, 2))


if __name__ == "__main__":
    key = jax.random.PRNGKey(0)
    kx, kz, kp = jax.random.split(key, 3)

    B, Cin, Cout, H, W = 2, 4, 8, 8, 8
    x = jax.random.normal(kx, (B, Cin, H, W), jnp.float32)
    z = jax.random.normal(kz, (B, 512), jnp.float32)
    params = init_params(kp, Cin, Cout)

    out = jax.jit(upblock_forward)(x, z, params)
    out = jax.block_until_ready(out)
    assert out.shape == (B, Cout, 2 * H, 2 * W), out.shape
    assert bool(jnp.all(jnp.isfinite(out)))
    print("KERNEL_OK")
</pallas_src>

<mosaic_0001>
module attributes {stable_mosaic.version = 11 : i64} {
  func.func @kernel(%arg0: i32, %arg1: memref<1x8x8x4xf32, #tpu.memory_space<vmem>>, %arg2: memref<1x8x2x8x8xbf16, #tpu.memory_space<vmem>>, %arg3: memref<10x10x4xf32, #tpu.memory_space<vmem>>) attributes {dimension_semantics = [#tpu.dimension_semantics<parallel>], iteration_bounds = array<i64: 2>, scalar_prefetch = 0 : i64, scratch_operands = 1 : i64, tpu.core_type = #tpu.core_type<tc>, window_params = [{transform_indices = @transform_0, window_bounds = array<i64: 1, 8, 8, 4>}, {transform_indices = @transform_1, window_bounds = array<i64: 1, 8, 2, 8, 8>}]} {
    %c0 = arith.constant 0 : index
    %c0_0 = arith.constant 0 : index
    %c0_1 = arith.constant 0 : index
    %c0_2 = arith.constant 0 : index
    %0 = vector.load %arg1[%c0, %c0_0, %c0_1, %c0_2] : memref<1x8x8x4xf32, #tpu.memory_space<vmem>>, vector<1x8x8x4xf32>
    %1 = vector.shape_cast %0 : vector<1x8x8x4xf32> to vector<8x8x4xf32>
    %c1 = arith.constant 1 : index
    %c1_3 = arith.constant 1 : index
    %c0_4 = arith.constant 0 : index
    %2 = vector.load %arg3[%c1, %c1_3, %c0_4] : memref<10x10x4xf32, #tpu.memory_space<vmem>>, vector<8x8x4xf32>
    tpu.vector_store %arg3[%c1, %c1_3, %c0_4], %1 {strides = array<i32>} : memref<10x10x4xf32, #tpu.memory_space<vmem>>, vector<8x8x4xf32>,
    %3 = vector.extract_strided_slice %1 {offsets = [0, 0, 0], sizes = [1, 8, 4], strides = [1, 1, 1]} : vector<8x8x4xf32> to vector<1x8x4xf32>
    %c0_5 = arith.constant 0 : index
    %c1_6 = arith.constant 1 : index
    %c0_7 = arith.constant 0 : index
    %4 = vector.load %arg3[%c0_5, %c1_6, %c0_7] : memref<10x10x4xf32, #tpu.memory_space<vmem>>, vector<1x8x4xf32>
    tpu.vector_store %arg3[%c0_5, %c1_6, %c0_7], %3 {strides = array<i32>} : memref<10x10x4xf32, #tpu.memory_space<vmem>>, vector<1x8x4xf32>,
    %5 = vector.extract_strided_slice %1 {offsets = [7, 0, 0], sizes = [1, 8, 4], strides = [1, 1, 1]} : vector<8x8x4xf32> to vector<1x8x4xf32>
    %c9 = arith.constant 9 : index
    %c1_8 = arith.constant 1 : index
    %c0_9 = arith.constant 0 : index
    %6 = vector.load %arg3[%c9, %c1_8, %c0_9] : memref<10x10x4xf32, #tpu.memory_space<vmem>>, vector<1x8x4xf32>
    tpu.vector_store %arg3[%c9, %c1_8, %c0_9], %5 {strides = array<i32>} : memref<10x10x4xf32, #tpu.memory_space<vmem>>, vector<1x8x4xf32>,
    %c0_10 = arith.constant 0 : index
    %c1_11 = arith.constant 1 : index
    %c0_12 = arith.constant 0 : index
    %7 = vector.load %arg3[%c0_10, %c1_11, %c0_12] : memref<10x10x4xf32, #tpu.memory_space<vmem>>, vector<10x1x4xf32>
    %c0_13 = arith.constant 0 : index
    %c0_14 = arith.constant 0 : index
    %c0_15 = arith.constant 0 : index
    %8 = vector.load %arg3[%c0_13, %c0_14, %c0_15] : memref<10x10x4xf32, #tpu.memory_space<vmem>>, vector<10x1x4xf32>
    tpu.vector_store %arg3[%c0_13, %c0_14, %c0_15], %7 {strides = array<i32>} : memref<10x10x4xf32, #tpu.memory_space<vmem>>, vector<10x1x4xf32>,
    %c0_16 = arith.constant 0 : index
    %c8 = arith.constant 8 : index
    %c0_17 = arith.constant 0 : index
    %9 = vector.load %arg3[%c0_16, %c8, %c0_17] : memref<10x10x4xf32, #tpu.memory_space<vmem>>, vector<10x1x4xf32>
    %c0_18 = arith.constant 0 : index
    %c9_19 = arith.constant 9 : index
    %c0_20 = arith.constant 0 : index
    %10 = vector.load %arg3[%c0_18, %c9_19, %c0_20] : memref<10x10x4xf32, #tpu.memory_space<vmem>>, vector<10x1x4xf32>
    tpu.vector_store %arg3[%c0_18, %c9_19, %c0_20], %9 {strides = array<i32>} : memref<10x10x4xf32, #tpu.memory_space<vmem>>, vector<10x1x4xf32>,
    %c1_21 = arith.constant 1 : index
    %c1_22 = arith.constant 1 : index
    %c0_23 = arith.constant 0 : index
    %11 = vector.load %arg3[%c1_21, %c1_22, %c0_23] : memref<10x10x4xf32, #tpu.memory_space<vmem>>, vector<8x8x4xf32>
    %c0_24 = arith.constant 0 : index
    %c1_25 = arith.constant 1 : index
    %c0_26 = arith.constant 0 : index
    %12 = vector.load %arg3[%c0_24, %c1_25, %c0_26] : memref<10x10x4xf32, #tpu.memory_space<vmem>>, vector<8x8x4xf32>
    %c2 = arith.constant 2 : index
    %c1_27 = arith.constant 1 : index
    %c0_28 = arith.constant 0 : index
    %13 = vector.load %arg3[%c2, %c1_27, %c0_28] : memref<10x10x4xf32, #tpu.memory_space<vmem>>, vector<8x8x4xf32>
    %c1_29 = arith.constant 1 : index
    %c0_30 = arith.constant 0 : index
    %c0_31 = arith.constant 0 : index
    %14 = vector.load %arg3[%c1_29, %c0_30, %c0_31] : memref<10x10x4xf32, #tpu.memory_space<vmem>>, vector<8x8x4xf32>
    %c1_32 = arith.constant 1 : index
    %c2_33 = arith.constant 2 : index
    %c0_34 = arith.constant 0 : index
    %15 = vector.load %arg3[%c1_32, %c2_33, %c0_34] : memref<10x10x4xf32, #tpu.memory_space<vmem>>, vector<8x8x4xf32>
    %c0_35 = arith.constant 0 : index
    %c0_36 = arith.constant 0 : index
    %c0_37 = arith.constant 0 : index
    %16 = vector.load %arg3[%c0_35, %c0_36, %c0_37] : memref<10x10x4xf32, #tpu.memory_space<vmem>>, vector<8x8x4xf32>
    %c0_38 = arith.constant 0 : index
    %c2_39 = arith.constant 2 : index
    %c0_40 = arith.constant 0 : index
    %17 = vector.load %arg3[%c0_38, %c2_39, %c0_40] : memref<10x10x4xf32, #tpu.memory_space<vmem>>, vector<8x8x4xf32>
    %c2_41 = arith.constant 2 : index
    %c0_42 = arith.constant 0 : index
    %c0_43 = arith.constant 0 : index
    %18 = vector.load %arg3[%c2_41, %c0_42, %c0_43] : memref<10x10x4xf32, #tpu.memory_space<vmem>>, vector<8x8x4xf32>
    %c2_44 = arith.constant 2 : index
    %c2_45 = arith.constant 2 : index
    %c0_46 = arith.constant 0 : index
    %19 = vector.load %arg3[%c2_44, %c2_45, %c0_46] : memref<10x10x4xf32, #tpu.memory_space<vmem>>, vector<8x8x4xf32>
    %cst = arith.constant 5.625000e-01 : f32
    %20 = vector.broadcast %cst : f32 to vector<8x8x4xf32>
    %21 = arith.mulf %20, %11 : vector<8x8x4xf32>
    %cst_47 = arith.constant 1.875000e-01 : f32
    %22 = vector.broadcast %cst_47 : f32 to vector<8x8x4xf32>
    %23 = arith.mulf %22, %12 : vector<8x8x4xf32>
    %24 = arith.addf %21, %23 : vector<8x8x4xf32>
    %cst_48 = arith.constant 1.875000e-01 : f32
    %25 = vector.broadcast %cst_48 : f32 to vector<8x8x4xf32>
    %26 = arith.mulf %25, %14 : vector<8x8x4xf32>
    %27 = arith.addf %24, %26 : vector<8x8x4xf32>
    %cst_49 = arith.constant 6.250000e-02 : f32
    %28 = vector.broadcast %cst_49 : f32 to vector<8x8x4xf32>
    %29 = arith.mulf %28, %16 : vector<8x8x4xf32>
    %30 = arith.addf %27, %29 : vector<8x8x4xf32>
    %cst_50 = arith.constant 5.625000e-01 : f32
    %31 = vector.broadcast %cst_50 : f32 to vector<8x8x4xf32>
    %32 = arith.mulf %31, %11 : vector<8x8x4xf32>
    %cst_51 = arith.constant 1.875000e-01 : f32
    %33 = vector.broadcast %cst_51 : f32 to vector<8x8x4xf32>
    %34 = arith.mulf %33, %12 : vector<8x8x4xf32>
    %35 = arith.addf %32, %34 : vector<8x8x4xf32>
    %cst_52 = arith.constant 1.875000e-01 : f32
    %36 = vector.broadcast %cst_52 : f32 to vector<8x8x4xf32>
    %37 = arith.mulf %36, %15 : vector<8x8x4xf32>
    %38 = arith.addf %35, %37 : vector<8x8x4xf32>
    %cst_53 = arith.constant 6.250000e-02 : f32
    %39 = vector.broadcast %cst_53 : f32 to vector<8x8x4xf32>
    %40 = arith.mulf %39, %17 : vector<8x8x4xf32>
    %41 = arith.addf %38, %40 : vector<8x8x4xf32>
    %cst_54 = arith.constant 5.625000e-01 : f32
    %42 = vector.broadcast %cst_54 : f32 to vector<8x8x4xf32>
    %43 = arith.mulf %42, %11 : vector<8x8x4xf32>
    %cst_55 = arith.constant 1.875000e-01 : f32
    %44 = vector.broadcast %cst_55 : f32 to vector<8x8x4xf32>
    %45 = arith.mulf %44, %13 : vector<8x8x4xf32>
    %46 = arith.addf %43, %45 : vector<8x8x4xf32>
    %cst_56 = arith.constant 1.875000e-01 : f32
    %47 = vector.broadcast %cst_56 : f32 to vector<8x8x4xf32>
    %48 = arith.mulf %47, %14 : vector<8x8x4xf32>
    %49 = arith.addf %46, %48 : vector<8x8x4xf32>
    %cst_57 = arith.constant 6.250000e-02 : f32
    %50 = vector.broadcast %cst_57 : f32 to vector<8x8x4xf32>
    %51 = arith.mulf %50, %18 : vector<8x8x4xf32>
    %52 = arith.addf %49, %51 : vector<8x8x4xf32>
    %cst_58 = arith.constant 5.625000e-01 : f32
    %53 = vector.broadcast %cst_58 : f32 to vector<8x8x4xf32>
    %54 = arith.mulf %53, %11 : vector<8x8x4xf32>
    %cst_59 = arith.constant 1.875000e-01 : f32
    %55 = vector.broadcast %cst_59 : f32 to vector<8x8x4xf32>
    %56 = arith.mulf %55, %13 : vector<8x8x4xf32>
    %57 = arith.addf %54, %56 : vector<8x8x4xf32>
    %cst_60 = arith.constant 1.875000e-01 : f32
    %58 = vector.broadcast %cst_60 : f32 to vector<8x8x4xf32>
    %59 = arith.mulf %58, %15 : vector<8x8x4xf32>
    %60 = arith.addf %57, %59 : vector<8x8x4xf32>
    %cst_61 = arith.constant 6.250000e-02 : f32
    %61 = vector.broadcast %cst_61 : f32 to vector<8x8x4xf32>
    %62 = arith.mulf %61, %19 : vector<8x8x4xf32>
    %63 = arith.addf %60, %62 : vector<8x8x4xf32>
    %64 = arith.truncf %30 : vector<8x8x4xf32> to vector<8x8x4xbf16>
    %c0_62 = arith.constant 0 : index
    %c0_63 = arith.constant 0 : index
    %c0_64 = arith.constant 0 : index
    %c0_65 = arith.constant 0 : index
    %c0_66 = arith.constant 0 : index
    %65 = vector.load %arg2[%c0_62, %c0_63, %c0_64, %c0_65, %c0_66] : memref<1x8x2x8x8xbf16, #tpu.memory_space<vmem>>, vector<1x8x1x8x4xbf16>
    %66 = vector.shape_cast %65 : vector<1x8x1x8x4xbf16> to vector<8x8x4xbf16>
    %67 = vector.shape_cast %64 : vector<8x8x4xbf16> to vector<1x8x1x8x4xbf16>
    tpu.vector_store %arg2[%c0_62, %c0_63, %c0_64, %c0_65, %c0_66], %67 {strides = array<i32>} : memref<1x8x2x8x8xbf16, #tpu.memory_space<vmem>>, vector<1x8x1x8x4xbf16>,
    %68 = arith.truncf %41 : vector<8x8x4xf32> to vector<8x8x4xbf16>
    %c0_67 = arith.constant 0 : index
    %c0_68 = arith.constant 0 : index
    %c0_69 = arith.constant 0 : index
    %c0_70 = arith.constant 0 : index
    %c4 = arith.constant 4 : index
    %69 = vector.load %arg2[%c0_67, %c0_68, %c0_69, %c0_70, %c4] : memref<1x8x2x8x8xbf16, #tpu.memory_space<vmem>>, vector<1x8x1x8x4xbf16>
    %70 = vector.shape_cast %69 : vector<1x8x1x8x4xbf16> to vector<8x8x4xbf16>
    %71 = vector.shape_cast %68 : vector<8x8x4xbf16> to vector<1x8x1x8x4xbf16>
    tpu.vector_store %arg2[%c0_67, %c0_68, %c0_69, %c0_70, %c4], %71 {strides = array<i32>} : memref<1x8x2x8x8xbf16, #tpu.memory_space<vmem>>, vector<1x8x1x8x4xbf16>,
    %72 = arith.truncf %52 : vector<8x8x4xf32> to vector<8x8x4xbf16>
    %c0_71 = arith.constant 0 : index
    %c0_72 = arith.constant 0 : index
    %c1_73 = arith.constant 1 : index
    %c0_74 = arith.constant 0 : index
    %c0_75 = arith.constant 0 : index
    %73 = vector.load %arg2[%c0_71, %c0_72, %c1_73, %c0_74, %c0_75] : memref<1x8x2x8x8xbf16, #tpu.memory_space<vmem>>, vector<1x8x1x8x4xbf16>
    %74 = vector.shape_cast %73 : vector<1x8x1x8x4xbf16> to vector<8x8x4xbf16>
    %75 = vector.shape_cast %72 : vector<8x8x4xbf16> to vector<1x8x1x8x4xbf16>
    tpu.vector_store %arg2[%c0_71, %c0_72, %c1_73, %c0_74, %c0_75], %75 {strides = array<i32>} : memref<1x8x2x8x8xbf16, #tpu.memory_space<vmem>>, vector<1x8x1x8x4xbf16>,
    %76 = arith.truncf %63 : vector<8x8x4xf32> to vector<8x8x4xbf16>
    %c0_76 = arith.constant 0 : index
    %c0_77 = arith.constant 0 : index
    %c1_78 = arith.constant 1 : index
    %c0_79 = arith.constant 0 : index
    %c4_80 = arith.constant 4 : index
    %77 = vector.load %arg2[%c0_76, %c0_77, %c1_78, %c0_79, %c4_80] : memref<1x8x2x8x8xbf16, #tpu.memory_space<vmem>>, vector<1x8x1x8x4xbf16>
    %78 = vector.shape_cast %77 : vector<1x8x1x8x4xbf16> to vector<8x8x4xbf16>
    %79 = vector.shape_cast %76 : vector<8x8x4xbf16> to vector<1x8x1x8x4xbf16>
    tpu.vector_store %arg2[%c0_76, %c0_77, %c1_78, %c0_79, %c4_80], %79 {strides = array<i32>} : memref<1x8x2x8x8xbf16, #tpu.memory_space<vmem>>, vector<1x8x1x8x4xbf16>,
    return
  }
  func.func @transform_0(%arg0: i32) -> (i32, i32, i32, i32) {
    %c0_i32 = arith.constant 0 : i32
    %c0_i32_0 = arith.constant 0 : i32
    %c0_i32_1 = arith.constant 0 : i32
    %c0_i32_2 = arith.constant 0 : i32
    return %arg0, %c0_i32, %c0_i32_0, %c0_i32_1 : i32, i32, i32, i32
  }
  func.func @transform_1(%arg0: i32) -> (i32, i32, i32, i32, i32) {
    %c0_i32 = arith.constant 0 : i32
    %c0_i32_0 = arith.constant 0 : i32
    %c0_i32_1 = arith.constant 0 : i32
    %c0_i32_2 = arith.constant 0 : i32
    %c0_i32_3 = arith.constant 0 : i32
    return %arg0, %c0_i32, %c0_i32_0, %c0_i32_1, %c0_i32_2 : i32, i32, i32, i32, i32
  }
}

module attributes {stable_mosaic.version = 11 : i64} {
  func.func @kernel(%arg0: i32, %arg1: memref<1x16x16x4xbf16, #tpu.memory_space<vmem>>, %arg2: memref<1x1x4xf32, #tpu.memory_space<vmem>>, %arg3: memref<1x1x4xf32, #tpu.memory_space<vmem>>, %arg4: memref<1x1x8xf32, #tpu.memory_space<vmem>>, %arg5: memref<1x1x8xf32, #tpu.memory_space<vmem>>, %arg6: memref<3x3x4x4xbf16, #tpu.memory_space<vmem>>, %arg7: memref<3x3x4x8xbf16, #tpu.memory_space<vmem>>, %arg8: memref<4x8xbf16, #tpu.memory_space<vmem>>, %arg9: memref<1x16x16x8xf32, #tpu.memory_space<vmem>>, %arg10: memref<18x18x4xbf16, #tpu.memory_space<vmem>>) attributes {dimension_semantics = [#tpu.dimension_semantics<parallel>], iteration_bounds = array<i64: 2>, scalar_prefetch = 0 : i64, scratch_operands = 1 : i64, tpu.core_type = #tpu.core_type<tc>, window_params = [{transform_indices = @transform_0, window_bounds = array<i64: 1, 16, 16, 4>}, {transform_indices = @transform_1, window_bounds = array<i64: 1, 1, 4>}, {transform_indices = @transform_2, window_bounds = array<i64: 1, 1, 4>}, {transform_indices = @transform_3, window_bounds = array<i64: 1, 1, 8>}, {transform_indices = @transform_4, window_bounds = array<i64: 1, 1, 8>}, {pipeline_mode = #tpu.pipeline_mode<synchronous>, transform_indices = @transform_5, window_bounds = array<i64: 3, 3, 4, 4>}, {pipeline_mode = #tpu.pipeline_mode<synchronous>, transform_indices = @transform_6, window_bounds = array<i64: 3, 3, 4, 8>}, {pipeline_mode = #tpu.pipeline_mode<synchronous>, transform_indices = @transform_7, window_bounds = array<i64: 4, 8>}, {transform_indices = @transform_8, window_bounds = array<i64: 1, 16, 16, 8>}]} {
    %c0 = arith.constant 0 : index
    %c0_0 = arith.constant 0 : index
    %c0_1 = arith.constant 0 : index
    %c0_2 = arith.constant 0 : index
    %0 = vector.load %arg1[%c0, %c0_0, %c0_1, %c0_2] : memref<1x16x16x4xbf16, #tpu.memory_space<vmem>>, vector<1x16x16x4xbf16>
    %1 = vector.shape_cast %0 : vector<1x16x16x4xbf16> to vector<16x16x4xbf16>
    %cst = arith.constant 0.000000e+00 : bf16
    %2 = vector.broadcast %cst : bf16 to vector<16x16x4xbf16>
    %3 = arith.cmpf oge, %1, %2 : vector<16x16x4xbf16>
    %cst_3 = arith.constant 1.000980e-02 : bf16
    %4 = vector.broadcast %cst_3 : bf16 to vector<16x16x4xbf16>
    %5 = arith.mulf %4, %1 : vector<16x16x4xbf16>
    %6 = arith.select %3, %1, %5 : vector<16x16x4xi1>, vector<16x16x4xbf16>
    %c1 = arith.constant 1 : index
    %c1_4 = arith.constant 1 : index
    %c0_5 = arith.constant 0 : index
    %7 = vector.load %arg10[%c1, %c1_4, %c0_5] : memref<18x18x4xbf16, #tpu.memory_space<vmem>>, vector<16x16x4xbf16>
    tpu.vector_store %arg10[%c1, %c1_4, %c0_5], %6 {strides = array<i32>} : memref<18x18x4xbf16, #tpu.memory_space<vmem>>, vector<16x16x4xbf16>,
    %8 = vector.extract_strided_slice %6 {offsets = [1, 0, 0], sizes = [1, 16, 4], strides = [1, 1, 1]} : vector<16x16x4xbf16> to vector<1x16x4xbf16>
    %c0_6 = arith.constant 0 : index
    %c1_7 = arith.constant 1 : index
    %c0_8 = arith.constant 0 : index
    %9 = vector.load %arg10[%c0_6, %c1_7, %c0_8] : memref<18x18x4xbf16, #tpu.memory_space<vmem>>, vector<1x16x4xbf16>
    tpu.vector_store %arg10[%c0_6, %c1_7, %c0_8], %8 {strides = array<i32>} : memref<18x18x4xbf16, #tpu.memory_space<vmem>>, vector<1x16x4xbf16>,
    %10 = vector.extract_strided_slice %6 {offsets = [14, 0, 0], sizes = [1, 16, 4], strides = [1, 1, 1]} : vector<16x16x4xbf16> to vector<1x16x4xbf16>
    %c17 = arith.constant 17 : index
    %c1_9 = arith.constant 1 : index
    %c0_10 = arith.constant 0 : index
    %11 = vector.load %arg10[%c17, %c1_9, %c0_10] : memref<18x18x4xbf16, #tpu.memory_space<vmem>>, vector<1x16x4xbf16>
    tpu.vector_store %arg10[%c17, %c1_9, %c0_10], %10 {strides = array<i32>} : memref<18x18x4xbf16, #tpu.memory_space<vmem>>, vector<1x16x4xbf16>,
    %c0_11 = arith.constant 0 : index
    %c2 = arith.constant 2 : index
    %c0_12 = arith.constant 0 : index
    %12 = vector.load %arg10[%c0_11, %c2, %c0_12] : memref<18x18x4xbf16, #tpu.memory_space<vmem>>, vector<18x1x4xbf16>
    %c0_13 = arith.constant 0 : index
    %c0_14 = arith.constant 0 : index
    %c0_15 = arith.constant 0 : index
    %13 = vector.load %arg10[%c0_13, %c0_14, %c0_15] : memref<18x18x4xbf16, #tpu.memory_space<vmem>>, vector<18x1x4xbf16>
    tpu.vector_store %arg10[%c0_13, %c0_14, %c0_15], %12 {strides = array<i32>} : memref<18x18x4xbf16, #tpu.memory_space<vmem>>, vector<18x1x4xbf16>,
    %c0_16 = arith.constant 0 : index
    %c15 = arith.constant 15 : index
    %c0_17 = arith.constant 0 : index
    %14 = vector.load %arg10[%c0_16, %c15, %c0_17] : memref<18x18x4xbf16, #tpu.memory_space<vmem>>, vector<18x1x4xbf16>
    %c0_18 = arith.constant 0 : index
    %c17_19 = arith.constant 17 : index
    %c0_20 = arith.constant 0 : index
    %15 = vector.load %arg10[%c0_18, %c17_19, %c0_20] : memref<18x18x4xbf16, #tpu.memory_space<vmem>>, vector<18x1x4xbf16>
    tpu.vector_store %arg10[%c0_18, %c17_19, %c0_20], %14 {strides = array<i32>} : memref<18x18x4xbf16, #tpu.memory_space<vmem>>, vector<18x1x4xbf16>,
    %cst_21 = arith.constant 0.000000e+00 : f32
    %16 = vector.broadcast %cst_21 : f32 to vector<256x4xf32>
    %c0_22 = arith.constant 0 : index
    %c0_23 = arith.constant 0 : index
    %c0_24 = arith.constant 0 : index
    %17 = vector.load %arg10[%c0_22, %c0_23, %c0_24] : memref<18x18x4xbf16, #tpu.memory_space<vmem>>, vector<18x16x4xbf16>
    %c0_25 = arith.constant 0 : index
    %c1_26 = arith.constant 1 : index
    %c0_27 = arith.constant 0 : index
    %18 = vector.load %arg10[%c0_25, %c1_26, %c0_27] : memref<18x18x4xbf16, #tpu.memory_space<vmem>>, vector<18x16x4xbf16>
    %c0_28 = arith.constant 0 : index
    %c2_29 = arith.constant 2 : index
    %c0_30 = arith.constant 0 : index
    %19 = vector.load %arg10[%c0_28, %c2_29, %c0_30] : memref<18x18x4xbf16, #tpu.memory_space<vmem>>, vector<18x16x4xbf16>
    %20 = vector.extract_strided_slice %17 {offsets = [0, 0, 0], sizes = [16, 16, 4], strides = [1, 1, 1]} : vector<18x16x4xbf16> to vector<16x16x4xbf16>
    %21 = vector.shape_cast %20 : vector<16x16x4xbf16> to vector<256x4xbf16>
    %c0_31 = arith.constant 0 : index
    %c0_32 = arith.constant 0 : index
    %c0_33 = arith.constant 0 : index
    %c0_34 = arith.constant 0 : index
    %22 = vector.load %arg6[%c0_31, %c0_32, %c0_33, %c0_34] : memref<3x3x4x4xbf16, #tpu.memory_space<vmem>>, vector<1x1x4x4xbf16>
    %23 = vector.shape_cast %22 : vector<1x1x4x4xbf16> to vector<4x4xbf16>
    %cst_35 = arith.constant dense<0.000000e+00> : vector<256x4xf32>
    %24 = tpu.matmul %21, %23, %cst_35 {dimension_numbers = #tpu.dot_dimension_numbers<[1], [0], [0], [1], [0, 0, 1, 1], [], []>} : vector<256x4xbf16>, vector<4x4xbf16>, vector<256x4xf32> -> vector<256x4xf32>
    %25 = arith.addf %16, %24 : vector<256x4xf32>
    %26 = vector.extract_strided_slice %18 {offsets = [0, 0, 0], sizes = [16, 16, 4], strides = [1, 1, 1]} : vector<18x16x4xbf16> to vector<16x16x4xbf16>
    %27 = vector.shape_cast %26 : vector<16x16x4xbf16> to vector<256x4xbf16>
    %c0_36 = arith.constant 0 : index
    %c1_37 = arith.constant 1 : index
    %c0_38 = arith.constant 0 : index
    %c0_39 = arith.constant 0 : index
    %28 = vector.load %arg6[%c0_36, %c1_37, %c0_38, %c0_39] : memref<3x3x4x4xbf16, #tpu.memory_space<vmem>>, vector<1x1x4x4xbf16>
    %29 = vector.shape_cast %28 : vector<1x1x4x4xbf16> to vector<4x4xbf16>
    %cst_40 = arith.constant dense<0.000000e+00> : vector<256x4xf32>
    %30 = tpu.matmul %27, %29, %cst_40 {dimension_numbers = #tpu.dot_dimension_numbers<[1], [0], [0], [1], [0, 0, 1, 1], [], []>} : vector<256x4xbf16>, vector<4x4xbf16>, vector<256x4xf32> -> vector<256x4xf32>
    %31 = arith.addf %25, %30 : vector<256x4xf32>
    %32 = vector.extract_strided_slice %19 {offsets = [0, 0, 0], sizes = [16, 16, 4], strides = [1, 1, 1]} : vector<18x16x4xbf16> to vector<16x16x4xbf16>
    %33 = vector.shape_cast %32 : vector<16x16x4xbf16> to vector<256x4xbf16>
    %c0_41 = arith.constant 0 : index
    %c2_42 = arith.constant 2 : index
    %c0_43 = arith.constant 0 : index
    %c0_44 = arith.constant 0 : index
    %34 = vector.load %arg6[%c0_41, %c2_42, %c0_43, %c0_44] : memref<3x3x4x4xbf16, #tpu.memory_space<vmem>>, vector<1x1x4x4xbf16>
    %35 = vector.shape_cast %34 : vector<1x1x4x4xbf16> to vector<4x4xbf16>
    %cst_45 = arith.constant dense<0.000000e+00> : vector<256x4xf32>
    %36 = tpu.matmul %33, %35, %cst_45 {dimension_numbers = #tpu.dot_dimension_numbers<[1], [0], [0], [1], [0, 0, 1, 1], [], []>} : vector<256x4xbf16>, vector<4x4xbf16>, vector<256x4xf32> -> vector<256x4xf32>
    %37 = arith.addf %31, %36 : vector<256x4xf32>
    %38 = vector.extract_strided_slice %17 {offsets = [1, 0, 0], sizes = [16, 16, 4], strides = [1, 1, 1]} : vector<18x16x4xbf16> to vector<16x16x4xbf16>
    %39 = vector.shape_cast %38 : vector<16x16x4xbf16> to vector<256x4xbf16>
    %c1_46 = arith.constant 1 : index
    %c0_47 = arith.constant 0 : index
    %c0_48 = arith.constant 0 : index
    %c0_49 = arith.constant 0 : index
    %40 = vector.load %arg6[%c1_46, %c0_47, %c0_48, %c0_49] : memref<3x3x4x4xbf16, #tpu.memory_space<vmem>>, vector<1x1x4x4xbf16>
    %41 = vector.shape_cast %40 : vector<1x1x4x4xbf16> to vector<4x4xbf16>
    %cst_50 = arith.constant dense<0.000000e+00> : vector<256x4xf32>
    %42 = tpu.matmul %39, %41, %cst_50 {dimension_numbers = #tpu.dot_dimension_numbers<[1], [0], [0], [1], [0, 0, 1, 1], [], []>} : vector<256x4xbf16>, vector<4x4xbf16>, vector<256x4xf32> -> vector<256x4xf32>
    %43 = arith.addf %37, %42 : vector<256x4xf32>
    %44 = vector.extract_strided_slice %18 {offsets = [1, 0, 0], sizes = [16, 16, 4], strides = [1, 1, 1]} : vector<18x16x4xbf16> to vector<16x16x4xbf16>
    %45 = vector.shape_cast %44 : vector<16x16x4xbf16> to vector<256x4xbf16>
    %c1_51 = arith.constant 1 : index
    %c1_52 = arith.constant 1 : index
    %c0_53 = arith.constant 0 : index
    %c0_54 = arith.constant 0 : index
    %46 = vector.load %arg6[%c1_51, %c1_52, %c0_53, %c0_54] : memref<3x3x4x4xbf16, #tpu.memory_space<vmem>>, vector<1x1x4x4xbf16>
    %47 = vector.shape_cast %46 : vector<1x1x4x4xbf16> to vector<4x4xbf16>
    %cst_55 = arith.constant dense<0.000000e+00> : vector<256x4xf32>
    %48 = tpu.matmul %45, %47, %cst_55 {dimension_numbers = #tpu.dot_dimension_numbers<[1], [0], [0], [1], [0, 0, 1, 1], [], []>} : vector<256x4xbf16>, vector<4x4xbf16>, vector<256x4xf32> -> vector<256x4xf32>
    %49 = arith.addf %43, %48 : vector<256x4xf32>
    %50 = vector.extract_strided_slice %19 {offsets = [1, 0, 0], sizes = [16, 16, 4], strides = [1, 1, 1]} : vector<18x16x4xbf16> to vector<16x16x4xbf16>
    %51 = vector.shape_cast %50 : vector<16x16x4xbf16> to vector<256x4xbf16>
    %c1_56 = arith.constant 1 : index
    %c2_57 = arith.constant 2 : index
    %c0_58 = arith.constant 0 : index
    %c0_59 = arith.constant 0 : index
    %52 = vector.load %arg6[%c1_56, %c2_57, %c0_58, %c0_59] : memref<3x3x4x4xbf16, #tpu.memory_space<vmem>>, vector<1x1x4x4xbf16>
    %53 = vector.shape_cast %52 : vector<1x1x4x4xbf16> to vector<4x4xbf16>
    %cst_60 = arith.constant dense<0.000000e+00> : vector<256x4xf32>
    %54 = tpu.matmul %51, %53, %cst_60 {dimension_numbers = #tpu.dot_dimension_numbers<[1], [0], [0], [1], [0, 0, 1, 1], [], []>} : vector<256x4xbf16>, vector<4x4xbf16>, vector<256x4xf32> -> vector<256x4xf32>
    %55 = arith.addf %49, %54 : vector<256x4xf32>
    %56 = vector.extract_strided_slice %17 {offsets = [2, 0, 0], sizes = [16, 16, 4], strides = [1, 1, 1]} : vector<18x16x4xbf16> to vector<16x16x4xbf16>
    %57 = vector.shape_cast %56 : vector<16x16x4xbf16> to vector<256x4xbf16>
    %c2_61 = arith.constant 2 : index
    %c0_62 = arith.constant 0 : index
    %c0_63 = arith.constant 0 : index
    %c0_64 = arith.constant 0 : index
    %58 = vector.load %arg6[%c2_61, %c0_62, %c0_63, %c0_64] : memref<3x3x4x4xbf16, #tpu.memory_space<vmem>>, vector<1x1x4x4xbf16>
    %59 = vector.shape_cast %58 : vector<1x1x4x4xbf16> to vector<4x4xbf16>
    %cst_65 = arith.constant dense<0.000000e+00> : vector<256x4xf32>
    %60 = tpu.matmul %57, %59, %cst_65 {dimension_numbers = #tpu.dot_dimension_numbers<[1], [0], [0], [1], [0, 0, 1, 1], [], []>} : vector<256x4xbf16>, vector<4x4xbf16>, vector<256x4xf32> -> vector<256x4xf32>
    %61 = arith.addf %55, %60 : vector<256x4xf32>
    %62 = vector.extract_strided_slice %18 {offsets = [2, 0, 0], sizes = [16, 16, 4], strides = [1, 1, 1]} : vector<18x16x4xbf16> to vector<16x16x4xbf16>
    %63 = vector.shape_cast %62 : vector<16x16x4xbf16> to vector<256x4xbf16>
    %c2_66 = arith.constant 2 : index
    %c1_67 = arith.constant 1 : index
    %c0_68 = arith.constant 0 : index
    %c0_69 = arith.constant 0 : index
    %64 = vector.load %arg6[%c2_66, %c1_67, %c0_68, %c0_69] : memref<3x3x4x4xbf16, #tpu.memory_space<vmem>>, vector<1x1x4x4xbf16>
    %65 = vector.shape_cast %64 : vector<1x1x4x4xbf16> to vector<4x4xbf16>
    %cst_70 = arith.constant dense<0.000000e+00> : vector<256x4xf32>
    %66 = tpu.matmul %63, %65, %cst_70 {dimension_numbers = #tpu.dot_dimension_numbers<[1], [0], [0], [1], [0, 0, 1, 1], [], []>} : vector<256x4xbf16>, vector<4x4xbf16>, vector<256x4xf32> -> vector<256x4xf32>
    %67 = arith.addf %61, %66 : vector<256x4xf32>
    %68 = vector.extract_strided_slice %19 {offsets = [2, 0, 0], sizes = [16, 16, 4], strides = [1, 1, 1]} : vector<18x16x4xbf16> to vector<16x16x4xbf16>
    %69 = vector.shape_cast %68 : vector<16x16x4xbf16> to vector<256x4xbf16>
    %c2_71 = arith.constant 2 : index
    %c2_72 = arith.constant 2 : index
    %c0_73 = arith.constant 0 : index
    %c0_74 = arith.constant 0 : index
    %70 = vector.load %arg6[%c2_71, %c2_72, %c0_73, %c0_74] : memref<3x3x4x4xbf16, #tpu.memory_space<vmem>>, vector<1x1x4x4xbf16>
    %71 = vector.shape_cast %70 : vector<1x1x4x4xbf16> to vector<4x4xbf16>
    %cst_75 = arith.constant dense<0.000000e+00> : vector<256x4xf32>
    %72 = tpu.matmul %69, %71, %cst_75 {dimension_numbers = #tpu.dot_dimension_numbers<[1], [0], [0], [1], [0, 0, 1, 1], [], []>} : vector<256x4xbf16>, vector<4x4xbf16>, vector<256x4xf32> -> vector<256x4xf32>
    %73 = arith.addf %67, %72 : vector<256x4xf32>
    %cst_76 = arith.constant dense<0.000000e+00> : vector<4xf32>
    %74 = vector.multi_reduction <add>, %73, %cst_76 [0] : vector<256x4xf32> to vector<4xf32>
    %75 = vector.shape_cast %74 : vector<4xf32> to vector<1x4xf32>
    %76 = arith.mulf %73, %73 : vector<256x4xf32>
    %cst_77 = arith.constant dense<0.000000e+00> : vector<4xf32>
    %77 = vector.multi_reduction <add>, %76, %cst_77 [0] : vector<256x4xf32> to vector<4xf32>
    %78 = vector.shape_cast %77 : vector<4xf32> to vector<1x4xf32>
    %cst_78 = arith.constant 3.906250e-03 : f32
    %79 = vector.broadcast %cst_78 : f32 to vector<1x4xf32>
    %80 = arith.mulf %75, %79 : vector<1x4xf32>
    %cst_79 = arith.constant 2.560000e+02 : f32
    %81 = vector.broadcast %cst_79 : f32 to vector<1x4xf32>
    %82 = arith.mulf %81, %80 : vector<1x4xf32>
    %83 = arith.mulf %82, %80 : vector<1x4xf32>
    %84 = arith.subf %78, %83 : vector<1x4xf32>
    %cst_80 = arith.constant 0.00392156886 : f32
    %85 = vector.broadcast %cst_80 : f32 to vector<1x4xf32>
    %86 = arith.mulf %84, %85 : vector<1x4xf32>
    %cst_81 = arith.constant 0.000000e+00 : f32
    %87 = vector.broadcast %cst_81 : f32 to vector<1x4xf32>
    %88 = arith.maximumf %86, %87 : vector<1x4xf32>
    %89 = math.sqrt %88 : vector<1x4xf32>
    %cst_82 = arith.constant 9.99999997E-7 : f32
    %90 = vector.broadcast %cst_82 : f32 to vector<1x4xf32>
    %91 = arith.addf %89, %90 : vector<1x4xf32>
    %c0_83 = arith.constant 0 : index
    %c0_84 = arith.constant 0 : index
    %c0_85 = arith.constant 0 : index
    %92 = vector.load %arg3[%c0_83, %c0_84, %c0_85] : memref<1x1x4xf32, #tpu.memory_space<vmem>>, vector<1x1x4xf32>
    %93 = vector.shape_cast %92 : vector<1x1x4xf32> to vector<1x4xf32>
    %94 = arith.divf %93, %91 : vector<1x4xf32>
    %c0_86 = arith.constant 0 : index
    %c0_87 = arith.constant 0 : index
    %c0_88 = arith.constant 0 : index
    %95 = vector.load %arg2[%c0_86, %c0_87, %c0_88] : memref<1x1x4xf32, #tpu.memory_space<vmem>>, vector<1x1x4xf32>
    %96 = vector.shape_cast %95 : vector<1x1x4xf32> to vector<1x4xf32>
    %97 = arith.mulf %80, %94 : vector<1x4xf32>
    %98 = arith.subf %96, %97 : vector<1x4xf32>
    %99 = vector.broadcast %94 : vector<1x4xf32> to vector<256x4xf32>
    %100 = arith.mulf %73, %99 : vector<256x4xf32>
    %101 = vector.broadcast %98 : vector<1x4xf32> to vector<256x4xf32>
    %102 = arith.addf %100, %101 : vector<256x4xf32>
    %cst_89 = arith.constant 0.000000e+00 : f32
    %103 = vector.broadcast %cst_89 : f32 to vector<256x4xf32>
    %104 = arith.cmpf oge, %102, %103 : vector<256x4xf32>
    %cst_90 = arith.constant 0.00999999977 : f32
    %105 = vector.broadcast %cst_90 : f32 to vector<256x4xf32>
    %106 = arith.mulf %105, %102 : vector<256x4xf32>
    %107 = arith.select %104, %102, %106 : vector<256x4xi1>, vector<256x4xf32>
    %108 = vector.shape_cast %107 : vector<256x4xf32> to vector<16x16x4xf32>
    %109 = arith.truncf %108 : vector<16x16x4xf32> to vector<16x16x4xbf16>
    %c1_91 = arith.constant 1 : index
    %c1_92 = arith.constant 1 : index
    %c0_93 = arith.constant 0 : index
    %110 = vector.load %arg10[%c1_91, %c1_92, %c0_93] : memref<18x18x4xbf16, #tpu.memory_space<vmem>>, vector<16x16x4xbf16>
    tpu.vector_store %arg10[%c1_91, %c1_92, %c0_93], %109 {strides = array<i32>} : memref<18x18x4xbf16, #tpu.memory_space<vmem>>, vector<16x16x4xbf16>,
    %111 = vector.extract_strided_slice %109 {offsets = [1, 0, 0], sizes = [1, 16, 4], strides = [1, 1, 1]} : vector<16x16x4xbf16> to vector<1x16x4xbf16>
    %c0_94 = arith.constant 0 : index
    %c1_95 = arith.constant 1 : index
    %c0_96 = arith.constant 0 : index
    %112 = vector.load %arg10[%c0_94, %c1_95, %c0_96] : memref<18x18x4xbf16, #tpu.memory_space<vmem>>, vector<1x16x4xbf16>
    tpu.vector_store %arg10[%c0_94, %c1_95, %c0_96], %111 {strides = array<i32>} : memref<18x18x4xbf16, #tpu.memory_space<vmem>>, vector<1x16x4xbf16>,
    %113 = vector.extract_strided_slice %109 {offsets = [14, 0, 0], sizes = [1, 16, 4], strides = [1, 1, 1]} : vector<16x16x4xbf16> to vector<1x16x4xbf16>
    %c17_97 = arith.constant 17 : index
    %c1_98 = arith.constant 1 : index
    %c0_99 = arith.constant 0 : index
    %114 = vector.load %arg10[%c17_97, %c1_98, %c0_99] : memref<18x18x4xbf16, #tpu.memory_space<vmem>>, vector<1x16x4xbf16>
    tpu.vector_store %arg10[%c17_97, %c1_98, %c0_99], %113 {strides = array<i32>} : memref<18x18x4xbf16, #tpu.memory_space<vmem>>, vector<1x16x4xbf16>,
    %c0_100 = arith.constant 0 : index
    %c2_101 = arith.constant 2 : index
    %c0_102 = arith.constant 0 : index
    %115 = vector.load %arg10[%c0_100, %c2_101, %c0_102] : memref<18x18x4xbf16, #tpu.memory_space<vmem>>, vector<18x1x4xbf16>
    %c0_103 = arith.constant 0 : index
    %c0_104 = arith.constant 0 : index
    %c0_105 = arith.constant 0 : index
    %116 = vector.load %arg10[%c0_103, %c0_104, %c0_105] : memref<18x18x4xbf16, #tpu.memory_space<vmem>>, vector<18x1x4xbf16>
    tpu.vector_store %arg10[%c0_103, %c0_104, %c0_105], %115 {strides = array<i32>} : memref<18x18x4xbf16, #tpu.memory_space<vmem>>, vector<18x1x4xbf16>,
    %c0_106 = arith.constant 0 : index
    %c15_107 = arith.constant 15 : index
    %c0_108 = arith.constant 0 : index
    %117 = vector.load %arg10[%c0_106, %c15_107, %c0_108] : memref<18x18x4xbf16, #tpu.memory_space<vmem>>, vector<18x1x4xbf16>
    %c0_109 = arith.constant 0 : index
    %c17_110 = arith.constant 17 : index
    %c0_111 = arith.constant 0 : index
    %118 = vector.load %arg10[%c0_109, %c17_110, %c0_111] : memref<18x18x4xbf16, #tpu.memory_space<vmem>>, vector<18x1x4xbf16>
    tpu.vector_store %arg10[%c0_109, %c17_110, %c0_111], %117 {strides = array<i32>} : memref<18x18x4xbf16, #tpu.memory_space<vmem>>, vector<18x1x4xbf16>,
    %cst_112 = arith.constant 0.000000e+00 : f32
    %119 = vector.broadcast %cst_112 : f32 to vector<256x8xf32>
    %c0_113 = arith.constant 0 : index
    %c0_114 = arith.constant 0 : index
    %c0_115 = arith.constant 0 : index
    %120 = vector.load %arg10[%c0_113, %c0_114, %c0_115] : memref<18x18x4xbf16, #tpu.memory_space<vmem>>, vector<18x16x4xbf16>
    %c0_116 = arith.constant 0 : index
    %c1_117 = arith.constant 1 : index
    %c0_118 = arith.constant 0 : index
    %121 = vector.load %arg10[%c0_116, %c1_117, %c0_118] : memref<18x18x4xbf16, #tpu.memory_space<vmem>>, vector<18x16x4xbf16>
    %c0_119 = arith.constant 0 : index
    %c2_120 = arith.constant 2 : index
    %c0_121 = arith.constant 0 : index
    %122 = vector.load %arg10[%c0_119, %c2_120, %c0_121] : memref<18x18x4xbf16, #tpu.memory_space<vmem>>, vector<18x16x4xbf16>
    %123 = vector.extract_strided_slice %120 {offsets = [0, 0, 0], sizes = [16, 16, 4], strides = [1, 1, 1]} : vector<18x16x4xbf16> to vector<16x16x4xbf16>
    %124 = vector.shape_cast %123 : vector<16x16x4xbf16> to vector<256x4xbf16>
    %c0_122 = arith.constant 0 : index
    %c0_123 = arith.constant 0 : index
    %c0_124 = arith.constant 0 : index
    %c0_125 = arith.constant 0 : index
    %125 = vector.load %arg7[%c0_122, %c0_123, %c0_124, %c0_125] : memref<3x3x4x8xbf16, #tpu.memory_space<vmem>>, vector<1x1x4x8xbf16>
    %126 = vector.shape_cast %125 : vector<1x1x4x8xbf16> to vector<4x8xbf16>
    %cst_126 = arith.constant dense<0.000000e+00> : vector<256x8xf32>
    %127 = tpu.matmul %124, %126, %cst_126 {dimension_numbers = #tpu.dot_dimension_numbers<[1], [0], [0], [1], [0, 0, 1, 1], [], []>} : vector<256x4xbf16>, vector<4x8xbf16>, vector<256x8xf32> -> vector<256x8xf32>
    %128 = arith.addf %119, %127 : vector<256x8xf32>
    %129 = vector.extract_strided_slice %121 {offsets = [0, 0, 0], sizes = [16, 16, 4], strides = [1, 1, 1]} : vector<18x16x4xbf16> to vector<16x16x4xbf16>
    %130 = vector.shape_cast %129 : vector<16x16x4xbf16> to vector<256x4xbf16>
    %c0_127 = arith.constant 0 : index
    %c1_128 = arith.constant 1 : index
    %c0_129 = arith.constant 0 : index
    %c0_130 = arith.constant 0 : index
    %131 = vector.load %arg7[%c0_127, %c1_128, %c0_129, %c0_130] : memref<3x3x4x8xbf16, #tpu.memory_space<vmem>>, vector<1x1x4x8xbf16>
    %132 = vector.shape_cast %131 : vector<1x1x4x8xbf16> to vector<4x8xbf16>
    %cst_131 = arith.constant dense<0.000000e+00> : vector<256x8xf32>
    %133 = tpu.matmul %130, %132, %cst_131 {dimension_numbers = #tpu.dot_dimension_numbers<[1], [0], [0], [1], [0, 0, 1, 1], [], []>} : vector<256x4xbf16>, vector<4x8xbf16>, vector<256x8xf32> -> vector<256x8xf32>
    %134 = arith.addf %128, %133 : vector<256x8xf32>
    %135 = vector.extract_strided_slice %122 {offsets = [0, 0, 0], sizes = [16, 16, 4], strides = [1, 1, 1]} : vector<18x16x4xbf16> to vector<16x16x4xbf16>
    %136 = vector.shape_cast %135 : vector<16x16x4xbf16> to vector<256x4xbf16>
    %c0_132 = arith.constant 0 : index
    %c2_133 = arith.constant 2 : index
    %c0_134 = arith.constant 0 : index
    %c0_135 = arith.constant 0 : index
    %137 = vector.load %arg7[%c0_132, %c2_133, %c0_134, %c0_135] : memref<3x3x4x8xbf16, #tpu.memory_space<vmem>>, vector<1x1x4x8xbf16>
    %138 = vector.shape_cast %137 : vector<1x1x4x8xbf16> to vector<4x8xbf16>
    %cst_136 = arith.constant dense<0.000000e+00> : vector<256x8xf32>
    %139 = tpu.matmul %136, %138, %cst_136 {dimension_numbers = #tpu.dot_dimension_numbers<[1], [0], [0], [1], [0, 0, 1, 1], [], []>} : vector<256x4xbf16>, vector<4x8xbf16>, vector<256x8xf32> -> vector<256x8xf32>
    %140 = arith.addf %134, %139 : vector<256x8xf32>
    %141 = vector.extract_strided_slice %120 {offsets = [1, 0, 0], sizes = [16, 16, 4], strides = [1, 1, 1]} : vector<18x16x4xbf16> to vector<16x16x4xbf16>
    %142 = vector.shape_cast %141 : vector<16x16x4xbf16> to vector<256x4xbf16>
    %c1_137 = arith.constant 1 : index
    %c0_138 = arith.constant 0 : index
    %c0_139 = arith.constant 0 : index
    %c0_140 = arith.constant 0 : index
    %143 = vector.load %arg7[%c1_137, %c0_138, %c0_139, %c0_140] : memref<3x3x4x8xbf16, #tpu.memory_space<vmem>>, vector<1x1x4x8xbf16>
    %144 = vector.shape_cast %143 : vector<1x1x4x8xbf16> to vector<4x8xbf16>
    %cst_141 = arith.constant dense<0.000000e+00> : vector<256x8xf32>
    %145 = tpu.matmul %142, %144, %cst_141 {dimension_numbers = #tpu.dot_dimension_numbers<[1], [0], [0], [1], [0, 0, 1, 1], [], []>} : vector<256x4xbf16>, vector<4x8xbf16>, vector<256x8xf32> -> vector<256x8xf32>
    %146 = arith.addf %140, %145 : vector<256x8xf32>
    %147 = vector.extract_strided_slice %121 {offsets = [1, 0, 0], sizes = [16, 16, 4], strides = [1, 1, 1]} : vector<18x16x4xbf16> to vector<16x16x4xbf16>
    %148 = vector.shape_cast %147 : vector<16x16x4xbf16> to vector<256x4xbf16>
    %c1_142 = arith.constant 1 : index
    %c1_143 = arith.constant 1 : index
    %c0_144 = arith.constant 0 : index
    %c0_145 = arith.constant 0 : index
    %149 = vector.load %arg7[%c1_142, %c1_143, %c0_144, %c0_145] : memref<3x3x4x8xbf16, #tpu.memory_space<vmem>>, vector<1x1x4x8xbf16>
    %150 = vector.shape_cast %149 : vector<1x1x4x8xbf16> to vector<4x8xbf16>
    %cst_146 = arith.constant dense<0.000000e+00> : vector<256x8xf32>
    %151 = tpu.matmul %148, %150, %cst_146 {dimension_numbers = #tpu.dot_dimension_numbers<[1], [0], [0], [1], [0, 0, 1, 1], [], []>} : vector<256x4xbf16>, vector<4x8xbf16>, vector<256x8xf32> -> vector<256x8xf32>
    %152 = arith.addf %146, %151 : vector<256x8xf32>
    %153 = vector.extract_strided_slice %122 {offsets = [1, 0, 0], sizes = [16, 16, 4], strides = [1, 1, 1]} : vector<18x16x4xbf16> to vector<16x16x4xbf16>
    %154 = vector.shape_cast %153 : vector<16x16x4xbf16> to vector<256x4xbf16>
    %c1_147 = arith.constant 1 : index
    %c2_148 = arith.constant 2 : index
    %c0_149 = arith.constant 0 : index
    %c0_150 = arith.constant 0 : index
    %155 = vector.load %arg7[%c1_147, %c2_148, %c0_149, %c0_150] : memref<3x3x4x8xbf16, #tpu.memory_space<vmem>>, vector<1x1x4x8xbf16>
    %156 = vector.shape_cast %155 : vector<1x1x4x8xbf16> to vector<4x8xbf16>
    %cst_151 = arith.constant dense<0.000000e+00> : vector<256x8xf32>
    %157 = tpu.matmul %154, %156, %cst_151 {dimension_numbers = #tpu.dot_dimension_numbers<[1], [0], [0], [1], [0, 0, 1, 1], [], []>} : vector<256x4xbf16>, vector<4x8xbf16>, vector<256x8xf32> -> vector<256x8xf32>
    %158 = arith.addf %152, %157 : vector<256x8xf32>
    %159 = vector.extract_strided_slice %120 {offsets = [2, 0, 0], sizes = [16, 16, 4], strides = [1, 1, 1]} : vector<18x16x4xbf16> to vector<16x16x4xbf16>
    %160 = vector.shape_cast %159 : vector<16x16x4xbf16> to vector<256x4xbf16>
    %c2_152 = arith.constant 2 : index
    %c0_153 = arith.constant 0 : index
    %c0_154 = arith.constant 0 : index
    %c0_155 = arith.constant 0 : index
    %161 = vector.load %arg7[%c2_152, %c0_153, %c0_154, %c0_155] : memref<3x3x4x8xbf16, #tpu.memory_space<vmem>>, vector<1x1x4x8xbf16>
    %162 = vector.shape_cast %161 : vector<1x1x4x8xbf16> to vector<4x8xbf16>
    %cst_156 = arith.constant dense<0.000000e+00> : vector<256x8xf32>
    %163 = tpu.matmul %160, %162, %cst_156 {dimension_numbers = #tpu.dot_dimension_numbers<[1], [0], [0], [1], [0, 0, 1, 1], [], []>} : vector<256x4xbf16>, vector<4x8xbf16>, vector<256x8xf32> -> vector<256x8xf32>
    %164 = arith.addf %158, %163 : vector<256x8xf32>
    %165 = vector.extract_strided_slice %121 {offsets = [2, 0, 0], sizes = [16, 16, 4], strides = [1, 1, 1]} : vector<18x16x4xbf16> to vector<16x16x4xbf16>
    %166 = vector.shape_cast %165 : vector<16x16x4xbf16> to vector<256x4xbf16>
    %c2_157 = arith.constant 2 : index
    %c1_158 = arith.constant 1 : index
    %c0_159 = arith.constant 0 : index
    %c0_160 = arith.constant 0 : index
    %167 = vector.load %arg7[%c2_157, %c1_158, %c0_159, %c0_160] : memref<3x3x4x8xbf16, #tpu.memory_space<vmem>>, vector<1x1x4x8xbf16>
    %168 = vector.shape_cast %167 : vector<1x1x4x8xbf16> to vector<4x8xbf16>
    %cst_161 = arith.constant dense<0.000000e+00> : vector<256x8xf32>
    %169 = tpu.matmul %166, %168, %cst_161 {dimension_numbers = #tpu.dot_dimension_numbers<[1], [0], [0], [1], [0, 0, 1, 1], [], []>} : vector<256x4xbf16>, vector<4x8xbf16>, vector<256x8xf32> -> vector<256x8xf32>
    %170 = arith.addf %164, %169 : vector<256x8xf32>
    %171 = vector.extract_strided_slice %122 {offsets = [2, 0, 0], sizes = [16, 16, 4], strides = [1, 1, 1]} : vector<18x16x4xbf16> to vector<16x16x4xbf16>
    %172 = vector.shape_cast %171 : vector<16x16x4xbf16> to vector<256x4xbf16>
    %c2_162 = arith.constant 2 : index
    %c2_163 = arith.constant 2 : index
    %c0_164 = arith.constant 0 : index
    %c0_165 = arith.constant 0 : index
    %173 = vector.load %arg7[%c2_162, %c2_163, %c0_164, %c0_165] : memref<3x3x4x8xbf16, #tpu.memory_space<vmem>>, vector<1x1x4x8xbf16>
    %174 = vector.shape_cast %173 : vector<1x1x4x8xbf16> to vector<4x8xbf16>
    %cst_166 = arith.constant dense<0.000000e+00> : vector<256x8xf32>
    %175 = tpu.matmul %172, %174, %cst_166 {dimension_numbers = #tpu.dot_dimension_numbers<[1], [0], [0], [1], [0, 0, 1, 1], [], []>} : vector<256x4xbf16>, vector<4x8xbf16>, vector<256x8xf32> -> vector<256x8xf32>
    %176 = arith.addf %170, %175 : vector<256x8xf32>
    %cst_167 = arith.constant dense<0.000000e+00> : vector<8xf32>
    %177 = vector.multi_reduction <add>, %176, %cst_167 [0] : vector<256x8xf32> to vector<8xf32>
    %178 = vector.shape_cast %177 : vector<8xf32> to vector<1x8xf32>
    %179 = arith.mulf %176, %176 : vector<256x8xf32>
    %cst_168 = arith.constant dense<0.000000e+00> : vector<8xf32>
    %180 = vector.multi_reduction <add>, %179, %cst_168 [0] : vector<256x8xf32> to vector<8xf32>
    %181 = vector.shape_cast %180 : vector<8xf32> to vector<1x8xf32>
    %cst_169 = arith.constant 3.906250e-03 : f32
    %182 = vector.broadcast %cst_169 : f32 to vector<1x8xf32>
    %183 = arith.mulf %178, %182 : vector<1x8xf32>
    %cst_170 = arith.constant 2.560000e+02 : f32
    %184 = vector.broadcast %cst_170 : f32 to vector<1x8xf32>
    %185 = arith.mulf %184, %183 : vector<1x8xf32>
    %186 = arith.mulf %185, %183 : vector<1x8xf32>
    %187 = arith.subf %181, %186 : vector<1x8xf32>
    %cst_171 = arith.constant 0.00392156886 : f32
    %188 = vector.broadcast %cst_171 : f32 to vector<1x8xf32>
    %189 = arith.mulf %187, %188 : vector<1x8xf32>
    %cst_172 = arith.constant 0.000000e+00 : f32
    %190 = vector.broadcast %cst_172 : f32 to vector<1x8xf32>
    %191 = arith.maximumf %189, %190 : vector<1x8xf32>
    %192 = math.sqrt %191 : vector<1x8xf32>
    %cst_173 = arith.constant 9.99999997E-7 : f32
    %193 = vector.broadcast %cst_173 : f32 to vector<1x8xf32>
    %194 = arith.addf %192, %193 : vector<1x8xf32>
    %c0_174 = arith.constant 0 : index
    %c0_175 = arith.constant 0 : index
    %c0_176 = arith.constant 0 : index
    %195 = vector.load %arg5[%c0_174, %c0_175, %c0_176] : memref<1x1x8xf32, #tpu.memory_space<vmem>>, vector<1x1x8xf32>
    %196 = vector.shape_cast %195 : vector<1x1x8xf32> to vector<1x8xf32>
    %197 = arith.divf %196, %194 : vector<1x8xf32>
    %c0_177 = arith.constant 0 : index
    %c0_178 = arith.constant 0 : index
    %c0_179 = arith.constant 0 : index
    %198 = vector.load %arg4[%c0_177, %c0_178, %c0_179] : memref<1x1x8xf32, #tpu.memory_space<vmem>>, vector<1x1x8xf32>
    %199 = vector.shape_cast %198 : vector<1x1x8xf32> to vector<1x8xf32>
    %200 = arith.mulf %183, %197 : vector<1x8xf32>
    %201 = arith.subf %199, %200 : vector<1x8xf32>
    %c0_180 = arith.constant 0 : index
    %c0_181 = arith.constant 0 : index
    %c0_182 = arith.constant 0 : index
    %c0_183 = arith.constant 0 : index
    %202 = vector.load %arg1[%c0_180, %c0_181, %c0_182, %c0_183] : memref<1x16x16x4xbf16, #tpu.memory_space<vmem>>, vector<1x16x16x4xbf16>
    %203 = vector.shape_cast %202 : vector<1x16x16x4xbf16> to vector<16x16x4xbf16>
    %204 = vector.shape_cast %203 : vector<16x16x4xbf16> to vector<256x4xbf16>
    %c0_184 = arith.constant 0 : index
    %c0_185 = arith.constant 0 : index
    %205 = vector.load %arg8[%c0_184, %c0_185] : memref<4x8xbf16, #tpu.memory_space<vmem>>, vector<4x8xbf16>
    %cst_186 = arith.constant dense<0.000000e+00> : vector<256x8xf32>
    %206 = tpu.matmul %204, %205, %cst_186 {dimension_numbers = #tpu.dot_dimension_numbers<[1], [0], [0], [1], [0, 0, 1, 1], [], []>} : vector<256x4xbf16>, vector<4x8xbf16>, vector<256x8xf32> -> vector<256x8xf32>
    %207 = vector.broadcast %197 : vector<1x8xf32> to vector<256x8xf32>
    %208 = arith.mulf %176, %207 : vector<256x8xf32>
    %209 = vector.broadcast %201 : vector<1x8xf32> to vector<256x8xf32>
    %210 = arith.addf %208, %209 : vector<256x8xf32>
    %211 = arith.addf %210, %206 : vector<256x8xf32>
    %212 = vector.shape_cast %211 : vector<256x8xf32> to vector<1x16x16x8xf32>
    %c0_187 = arith.constant 0 : index
    %c0_188 = arith.constant 0 : index
    %c0_189 = arith.constant 0 : index
    %c0_190 = arith.constant 0 : index
    %213 = vector.load %arg9[%c0_187, %c0_188, %c0_189, %c0_190] : memref<1x16x16x8xf32, #tpu.memory_space<vmem>>, vector<1x16x16x8xf32>
    tpu.vector_store %arg9[%c0_187, %c0_188, %c0_189, %c0_190], %212 {strides = array<i32>} : memref<1x16x16x8xf32, #tpu.memory_space<vmem>>, vector<1x16x16x8xf32>,
    return
  }
  func.func @transform_0(%arg0: i32) -> (i32, i32, i32, i32) {
    %c0_i32 = arith.constant 0 : i32
    %c0_i32_0 = arith.constant 0 : i32
    %c0_i32_1 = arith.constant 0 : i32
    %c0_i32_2 = arith.constant 0 : i32
    return %arg0, %c0_i32, %c0_i32_0, %c0_i32_1 : i32, i32, i32, i32
  }
  func.func @transform_1(%arg0: i32) -> (i32, i32, i32) {
    %c0_i32 = arith.constant 0 : i32
    %c0_i32_0 = arith.constant 0 : i32
    %c0_i32_1 = arith.constant 0 : i32
    return %arg0, %c0_i32, %c0_i32_0 : i32, i32, i32
  }
  func.func @transform_2(%arg0: i32) -> (i32, i32, i32) {
    %c0_i32 = arith.constant 0 : i32
    %c0_i32_0 = arith.constant 0 : i32
    %c0_i32_1 = arith.constant 0 : i32
    return %arg0, %c0_i32, %c0_i32_0 : i32, i32, i32
  }
  func.func @transform_3(%arg0: i32) -> (i32, i32, i32) {
    %c0_i32 = arith.constant 0 : i32
    %c0_i32_0 = arith.constant 0 : i32
    %c0_i32_1 = arith.constant 0 : i32
    return %arg0, %c0_i32, %c0_i32_0 : i32, i32, i32
  }
  func.func @transform_4(%arg0: i32) -> (i32, i32, i32) {
    %c0_i32 = arith.constant 0 : i32
    %c0_i32_0 = arith.constant 0 : i32
    %c0_i32_1 = arith.constant 0 : i32
    return %arg0, %c0_i32, %c0_i32_0 : i32, i32, i32
  }
  func.func @transform_5(%arg0: i32) -> (i32, i32, i32, i32) {
    %c0_i32 = arith.constant 0 : i32
    %c0_i32_0 = arith.constant 0 : i32
    %c0_i32_1 = arith.constant 0 : i32
    %c0_i32_2 = arith.constant 0 : i32
    %c0_i32_3 = arith.constant 0 : i32
    return %c0_i32, %c0_i32_0, %c0_i32_1, %c0_i32_2 : i32, i32, i32, i32
  }
  func.func @transform_6(%arg0: i32) -> (i32, i32, i32, i32) {
    %c0_i32 = arith.constant 0 : i32
    %c0_i32_0 = arith.constant 0 : i32
    %c0_i32_1 = arith.constant 0 : i32
    %c0_i32_2 = arith.constant 0 : i32
    %c0_i32_3 = arith.constant 0 : i32
    return %c0_i32, %c0_i32_0, %c0_i32_1, %c0_i32_2 : i32, i32, i32, i32
  }
  func.func @transform_7(%arg0: i32) -> (i32, i32) {
    %c0_i32 = arith.constant 0 : i32
    %c0_i32_0 = arith.constant 0 : i32
    %c0_i32_1 = arith.constant 0 : i32
    return %c0_i32, %c0_i32_0 : i32, i32
  }
  func.func @transform_8(%arg0: i32) -> (i32, i32, i32, i32) {
    %c0_i32 = arith.constant 0 : i32
    %c0_i32_0 = arith.constant 0 : i32
    %c0_i32_1 = arith.constant 0 : i32
    %c0_i32_2 = arith.constant 0 : i32
    return %arg0, %c0_i32, %c0_i32_0, %c0_i32_1 : i32, i32, i32, i32
  }
}

</mosaic_0001>

<bundles_post_ra>
// kernel: upblock_forward.2
= control target key start
LH: loop header
LB: loop body
LE: loop exit
PB: predicated region body
PF: predicated region fallthrough
CT: control target
= control target key end

     0   :  { %s647_s6 = smov 0   ;;  %s980_s0 = inlined_call_operand.vmem [shape: f32[2,8,8,4], index: 0, kind: input, shape index: {}]   ;;  %s981_s1 = inlined_call_operand.vmem [shape: bf16[2,8,2,8,8], index: 1, kind: output, shape index: {}]  }
   0x1 LB: > { %s590_s7 = sadd.s32 4294967295, %s634_s6   ;;  %p594_p0 = scmp.ge.s32.totalorder %s634_s6, 1  ;;  %s634_s6 = sphi %s647_s6, %s11_s6  }
   0x2   : > { %p87_p1 = scmp.lt.s32.totalorder %s634_s6, 3 }
   0x4   : > { %p88_p2 = pnand %p594_p0, %p87_p1 }
   0x5   : > { %p107_p3 = scmp.lt.s32.totalorder (!%p88_p2), %s590_s7, 1  ;;  %s636_s12 = smov (!%p88_p2), 4  }
   0x6   : > { %91 = sbr.rel (%p88_p2) target bundleno = 196 (0xc4), region = 24 }
   0xb   : > { %s983_s7 = smov (!%p107_p3, %s590_s7), 1  ;;  %vm126_vm0 = vcmask 31744   ;;  %vm148_vm1 = vcmask 24576   ;;  %vm412_vm2 = vcmask 27648   ;;  %vm461_vm3 = vcmask 60448  }
   0xc   : > { %s617_s8 = sshll.u32 %s983_s7, 6 }
   0xd   : > { %s663_s11 = scalar_lea.vmem %s980_s0, %s617_s8  ;;  %s866_s15 = scalar_lea.vmem %s981_s1, %s617_s8 }
   0xe   : > { %v117_v0 = vld [vmem:[%s663_s11] sm:$0xff]  ;;  %v118_v1 = vld [vmem:[%s663_s11 + $0x8] sm:$0xff]  ;;  %v119_v2 = vld [vmem:[%s663_s11 + $0x10] sm:$0xff] }
   0xf   : > { %127 = vst.msk [vmem:[#allocation2 + $0x11] sm:$0xff] %vm126_vm0, %v117_v0  ;;  %v120_v3 = vld [vmem:[%s663_s11 + $0x18] sm:$0xff]  ;;  %v122_v4 = vld [vmem:[%s663_s11 + $0x28] sm:$0xff]  ;;  %v123_v5 = vld [vmem:[%s663_s11 + $0x30] sm:$0xff] }
  0x10   : > { %135 = vst.msk [vmem:[#allocation2 + $0x1] sm:$0xff] %vm126_vm0, %v117_v0  ;;  %v677_v6 = vld [vmem:[%s663_s11 + $0x38] sm:$0xff]  ;;  %v121_v42 = vld [vmem:[%s663_s11 + $0x20] sm:$0xff] }
  0x11   : > { %128 = vst.msk [vmem:[#allocation2 + $0x21] sm:$0xff] %vm126_vm0, %v118_v1 }
  0x12   : > { %129 = vst.msk [vmem:[#allocation2 + $0x31] sm:$0xff] %vm126_vm0, %v119_v2 }
  0x13   : > { %130 = vst.msk [vmem:[#allocation2 + $0x41] sm:$0xff] %vm126_vm0, %v120_v3 }
  0x14   : > { %132 = vst.msk [vmem:[#allocation2 + $0x61] sm:$0xff] %vm126_vm0, %v122_v4 }
  0x15   : > { %133 = vst.msk [vmem:[#allocation2 + $0x71] sm:$0xff] %vm126_vm0, %v123_v5 }
  0x16   : > { %v160_v7 = vld [vmem:[#allocation2 + $0x18] sm:$0x1]  ;;  %v139_v9 = vld [vmem:[#allocation2 + $0x11] sm:$0x1]  ;;  %134 = vst.msk [vmem:[#allocation2 + $0x81] sm:$0xff] %vm126_vm0, %v677_v6 }
  0x17   : > { %v179_v8 = vld [vmem:[#allocation2 + $0x11] sm:$0xff]  ;;  %v138_v10 = vld [vmem:[#allocation2 + $0x1] sm:$0x1]  ;;  %v159_v11 = vld [vmem:[#allocation2 + $0x8] sm:$0x1]  ;;  %137 = vst.msk [vmem:[#allocation2 + $0x91] sm:$0xff] %vm126_vm0, %v677_v6 }
  0x18   : > { %170 = vst.msk [vmem:[#allocation2 + $0x19] sm:$0x1] %vm148_vm1, %v160_v7  ;;  %v187_v12 = vld [vmem:[#allocation2 + $0x1] sm:$0xff]  ;;  %v686_v14 = vmul.f32 0.5625, %v179_v8  ;;  %v261_v26 = vmul.f32 0.1875, %v179_v8 }
  0x19   : > { %149 = vst.msk [vmem:[#allocation2] sm:$0x1] %vm148_vm1, %v138_v10  ;;  %v161_v13 = vld [vmem:[#allocation2 + $0x28] sm:$0x1]  ;;  %v260_v15 = vmul.f32 0.1875, %v187_v12  ;;  %v181_v20 = vld [vmem:[#allocation2 + $0x31] sm:$0xff] }
  0x1a   : > { %169 = vst.msk [vmem:[#allocation2 + $0x9] sm:$0x1] %vm148_vm1, %v159_v11  ;;  %v141_v16 = vld [vmem:[#allocation2 + $0x31] sm:$0x1]  ;;  %v162_v17 = vld [vmem:[#allocation2 + $0x38] sm:$0x1] }
  0x1b   : > { %150 = vst.msk [vmem:[#allocation2 + $0x10] sm:$0x1] %vm148_vm1, %v139_v9  ;;  %v189_v18 = vld [vmem:[#allocation2 + $0x21] sm:$0xff]  ;;  %v692_v22 = vadd.f32 %v260_v15, %v686_v14  ;;  %v700_v29 = vmul.f32 0.5625, %v181_v20  ;;  %v263_v41 = vmul.f32 0.1875, %v181_v20 }
  0x1c   : > { %152 = vst.msk [vmem:[#allocation2 + $0x30] sm:$0x1] %vm148_vm1, %v141_v16  ;;  %v140_v19 = vld [vmem:[#allocation2 + $0x21] sm:$0x1]  ;;  %v695_v23 = vmul.f32 0.5625, %v189_v18  ;;  %v702_v30 = vmul.f32 0.1875, %v189_v18 }
  0x1d   : > { %171 = vst.msk [vmem:[#allocation2 + $0x29] sm:$0x1] %vm148_vm1, %v161_v13  ;;  %v142_v21 = vld [vmem:[#allocation2 + $0x41] sm:$0x1]  ;;  %v163_v24 = vld [vmem:[#allocation2 + $0x48] sm:$0x1] }
  0x1e   : > { %172 = vst.msk [vmem:[#allocation2 + $0x39] sm:$0x1] %vm148_vm1, %v162_v17  ;;  %v145_v27 = vld [vmem:[#allocation2 + $0x71] sm:$0x1]  ;;  %v705_v31 = vld [vmem:[#allocation2 + $0x41] sm:$0xff]  ;;  %v714_v39 = vadd.f32 %v261_v26, %v695_v23  ;;  %v723_v45 = vadd.f32 %v702_v30, %v700_v29 }
  0x1f   : > { %v212_v25 = vld [vmem:[#allocation2 + $0x12] sm:$0xff]  ;;  %151 = vst.msk [vmem:[#allocation2 + $0x20] sm:$0x1] %vm148_vm1, %v140_v19  ;;  %v165_v33 = vld [vmem:[#allocation2 + $0x68] sm:$0x1]  ;;  %v717_v40 = vmul.f32 0.5625, %v705_v31 }
  0x20   : > { %v698_v28 = vmul.f32 0.1875, %v212_v25  ;;  %153 = vst.msk [vmem:[#allocation2 + $0x40] sm:$0x1] %vm148_vm1, %v142_v21  ;;  %v185_v34 = vld [vmem:[#allocation2 + $0x71] sm:$0xff]  ;;  %v711_v38 = vld [vmem:[#allocation2 + $0x61] sm:$0xff]  ;;  %v325_v46 = vmul.f32 0.0625, %v212_v25 }
  0x21   : > { %v228_v32 = vld [vmem:[#allocation2 + $0x2] sm:$0xff]  ;;  %173 = vst.msk [vmem:[#allocation2 + $0x49] sm:$0x1] %vm148_vm1, %v163_v24  ;;  %v166_v37 = vld [vmem:[#allocation2 + $0x78] sm:$0x1]  ;;  %v728_v50 = vmul.f32 0.5625, %v185_v34  ;;  %v271_v61 = vadd.f32 %v263_v41, %v717_v40 }
  0x22   : > { %v316_v35 = vadd.f32 %v698_v28, %v692_v22  ;;  %v324_v36 = vmul.f32 0.0625, %v228_v32  ;;  %156 = vst.msk [vmem:[#allocation2 + $0x70] sm:$0x1] %vm148_vm1, %v145_v27  ;;  %v146_v47 = vld [vmem:[#allocation2 + $0x81] sm:$0x1]  ;;  %v731_v51 = vmul.f32 0.1875, %v711_v38 }
  0x23   : > { %175 = vst.msk [vmem:[#allocation2 + $0x69] sm:$0x1] %vm148_vm1, %v165_v33  ;;  %v167_v55 = vld [vmem:[#allocation2 + $0x88] sm:$0x1]  ;;  %v144_v3 = vld [vmem:[#allocation2 + $0x61] sm:$0x1]  ;;  %v802_v33 = vadd.f32 %v263_v41, %v695_v23 }
  0x24   : > { %v332_v43 = vadd.f32 %v324_v36, %v316_v35  ;;  %v230_v44 = vld [vmem:[#allocation2 + $0x22] sm:$0xff]  ;;  %176 = vst.msk [vmem:[#allocation2 + $0x79] sm:$0x1] %vm148_vm1, %v166_v37  ;;  %v759_v1 = vadd.f32 %v731_v51, %v728_v50  ;;  %v764_v4 = vld [vmem:[#allocation2 + $0x10] sm:$0xff]  ;;  %v775_v9 = vmul.f32 0.1875, %v185_v34  ;;  %v264_v27 = vmul.f32 0.1875, %v705_v31 }
  0x25   : > { %v214_v48 = vld [vmem:[#allocation2 + $0x32] sm:$0xff]  ;;  %v726_v49 = vmul.f32 0.1875, %v230_v44  ;;  %157 = vst.msk [vmem:[#allocation2 + $0x80] sm:$0x1] %vm148_vm1, %v146_v47  ;;  %v736_v54 = vmul.f32 0.0625, %v230_v44  ;;  %v738_v56 = vld [vmem:[#allocation2 + $0x81] sm:$0xff] }
  0x26   : > { %v421_v52 = vpack.c.bf16 %v332_v43, %v332_v43  ;;  %v734_v53 = vmul.f32 0.1875, %v214_v48  ;;  %177 = vst.msk [vmem:[#allocation2 + $0x89] sm:$0x1] %vm148_vm1, %v167_v55  ;;  %v327_v0 = vmul.f32 0.0625, %v214_v48  ;;  %v762_v2 = vmul.f32 0.5625, %v738_v56  ;;  %v220_v19 = vld [vmem:[#allocation2] sm:$0xff] }
  0x27   : > { %v317_v57 = vadd.f32 %v726_v49, %v714_v39  ;;  %v744_v58 = vld [vmem:[#allocation2 + $0x40] sm:$0xff]  ;;  %131 = vst.msk [vmem:[#allocation2 + $0x51] sm:$0xff] %vm126_vm0, %v121_v42  ;;  %v276_v17 = vmul.f32 0.1875, %v764_v4  ;;  %v168_v18 = vld [vmem:[#allocation2 + $0x98] sm:$0x1]  ;;  %v785_v20 = vld [vmem:[#allocation2 + $0x30] sm:$0xff]  ;;  %v350_v43 = vadd.f32 %v264_v27, %v700_v29  ;;  %v381_v47 = vadd.f32 %v802_v33, %v726_v49 }
  0x28   : > { %437 = vrot.lane.b32.xlu0 %v421_v52, %s636_s12  ;;  %v318_v59 = vadd.f32 %v734_v53, %v723_v45  ;;  %v750_v60 = vld [vmem:[#allocation2 + $0x42] sm:$0xff]  ;;  %v754_v62 = vmul.f32 0.1875, %v744_v58  ;;  %155 = vst.msk [vmem:[#allocation2 + $0x60] sm:$0x1] %vm148_vm1, %v144_v3  ;;  %v794_v26 = vadd.f32 %v775_v9, %v762_v2  ;;  %v292_v42 = vmul.f32 0.0625, %v220_v19 }
  0x29   : > { %v333_v63 = vadd.f32 %v325_v46, %v317_v57  ;;  %v771_v7 = vmul.f32 0.1875, %v750_v60  ;;  %178 = vst.msk [vmem:[#allocation2 + $0x99] sm:$0x1] %vm148_vm1, %v168_v18  ;;  %v278_v31 = vmul.f32 0.1875, %v785_v20  ;;  %v284_v44 = vadd.f32 %v276_v17, %v692_v22  ;;  %v821_v22 = vld [vmem:[#allocation2 + $0x20] sm:$0xff] }
  0x2a   : > { %v334_v5 = vadd.f32 %v736_v54, %v318_v59  ;;  %v768_v6 = vadd.f32 %v754_v62, %v271_v61  ;;  %v773_v8 = vld [vmem:[#allocation2 + $0x62] sm:$0xff]  ;;  %v257_v29 = vmul.f32 0.5625, %v711_v38  ;;  %v348_v3 = vadd.f32 %v702_v30, %v686_v14 }
  0x2b   : > { %v422_v10 = vpack.c.bf16 %v333_v63, %v333_v63  ;;  %v218_v11 = vld [vmem:[#allocation2 + $0x72] sm:$0xff]  ;;  %v319_v13 = vadd.f32 %v771_v7, %v271_v61  ;;  %v782_v16 = vmul.f32 0.0625, %v773_v8  ;;  %v817_v52 = vadd.f32 %v350_v43, %v278_v31 }
  0x2c   : > { %v423_v12 = vpack.c.bf16 %v334_v5, %v334_v5  ;;  %v779_v15 = vmul.f32 0.1875, %v218_v11  ;;  %v813_v46 = vmul.f32 0.0625, %v218_v11  ;;  %v286_v59 = vadd.f32 %v278_v31, %v723_v45 }
  0x2d   : > { %v335_v21 = vadd.f32 %v327_v0, %v319_v13  ;;  %v790_v25 = vld [vmem:[#allocation2 + $0x82] sm:$0xff]  ;;  %v300_v61 = vadd.f32 %v292_v42, %v284_v44  ;;  %v831_v5 = vmul.f32 0.0625, %v821_v22  ;;  %v836_v11 = vmul.f32 0.0625, %v744_v58 }
  0x2e   : > { %441 = vrot.lane.b32.xlu1 %v423_v12, %s636_s12  ;;  %v322_v24 = vadd.f32 %v779_v15, %v759_v1  ;;  %v799_v32 = vmul.f32 0.1875, %v790_v25  ;;  %v143_v34 = vld [vmem:[#allocation2 + $0x51] sm:$0x1]  ;;  %v164_v35 = vld [vmem:[#allocation2 + $0x58] sm:$0x1]  ;;  %v841_v30 = vadd.f32 %v348_v3, %v276_v17  ;;  %v328_v18 = vmul.f32 0.0625, %v750_v60 }
  0x2f   : > { %154 = vst.msk [vmem:[#allocation2 + $0x50] sm:$0x1] %vm148_vm1, %v143_v34  ;;  %v183_v37 = vld [vmem:[#allocation2 + $0x51] sm:$0xff]  ;;  %v424_v23 = vpack.c.bf16 %v335_v21, %v335_v21  ;;  %v313_v58 = vmul.f32 0.1875, %v773_v8  ;;  %v382_v34 = vadd.f32 %v350_v43, %v734_v53  ;;  %v302_v17 = vadd.f32 %v831_v5, %v286_v59 }
  0x30   : > { %439 = vrot.lane.b32.xlu0 %v422_v10, %s636_s12  ;;  %v338_v36 = vadd.f32 %v782_v16, %v322_v24  ;;  %174 = vst.msk [vmem:[#allocation2 + $0x59] sm:$0x1] %vm148_vm1, %v164_v35  ;;  %v323_v41 = vadd.f32 %v799_v32, %v794_v26  ;;  %v256_v48 = vmul.f32 0.5625, %v183_v37  ;;  %v265_v57 = vmul.f32 0.1875, %v183_v37  ;;  %v203_v21 = vld [vmem:[#allocation2 + $0x91] sm:$0xff] }
  0x31   : > { %v397_v10 = vadd.f32 %v381_v47, %v327_v0  ;;  %v347_v60 = vmul.f32 0.1875, %v203_v21  ;;  %v404_v44 = vpack.c.bf16 %v300_v61, %v300_v61  ;;  %v859_v53 = vadd.f32 %v775_v9, %v257_v29 }
  0x32   : > { %v427_v55 = vpack.c.bf16 %v338_v36, %v338_v36  ;;  %v339_v63 = vadd.f32 %v813_v46, %v323_v41  ;;  %v828_v49 = vadd.f32 %v265_v57, %v717_v40  ;;  %v272_v38 = vadd.f32 %v264_v27, %v256_v48 }
  0x33   : > { %v352_v14 = vadd.f32 %v731_v51, %v256_v48  ;;  %v848_v19 = vadd.f32 %v265_v57, %v257_v29  ;;  %v406_v43 = vpack.c.bf16 %v302_v17, %v302_v17  ;;  %v251_v57 = vld [vmem:[#allocation2 + $0x92] sm:$0xff]  ;;  %v385_v29 = vadd.f32 %v859_v53, %v313_v58  ;;  %413 = vst.msk [vmem:[%s866_s15] sm:$0xf] %vm412_vm2, %v404_v44 }
  0x34   : > { %v845_v40 = vadd.f32 %v828_v49, %v754_v62  ;;  %v428_v24 = vpack.c.bf16 %v339_v63, %v339_v63  ;;  %v488_v62 = vpack.c.bf16 %v397_v10, %v397_v10  ;;  %v380_v10 = vadd.f32 %v348_v3, %v698_v28 }
  0x35   : > { %v321_v31 = vadd.f32 %v313_v58, %v848_v19  ;;  %415 = vst.msk [vmem:[%s866_s15 + $0x10] sm:$0xf] %vm412_vm2, %v406_v43  ;;  %v346_v58 = vmul.f32 0.1875, %v738_v56  ;;  %v394_v21 = vmul.f32 0.0625, %v790_v25  ;;  %v277_v56 = vmul.f32 0.1875, %v821_v22 }
  0x36   : > { %443 = vrot.lane.b32.xlu1 %v424_v23, %s636_s12  ;;  %v833_v45 = vld [vmem:[#allocation2 + $0x50] sm:$0xff]  ;;  %v398_v23 = vadd.f32 %v382_v34, %v328_v18  ;;  %v295_v22 = vmul.f32 0.0625, %v785_v20 }
  0x37   : > { %v216_v12 = vld [vmem:[#allocation2 + $0x52] sm:$0xff]  ;;  %v280_v13 = vmul.f32 0.1875, %v833_v45 }
  0x38   : > { %449 = vrot.lane.b32.xlu0 %v427_v55, %s636_s12  ;;  %v312_v0 = vmul.f32 0.1875, %v216_v12  ;;  %v329_v8 = vmul.f32 0.0625, %v216_v12  ;;  %v871_v55 = vadd.f32 %v347_v60, %v762_v2  ;;  %v489_v59 = vpack.c.bf16 %v398_v23, %v398_v23  ;;  %v210_v34 = vld [vmem:[#allocation2 + $0x70] sm:$0xff] }
  0x39   : > { %v288_v27 = vadd.f32 %v280_v13, %v272_v38  ;;  %v852_v51 = vadd.f32 %v352_v14, %v280_v13  ;;  %v396_v13 = vadd.f32 %v380_v10, %v736_v54  ;;  %v299_v20 = vmul.f32 0.0625, %v210_v34 }
  0x3a   : > { %v320_v35 = vadd.f32 %v312_v0, %v272_v38  ;;  %v384_v37 = vadd.f32 %v352_v14, %v312_v0  ;;  %v337_v9 = vadd.f32 %v329_v8, %v321_v31  ;;  %v387_v63 = vadd.f32 %v871_v55, %v799_v32 }
  0x3b   : > { %v304_v36 = vadd.f32 %v836_v11, %v288_v27  ;;  %v401_v38 = vadd.f32 %v385_v29, %v813_v46  ;;  %v487_v32 = vpack.c.bf16 %v396_v13, %v396_v13  ;;  %v354_v46 = vadd.f32 %v346_v58, %v728_v50  ;;  %v209_v27 = vld [vmem:[#allocation2 + $0x60] sm:$0xff] }
  0x3c   : > { %v336_v42 = vadd.f32 %v328_v18, %v320_v35  ;;  %v400_v48 = vadd.f32 %v384_v37, %v782_v16  ;;  %v395_v16 = vmul.f32 0.0625, %v251_v57  ;;  %v426_v2 = vpack.c.bf16 %v337_v9, %v337_v9  ;;  %v211_v37 = vld [vmem:[#allocation2 + $0x80] sm:$0xff] }
  0x3d   : > { %v408_v47 = vpack.c.bf16 %v304_v36, %v304_v36  ;;  %v492_v14 = vpack.c.bf16 %v401_v38, %v401_v38  ;;  %v383_v18 = vadd.f32 %v828_v49, %v771_v7  ;;  %v386_v54 = vadd.f32 %v354_v46, %v779_v15 }
  0x3e   : > { %451 = vrot.lane.b32.xlu1 %v428_v24, %s636_s12  ;;  %v425_v41 = vpack.c.bf16 %v336_v42, %v336_v42  ;;  %v491_v61 = vpack.c.bf16 %v400_v48, %v400_v48  ;;  %v403_v12 = vadd.f32 %v395_v16, %v387_v63  ;;  %v285_v24 = vadd.f32 %v277_v56, %v714_v39 }
  0x3f   : > { %417 = vst.msk [vmem:[%s866_s15 + $0x20] sm:$0xf] %vm412_vm2, %v408_v47  ;;  %v399_v28 = vadd.f32 %v383_v18, %v329_v8  ;;  %v402_v7 = vadd.f32 %v394_v21, %v386_v54  ;;  %v293_v50 = vmul.f32 0.0625, %v764_v4  ;;  %v281_v17 = vmul.f32 0.1875, %v209_v27 }
  0x40   : > { %505 = vrot.lane.b32.xlu0 %v488_v62, %s636_s12  ;;  %445 = vrot.lane.b32.xlu2 %v425_v41, %s636_s12  ;;  %v494_v0 = vpack.c.bf16 %v403_v12, %v403_v12  ;;  %v282_v35 = vmul.f32 0.1875, %v210_v34  ;;  %v297_v39 = vmul.f32 0.0625, %v833_v45  ;;  %v298_v60 = vmul.f32 0.0625, %v209_v27 }
  0x41   : > { %v490_v3 = vpack.c.bf16 %v399_v28, %v399_v28  ;;  %v493_v49 = vpack.c.bf16 %v402_v7, %v402_v7  ;;  %v301_v15 = vadd.f32 %v293_v50, %v285_v24  ;;  %v289_v25 = vadd.f32 %v281_v17, %v848_v19 }
  0x42   : > { %v290_v36 = vadd.f32 %v282_v35, %v759_v1  ;;  %v283_v4 = vmul.f32 0.1875, %v211_v37  ;;  %v303_v31 = vadd.f32 %v295_v22, %v768_v6  ;;  %v357_v45 = vadd.f32 %v802_v33, %v277_v56  ;;  %v147_v33 = vld [vmem:[#allocation2 + $0x91] sm:$0x1] }
  0x43   : > { %v405_v62 = vpack.c.bf16 %v301_v15, %v301_v15  ;;  %v305_v42 = vadd.f32 %v297_v39, %v289_v25  ;;  %v372_v6 = vadd.f32 %v841_v30, %v831_v5  ;;  %158 = vst.msk [vmem:[#allocation2 + $0x90] sm:$0x1] %vm148_vm1, %v147_v33  ;;  %v375_v5 = vadd.f32 %v845_v40, %v297_v39 }
  0x44   : > { %v306_v8 = vadd.f32 %v298_v60, %v290_v36  ;;  %v407_v19 = vpack.c.bf16 %v303_v31, %v303_v31  ;;  %v291_v23 = vadd.f32 %v283_v4, %v794_v26  ;;  %v373_v41 = vadd.f32 %v357_v45, %v295_v22 }
  0x45   : > { %414 = vst.msk [vmem:[%s866_s15 + $0x8] sm:$0xf] %vm412_vm2, %v405_v62  ;;  %v409_v44 = vpack.c.bf16 %v305_v42, %v305_v42  ;;  %v470_v48 = vpack.c.bf16 %v372_v6, %v372_v6  ;;  %v374_v26 = vadd.f32 %v817_v52, %v836_v11  ;;  %v376_v30 = vadd.f32 %v852_v51, %v298_v60 }
  0x46   : > { %507 = vrot.lane.b32.xlu1 %v489_v59, %s636_s12  ;;  %v410_v1 = vpack.c.bf16 %v306_v8, %v306_v8  ;;  %416 = vst.msk [vmem:[%s866_s15 + $0x18] sm:$0xf] %vm412_vm2, %v407_v19  ;;  %v307_v43 = vadd.f32 %v299_v20, %v291_v23  ;;  %v471_v9 = vpack.c.bf16 %v373_v41, %v373_v41  ;;  %v370_v16 = vmul.f32 0.0625, %v211_v37 }
  0x47   : > { %418 = vst.msk [vmem:[%s866_s15 + $0x28] sm:$0xf] %vm412_vm2, %v409_v44  ;;  %v472_v57 = vpack.c.bf16 %v374_v26, %v374_v26  ;;  %v361_v59 = vadd.f32 %v859_v53, %v281_v17  ;;  %v473_v29 = vpack.c.bf16 %v375_v5, %v375_v5  ;;  %v363_v52 = vadd.f32 %v871_v55, %v283_v4 }
  0x48   : > { %511 = vrot.lane.b32.xlu0 %v491_v61, %s636_s12  ;;  %447 = vrot.lane.b32.xlu2 %v426_v2, %s636_s12  ;;  %419 = vst.msk [vmem:[%s866_s15 + $0x30] sm:$0xf] %vm412_vm2, %v410_v1  ;;  %v411_v47 = vpack.c.bf16 %v307_v43, %v307_v43  ;;  %v474_v61 = vpack.c.bf16 %v376_v30, %v376_v30 }
  0x49   : > { %599 = vst.msk [vmem:[%s866_s15 + $0x4] sm:$0xf] %vm412_vm2, %v470_v48  ;;  %v362_v11 = vadd.f32 %v354_v46, %v282_v35  ;;  %v377_v51 = vadd.f32 %v361_v59, %v299_v20 }
  0x4a   : > { %420 = vst.msk [vmem:[%s866_s15 + $0x38] sm:$0xf] %vm412_vm2, %v411_v47  ;;  %v243_v53 = vld [vmem:[#allocation2 + $0x90] sm:$0xff] }
  0x4b   : > { %600 = vst.msk [vmem:[%s866_s15 + $0xc] sm:$0xf] %vm412_vm2, %v471_v9  ;;  %v371_v2 = vmul.f32 0.0625, %v243_v53  ;;  %v475_v55 = vpack.c.bf16 %v377_v51, %v377_v51  ;;  %v378_v10 = vadd.f32 %v370_v16, %v362_v11 }
  0x4c   : > { %601 = vst.msk [vmem:[%s866_s15 + $0x14] sm:$0xf] %vm412_vm2, %v472_v57 }
  0x4d   : > { %602 = vst.msk [vmem:[%s866_s15 + $0x1c] sm:$0xf] %vm412_vm2, %v473_v29  ;;  %v379_v38 = vadd.f32 %v371_v2, %v363_v52  ;;  %v476_v13 = vpack.c.bf16 %v378_v10, %v378_v10 }
  0x4e   : > { %513 = vrot.lane.b32.xlu1 %v492_v14, %s636_s12  ;;  %603 = vst.msk [vmem:[%s866_s15 + $0x24] sm:$0xf] %vm412_vm2, %v474_v61 }
  0x4f   : > { %604 = vst.msk [vmem:[%s866_s15 + $0x2c] sm:$0xf] %vm412_vm2, %v475_v55  ;;  %v477_v14 = vpack.c.bf16 %v379_v38, %v379_v38 }
  0x50   : > { %517 = vrot.lane.b32.xlu0 %v494_v0, %s636_s12  ;;  %503 = vrot.lane.b32.xlu2 %v487_v32, %s636_s12  ;;  %605 = vst.msk [vmem:[%s866_s15 + $0x34] sm:$0xf] %vm412_vm2, %v476_v13 }
  0x51   : > { %606 = vst.msk [vmem:[%s866_s15 + $0x3c] sm:$0xf] %vm412_vm2, %v477_v14 }
  0x58   : > { %509 = vrot.lane.b32.xlu2 %v490_v3, %s636_s12 }
  0x60   : > { %515 = vrot.lane.b32.xlu2 %v493_v49, %s636_s12 }
  0x9a   : > { %v438_v63 = vpop.permute.xlu0 %437  ;;  %v446_v40 = vpop.permute.xlu2 %445 }
  0x9b   : > { %462 = vst.msk [vmem:[%s866_s15] sm:$0xf] %vm461_vm3, %v438_v63 }
  0x9c   : > { %466 = vst.msk [vmem:[%s866_s15 + $0x20] sm:$0xf] %vm461_vm3, %v446_v40 }
  0xa0   : > { %v442_v12 = vpop.permute.xlu1 %441 }
  0xa1   : > { %464 = vst.msk [vmem:[%s866_s15 + $0x10] sm:$0xf] %vm461_vm3, %v442_v12 }
  0xa2   : > { %v440_v0 = vpop.permute.xlu0 %439  ;;  %v448_v32 = vpop.permute.xlu2 %447 }
  0xa3   : > { %463 = vst.msk [vmem:[%s866_s15 + $0x8] sm:$0xf] %vm461_vm3, %v440_v0 }
  0xa4   : > { %467 = vst.msk [vmem:[%s866_s15 + $0x28] sm:$0xf] %vm461_vm3, %v448_v32 }
  0xa8   : > { %v444_v18 = vpop.permute.xlu1 %443 }
  0xa9   : > { %465 = vst.msk [vmem:[%s866_s15 + $0x18] sm:$0xf] %vm461_vm3, %v444_v18 }
  0xaa   : > { %v450_v58 = vpop.permute.xlu0 %449  ;;  %v504_v28 = vpop.permute.xlu2 %503 }
  0xab   : > { %468 = vst.msk [vmem:[%s866_s15 + $0x30] sm:$0xf] %vm461_vm3, %v450_v58 }
  0xac   : > { %607 = vst.msk [vmem:[%s866_s15 + $0x4] sm:$0xf] %vm461_vm3, %v504_v28 }
  0xb0   : > { %v452_v46 = vpop.permute.xlu1 %451 }
  0xb1   : > { %469 = vst.msk [vmem:[%s866_s15 + $0x38] sm:$0xf] %vm461_vm3, %v452_v46 }
  0xb2   : > { %v506_v3 = vpop.permute.xlu0 %505  ;;  %v510_v54 = vpop.permute.xlu2 %509 }
  0xb3   : > { %608 = vst.msk [vmem:[%s866_s15 + $0xc] sm:$0xf] %vm461_vm3, %v506_v3 }
  0xb4   : > { %610 = vst.msk [vmem:[%s866_s15 + $0x1c] sm:$0xf] %vm461_vm3, %v510_v54 }
  0xb8   : > { %v508_v21 = vpop.permute.xlu1 %507 }
  0xb9   : > { %609 = vst.msk [vmem:[%s866_s15 + $0x14] sm:$0xf] %vm461_vm3, %v508_v21 }
  0xba   : > { %v512_v7 = vpop.permute.xlu0 %511  ;;  %v516_v49 = vpop.permute.xlu2 %515 }
  0xbb   : > { %611 = vst.msk [vmem:[%s866_s15 + $0x24] sm:$0xf] %vm461_vm3, %v512_v7 }
  0xbc   : > { %613 = vst.msk [vmem:[%s866_s15 + $0x34] sm:$0xf] %vm461_vm3, %v516_v49 }
  0xc0   : > { %v514_v56 = vpop.permute.xlu1 %513 }
  0xc1   : > { %612 = vst.msk [vmem:[%s866_s15 + $0x2c] sm:$0xf] %vm461_vm3, %v514_v56 }
  0xc2   : > { %v518_v24 = vpop.permute.xlu0 %517 }
  0xc3   : > { %614 = vst.msk [vmem:[%s866_s15 + $0x3c] sm:$0xf] %vm461_vm3, %v518_v24 }
  0xc4 PF: > { %s11_s6 = sadd.s32 1, %s634_s6  }
  0xc5   : > { %p8_p4 = scmp.ge.s32.totalorder %s11_s6, 4  }
  0xc7   :  { %10 = sbr.rel (!%p8_p4) target bundleno = 1 (0x1), region = 58 }

// kernel: upblock_forward.3
= control target key start
LH: loop header
LB: loop body
LE: loop exit
PB: predicated region body
PF: predicated region fallthrough
CT: control target
= control target key end

     0   :  { %s8156_s27 = smov 0   ;;  %s12528_s0 = inlined_call_operand.vmem [shape: bf16[2,16,16,4], index: 0, kind: input, shape index: {}]   ;;  %s12529_s1 = inlined_call_operand.vmem [shape: f32[2,1,4], index: 1, kind: input, shape index: {}]   ;;  %s12530_s2 = inlined_call_operand.vmem [shape: f32[2,1,4], index: 2, kind: input, shape index: {}]   ;;  %s12531_s3 = inlined_call_operand.vmem [shape: f32[2,1,8], index: 3, kind: input, shape index: {}]   ;;  %s12532_s4 = inlined_call_operand.vmem [shape: f32[2,1,8], index: 4, kind: input, shape index: {}]   ;;  %s12533_s5 = inlined_call_operand.vmem [shape: bf16[3,3,4,4], index: 5, kind: input, shape index: {}]   ;;  %s12534_s6 = inlined_call_operand.vmem [shape: bf16[3,3,4,8], index: 6, kind: input, shape index: {}]   ;;  %s12535_s7 = inlined_call_operand.vmem [shape: bf16[4,8], index: 7, kind: input, shape index: {}]   ;;  %s12536_s8 = inlined_call_operand.vmem [shape: f32[2,16,16,8], index: 8, kind: output, shape index: {}]  }
   0x1 LB: > { %s7358_s28 = sadd.s32 4294967295, %s8109_s27   ;;  %p7362_p0 = scmp.ge.s32.totalorder %s8109_s27, 1  ;;  %s8109_s27 = sphi %s8156_s27, %s18_s27  }
   0x2   : > { %p294_p1 = scmp.lt.s32.totalorder %s8109_s27, 3 }
   0x4   : > { %p295_p2 = pnand %p7362_p0, %p294_p1 }
   0x6   : > { %298 = sbr.rel (%p295_p2) target bundleno = 2146 (0x862), region = 52 }
   0xb   : > { %vm12588_vm0 = vcmask 1041408   ;;  %v7516_v0 = vld [vmem:[%s12533_s5 + $0x4] sm:$0x3]  ;;  %p340_p3 = scmp.lt.s32.totalorder %s7358_s28, 1  ;;  %vm587_vm1 = vsmask.f32 256 }
   0xc   : > { %v8168_v1 = vsel %vm12588_vm0, %v7516_v0, 0  ;;  %vm588_vm8 = vsmask.f32 4368  ;;  %vm12587_vm9 = vcmask 27648   ;;  %vm912_vm10 = vsmask.f32 7938 }
   0xd   : > { %2460 = vmatpush.bf16.msra.mxu2 %v8168_v1  ;;  %s13221_s28 = smov (!%p340_p3, %s7358_s28), 1  ;;  %vm919_vm11 = vcmask 24576   ;;  %vm8232_vm14 = vmor %vm587_vm1, %vm588_vm8  ;;  %v12633_v34 = vmov 0  ;;  %v1029_v35 = vld [vmem:[#allocation2] sm:$0xf]  ;;  %v12640_v42 = vmov 0 }
   0xe   : > { %s8005_s9 = sshll.u32 %s13221_s28, 7  ;;  %v12634_v34 = vsel %vm8232_vm14, 4294967295, %v12633_v34  ;;  %v7403_v43 = vld [vmem:[%s12533_s5 + $0x2] sm:$0x3]  ;;  %v1405_v44 = vld [vmem:[%s12533_s5] sm:$0x3]  ;;  %vm8319_vm8 = vmand %vm919_vm11, %vm912_vm10  ;;  %s350_s16 = scalar_lea.vmem %s12530_s2, %s13221_s28 }
   0xf   : > { %s8177_s12 = scalar_lea.vmem %s12528_s0, %s8005_s9  ;;  %12635 = vst [vmem:[#allocation3_spill] sm:$0xff] %v12634_v34  ;;  %v12643_v47 = vmov 0  ;;  %v1033_v48 = vld [vmem:[#allocation2 + $0x8] sm:$0x1]  ;;  %v1894_v49 = vsel %vm12588_vm0, %v7403_v43, 0  ;;  %v2114_v50 = vsel %vm12588_vm0, %v1405_v44, 0  ;;  %s347_s19 = scalar_lea.vmem %s12529_s1, %s13221_s28 }
  0x10   : > { %v365_v2 = vld [vmem:[%s8177_s12 + $0x8] sm:$0xf]  ;;  %v366_v3 = vld [vmem:[%s8177_s12 + $0xc] sm:$0xf]  ;;  %v385_v4 = vld [vmem:[%s8177_s12 + $0x58] sm:$0xf]  ;;  %1903 = vmatpush.bf16.msra.mxu0 %v1894_v49  ;;  %8059 = vmatpush.bf16.msra.mxu3 %v1894_v49  ;;  %s356_s18 = scalar_lea.vmem %s12532_s4, %s13221_s28  ;;  %s353_s21 = scalar_lea.vmem %s12531_s3, %s13221_s28 }
  0x11   : > { %v397_v5 = vunpack.c.l.bf16 %v365_v2  ;;  %v398_v6 = vunpack.c.l.bf16 %v366_v3  ;;  %v386_v7 = vld [vmem:[%s8177_s12 + $0x5c] sm:$0xf]  ;;  %v417_v8 = vunpack.c.l.bf16 %v385_v4  ;;  %v8192_v14 = vld [vmem:[%s8177_s12] sm:$0xf]  ;;  %v8206_v19 = vld [vmem:[%s8177_s12 + $0x4] sm:$0xf]  ;;  %2123 = vmatpush.bf16.msra.mxu1 %v2114_v50 }
  0x12   : > { %v418_v9 = vunpack.c.l.bf16 %v386_v7  ;;  %v8215_v24 = vld [vmem:[%s8177_s12 + $0x60] sm:$0xf]  ;;  %v395_v27 = vunpack.c.l.bf16 %v8192_v14  ;;  %v396_v28 = vunpack.c.l.bf16 %v8206_v19  ;;  %v8228_v29 = vld [vmem:[%s8177_s12 + $0x64] sm:$0xf]  ;;  %v994_v0 = vld [vmem:[#allocation2 + $0x90] sm:$0xf] }
  0x13   : > { %vm8183_vm2 = vcmp.ge.f32.partialorder %v397_v5, 0.0  ;;  %vm8187_vm3 = vcmp.ge.f32.partialorder %v398_v6, 0.0  ;;  %v461_v12 = vmul.f32 0.010009766, %v397_v5  ;;  %v462_v13 = vmul.f32 0.010009766, %v398_v6  ;;  %s8006_s22 = sshll.u32 %s13221_s28, 8 }
  0x14   : > { %vm525_vm4 = vmpackc.low %vm8183_vm2, %vm8183_vm2  ;;  %vm8197_vm5 = vcmp.ge.f32.partialorder %v417_v8, 0.0  ;;  %vm8201_vm6 = vcmp.ge.f32.partialorder %v418_v9, 0.0  ;;  %v481_v17 = vmul.f32 0.010009766, %v417_v8  ;;  %v482_v18 = vmul.f32 0.010009766, %v418_v9  ;;  %8060 = vmatpush.bf16.msrb.mxu3 %v2114_v50  ;;  %s12354_s24 = scalar_lea.vmem %s12536_s8, %s8006_s22 }
  0x15   : > { %v493_v20 = vpack.c.bf16 %v461_v12, %v461_v12  ;;  %v494_v21 = vpack.c.bf16 %v462_v13, %v462_v13  ;;  %vm526_vm7 = vmpackc.low %vm8187_vm3, %vm8187_vm3  ;;  %vm8236_vm15 = vcmp.ge.f32.partialorder %v395_v27, 0.0  ;;  %vm8240_vm2 = vcmp.ge.f32.partialorder %v396_v28, 0.0 }
  0x16   : > { %v513_v22 = vpack.c.bf16 %v481_v17, %v481_v17  ;;  %v514_v23 = vpack.c.bf16 %v482_v18, %v482_v18  ;;  %vm545_vm12 = vmpackc.low %vm8197_vm5, %vm8197_vm5  ;;  %v419_v39 = vunpack.c.l.bf16 %v8215_v24  ;;  %v420_v46 = vunpack.c.l.bf16 %v8228_v29 }
  0x17   : > { %v557_v25 = vsel %vm525_vm4, %v365_v2, %v493_v20  ;;  %v558_v26 = vsel %vm526_vm7, %v366_v3, %v494_v21  ;;  %vm546_vm13 = vmpackc.low %vm8201_vm6, %vm8201_vm6  ;;  %v459_v60 = vmul.f32 0.010009766, %v395_v27  ;;  %v460_v2 = vmul.f32 0.010009766, %v396_v28 }
  0x18   : > { %v608_v30 = vshrl.u32 %v557_v25, 16  ;;  %v611_v31 = vshll.u32 %v557_v25, 16  ;;  %v616_v32 = vshrl.u32 %v558_v26, 16  ;;  %v619_v33 = vshll.u32 %v558_v26, 16  ;;  %vm8249_vm3 = vmand %vm12587_vm9, %vm912_vm10 }
  0x19   : > { %v577_v36 = vsel %vm545_vm12, %v385_v4, %v513_v22  ;;  %v12641_v42 = vsel %vm8249_vm3, 4294967295, %v12640_v42  ;;  %v578_v45 = vsel %vm546_vm13, %v386_v7, %v514_v23  ;;  %vm8267_vm4 = vmand %vm919_vm11, %vm587_vm1  ;;  %v491_v6 = vpack.c.bf16 %v459_v60, %v459_v60  ;;  %v998_v7 = vld [vmem:[#allocation2 + $0x98] sm:$0x1] }
  0x1a   : > { %v610_v40 = vrot.slane %v608_v30, 7  ;;  %v8245_v41 = vrot.slane %v616_v32, 7  ;;  %12642 = vst [vmem:[#allocation4_spill] sm:$0xff] %v12641_v42  ;;  %v12644_v47 = vsel %vm8267_vm4, 4294967295, %v12643_v47  ;;  %v778_v51 = vshrl.u32 %v577_v36, 16  ;;  %vm523_vm1 = vmpackc.low %vm8236_vm15, %vm8236_vm15 }
  0x1b   : > { %12645 = vst [vmem:[#allocation5_spill] sm:$0xff] %v12644_v47  ;;  %v781_v52 = vshll.u32 %v577_v36, 16  ;;  %v786_v58 = vshrl.u32 %v578_v45, 16  ;;  %v789_v59 = vshll.u32 %v578_v45, 16  ;;  %vm524_vm5 = vmpackc.low %vm8240_vm2, %vm8240_vm2  ;;  %vm2237_vm6 = vcmask 1042432  }
  0x1c   : > { %v8273_v53 = vor.u32 %v611_v31, %v610_v40  ;;  %v614_v54 = vrot.slane %v610_v40, 4  ;;  %v621_v55 = vor.u32 %v619_v33, %v8245_v41  ;;  %v623_v56 = vrot.slane %v8245_v41, 4  ;;  %v914_v30 = vld [vmem:[#allocation2 + $0xc] sm:$0xf] }
  0x1d   : > { %v780_v57 = vrot.slane %v778_v51, 7  ;;  %v788_v5 = vrot.slane %v786_v58, 7  ;;  %v492_v8 = vpack.c.bf16 %v460_v2, %v460_v2  ;;  %v8293_v9 = vmul.f32 0.010009766, %v419_v39  ;;  %v921_v58 = vld [vmem:[#allocation2 + $0x14] sm:$0x1] }
  0x1e   : > { %v622_v61 = vsel %vm8232_vm14, %v614_v54, %v621_v55  ;;  %v1030_v62 = vsel %vm8249_vm3, %v8273_v53, %v1029_v35  ;;  %v1034_v63 = vsel %vm8267_vm4, %v623_v56, %v1033_v48  ;;  %v555_v13 = vsel %vm523_vm1, %v8192_v14, %v491_v6  ;;  %v7554_v14 = vld [vmem:[%s12533_s5 + $0x8] sm:$0x3] }
  0x1f   : > { %1031 = vst [vmem:[#allocation2] sm:$0xf] %v1030_v62  ;;  %v783_v3 = vor.u32 %v781_v52, %v780_v57  ;;  %v784_v4 = vrot.slane %v780_v57, 4  ;;  %v791_v10 = vor.u32 %v789_v59, %v788_v5  ;;  %v793_v11 = vrot.slane %v788_v5, 4 }
  0x20   : > { %1032 = vst.msk [vmem:[#allocation2 + $0x4] sm:$0xf] %vm12587_vm9, %v622_v61  ;;  %v556_v15 = vsel %vm524_vm5, %v8206_v19, %v492_v8  ;;  %v591_v16 = vshrl.u32 %v555_v13, 16  ;;  %v594_v17 = vshll.u32 %v555_v13, 16  ;;  %v484_v18 = vmul.f32 0.010009766, %v420_v46 }
  0x21   : > { %1035 = vst [vmem:[#allocation2 + $0x8] sm:$0x1] %v1034_v63  ;;  %v995_v12 = vsel %vm8249_vm3, %v783_v3, %v994_v0  ;;  %v792_v20 = vsel %vm8232_vm14, %v784_v4, %v791_v10  ;;  %v999_v21 = vsel %vm8267_vm4, %v793_v11, %v998_v7  ;;  %v599_v22 = vshrl.u32 %v556_v15, 16  ;;  %v8373_v11 = vld [vmem:[%s8177_s12 + $0x68] sm:$0xf] }
  0x22   : > { %927 = vst.msk [vmem:[#allocation2 + $0x1c] sm:$0xf] %vm12587_vm9, %v622_v61  ;;  %v602_v23 = vshll.u32 %v556_v15, 16  ;;  %v593_v25 = vrot.slane %v591_v16, 7  ;;  %vm8313_vm7 = vcmp.ge.f32.partialorder %v419_v39, 0.0  ;;  %v12648_v26 = vmov 0 }
  0x23   : > { %996 = vst [vmem:[#allocation2 + $0x90] sm:$0xf] %v995_v12  ;;  %v12649_v26 = vsel %vm8319_vm8, 4294967295, %v12648_v26  ;;  %vm2238_vm12 = vcmask 1046532   ;;  %v2741_v27 = vsel %vm12588_vm0, %v7554_v14, 0  ;;  %v601_v28 = vrot.slane %v599_v22, 7  ;;  %vm547_vm10 = vmpackc.low %vm8313_vm7, %vm8313_vm7 }
  0x24   : > { %997 = vst.msk [vmem:[#allocation2 + $0x94] sm:$0xf] %vm12587_vm9, %v792_v20  ;;  %vm8324_vm13 = vcmp.ge.f32.partialorder %v420_v46, 0.0  ;;  %2750 = vmatpush.bf16.msrb.mxu0 %v2741_v27  ;;  %v596_v36 = vor.u32 %v594_v17, %v593_v25  ;;  %v515_v37 = vpack.c.bf16 %v8293_v9, %v8293_v9  ;;  %v516_v45 = vpack.c.bf16 %v484_v18, %v484_v18  ;;  %vm8338_vm15 = vmor %vm2237_vm6, %vm2238_vm12  ;;  %v924_v16 = vld [vmem:[#allocation2 + $0x18] sm:$0xf] }
  0x25   : > { %12650 = vst [vmem:[#allocation6_spill] sm:$0xff] %v12649_v26  ;;  %v604_v44 = vor.u32 %v602_v23, %v601_v28  ;;  %vm548_vm11 = vmpackc.low %vm8324_vm13, %vm8324_vm13  ;;  %v12653_v52 = vmov 0  ;;  %vm1406_vm2 = vsmask.f32 3328  ;;  %vm1407_vm1 = vsmask.f32 7440 }
  0x26   : > { %1000 = vst [vmem:[#allocation2 + $0x98] sm:$0x1] %v999_v21  ;;  %v1387_v32 = vld [vmem:[#allocation2] sm:$0xe]  ;;  %v1134_v35 = vld [vmem:[#allocation2] sm:$0x1]  ;;  %v915_v63 = vsel %vm8249_vm3, %v596_v36, %v914_v30  ;;  %v8358_v4 = vsel %vm547_vm10, %v8215_v24, %v515_v37  ;;  %v580_v5 = vsel %vm548_vm11, %v8228_v29, %v516_v45  ;;  %v925_v30 = vsel %vm8249_vm3, %v8273_v53, %v924_v16  ;;  %vm8403_vm6 = vmor %vm1406_vm2, %vm1407_vm1 }
  0x27   : > { %v1044_v33 = vld [vmem:[#allocation2] sm:$0x2]  ;;  %v1188_v38 = vld [vmem:[#allocation2 + $0x4] sm:$0x8]  ;;  %v7500_v40 = vrot.slane %v1387_v32, 9  ;;  %v12654_v52 = vsel %vm8338_vm15, 4294967295, %v12653_v52 }
  0x28   : > { %v1334_v39 = vld [vmem:[#allocation2 + $0x4] sm:$0xf]  ;;  %v7367_v43 = vrot.slane %v1044_v33, 9  ;;  %v7385_v46 = vrot.slane %v1188_v38, 11  ;;  %v1279_v48 = vld [vmem:[#allocation2 + $0x8] sm:$0x1] }
  0x29   : > { %v2242_v49 = vrot.slane %v1334_v39, 5  ;;  %v1419_v50 = vshll.u32 %v1334_v39, 16  ;;  %v1423_v51 = vshrl.u32 %v1334_v39, 16  ;;  %12655 = vst [vmem:[#allocation7_spill] sm:$0xff] %v12654_v52  ;;  %v597_v55 = vrot.slane %v593_v25, 4 }
  0x2a   : > { %v1135_v54 = vsel %vm8267_vm4, %v7367_v43, %v1134_v35  ;;  %v606_v57 = vrot.slane %v601_v28, 4  ;;  %v1280_v59 = vsel %vm8319_vm8, %v7385_v46, %v1279_v48  ;;  %vm12589_vm5 = vcmask 31744   ;;  %v1056_v62 = vld [vmem:[#allocation2 + $0x90] sm:$0x2]  ;;  %v1170_v3 = vld [vmem:[#allocation2 + $0x90] sm:$0x1] }
  0x2b   : > { %v8346_v60 = vrot.slane %v2242_v49, 4  ;;  %1136 = vst [vmem:[#allocation2] sm:$0x1] %v1135_v54  ;;  %v8348_v61 = vrot.slane %v1419_v50, 5  ;;  %v1425_v0 = vrot.slane %v1423_v51, 4  ;;  %v7379_v2 = vrot.slane %v1056_v62, 9 }
  0x2c   : > { %1281 = vst [vmem:[#allocation2 + $0x8] sm:$0x1] %v1280_v59  ;;  %v8368_v6 = vsel %vm8338_vm15, %v7500_v40, %v2242_v49  ;;  %v1200_v7 = vld [vmem:[#allocation2 + $0x94] sm:$0x8]  ;;  %v605_v10 = vsel %vm8232_vm14, %v597_v55, %v604_v44  ;;  %v8376_v24 = vld [vmem:[%s8177_s12 + $0x6c] sm:$0xf]  ;;  %v922_v18 = vsel %vm8267_vm4, %v606_v57, %v921_v58  ;;  %v421_v35 = vunpack.c.l.bf16 %v8373_v11 }
  0x2d   : > { %v1315_v8 = vld [vmem:[#allocation2 + $0x98] sm:$0x1]  ;;  %v1358_v9 = vld [vmem:[#allocation2 + $0x94] sm:$0xf]  ;;  %v1426_v12 = vor.u32 %v1425_v0, %v8348_v61  ;;  %v1171_v13 = vsel %vm8267_vm4, %v7379_v2, %v1170_v3  ;;  %v7397_v29 = vrot.slane %v1200_v7, 11  ;;  %v795_v20 = vshrl.u32 %v8358_v4, 16 }
  0x2e   : > { %v1707_v15 = vshll.u32 %v1358_v9, 16  ;;  %916 = vst [vmem:[#allocation2 + $0xc] sm:$0xf] %v915_v63  ;;  %v1711_v17 = vshrl.u32 %v1358_v9, 16  ;;  %v803_v21 = vshrl.u32 %v580_v5, 16  ;;  %v798_v14 = vshll.u32 %v8358_v4, 16 }
  0x2f   : > { %1172 = vst [vmem:[#allocation2 + $0x90] sm:$0x1] %v1171_v13  ;;  %v1316_v22 = vsel %vm8319_vm8, %v7397_v29, %v1315_v8  ;;  %v806_v25 = vshll.u32 %v580_v5, 16  ;;  %v1427_v19 = vrot.slane %v1426_v12, 4  ;;  %v797_v33 = vrot.slane %v795_v20, 7 }
  0x30   : > { %v8386_v23 = vrot.slane %v1707_v15, 5  ;;  %918 = vst.msk [vmem:[#allocation2 + $0x10] sm:$0xf] %vm12587_vm9, %v605_v10  ;;  %v1713_v27 = vrot.slane %v1711_v17, 4  ;;  %v8390_v28 = vrot.slane %v803_v21, 7  ;;  %v422_v36 = vunpack.c.l.bf16 %v8376_v24 }
  0x31   : > { %1317 = vst [vmem:[#allocation2 + $0x98] sm:$0x1] %v1316_v22  ;;  %v2354_v38 = vunpack.c.l.b16 %v8368_v6  ;;  %v801_v53 = vrot.slane %v797_v33, 4  ;;  %v12656_v48 = vmov 0  ;;  %v1001_v13 = vld [vmem:[#allocation2 + $0x9c] sm:$0xf]  ;;  %v800_v21 = vor.u32 %v798_v14, %v797_v33 }
  0x32   : > { %v1333_v31 = vld [vmem:[#allocation2] sm:$0xf]  ;;  %923 = vst [vmem:[#allocation2 + $0x14] sm:$0x1] %v922_v18  ;;  %v1714_v43 = vor.u32 %v1713_v27, %v8386_v23  ;;  %v808_v46 = vor.u32 %v806_v25, %v8390_v28  ;;  %v12657_v48 = vsel %vm8403_vm6, 4294967295, %v12656_v48  ;;  %v810_v55 = vrot.slane %v8390_v28, 4 }
  0x33   : > { %v8007_v32 = vld [vmem:[#allocation2] sm:$0xff]  ;;  %v1369_v37 = vld [vmem:[#allocation2 + $0x8] sm:$0x1]  ;;  %v1410_v39 = vshrl.u32 %v1333_v31, 16  ;;  %v1413_v40 = vshll.u32 %v1333_v31, 16  ;;  %12658 = vst [vmem:[#allocation8_spill] sm:$0xff] %v12657_v48 }
  0x34   : > { %926 = vst [vmem:[#allocation2 + $0x18] sm:$0xf] %v925_v30  ;;  %v2245_v44 = vrot.slane %v1369_v37, 5  ;;  %v1429_v45 = vshll.u32 %v1369_v37, 16  ;;  %7484 = vmatmul.msk.bf16.vlgmr.msra.gmra.mxu1 %vm12589_vm5, %v8007_v32  ;;  %v1715_v51 = vrot.slane %v1714_v43, 4  ;;  %v809_v0 = vsel %vm8232_vm14, %v801_v53, %v808_v46 }
  0x35   : > { %v1412_v49 = vrot.slane %v1410_v39, 4  ;;  %v1415_v50 = vrot.slane %v1413_v40, 5  ;;  %v1388_v54 = vld [vmem:[#allocation2 + $0xc] sm:$0xe]  ;;  %v1005_v29 = vld [vmem:[#allocation2 + $0xa4] sm:$0x1] }
  0x36   : > { %v2246_v57 = vsel %vm8338_vm15, %v8346_v60, %v2245_v44  ;;  %v1431_v58 = vrot.slane %v1429_v45, 5  ;;  %v1357_v59 = vld [vmem:[#allocation2 + $0x90] sm:$0xf]  ;;  %v7501_v62 = vrot.slane %v1388_v54, 9  ;;  %v1045_v63 = vld [vmem:[#allocation2 + $0xc] sm:$0x2]  ;;  %v1006_v44 = vsel %vm8267_vm4, %v810_v55, %v1005_v29 }
  0x37   : > { %v2355_v2 = vunpack.c.l.b16 %v2246_v57  ;;  %v1416_v3 = vor.u32 %v1415_v50, %v1412_v49  ;;  %v1698_v4 = vshrl.u32 %v1357_v59, 16  ;;  %v1701_v5 = vshll.u32 %v1357_v59, 16  ;;  %v1189_v6 = vld [vmem:[#allocation2 + $0x10] sm:$0x8]  ;;  %v1137_v20 = vld [vmem:[#allocation2 + $0xc] sm:$0x1] }
  0x38   : > { %v1336_v7 = vld [vmem:[#allocation2 + $0x10] sm:$0xf]  ;;  %v1432_v8 = vsel %vm8403_vm6, %v1427_v19, %v1431_v58  ;;  %v1381_v9 = vld [vmem:[#allocation2 + $0x98] sm:$0x1]  ;;  %v7386_v10 = vrot.slane %v1189_v6, 11  ;;  %v7368_v60 = vrot.slane %v1045_v63, 9 }
  0x39   : > { %v2249_v12 = vrot.slane %v1336_v7, 5  ;;  %v2386_v15 = vpack.c.b16 %v2355_v2, %v2354_v38  ;;  %v1417_v16 = vrot.slane %v1416_v3, 4  ;;  %v1700_v17 = vrot.slane %v1698_v4, 4  ;;  %v1282_v18 = vld [vmem:[#allocation2 + $0x14] sm:$0x1] }
  0x3a   : > { %v1796_v22 = vunpack.c.l.b16 %v1432_v8  ;;  %v1703_v25 = vrot.slane %v1701_v5, 5  ;;  %v1717_v27 = vshll.u32 %v1381_v9, 16  ;;  %v1283_v28 = vsel %vm8319_vm8, %v7386_v10, %v1282_v18  ;;  %1004 = vst.msk [vmem:[#allocation2 + $0xa0] sm:$0xf] %vm12587_vm9, %v809_v0  ;;  %v928_v19 = vld [vmem:[#allocation2 + $0x20] sm:$0x1] }
  0x3b   : > { %7517 = vmatmul.msk.bf16.vlgmr.msra.gmra.mxu2 %vm12589_vm5, %v2386_v15  ;;  %v1422_v30 = vsel %vm8403_vm6, %v1417_v16, %v8348_v61  ;;  %1284 = vst [vmem:[#allocation2 + $0x14] sm:$0x1] %v1283_v28  ;;  %v8424_v31 = vsel %vm8338_vm15, %v7501_v62, %v2249_v12  ;;  %v2251_v14 = vrot.slane %v2249_v12, 4  ;;  %v1138_v32 = vsel %vm8267_vm4, %v7368_v60, %v1137_v20  ;;  %v8428_v40 = vld [vmem:[#allocation2 + $0x1c] sm:$0x8] }
  0x3c   : > { %v1795_v33 = vunpack.c.l.b16 %v1422_v30  ;;  %v1704_v37 = vor.u32 %v1703_v25, %v1700_v17  ;;  %v1719_v38 = vrot.slane %v1717_v27, 5  ;;  %1139 = vst [vmem:[#allocation2 + $0xc] sm:$0x1] %v1138_v32  ;;  %v1443_v39 = vshll.u32 %v1336_v7, 16  ;;  %v1046_v53 = vld [vmem:[#allocation2 + $0x18] sm:$0x2] }
  0x3d   : > { %v1447_v43 = vshrl.u32 %v1336_v7, 16  ;;  %v1002_v61 = vsel %vm8249_vm3, %v800_v21, %v1001_v13  ;;  %v929_v45 = vsel %vm8267_vm4, %v623_v56, %v928_v19  ;;  %v8442_v57 = vld [vmem:[#allocation2 + $0x1c] sm:$0xf]  ;;  %v2356_v59 = vunpack.c.l.b16 %v8424_v31  ;;  %1007 = vst [vmem:[#allocation2 + $0xa4] sm:$0x1] %v1006_v44 }
  0x3e   : > { %v1827_v46 = vpack.c.b16 %v1796_v22, %v1795_v33  ;;  %v1705_v49 = vrot.slane %v1704_v37, 4  ;;  %v1720_v50 = vsel %vm8403_vm6, %v1715_v51, %v1719_v38  ;;  %v8440_v54 = vrot.slane %v1443_v39, 5  ;;  %1003 = vst [vmem:[#allocation2 + $0x9c] sm:$0xf] %v1002_v61  ;;  %v1389_v62 = vld [vmem:[#allocation2 + $0x18] sm:$0xe] }
  0x3f   : > { %v1820_v58 = vunpack.c.l.b16 %v1720_v50  ;;  %v1449_v55 = vrot.slane %v1447_v43, 4  ;;  %v7387_v41 = vrot.slane %v8428_v40, 11  ;;  %vm8448_vm7 = vcmp.ge.f32.partialorder %v421_v35, 0.0  ;;  %930 = vst [vmem:[#allocation2 + $0x20] sm:$0x1] %v929_v45 }
  0x40   : > { %7404 = vmatmul.msk.bf16.vlgmr.msra.gmra.mxu0 %vm12589_vm5, %v1827_v46  ;;  %v1710_v51 = vsel %vm8403_vm6, %v1705_v49, %v8386_v23  ;;  %v7502_v63 = vrot.slane %v1389_v62, 9  ;;  %v2256_v0 = vrot.slane %v8442_v57, 5  ;;  %v7369_v2 = vrot.slane %v1046_v53, 9  ;;  %v1140_v27 = vld [vmem:[#allocation2 + $0x18] sm:$0x1]  ;;  %vm549_vm13 = vmpackc.low %vm8448_vm7, %vm8448_vm7 }
  0x41   : > { %v1819_v3 = vunpack.c.l.b16 %v1710_v51  ;;  %v1450_v4 = vor.u32 %v1449_v55, %v8440_v54  ;;  %v1201_v5 = vld [vmem:[#allocation2 + $0xa0] sm:$0x8]  ;;  %v1467_v7 = vshll.u32 %v8442_v57, 16  ;;  %v1471_v8 = vshrl.u32 %v8442_v57, 16  ;;  %v367_v46 = vld [vmem:[%s8177_s12 + $0x10] sm:$0xf] }
  0x42   : > { %v1360_v6 = vld [vmem:[#allocation2 + $0xa0] sm:$0xf]  ;;  %v1370_v9 = vld [vmem:[#allocation2 + $0x14] sm:$0x1]  ;;  %v7398_v10 = vrot.slane %v1201_v5, 11  ;;  %v8462_v23 = vsel %vm8338_vm15, %v7502_v63, %v2256_v0  ;;  %v8473_v32 = vrot.slane %v2256_v0, 4  ;;  %v1141_v53 = vsel %vm8267_vm4, %v7369_v2, %v1140_v27 }
  0x43   : > { %v1731_v12 = vshll.u32 %v1360_v6, 16  ;;  %v1735_v60 = vshrl.u32 %v1360_v6, 16  ;;  %v8464_v13 = vpack.c.b16 %v1820_v58, %v1819_v3  ;;  %v2252_v29 = vrot.slane %v1370_v9, 5  ;;  %v1335_v15 = vld [vmem:[#allocation2 + $0xc] sm:$0xf] }
  0x44   : > { %v1451_v16 = vrot.slane %v1450_v4, 4  ;;  %v1453_v17 = vshll.u32 %v1370_v9, 16  ;;  %v8008_v18 = vld [vmem:[#allocation2 + $0xc] sm:$0xff]  ;;  %v1434_v20 = vshrl.u32 %v1335_v15, 16  ;;  %v1437_v21 = vshll.u32 %v1335_v15, 16 }
  0x45   : > { %12661 = vst [vmem:[#allocation9_spill] sm:$0xff] %v8464_v13  ;;  %v8466_v22 = vrot.slane %v1731_v12, 5  ;;  %v1737_v25 = vrot.slane %v1735_v60, 4  ;;  %7416 = vmatmul.msk.bf16.vlgmr.msra.gmra.mxu3 %vm12589_vm5, %v8464_v13  ;;  %v2253_v28 = vsel %vm8338_vm15, %v2251_v14, %v2252_v29  ;;  %v1057_v30 = vld [vmem:[#allocation2 + $0x9c] sm:$0x2]  ;;  %7485 = vmatmul.msk.bf16.gmra.mxu1 %vm12589_vm5, %v8008_v18  ;;  %v2358_v33 = vunpack.c.l.b16 %v8462_v23 }
  0x46   : > { %v1455_v19 = vrot.slane %v1453_v17, 5  ;;  %v1173_v31 = vld [vmem:[#allocation2 + $0x9c] sm:$0x1]  ;;  %v2357_v37 = vunpack.c.l.b16 %v2253_v28  ;;  %v1436_v38 = vrot.slane %v1434_v20, 4  ;;  %v1439_v39 = vrot.slane %v1437_v21, 5  ;;  %8061 = vmatpush.bf16.msra.mxu3 %v8168_v1 }
  0x47   : > { %v7380_v40 = vrot.slane %v1057_v30, 9  ;;  %v1318_v43 = vld [vmem:[#allocation2 + $0xa4] sm:$0x1]  ;;  %v1738_v44 = vor.u32 %v1737_v25, %v8466_v22  ;;  %v1285_v45 = vld [vmem:[#allocation2 + $0x20] sm:$0x1]  ;;  %v8500_v0 = vrot.slane %v1467_v7, 5  ;;  %v399_v6 = vunpack.c.l.bf16 %v367_v46 }
  0x48   : > { %v1456_v14 = vsel %vm8403_vm6, %v1451_v16, %v1455_v19  ;;  %v1319_v61 = vsel %vm8319_vm8, %v7398_v10, %v1318_v43  ;;  %v8486_v49 = vld [vmem:[%s8177_s12 + $0x14] sm:$0xf]  ;;  %v8488_v50 = vpack.c.b16 %v2357_v37, %v2356_v59  ;;  %v1440_v57 = vor.u32 %v1439_v39, %v1436_v38  ;;  %v8493_v55 = vld [vmem:[%s8177_s12 + $0x70] sm:$0xf]  ;;  %1142 = vst [vmem:[#allocation2 + $0x18] sm:$0x1] %v1141_v53 }
  0x49   : > { %v1798_v58 = vunpack.c.l.b16 %v1456_v14  ;;  %v1174_v1 = vsel %vm8267_vm4, %v7380_v40, %v1173_v31  ;;  %1320 = vst [vmem:[#allocation2 + $0xa4] sm:$0x1] %v1319_v61  ;;  %v8496_v62 = vld [vmem:[%s8177_s12 + $0x74] sm:$0xf]  ;;  %v1739_v51 = vrot.slane %v1738_v44, 4  ;;  %v1286_v63 = vsel %vm8319_vm8, %v7387_v41, %v1285_v45 }
  0x4a   : > { %1175 = vst [vmem:[#allocation2 + $0x9c] sm:$0x1] %v1174_v1  ;;  %v1473_v2 = vrot.slane %v1471_v8, 4  ;;  %v1441_v59 = vrot.slane %v1440_v57, 4  ;;  %vm8504_vm12 = vcmp.ge.f32.partialorder %v422_v36, 0.0  ;;  %v485_v4 = vmul.f32 0.010009766, %v421_v35 }
  0x4b   : > { %1287 = vst [vmem:[#allocation2 + $0x20] sm:$0x1] %v1286_v63  ;;  %v486_v5 = vmul.f32 0.010009766, %v422_v36  ;;  %7518 = vmatmul.msk.bf16.gmra.mxu2 %vm12589_vm5, %v8488_v50  ;;  %vm550_vm10 = vmpackc.low %vm8504_vm12, %vm8504_vm12  ;;  %v400_v35 = vunpack.c.l.bf16 %v8486_v49  ;;  %v423_v7 = vunpack.c.l.bf16 %v8493_v55  ;;  %v424_v10 = vunpack.c.l.bf16 %v8496_v62 }
  0x4c   : > { %v1474_v41 = vor.u32 %v1473_v2, %v8500_v0  ;;  %v1446_v36 = vsel %vm8403_vm6, %v1441_v59, %v8440_v54  ;;  %v517_v8 = vpack.c.bf16 %v485_v4, %v485_v4  ;;  %vm8527_vm11 = vcmp.ge.f32.partialorder %v399_v6, 0.0 }
  0x4d   : > { %v518_v9 = vpack.c.bf16 %v486_v5, %v486_v5  ;;  %v1797_v12 = vunpack.c.l.b16 %v1446_v36  ;;  %vm8531_vm2 = vcmp.ge.f32.partialorder %v400_v35, 0.0  ;;  %v463_v17 = vmul.f32 0.010009766, %v399_v6  ;;  %vm527_vm1 = vmpackc.low %vm8527_vm11, %vm8527_vm11 }
  0x4e   : > { %v1475_v60 = vrot.slane %v1474_v41, 4  ;;  %v581_v54 = vsel %vm549_vm13, %v8373_v11, %v517_v8  ;;  %v464_v18 = vmul.f32 0.010009766, %v400_v35  ;;  %v1008_v35 = vld [vmem:[#allocation2 + $0xa8] sm:$0xf]  ;;  %vm528_vm7 = vmpackc.low %vm8531_vm2, %vm8531_vm2  ;;  %vm8584_vm12 = vcmp.ge.f32.partialorder %v423_v7, 0.0 }
  0x4f   : > { %v582_v16 = vsel %vm550_vm10, %v8376_v24, %v518_v9  ;;  %v8542_v20 = vpack.c.b16 %v1798_v58, %v1797_v12  ;;  %v812_v25 = vshrl.u32 %v581_v54, 16  ;;  %v815_v27 = vshll.u32 %v581_v54, 16  ;;  %v1337_v61 = vld [vmem:[#allocation2 + $0x18] sm:$0xf]  ;;  %v1012_v9 = vld [vmem:[#allocation2 + $0xb0] sm:$0x1]  ;;  %vm551_vm10 = vmpackc.low %vm8584_vm12, %vm8584_vm12 }
  0x50   : > { %v1382_v21 = vld [vmem:[#allocation2 + $0xa4] sm:$0x1]  ;;  %v820_v28 = vshrl.u32 %v582_v16, 16  ;;  %v823_v31 = vshll.u32 %v582_v16, 16  ;;  %v495_v56 = vpack.c.bf16 %v463_v17, %v463_v17  ;;  %v496_v37 = vpack.c.bf16 %v464_v18, %v464_v18  ;;  %v8009_v16 = vld [vmem:[#allocation2 + $0x18] sm:$0xff] }
  0x51   : > { %v1359_v19 = vld [vmem:[#allocation2 + $0x9c] sm:$0xf]  ;;  %v1741_v30 = vshll.u32 %v1382_v21, 16  ;;  %7405 = vmatmul.msk.bf16.gmra.mxu0 %vm12589_vm5, %v8542_v20  ;;  %v814_v39 = vrot.slane %v812_v25, 7  ;;  %v1458_v58 = vshrl.u32 %v1337_v61, 16  ;;  %v1461_v1 = vshll.u32 %v1337_v61, 16 }
  0x52   : > { %v1722_v11 = vshrl.u32 %v1359_v19, 16  ;;  %v1725_v24 = vshll.u32 %v1359_v19, 16  ;;  %v1371_v38 = vld [vmem:[#allocation2 + $0x20] sm:$0x1]  ;;  %v822_v40 = vrot.slane %v820_v28, 7  ;;  %v559_v45 = vsel %vm527_vm1, %v367_v46, %v495_v56 }
  0x53   : > { %v1743_v43 = vrot.slane %v1741_v30, 5  ;;  %v2259_v14 = vrot.slane %v1371_v38, 5  ;;  %v1477_v44 = vshll.u32 %v1371_v38, 16  ;;  %v817_v3 = vor.u32 %v815_v27, %v814_v39  ;;  %v931_v38 = vld [vmem:[#allocation2 + $0x24] sm:$0xf] }
  0x54   : > { %v1724_v53 = vrot.slane %v1722_v11, 4  ;;  %v1727_v57 = vrot.slane %v1725_v24, 5  ;;  %v1460_v6 = vrot.slane %v1458_v58, 4  ;;  %v1463_v46 = vrot.slane %v1461_v1, 5  ;;  %v8610_v61 = vld [vmem:[%s8177_s12 + $0x18] sm:$0xf] }
  0x55   : > { %v1744_v63 = vsel %vm8403_vm6, %v1739_v51, %v1743_v43  ;;  %v2260_v2 = vsel %vm8338_vm15, %v8473_v32, %v2259_v14  ;;  %v1479_v59 = vrot.slane %v1477_v44, 5  ;;  %v818_v51 = vrot.slane %v814_v39, 4  ;;  %7486 = vmatmul.msk.bf16.gmra.mxu1 %vm12589_vm5, %v8009_v16 }
  0x56   : > { %v1728_v4 = vor.u32 %v1727_v57, %v1724_v53  ;;  %v1822_v5 = vunpack.c.l.b16 %v1744_v63  ;;  %v2359_v41 = vunpack.c.l.b16 %v2260_v2  ;;  %v825_v8 = vor.u32 %v823_v31, %v822_v40  ;;  %v8615_v53 = vld [vmem:[%s8177_s12 + $0x1c] sm:$0xf] }
  0x57   : > { %v1480_v36 = vsel %vm8403_vm6, %v1475_v60, %v1479_v59  ;;  %v827_v54 = vrot.slane %v822_v40, 4  ;;  %v1464_v17 = vor.u32 %v1463_v46, %v1460_v6  ;;  %v1009_v18 = vsel %vm8249_vm3, %v817_v3, %v1008_v35 }
  0x58   : > { %v1729_v12 = vrot.slane %v1728_v4, 4  ;;  %v8566_v32 = vpack.c.b16 %v2359_v41, %v2358_v33  ;;  %v1800_v29 = vunpack.c.l.b16 %v1480_v36  ;;  %v826_v15 = vsel %vm8232_vm14, %v818_v51, %v825_v8  ;;  %1010 = vst [vmem:[#allocation2 + $0xa8] sm:$0xf] %v1009_v18 }
  0x59   : > { %v560_v60 = vsel %vm528_vm7, %v8486_v49, %v496_v37  ;;  %v1013_v23 = vsel %vm8267_vm4, %v827_v54, %v1012_v9  ;;  %v625_v33 = vshrl.u32 %v559_v45, 16  ;;  %v628_v25 = vshll.u32 %v559_v45, 16  ;;  %1011 = vst.msk [vmem:[#allocation2 + $0xac] sm:$0xf] %vm12587_vm9, %v826_v15 }
  0x5a   : > { %12668 = vst [vmem:[#allocation10_spill] sm:$0xff] %v8566_v32  ;;  %v1734_v21 = vsel %vm8403_vm6, %v1729_v12, %v8466_v22  ;;  %v1465_v28 = vrot.slane %v1464_v17, 4  ;;  %v633_v19 = vshrl.u32 %v560_v60, 16  ;;  %v636_v30 = vshll.u32 %v560_v60, 16  ;;  %v1015_v60 = vld [vmem:[#allocation2 + $0xb4] sm:$0xf] }
  0x5b   : > { %v1821_v27 = vunpack.c.l.b16 %v1734_v21  ;;  %7519 = vmatmul.msk.bf16.gmra.mxu2 %vm12589_vm5, %v8566_v32  ;;  %1014 = vst [vmem:[#allocation2 + $0xb0] sm:$0x1] %v1013_v23  ;;  %v627_v22 = vrot.slane %v625_v33, 7  ;;  %vm8590_vm13 = vcmp.ge.f32.partialorder %v424_v10, 0.0  ;;  %v487_v56 = vmul.f32 0.010009766, %v423_v7 }
  0x5c   : > { %v1470_v11 = vsel %vm8403_vm6, %v1465_v28, %v8500_v0  ;;  %v635_v24 = vrot.slane %v633_v19, 7  ;;  %v488_v39 = vmul.f32 0.010009766, %v424_v10  ;;  %vm552_vm11 = vmpackc.low %vm8590_vm13, %vm8590_vm13  ;;  %v935_v10 = vld [vmem:[#allocation2 + $0x2c] sm:$0x1]  ;;  %v401_v4 = vunpack.c.l.bf16 %v8610_v61 }
  0x5d   : > { %v8596_v37 = vpack.c.b16 %v1822_v5, %v1821_v27  ;;  %v1799_v40 = vunpack.c.l.b16 %v1470_v11  ;;  %v630_v43 = vor.u32 %v628_v25, %v627_v22  ;;  %v631_v14 = vrot.slane %v627_v22, 4  ;;  %v1019_v25 = vld [vmem:[#allocation2 + $0xbc] sm:$0x1] }
  0x5e   : > { %v519_v7 = vpack.c.bf16 %v487_v56, %v487_v56  ;;  %v638_v0 = vor.u32 %v636_v30, %v635_v24  ;;  %v640_v44 = vrot.slane %v635_v24, 4  ;;  %v520_v45 = vpack.c.bf16 %v488_v39, %v488_v39 }
  0x5f   : > { %12673 = vst [vmem:[#allocation11_spill] sm:$0xff] %v8596_v37  ;;  %7417 = vmatmul.msk.bf16.gmra.mxu3 %vm12589_vm5, %v8596_v37  ;;  %v8617_v57 = vpack.c.b16 %v1800_v29, %v1799_v40  ;;  %v932_v58 = vsel %vm8249_vm3, %v630_v43, %v931_v38  ;;  %v1058_v63 = vld [vmem:[#allocation2 + $0xa8] sm:$0x2]  ;;  %v1176_v2 = vld [vmem:[#allocation2 + $0xa8] sm:$0x1]  ;;  %v402_v46 = vunpack.c.l.bf16 %v8615_v53  ;;  %vm8642_vm2 = vcmp.ge.f32.partialorder %v401_v4, 0.0 }
  0x60   : > { %v583_v1 = vsel %vm551_vm10, %v8493_v55, %v519_v7  ;;  %v639_v59 = vsel %vm8232_vm14, %v631_v14, %v638_v0  ;;  %933 = vst [vmem:[#allocation2 + $0x24] sm:$0xf] %v932_v58  ;;  %v584_v3 = vsel %vm552_vm11, %v8496_v62, %v520_v45  ;;  %v7381_v5 = vrot.slane %v1058_v63, 9  ;;  %v1202_v41 = vld [vmem:[#allocation2 + $0xac] sm:$0x8]  ;;  %vm529_vm7 = vmpackc.low %vm8642_vm2, %vm8642_vm2 }
  0x61   : > { %12674 = vst [vmem:[#allocation12_spill] sm:$0xff] %v8617_v57  ;;  %7406 = vmatmul.msk.bf16.gmra.mxu0 %vm12589_vm5, %v8617_v57  ;;  %v1362_v6 = vld [vmem:[#allocation2 + $0xac] sm:$0xf]  ;;  %v936_v35 = vsel %vm8267_vm4, %v640_v44, %v935_v10  ;;  %v829_v55 = vshrl.u32 %v583_v1, 16  ;;  %v7399_v36 = vrot.slane %v1202_v41, 11  ;;  %v832_v12 = vshll.u32 %v583_v1, 16 }
  0x62   : > { %v1321_v51 = vld [vmem:[#allocation2 + $0xb0] sm:$0x1]  ;;  %v1755_v8 = vshll.u32 %v1362_v6, 16  ;;  %v1759_v9 = vshrl.u32 %v1362_v6, 16  ;;  %v1177_v62 = vsel %vm8267_vm4, %v7381_v5, %v1176_v2  ;;  %934 = vst.msk [vmem:[#allocation2 + $0x28] sm:$0xf] %vm12587_vm9, %v639_v59 }
  0x63   : > { %v831_v29 = vrot.slane %v829_v55, 7  ;;  %v837_v54 = vshrl.u32 %v584_v3, 16  ;;  %v840_v16 = vshll.u32 %v584_v3, 16  ;;  %1178 = vst [vmem:[#allocation2 + $0xa8] sm:$0x1] %v1177_v62  ;;  %v1322_v17 = vsel %vm8319_vm8, %v7399_v36, %v1321_v51 }
  0x64   : > { %v8636_v15 = vrot.slane %v1755_v8, 5  ;;  %v1761_v18 = vrot.slane %v1759_v9, 4  ;;  %1323 = vst [vmem:[#allocation2 + $0xb0] sm:$0x1] %v1322_v17  ;;  %vm8646_vm1 = vcmp.ge.f32.partialorder %v402_v46, 0.0  ;;  %v465_v19 = vmul.f32 0.010009766, %v401_v4 }
  0x65   : > { %v8638_v21 = vor.u32 %v832_v12, %v831_v29  ;;  %v835_v23 = vrot.slane %v831_v29, 4  ;;  %v8640_v33 = vrot.slane %v837_v54, 7  ;;  %937 = vst [vmem:[#allocation2 + $0x2c] sm:$0x1] %v936_v35  ;;  %v466_v30 = vmul.f32 0.010009766, %v402_v46  ;;  %vm530_vm12 = vmpackc.low %vm8646_vm1, %vm8646_vm1 }
  0x66   : > { %v1762_v24 = vor.u32 %v1761_v18, %v8636_v15  ;;  %v8660_v40 = vld [vmem:[%s8177_s12 + $0x20] sm:$0xf]  ;;  %v497_v7 = vpack.c.bf16 %v465_v19, %v465_v19  ;;  %v8665_v44 = vld [vmem:[%s8177_s12 + $0x24] sm:$0xf] }
  0x67   : > { %12675 = vst [vmem:[#allocation13_spill] sm:$0xff] %v8638_v21  ;;  %v1390_v22 = vld [vmem:[#allocation2 + $0x24] sm:$0xe]  ;;  %v1143_v31 = vld [vmem:[#allocation2 + $0x24] sm:$0x1]  ;;  %v842_v56 = vor.u32 %v840_v16, %v8640_v33  ;;  %v1016_v11 = vsel %vm8249_vm3, %v8638_v21, %v1015_v60  ;;  %v12537_v39 = vrot.slane %v8640_v33, 4  ;;  %v498_v0 = vpack.c.bf16 %v466_v30, %v466_v30 }
  0x68   : > { %12676 = vst [vmem:[#allocation14_spill] sm:$0xff] %v8640_v33  ;;  %v1047_v49 = vld [vmem:[#allocation2 + $0x24] sm:$0x2]  ;;  %v7503_v43 = vrot.slane %v1390_v22, 9  ;;  %v561_v3 = vsel %vm529_vm7, %v8610_v61, %v497_v7  ;;  %v403_v4 = vunpack.c.l.bf16 %v8660_v40  ;;  %v1763_v46 = vrot.slane %v1762_v24, 4 }
  0x69   : > { %v7370_v38 = vrot.slane %v1047_v49, 9  ;;  %1017 = vst [vmem:[#allocation2 + $0xb4] sm:$0xf] %v1016_v11  ;;  %v843_v14 = vsel %vm8232_vm14, %v835_v23, %v842_v56  ;;  %v1191_v10 = vld [vmem:[#allocation2 + $0x28] sm:$0x8]  ;;  %v1020_v1 = vsel %vm8267_vm4, %v12537_v39, %v1019_v25  ;;  %v8690_v8 = vsel %vm530_vm12, %v8615_v53, %v498_v0 }
  0x6a   : > { %v1340_v45 = vld [vmem:[#allocation2 + $0x28] sm:$0xf]  ;;  %1018 = vst.msk [vmem:[#allocation2 + $0xb8] sm:$0xf] %vm12587_vm9, %v843_v14  ;;  %v7388_v2 = vrot.slane %v1191_v10, 11  ;;  %v404_v61 = vunpack.c.l.bf16 %v8665_v44  ;;  %v642_v18 = vshrl.u32 %v561_v3, 16 }
  0x6b   : > { %v1144_v58 = vsel %vm8267_vm4, %v7370_v38, %v1143_v31  ;;  %v1361_v63 = vld [vmem:[#allocation2 + $0xa8] sm:$0xf]  ;;  %v2263_v59 = vrot.slane %v1340_v45, 5  ;;  %v1383_v5 = vld [vmem:[#allocation2 + $0xb0] sm:$0x1]  ;;  %v1491_v35 = vshll.u32 %v1340_v45, 16 }
  0x6c   : > { %1145 = vst [vmem:[#allocation2 + $0x24] sm:$0x1] %v1144_v58  ;;  %v1746_v41 = vshrl.u32 %v1361_v63, 16  ;;  %v1749_v6 = vshll.u32 %v1361_v63, 16  ;;  %v1495_v55 = vshrl.u32 %v1340_v45, 16  ;;  %v1765_v36 = vshll.u32 %v1383_v5, 16 }
  0x6d   : > { %v1288_v51 = vld [vmem:[#allocation2 + $0x2c] sm:$0x1]  ;;  %1021 = vst [vmem:[#allocation2 + $0xbc] sm:$0x1] %v1020_v1  ;;  %v2265_v29 = vrot.slane %v2263_v59, 4  ;;  %v8696_v16 = vrot.slane %v1491_v35, 5  ;;  %v8706_v23 = vsel %vm8338_vm15, %v7503_v43, %v2263_v59 }
  0x6e   : > { %v1748_v9 = vrot.slane %v1746_v41, 4  ;;  %v1751_v12 = vrot.slane %v1749_v6, 5  ;;  %v1289_v62 = vsel %vm8319_vm8, %v7388_v2, %v1288_v51  ;;  %1040 = vst.msk [vmem:[#allocation2 + $0xd0] sm:$0xf] %vm12587_vm9, %v843_v14  ;;  %v1767_v54 = vrot.slane %v1765_v36, 5 }
  0x6f   : > { %1290 = vst [vmem:[#allocation2 + $0x2c] sm:$0x1] %v1289_v62  ;;  %v1497_v17 = vrot.slane %v1495_v55, 4  ;;  %vm8700_vm13 = vcmp.ge.f32.partialorder %v403_v4, 0.0  ;;  %v645_v28 = vshll.u32 %v561_v3, 16  ;;  %v650_v19 = vshrl.u32 %v8690_v8, 16 }
  0x70   : > { %v1752_v60 = vor.u32 %v1751_v12, %v1748_v9  ;;  %v1059_v25 = vld [vmem:[#allocation2 + $0xb4] sm:$0x2]  ;;  %v1179_v27 = vld [vmem:[#allocation2 + $0xb4] sm:$0x1]  ;;  %vm8711_vm10 = vcmp.ge.f32.partialorder %v404_v61, 0.0  ;;  %v1768_v22 = vsel %vm8403_vm6, %v1763_v46, %v1767_v54  ;;  %v8718_v24 = vrot.slane %v642_v18, 7  ;;  %vm531_vm11 = vmpackc.low %vm8700_vm13, %vm8700_vm13 }
  0x71   : > { %v1498_v49 = vor.u32 %v1497_v17, %v8696_v16  ;;  %v7382_v31 = vrot.slane %v1059_v25, 9  ;;  %v1203_v56 = vld [vmem:[#allocation2 + $0xb8] sm:$0x8]  ;;  %v1824_v43 = vunpack.c.l.b16 %v1768_v22  ;;  %v938_v2 = vld [vmem:[#allocation2 + $0x30] sm:$0xf]  ;;  %v2360_v9 = vunpack.c.l.b16 %v8706_v23  ;;  %vm532_vm2 = vmpackc.low %vm8711_vm10, %vm8711_vm10 }
  0x72   : > { %v1364_v11 = vld [vmem:[#allocation2 + $0xb8] sm:$0xf]  ;;  %v1753_v38 = vrot.slane %v1752_v60, 4  ;;  %v7400_v7 = vrot.slane %v1203_v56, 11  ;;  %v647_v6 = vor.u32 %v645_v28, %v8718_v24  ;;  %v648_v12 = vrot.slane %v8718_v24, 4 }
  0x73   : > { %v1339_v14 = vld [vmem:[#allocation2 + $0x24] sm:$0xf]  ;;  %v1779_v0 = vshll.u32 %v1364_v11, 16  ;;  %v1499_v1 = vrot.slane %v1498_v49, 4  ;;  %v1180_v63 = vsel %vm8267_vm4, %v7382_v31, %v1179_v27  ;;  %v1783_v41 = vshrl.u32 %v1364_v11, 16 }
  0x74   : > { %v8010_v10 = vld [vmem:[#allocation2 + $0x24] sm:$0xff]  ;;  %v1482_v45 = vshrl.u32 %v1339_v14, 16  ;;  %v1485_v58 = vshll.u32 %v1339_v14, 16  ;;  %v1758_v59 = vsel %vm8403_vm6, %v1753_v38, %v8636_v15  ;;  %1181 = vst [vmem:[#allocation2 + $0xb4] sm:$0x1] %v1180_v63  ;;  %v939_v62 = vsel %vm8249_vm3, %v647_v6, %v938_v2 }
  0x75   : > { %v1324_v3 = vld [vmem:[#allocation2 + $0xbc] sm:$0x1]  ;;  %v8725_v5 = vrot.slane %v1779_v0, 5  ;;  %7487 = vmatmul.msk.bf16.gmra.mxu1 %vm12589_vm5, %v8010_v10  ;;  %v1823_v35 = vunpack.c.l.b16 %v1758_v59  ;;  %v1785_v15 = vrot.slane %v1783_v41, 4  ;;  %940 = vst [vmem:[#allocation2 + $0x30] sm:$0xf] %v939_v62 }
  0x76   : > { %v1484_v55 = vrot.slane %v1482_v45, 4  ;;  %v1487_v46 = vrot.slane %v1485_v58, 5  ;;  %v1325_v36 = vsel %vm8319_vm8, %v7400_v7, %v1324_v3  ;;  %v1372_v51 = vld [vmem:[#allocation2 + $0x2c] sm:$0x1]  ;;  %v652_v27 = vrot.slane %v650_v19, 7 }
  0x77   : > { %1326 = vst [vmem:[#allocation2 + $0xbc] sm:$0x1] %v1325_v36  ;;  %v8735_v54 = vpack.c.b16 %v1824_v43, %v1823_v35  ;;  %v2266_v17 = vrot.slane %v1372_v51, 5  ;;  %v1501_v60 = vshll.u32 %v1372_v51, 16  ;;  %v1786_v25 = vor.u32 %v1785_v15, %v8725_v5  ;;  %v8761_v58 = vld [vmem:[%s8177_s12 + $0x28] sm:$0xf] }
  0x78   : > { %v1488_v18 = vor.u32 %v1487_v46, %v1484_v55  ;;  %v653_v28 = vshll.u32 %v8690_v8, 16  ;;  %v467_v23 = vmul.f32 0.010009766, %v403_v4  ;;  %v468_v56 = vmul.f32 0.010009766, %v404_v61  ;;  %v942_v8 = vld [vmem:[#allocation2 + $0x38] sm:$0x1] }
  0x79   : > { %12685 = vst [vmem:[#allocation15_spill] sm:$0xff] %v8735_v54  ;;  %7418 = vmatmul.msk.bf16.gmra.mxu3 %vm12589_vm5, %v8735_v54  ;;  %v2267_v22 = vsel %vm8338_vm15, %v2265_v29, %v2266_v17  ;;  %v1503_v31 = vrot.slane %v1501_v60, 5  ;;  %v1787_v24 = vrot.slane %v1786_v25, 4  ;;  %v657_v38 = vrot.slane %v652_v27, 4  ;;  %v8785_v55 = vld [vmem:[%s8177_s12 + $0x2c] sm:$0xf] }
  0x7a   : > { %v1489_v49 = vrot.slane %v1488_v18, 4  ;;  %v2361_v11 = vunpack.c.l.b16 %v2267_v22  ;;  %v655_v19 = vor.u32 %v653_v28, %v652_v27  ;;  %v499_v14 = vpack.c.bf16 %v467_v23, %v467_v23  ;;  %v945_v27 = vld [vmem:[#allocation2 + $0x3c] sm:$0xf] }
  0x7b   : > { %v1504_v29 = vsel %vm8403_vm6, %v1499_v1, %v1503_v31  ;;  %v1363_v43 = vld [vmem:[#allocation2 + $0xb4] sm:$0xf]  ;;  %v500_v61 = vpack.c.bf16 %v468_v56, %v468_v56  ;;  %v943_v2 = vsel %vm8267_vm4, %v657_v38, %v942_v8  ;;  %v405_v46 = vunpack.c.l.bf16 %v8761_v58  ;;  %v949_v38 = vld [vmem:[#allocation2 + $0x44] sm:$0x1]  ;;  %v1400_v33 = vld [vmem:[#allocation2 + $0x9c] sm:$0xe] }
  0x7c   : > { %v1494_v4 = vsel %vm8403_vm6, %v1489_v49, %v8696_v16  ;;  %v8758_v7 = vpack.c.b16 %v2361_v11, %v2360_v9  ;;  %v1802_v10 = vunpack.c.l.b16 %v1504_v29  ;;  %v1770_v45 = vshrl.u32 %v1363_v43, 16  ;;  %944 = vst [vmem:[#allocation2 + $0x38] sm:$0x1] %v943_v2  ;;  %v1146_v9 = vld [vmem:[#allocation2 + $0x30] sm:$0x1] }
  0x7d   : > { %v1801_v0 = vunpack.c.l.b16 %v1494_v4  ;;  %v1773_v16 = vshll.u32 %v1363_v43, 16  ;;  %v656_v1 = vsel %vm8232_vm14, %v648_v12, %v655_v19  ;;  %v563_v59 = vsel %vm531_vm11, %v8660_v40, %v499_v14  ;;  %v1048_v40 = vld [vmem:[#allocation2 + $0x30] sm:$0x2] }
  0x7e   : > { %12686 = vst [vmem:[#allocation16_spill] sm:$0xff] %v8758_v7  ;;  %v1384_v63 = vld [vmem:[#allocation2 + $0xbc] sm:$0x1]  ;;  %7520 = vmatmul.msk.bf16.gmra.mxu2 %vm12589_vm5, %v8758_v7  ;;  %v1772_v41 = vrot.slane %v1770_v45, 4  ;;  %v564_v35 = vsel %vm532_vm2, %v8665_v44, %v500_v61  ;;  %v7371_v51 = vrot.slane %v1048_v40, 9  ;;  %v659_v15 = vshrl.u32 %v563_v59, 16 }
  0x7f   : > { %v8775_v3 = vpack.c.b16 %v1802_v10, %v1801_v0  ;;  %v1789_v6 = vshll.u32 %v1384_v63, 16  ;;  %941 = vst.msk [vmem:[#allocation2 + $0x34] sm:$0xf] %vm12587_vm9, %v656_v1  ;;  %v1775_v53 = vrot.slane %v1773_v16, 5  ;;  %v662_v12 = vshll.u32 %v563_v59, 16 }
  0x80   : > { %v667_v17 = vshrl.u32 %v564_v35, 16  ;;  %v670_v30 = vshll.u32 %v564_v35, 16  ;;  %v406_v44 = vunpack.c.l.bf16 %v8785_v55  ;;  %v1147_v60 = vsel %vm8267_vm4, %v7371_v51, %v1146_v9  ;;  %v1391_v56 = vld [vmem:[#allocation2 + $0x30] sm:$0xe]  ;;  %v8826_v40 = vld [vmem:[%s8177_s12 + $0x34] sm:$0xf] }
  0x81   : > { %12687 = vst [vmem:[#allocation17_spill] sm:$0xff] %v8775_v3  ;;  %7407 = vmatmul.msk.bf16.gmra.mxu0 %vm12589_vm5, %v8775_v3  ;;  %v1791_v36 = vrot.slane %v1789_v6, 5  ;;  %v1776_v62 = vor.u32 %v1775_v53, %v1772_v41  ;;  %v661_v25 = vrot.slane %v659_v15, 7  ;;  %vm8795_vm1 = vcmp.ge.f32.partialorder %v405_v46, 0.0 }
  0x82   : > { %1148 = vst [vmem:[#allocation2 + $0x30] sm:$0x1] %v1147_v60  ;;  %v669_v23 = vrot.slane %v667_v17, 7  ;;  %v469_v49 = vmul.f32 0.010009766, %v405_v46  ;;  %vm8799_vm7 = vcmp.ge.f32.partialorder %v406_v44, 0.0  ;;  %v470_v61 = vmul.f32 0.010009766, %v406_v44  ;;  %vm533_vm12 = vmpackc.low %vm8795_vm1, %vm8795_vm1 }
  0x83   : > { %v1792_v18 = vsel %vm8403_vm6, %v1787_v24, %v1791_v36  ;;  %v1777_v28 = vrot.slane %v1776_v62, 4  ;;  %v664_v11 = vor.u32 %v662_v12, %v661_v25  ;;  %v665_v19 = vrot.slane %v661_v25, 4  ;;  %v1291_v45 = vld [vmem:[#allocation2 + $0x38] sm:$0x1]  ;;  %vm534_vm13 = vmpackc.low %vm8799_vm7, %vm8799_vm7  ;;  %v952_v24 = vld [vmem:[#allocation2 + $0x48] sm:$0xf] }
  0x84   : > { %v1826_v31 = vunpack.c.l.b16 %v1792_v18  ;;  %v672_v43 = vor.u32 %v670_v30, %v669_v23  ;;  %v674_v14 = vrot.slane %v669_v23, 4  ;;  %v501_v16 = vpack.c.bf16 %v469_v49, %v469_v49 }
  0x85   : > { %v1782_v8 = vsel %vm8403_vm6, %v1777_v28, %v8725_v5  ;;  %v946_v59 = vsel %vm8249_vm3, %v664_v11, %v945_v27  ;;  %v8814_v5 = vld [vmem:[%s8177_s12 + $0x30] sm:$0xf]  ;;  %v7504_v35 = vrot.slane %v1391_v56, 9  ;;  %v502_v9 = vpack.c.bf16 %v470_v61, %v470_v61 }
  0x86   : > { %v1192_v4 = vld [vmem:[#allocation2 + $0x34] sm:$0x8]  ;;  %v1825_v0 = vunpack.c.l.b16 %v1782_v8  ;;  %v673_v2 = vsel %vm8232_vm14, %v665_v19, %v672_v43  ;;  %947 = vst [vmem:[#allocation2 + $0x3c] sm:$0xf] %v946_v59  ;;  %v950_v53 = vsel %vm8267_vm4, %v674_v14, %v949_v38  ;;  %v565_v62 = vsel %vm533_vm12, %v8761_v58, %v501_v16  ;;  %v8857_v16 = vld [vmem:[%s8177_s12 + $0x38] sm:$0xf] }
  0x87   : > { %v1342_v29 = vld [vmem:[#allocation2 + $0x34] sm:$0xf]  ;;  %v7389_v10 = vrot.slane %v1192_v4, 11  ;;  %948 = vst.msk [vmem:[#allocation2 + $0x40] sm:$0xf] %vm12587_vm9, %v673_v2  ;;  %v407_v17 = vunpack.c.l.bf16 %v8814_v5  ;;  %v566_v60 = vsel %vm534_vm13, %v8785_v55, %v502_v9  ;;  %v676_v25 = vshrl.u32 %v565_v62, 16 }
  0x88   : > { %v1515_v63 = vshll.u32 %v1342_v29, 16  ;;  %v1519_v1 = vshrl.u32 %v1342_v29, 16  ;;  %v8816_v41 = vpack.c.b16 %v1826_v31, %v1825_v0  ;;  %v2270_v46 = vrot.slane %v1342_v29, 5  ;;  %951 = vst [vmem:[#allocation2 + $0x44] sm:$0x1] %v950_v53 }
  0x89   : > { %v1292_v6 = vsel %vm8319_vm8, %v7389_v10, %v1291_v45  ;;  %v1341_v15 = vld [vmem:[#allocation2 + $0x30] sm:$0xf]  ;;  %v679_v27 = vshll.u32 %v565_v62, 16  ;;  %v684_v28 = vshrl.u32 %v566_v60, 16  ;;  %v408_v58 = vunpack.c.l.bf16 %v8826_v40 }
  0x8a   : > { %12692 = vst [vmem:[#allocation18_spill] sm:$0xff] %v8816_v41  ;;  %v1517_v36 = vrot.slane %v1515_v63, 5  ;;  %v1521_v51 = vrot.slane %v1519_v1, 4  ;;  %7419 = vmatmul.msk.bf16.gmra.mxu3 %vm12589_vm5, %v8816_v41  ;;  %v8011_v12 = vld [vmem:[#allocation2 + $0x30] sm:$0xff]  ;;  %v1506_v30 = vshrl.u32 %v1341_v15, 16  ;;  %v1509_v44 = vshll.u32 %v1341_v15, 16 }
  0x8b   : > { %1293 = vst [vmem:[#allocation2 + $0x38] sm:$0x1] %v1292_v6  ;;  %7488 = vmatmul.msk.bf16.gmra.mxu1 %vm12589_vm5, %v8011_v12  ;;  %v2271_v23 = vsel %vm8338_vm15, %v7504_v35, %v2270_v46  ;;  %v2272_v22 = vrot.slane %v2270_v46, 4  ;;  %v678_v11 = vrot.slane %v676_v25, 7  ;;  %v686_v19 = vrot.slane %v684_v28, 7 }
  0x8c   : > { %v1522_v18 = vor.u32 %v1521_v51, %v1517_v36  ;;  %v1508_v49 = vrot.slane %v1506_v30, 4  ;;  %v1511_v31 = vrot.slane %v1509_v44, 5  ;;  %v687_v38 = vshll.u32 %v566_v60, 16  ;;  %v956_v28 = vld [vmem:[#allocation2 + $0x50] sm:$0x1] }
  0x8d   : > { %v1049_v8 = vld [vmem:[#allocation2 + $0x3c] sm:$0x2]  ;;  %v1149_v4 = vld [vmem:[#allocation2 + $0x3c] sm:$0x1]  ;;  %vm8848_vm10 = vcmp.ge.f32.partialorder %v407_v17, 0.0  ;;  %vm8852_vm11 = vcmp.ge.f32.partialorder %v408_v58, 0.0  ;;  %v2362_v61 = vunpack.c.l.b16 %v2271_v23  ;;  %v681_v45 = vor.u32 %v679_v27, %v678_v11 }
  0x8e   : > { %v1523_v56 = vrot.slane %v1522_v18, 4  ;;  %v1512_v55 = vor.u32 %v1511_v31, %v1508_v49  ;;  %v1392_v0 = vld [vmem:[#allocation2 + $0x3c] sm:$0xe]  ;;  %v7372_v10 = vrot.slane %v1049_v8, 9  ;;  %v471_v63 = vmul.f32 0.010009766, %v407_v17  ;;  %vm535_vm2 = vmpackc.low %vm8848_vm10, %vm8848_vm10 }
  0x8f   : > { %v1193_v6 = vld [vmem:[#allocation2 + $0x40] sm:$0x8]  ;;  %v682_v35 = vrot.slane %v678_v11, 4  ;;  %v1294_v46 = vld [vmem:[#allocation2 + $0x44] sm:$0x1]  ;;  %v689_v15 = vor.u32 %v687_v38, %v686_v19  ;;  %v953_v12 = vsel %vm8249_vm3, %v681_v45, %v952_v24  ;;  %v691_v44 = vrot.slane %v686_v19, 4  ;;  %vm536_vm1 = vmpackc.low %vm8852_vm11, %vm8852_vm11 }
  0x90   : > { %v1513_v2 = vrot.slane %v1512_v55, 4  ;;  %v7390_v53 = vrot.slane %v1193_v6, 11  ;;  %v1344_v51 = vld [vmem:[#allocation2 + $0x40] sm:$0xf]  ;;  %v1150_v9 = vsel %vm8267_vm4, %v7372_v10, %v1149_v4  ;;  %954 = vst [vmem:[#allocation2 + $0x48] sm:$0xf] %v953_v12 }
  0x91   : > { %1151 = vst [vmem:[#allocation2 + $0x3c] sm:$0x1] %v1150_v9  ;;  %v1539_v27 = vshll.u32 %v1344_v51, 16  ;;  %v7505_v49 = vrot.slane %v1392_v0, 9  ;;  %v8872_v31 = vld [vmem:[%s8177_s12 + $0x3c] sm:$0xf]  ;;  %v690_v4 = vsel %vm8232_vm14, %v682_v35, %v689_v15  ;;  %v503_v0 = vpack.c.bf16 %v471_v63, %v471_v63 }
  0x92   : > { %v1373_v14 = vld [vmem:[#allocation2 + $0x38] sm:$0x1]  ;;  %v1518_v17 = vsel %vm8403_vm6, %v1513_v2, %v1517_v36  ;;  %v1295_v25 = vsel %vm8319_vm8, %v7390_v53, %v1294_v46  ;;  %v409_v36 = vunpack.c.l.bf16 %v8857_v16  ;;  %v8019_v38 = vld [vmem:[#allocation2 + $0x90] sm:$0xff]  ;;  %v2277_v24 = vrot.slane %v1344_v51, 5  ;;  %955 = vst.msk [vmem:[#allocation2 + $0x4c] sm:$0xf] %vm12587_vm9, %v690_v4 }
  0x93   : > { %v2273_v1 = vrot.slane %v1373_v14, 5  ;;  %v1525_v59 = vshll.u32 %v1373_v14, 16  ;;  %v1803_v60 = vunpack.c.l.b16 %v1518_v17  ;;  %1296 = vst [vmem:[#allocation2 + $0x44] sm:$0x1] %v1295_v25  ;;  %v8877_v55 = vrot.slane %v1539_v27, 5 }
  0x94   : > { %v472_v14 = vmul.f32 0.010009766, %v408_v58  ;;  %v410_v10 = vunpack.c.l.bf16 %v8872_v31  ;;  %v2278_v45 = vsel %vm8338_vm15, %v7505_v49, %v2277_v24  ;;  %v2279_v2 = vrot.slane %v2277_v24, 4 }
  0x95   : > { %v2274_v62 = vsel %vm8338_vm15, %v2272_v22, %v2273_v1  ;;  %v1527_v30 = vrot.slane %v1525_v59, 5  ;;  %v1543_v22 = vshrl.u32 %v1344_v51, 16  ;;  %v567_v6 = vsel %vm535_vm2, %v8814_v5, %v503_v0 }
  0x96   : > { %v2363_v18 = vunpack.c.l.b16 %v2274_v62  ;;  %v504_v58 = vpack.c.bf16 %v472_v14, %v472_v14  ;;  %v473_v35 = vmul.f32 0.010009766, %v409_v36  ;;  %v474_v53 = vmul.f32 0.010009766, %v410_v10 }
  0x97   : > { %v1528_v23 = vsel %vm8403_vm6, %v1523_v56, %v1527_v30  ;;  %v1545_v8 = vrot.slane %v1543_v22, 4  ;;  %v957_v56 = vsel %vm8267_vm4, %v691_v44, %v956_v28  ;;  %vm8907_vm7 = vcmp.ge.f32.partialorder %v409_v36, 0.0  ;;  %v1050_v29 = vld [vmem:[#allocation2 + $0x48] sm:$0x2]  ;;  %v1152_v27 = vld [vmem:[#allocation2 + $0x48] sm:$0x1] }
  0x98   : > { %v8875_v11 = vpack.c.b16 %v2363_v18, %v2362_v61  ;;  %v1804_v19 = vunpack.c.l.b16 %v1528_v23  ;;  %958 = vst [vmem:[#allocation2 + $0x50] sm:$0x1] %v957_v56  ;;  %v1343_v63 = vld [vmem:[#allocation2 + $0x3c] sm:$0xf]  ;;  %vm8911_vm12 = vcmp.ge.f32.partialorder %v410_v10, 0.0  ;;  %v2364_v62 = vunpack.c.l.b16 %v2278_v45  ;;  %vm537_vm13 = vmpackc.low %vm8907_vm7, %vm8907_vm7 }
  0x99   : > { %v1546_v1 = vor.u32 %v1545_v8, %v8877_v55  ;;  %v8012_v59 = vld [vmem:[#allocation2 + $0x3c] sm:$0xff]  ;;  %v1530_v46 = vshrl.u32 %v1343_v63, 16  ;;  %v1533_v51 = vshll.u32 %v1343_v63, 16  ;;  %v568_v5 = vsel %vm536_vm1, %v8826_v40, %v504_v58  ;;  %v8922_v28 = vld [vmem:[#allocation2 + $0x48] sm:$0xe]  ;;  %vm538_vm10 = vmpackc.low %vm8911_vm12, %vm8911_vm12 }
  0x9a   : > { %12697 = vst [vmem:[#allocation19_spill] sm:$0xff] %v8875_v11  ;;  %7521 = vmatmul.msk.bf16.gmra.mxu2 %vm12589_vm5, %v8875_v11  ;;  %v8888_v61 = vpack.c.b16 %v1804_v19, %v1803_v60  ;;  %7496 = vmatmul.msk.bf16.vlgmr.msrb.gmra.mxu3 %vm12589_vm5, %v8019_v38  ;;  %v1374_v12 = vld [vmem:[#allocation2 + $0x44] sm:$0x1]  ;;  %v693_v30 = vshrl.u32 %v567_v6, 16  ;;  %v7373_v23 = vrot.slane %v1050_v29, 9  ;;  %v505_v22 = vpack.c.bf16 %v473_v35, %v473_v35 }
  0x9b   : > { %v1547_v17 = vrot.slane %v1546_v1, 4  ;;  %7489 = vmatmul.msk.bf16.gmra.mxu1 %vm12589_vm5, %v8012_v59  ;;  %v2280_v44 = vrot.slane %v1374_v12, 5  ;;  %v1532_v18 = vrot.slane %v1530_v46, 4  ;;  %v1535_v60 = vrot.slane %v1533_v51, 5  ;;  %v1194_v43 = vld [vmem:[#allocation2 + $0x4c] sm:$0x8] }
  0x9c   : > { %12698 = vst [vmem:[#allocation20_spill] sm:$0xff] %v8888_v61  ;;  %7408 = vmatmul.msk.bf16.gmra.mxu0 %vm12589_vm5, %v8888_v61  ;;  %v1549_v25 = vshll.u32 %v1374_v12, 16  ;;  %v695_v49 = vrot.slane %v693_v30, 7  ;;  %v506_v36 = vpack.c.bf16 %v474_v53, %v474_v53  ;;  %v1346_v8 = vld [vmem:[#allocation2 + $0x4c] sm:$0xf]  ;;  %v696_v40 = vshll.u32 %v567_v6, 16 }
  0x9d   : > { %v2281_v19 = vsel %vm8338_vm15, %v2279_v2, %v2280_v44  ;;  %v1536_v38 = vor.u32 %v1535_v60, %v1532_v18  ;;  %v7391_v56 = vrot.slane %v1194_v43, 11  ;;  %v1153_v0 = vsel %vm8267_vm4, %v7373_v23, %v1152_v27  ;;  %v959_v35 = vld [vmem:[#allocation2 + $0x54] sm:$0xf]  ;;  %v8020_v27 = vld [vmem:[#allocation2 + $0x9c] sm:$0xff] }
  0x9e   : > { %v1551_v24 = vrot.slane %v1549_v25, 5  ;;  %v2365_v4 = vunpack.c.l.b16 %v2281_v19  ;;  %v701_v10 = vshrl.u32 %v568_v5, 16  ;;  %1154 = vst [vmem:[#allocation2 + $0x48] sm:$0x1] %v1153_v0  ;;  %v1563_v58 = vshll.u32 %v1346_v8, 16 }
  0x9f   : > { %v1297_v14 = vld [vmem:[#allocation2 + $0x50] sm:$0x1]  ;;  %v1537_v45 = vrot.slane %v1536_v38, 4  ;;  %v1567_v63 = vshrl.u32 %v1346_v8, 16  ;;  %v7506_v6 = vrot.slane %v8922_v28, 9  ;;  %v2284_v46 = vrot.slane %v1346_v8, 5 }
  0xa0   : > { %v1552_v1 = vsel %vm8403_vm6, %v1547_v17, %v1551_v24  ;;  %v1298_v59 = vsel %vm8319_vm8, %v7391_v56, %v1297_v14  ;;  %v8942_v51 = vrot.slane %v1563_v58, 5  ;;  %v704_v12 = vshll.u32 %v568_v5, 16  ;;  %v963_v28 = vld [vmem:[#allocation2 + $0x5c] sm:$0x1]  ;;  %v966_v38 = vld [vmem:[#allocation2 + $0x60] sm:$0xf] }
  0xa1   : > { %v1806_v2 = vunpack.c.l.b16 %v1552_v1  ;;  %v1542_v53 = vsel %vm8403_vm6, %v1537_v45, %v8877_v55  ;;  %1299 = vst [vmem:[#allocation2 + $0x50] sm:$0x1] %v1298_v59  ;;  %v8944_v17 = vpack.c.b16 %v2365_v4, %v2364_v62  ;;  %v1569_v30 = vrot.slane %v1567_v63, 4  ;;  %v8965_v56 = vld [vmem:[%s8177_s12 + $0x40] sm:$0xf] }
  0xa2   : > { %v1805_v29 = vunpack.c.l.b16 %v1542_v53  ;;  %v698_v44 = vor.u32 %v696_v40, %v695_v49  ;;  %v699_v18 = vrot.slane %v695_v49, 4  ;;  %v703_v60 = vrot.slane %v701_v10, 7  ;;  %v8968_v14 = vld [vmem:[%s8177_s12 + $0x44] sm:$0xf] }
  0xa3   : > { %12703 = vst [vmem:[#allocation21_spill] sm:$0xff] %v8944_v17  ;;  %v569_v15 = vsel %vm537_vm13, %v8857_v16, %v505_v22  ;;  %v570_v55 = vsel %vm538_vm10, %v8872_v31, %v506_v36  ;;  %v1570_v62 = vor.u32 %v1569_v30, %v8942_v51  ;;  %v2286_v16 = vrot.slane %v2284_v46, 4 }
  0xa4   : > { %v8953_v25 = vpack.c.b16 %v1806_v2, %v1805_v29  ;;  %v960_v5 = vsel %vm8249_vm3, %v698_v44, %v959_v35  ;;  %v710_v23 = vshrl.u32 %v569_v15, 16  ;;  %v706_v49 = vor.u32 %v704_v12, %v703_v60 }
  0xa5   : > { %v708_v19 = vrot.slane %v703_v60, 4  ;;  %961 = vst [vmem:[#allocation2 + $0x54] sm:$0xf] %v960_v5  ;;  %v713_v9 = vshll.u32 %v569_v15, 16  ;;  %v1345_v31 = vld [vmem:[#allocation2 + $0x48] sm:$0xf]  ;;  %v2285_v10 = vsel %vm8338_vm15, %v7506_v6, %v2284_v46  ;;  %v411_v30 = vunpack.c.l.bf16 %v8965_v56 }
  0xa6   : > { %v8013_v22 = vld [vmem:[#allocation2 + $0x48] sm:$0xff]  ;;  %v712_v36 = vrot.slane %v710_v23, 7  ;;  %v718_v24 = vshrl.u32 %v570_v55, 16  ;;  %v1554_v43 = vshrl.u32 %v1345_v31, 16  ;;  %v1557_v8 = vshll.u32 %v1345_v31, 16 }
  0xa7   : > { %v707_v40 = vsel %vm8232_vm14, %v699_v18, %v706_v49  ;;  %v964_v4 = vsel %vm8267_vm4, %v708_v19, %v963_v28  ;;  %v1571_v45 = vrot.slane %v1570_v62, 4  ;;  %v721_v58 = vshll.u32 %v570_v55, 16  ;;  %v970_v23 = vld [vmem:[#allocation2 + $0x68] sm:$0x1] }
  0xa8   : > { %v1375_v0 = vld [vmem:[#allocation2 + $0x50] sm:$0x1]  ;;  %962 = vst.msk [vmem:[#allocation2 + $0x58] sm:$0xf] %vm12587_vm9, %v707_v40  ;;  %v715_v1 = vor.u32 %v713_v9, %v712_v36  ;;  %v1556_v2 = vrot.slane %v1554_v43, 4  ;;  %v1559_v59 = vrot.slane %v1557_v8, 5  ;;  %v2366_v18 = vunpack.c.l.b16 %v2285_v10 }
  0xa9   : > { %v2287_v63 = vrot.slane %v1375_v0, 5  ;;  %v1573_v35 = vshll.u32 %v1375_v0, 16  ;;  %965 = vst [vmem:[#allocation2 + $0x5c] sm:$0x1] %v964_v4  ;;  %v716_v53 = vrot.slane %v712_v36, 4  ;;  %v720_v12 = vrot.slane %v718_v24, 7 }
  0xaa   : > { %7522 = vmatmul.msk.bf16.gmra.mxu2 %vm12589_vm5, %v8944_v17  ;;  %7497 = vmatmul.msk.bf16.gmra.mxu3 %vm12589_vm5, %v8020_v27  ;;  %v967_v29 = vsel %vm8249_vm3, %v715_v1, %v966_v38  ;;  %v1560_v46 = vor.u32 %v1559_v59, %v1556_v2  ;;  %v412_v27 = vunpack.c.l.bf16 %v8968_v14  ;;  %vm8985_vm11 = vcmp.ge.f32.partialorder %v411_v30, 0.0 }
  0xab   : > { %7490 = vmatmul.msk.bf16.gmra.mxu1 %vm12589_vm5, %v8013_v22  ;;  %v2288_v6 = vsel %vm8338_vm15, %v2286_v16, %v2287_v63  ;;  %v1575_v44 = vrot.slane %v1573_v35, 5  ;;  %968 = vst [vmem:[#allocation2 + $0x60] sm:$0xf] %v967_v29  ;;  %v723_v55 = vor.u32 %v721_v58, %v720_v12  ;;  %v725_v16 = vrot.slane %v720_v12, 4  ;;  %vm539_vm2 = vmpackc.low %vm8985_vm11, %vm8985_vm11 }
  0xac   : > { %7409 = vmatmul.msk.bf16.gmra.mxu0 %vm12589_vm5, %v8953_v25  ;;  %v1051_v60 = vld [vmem:[#allocation2 + $0x54] sm:$0x2]  ;;  %v1155_v15 = vld [vmem:[#allocation2 + $0x54] sm:$0x1]  ;;  %v1561_v62 = vrot.slane %v1560_v46, 4  ;;  %v2367_v19 = vunpack.c.l.b16 %v2288_v6  ;;  %v475_v31 = vmul.f32 0.010009766, %v411_v30 }
  0xad   : > { %v1576_v5 = vsel %vm8403_vm6, %v1571_v45, %v1575_v44  ;;  %v7374_v28 = vrot.slane %v1051_v60, 9  ;;  %v1394_v9 = vld [vmem:[#allocation2 + $0x54] sm:$0xe]  ;;  %v724_v38 = vsel %vm8232_vm14, %v716_v53, %v723_v55  ;;  %v971_v10 = vsel %vm8267_vm4, %v725_v16, %v970_v23  ;;  %v8021_v6 = vld [vmem:[#allocation2 + $0xa8] sm:$0xff] }
  0xae   : > { %v1566_v22 = vsel %vm8403_vm6, %v1561_v62, %v8942_v51  ;;  %969 = vst.msk [vmem:[#allocation2 + $0x64] sm:$0xf] %vm12587_vm9, %v724_v38  ;;  %v1808_v40 = vunpack.c.l.b16 %v1576_v5  ;;  %v8999_v58 = vpack.c.b16 %v2367_v19, %v2366_v18  ;;  %v476_v2 = vmul.f32 0.010009766, %v412_v27  ;;  %v9015_v60 = vld [vmem:[%s8177_s12 + $0x48] sm:$0xf] }
  0xaf   : > { %v1195_v36 = vld [vmem:[#allocation2 + $0x58] sm:$0x8]  ;;  %v1156_v43 = vsel %vm8267_vm4, %v7374_v28, %v1155_v15  ;;  %v1807_v8 = vunpack.c.l.b16 %v1566_v22  ;;  %972 = vst [vmem:[#allocation2 + $0x68] sm:$0x1] %v971_v10  ;;  %v507_v59 = vpack.c.bf16 %v475_v31, %v475_v31  ;;  %v7507_v35 = vrot.slane %v1394_v9, 9 }
  0xb0   : > { %v1348_v24 = vld [vmem:[#allocation2 + $0x58] sm:$0xf]  ;;  %v7392_v4 = vrot.slane %v1195_v36, 11  ;;  %v1300_v0 = vld [vmem:[#allocation2 + $0x5c] sm:$0x1]  ;;  %vm9010_vm1 = vcmp.ge.f32.partialorder %v412_v27, 0.0  ;;  %v508_v28 = vpack.c.bf16 %v476_v2, %v476_v2  ;;  %v413_v36 = vunpack.c.l.bf16 %v9015_v60 }
  0xb1   : > { %1157 = vst [vmem:[#allocation2 + $0x54] sm:$0x1] %v1156_v43  ;;  %v1587_v45 = vshll.u32 %v1348_v24, 16  ;;  %v1591_v1 = vshrl.u32 %v1348_v24, 16  ;;  %v2291_v53 = vrot.slane %v1348_v24, 5  ;;  %v9008_v30 = vpack.c.b16 %v1808_v40, %v1807_v8  ;;  %v2125_v62 = vpop.f32.mrf.mxu1  ;;  %vm540_vm7 = vmpackc.low %vm9010_vm1, %vm9010_vm1 }
  0xb2   : > { %v1301_v51 = vsel %vm8319_vm8, %v7392_v4, %v1300_v0  ;;  %v1052_v63 = vld [vmem:[#allocation2 + $0x60] sm:$0x2]  ;;  %v1158_v44 = vld [vmem:[#allocation2 + $0x60] sm:$0x1]  ;;  %v571_v23 = vsel %vm539_vm2, %v8965_v56, %v507_v59  ;;  %v7533_v8 = vld [vmem:[%s12533_s5 + $0x6] sm:$0x3] }
  0xb3   : > { %1302 = vst [vmem:[#allocation2 + $0x5c] sm:$0x1] %v1301_v51  ;;  %v9003_v12 = vrot.slane %v1587_v45, 5  ;;  %v1593_v29 = vrot.slane %v1591_v1, 4  ;;  %v7375_v46 = vrot.slane %v1052_v63, 9  ;;  %v9026_v27 = vsel %vm8338_vm15, %v7507_v35, %v2291_v53 }
  0xb4   : > { %v2293_v49 = vrot.slane %v2291_v53, 4  ;;  %v727_v40 = vshrl.u32 %v571_v23, 16  ;;  %v730_v4 = vshll.u32 %v571_v23, 16  ;;  %v2368_v10 = vunpack.c.l.b16 %v9026_v27 }
  0xb5   : > { %v1196_v15 = vld [vmem:[#allocation2 + $0x64] sm:$0x8]  ;;  %v1159_v5 = vsel %vm8267_vm4, %v7375_v46, %v1158_v44  ;;  %v1594_v9 = vor.u32 %v1593_v29, %v9003_v12  ;;  %v572_v51 = vsel %vm540_vm7, %v8968_v14, %v508_v28  ;;  %vm9097_vm12 = vcmp.ge.f32.partialorder %v413_v36, 0.0 }
  0xb6   : > { %v9019_v55 = vld [vmem:[#allocation2 + $0x64] sm:$0xf]  ;;  %v7393_v16 = vrot.slane %v1196_v15, 11  ;;  %v1303_v22 = vld [vmem:[#allocation2 + $0x68] sm:$0x1]  ;;  %v729_v28 = vrot.slane %v727_v40, 7  ;;  %vm541_vm10 = vmpackc.low %vm9097_vm12, %vm9097_vm12 }
  0xb7   : > { %1160 = vst [vmem:[#allocation2 + $0x60] sm:$0x1] %v1159_v5  ;;  %v1611_v43 = vshll.u32 %v9019_v55, 16  ;;  %v1595_v2 = vrot.slane %v1594_v9, 4  ;;  %v1615_v53 = vshrl.u32 %v9019_v55, 16  ;;  %v2585_v5 = vsel %vm12588_vm0, %v7533_v8, 0 }
  0xb8   : > { %v1347_v19 = vld [vmem:[#allocation2 + $0x54] sm:$0xf]  ;;  %v1304_v24 = vsel %vm8319_vm8, %v7393_v16, %v1303_v22  ;;  %v9056_v15 = vld [vmem:[#allocation2 + $0x90] sm:$0xe]  ;;  %2594 = vmatpush.bf16.msrb.mxu3 %v2585_v5  ;;  %v733_v5 = vrot.slane %v729_v28, 4 }
  0xb9   : > { %v9029_v38 = vld [vmem:[#allocation2 + $0x54] sm:$0xff]  ;;  %v1578_v56 = vshrl.u32 %v1347_v19, 16  ;;  %v1581_v31 = vshll.u32 %v1347_v19, 16  ;;  %1305 = vst [vmem:[#allocation2 + $0x68] sm:$0x1] %v1304_v24  ;;  %v9054_v44 = vrot.slane %v1611_v43, 5  ;;  %v9063_v16 = vpop.f32.mrf.mxu1  ;;  %v732_v43 = vor.u32 %v730_v4, %v729_v28 }
  0xba   : > { %7523 = vmatmul.msk.bf16.gmra.mxu2 %vm12589_vm5, %v8999_v58  ;;  %7498 = vmatmul.msk.bf16.gmra.mxu3 %vm12589_vm5, %v8021_v6  ;;  %v1376_v0 = vld [vmem:[#allocation2 + $0x5c] sm:$0x1]  ;;  %v1617_v14 = vrot.slane %v1615_v53, 4  ;;  %v7512_v22 = vrot.slane %v9056_v15, 9  ;;  %v8078_v24 = vld [vmem:[#allocation2 + $0x94] sm:$0xf] }
  0xbb   : > { %v1580_v45 = vrot.slane %v1578_v56, 4  ;;  %v1583_v1 = vrot.slane %v1581_v31, 5  ;;  %7491 = vmatmul.msk.bf16.gmra.mxu1 %vm12589_vm5, %v9029_v38  ;;  %v2294_v63 = vrot.slane %v1376_v0, 5  ;;  %v1597_v59 = vshll.u32 %v1376_v0, 16 }
  0xbc   : > { %7410 = vmatmul.msk.bf16.gmra.mxu0 %vm12589_vm5, %v9008_v30  ;;  %v2298_v0 = vrot.slane %v9019_v55, 5  ;;  %v1618_v53 = vor.u32 %v1617_v14, %v9054_v44  ;;  %v8022_v14 = vld [vmem:[#allocation2 + $0xb4] sm:$0xff] }
  0xbd   : > { %v1905_v35 = vpop.f32.mrf.mxu0  ;;  %v1584_v29 = vor.u32 %v1583_v1, %v1580_v45  ;;  %v2295_v18 = vsel %vm8338_vm15, %v2293_v49, %v2294_v63  ;;  %v1599_v23 = vrot.slane %v1597_v59, 5  ;;  %v2326_v49 = vrot.slane %v8078_v24, 5  ;;  %v973_v1 = vld [vmem:[#allocation2 + $0x6c] sm:$0xf]  ;;  %v977_v63 = vld [vmem:[#allocation2 + $0x74] sm:$0x1] }
  0xbe   : > { %v2126_v6 = vadd.f32 %v2125_v62, %v1905_v35  ;;  %v2462_v46 = vpop.f32.mrf.mxu2  ;;  %v2369_v27 = vunpack.c.l.b16 %v2295_v18  ;;  %v735_v62 = vshrl.u32 %v572_v51, 16  ;;  %v1349_v31 = vld [vmem:[#allocation2 + $0x60] sm:$0xf] }
  0xbf   : > { %v1585_v19 = vrot.slane %v1584_v29, 4  ;;  %v1600_v56 = vsel %vm8403_vm6, %v1595_v2, %v1599_v23  ;;  %v1602_v45 = vshrl.u32 %v1349_v31, 16  ;;  %v1395_v35 = vld [vmem:[#allocation2 + $0x60] sm:$0xe]  ;;  %v1605_v2 = vshll.u32 %v1349_v31, 16 }
  0xc0   : > { %v9061_v9 = vadd.f32 %v2462_v46, %v2126_v6  ;;  %v1810_v40 = vunpack.c.l.b16 %v1600_v56  ;;  %v737_v29 = vrot.slane %v735_v62, 7  ;;  %v9074_v6 = vld [vmem:[%s8177_s12 + $0x4c] sm:$0xf]  ;;  %v9076_v46 = vpack.c.b16 %v2369_v27, %v2368_v10  ;;  %v1377_v4 = vld [vmem:[#allocation2 + $0x68] sm:$0x1] }
  0xc1   : > { %v1590_v8 = vsel %vm8403_vm6, %v1585_v19, %v9003_v12  ;;  %v1604_v15 = vrot.slane %v1602_v45, 4  ;;  %v738_v12 = vshll.u32 %v572_v51, 16  ;;  %v1607_v18 = vrot.slane %v1605_v2, 5 }
  0xc2   : > { %v1809_v59 = vunpack.c.l.b16 %v1590_v8  ;;  %v1621_v23 = vshll.u32 %v1377_v4, 16  ;;  %v742_v19 = vrot.slane %v737_v29, 4  ;;  %v974_v56 = vsel %vm8249_vm3, %v732_v43, %v973_v1  ;;  %v8079_v8 = vld [vmem:[#allocation2 + $0x98] sm:$0x1]  ;;  %v9091_v1 = vld [vmem:[#allocation2 + $0x60] sm:$0xff] }
  0xc3   : > { %v7508_v62 = vrot.slane %v1395_v35, 9  ;;  %v740_v10 = vor.u32 %v738_v12, %v737_v29  ;;  %975 = vst [vmem:[#allocation2 + $0x6c] sm:$0xf] %v974_v56  ;;  %v414_v27 = vunpack.c.l.bf16 %v9074_v6  ;;  %v1608_v28 = vor.u32 %v1607_v18, %v1604_v15  ;;  %v2130_v12 = vpop.f32.mrf.mxu1 }
  0xc4   : > { %v9082_v31 = vpack.c.b16 %v1810_v40, %v1809_v59  ;;  %v2328_v51 = vrot.slane %v2326_v49, 4  ;;  %v2329_v45 = vrot.slane %v8079_v8, 5  ;;  %v978_v2 = vsel %vm8267_vm4, %v742_v19, %v977_v63 }
  0xc5   : > { %v9078_v55 = vpop.f32.mrf.mxu0  ;;  %v2300_v43 = vrot.slane %v2298_v0, 4  ;;  %v2301_v40 = vrot.slane %v1377_v4, 5  ;;  %v741_v59 = vsel %vm8232_vm14, %v733_v5, %v740_v10  ;;  %979 = vst [vmem:[#allocation2 + $0x74] sm:$0x1] %v978_v2  ;;  %v1619_v29 = vrot.slane %v1618_v53, 4 }
  0xc6   : > { %v9084_v24 = vpop.f32.mrf.mxu2  ;;  %v1623_v15 = vrot.slane %v1621_v23, 5  ;;  %v2327_v63 = vsel %vm8338_vm15, %v7512_v22, %v2326_v49  ;;  %976 = vst.msk [vmem:[#allocation2 + $0x70] sm:$0xf] %vm12587_vm9, %v741_v59  ;;  %v2299_v4 = vsel %vm8338_vm15, %v7508_v62, %v2298_v0  ;;  %v1609_v5 = vrot.slane %v1608_v28, 4 }
  0xc7   : > { %vm9109_vm13 = vcmp.ge.f32.partialorder %v414_v27, 0.0  ;;  %v477_v53 = vmul.f32 0.010009766, %v413_v36  ;;  %v2330_v22 = vsel %vm8338_vm15, %v2328_v51, %v2329_v45  ;;  %v478_v49 = vmul.f32 0.010009766, %v414_v27 }
  0xc8   : > { %v2302_v0 = vsel %vm8338_vm15, %v2300_v43, %v2301_v40  ;;  %vm542_vm11 = vmpackc.low %vm9109_vm13, %vm9109_vm13  ;;  %v2370_v36 = vunpack.c.l.b16 %v2299_v4  ;;  %v1624_v19 = vsel %vm8403_vm6, %v1619_v29, %v1623_v15  ;;  %v2378_v56 = vunpack.c.l.b16 %v2327_v63 }
  0xc9   : > { %v509_v23 = vpack.c.bf16 %v477_v53, %v477_v53  ;;  %v510_v10 = vpack.c.bf16 %v478_v49, %v478_v49  ;;  %v1614_v27 = vsel %vm8403_vm6, %v1609_v5, %v9054_v44  ;;  %v2379_v28 = vunpack.c.l.b16 %v2330_v22 }
  0xca   : > { %7524 = vmatmul.msk.bf16.gmra.mxu2 %vm12589_vm5, %v9076_v46  ;;  %7499 = vmatmul.msk.bf16.gmra.mxu3 %vm12589_vm5, %v8022_v14  ;;  %v1053_v14 = vld [vmem:[#allocation2 + $0x6c] sm:$0x2]  ;;  %v1161_v62 = vld [vmem:[#allocation2 + $0x6c] sm:$0x1]  ;;  %v2371_v43 = vunpack.c.l.b16 %v2302_v0  ;;  %v1812_v15 = vunpack.c.l.b16 %v1624_v19  ;;  %v980_v19 = vld [vmem:[#allocation2 + $0x78] sm:$0xf] }
  0xcb   : > { %7492 = vmatmul.msk.bf16.gmra.mxu1 %vm12589_vm5, %v9091_v1  ;;  %v7376_v45 = vrot.slane %v1053_v14, 9  ;;  %v573_v2 = vsel %vm541_vm10, %v9015_v60, %v509_v23  ;;  %v574_v44 = vsel %vm542_vm11, %v9074_v6, %v510_v10 }
  0xcc   : > { %7411 = vmatmul.msk.bf16.gmra.mxu0 %vm12589_vm5, %v9082_v31  ;;  %v1306_v40 = vld [vmem:[#allocation2 + $0x74] sm:$0x1]  ;;  %v744_v29 = vshrl.u32 %v573_v2, 16  ;;  %v747_v5 = vshll.u32 %v573_v2, 16  ;;  %v752_v60 = vshrl.u32 %v574_v44, 16  ;;  %v755_v23 = vshll.u32 %v574_v44, 16 }
  0xcd   : > { %v1197_v63 = vld [vmem:[#allocation2 + $0x70] sm:$0x8]  ;;  %v1162_v35 = vsel %vm8267_vm4, %v7376_v45, %v1161_v62  ;;  %v9152_v14 = vpack.c.b16 %v2371_v43, %v2370_v36  ;;  %v9154_v62 = vpop.f32.mrf.mxu3  ;;  %v9168_v36 = vpack.c.b16 %v2379_v28, %v2378_v56  ;;  %v1396_v43 = vld [vmem:[#allocation2 + $0x6c] sm:$0xe] }
  0xce   : > { %v1910_v51 = vpop.f32.mrf.mxu0  ;;  %v2467_v8 = vpop.f32.mrf.mxu2  ;;  %v9144_v4 = vld [vmem:[#allocation2 + $0x70] sm:$0xf]  ;;  %v7394_v53 = vrot.slane %v1197_v63, 11  ;;  %1163 = vst [vmem:[#allocation2 + $0x6c] sm:$0x1] %v1162_v35  ;;  %v746_v49 = vrot.slane %v744_v29, 7 }
  0xcf   : > { %v2131_v59 = vadd.f32 %v2130_v12, %v1910_v51  ;;  %v1811_v12 = vunpack.c.l.b16 %v1614_v27  ;;  %v1635_v18 = vshll.u32 %v9144_v4, 16  ;;  %v1639_v6 = vshrl.u32 %v9144_v4, 16  ;;  %v984_v27 = vld [vmem:[#allocation2 + $0x80] sm:$0x1]  ;;  %v9159_v51 = vld [vmem:[%s8177_s12 + $0x50] sm:$0xf] }
  0xd0   : > { %v754_v0 = vrot.slane %v752_v60, 7  ;;  %v1307_v10 = vsel %vm8319_vm8, %v7394_v53, %v1306_v40  ;;  %v749_v44 = vor.u32 %v747_v5, %v746_v49  ;;  %v750_v29 = vrot.slane %v746_v49, 4  ;;  %12713 = vst [vmem:[#allocation23_spill] sm:$0xff] %v9168_v36  ;;  %v8080_v63 = vld [vmem:[#allocation2 + $0xa0] sm:$0xf] }
  0xd1   : > { %v9148_v22 = vadd.f32 %v2467_v8, %v2131_v59  ;;  %v9162_v8 = vld [vmem:[%s8177_s12 + $0x54] sm:$0xf]  ;;  %1308 = vst [vmem:[#allocation2 + $0x74] sm:$0x1] %v1307_v10  ;;  %v9164_v45 = vrot.slane %v1635_v18, 5  ;;  %v1641_v2 = vrot.slane %v1639_v6, 4  ;;  %v9166_v59 = vpop.f32.mrf.mxu1  ;;  %v9170_v53 = vpack.c.b16 %v1812_v15, %v1811_v12 }
  0xd2   : > { %12712 = vst [vmem:[#allocation22_spill] sm:$0xff] %v9166_v59  ;;  %v2333_v35 = vrot.slane %v8080_v63, 5  ;;  %v757_v60 = vor.u32 %v755_v23, %v754_v0  ;;  %v759_v40 = vrot.slane %v754_v0, 4  ;;  %v2305_v39 = vrot.slane %v9144_v4, 5 }
  0xd3   : > { %v981_v5 = vsel %vm8249_vm3, %v749_v44, %v980_v19  ;;  %v415_v56 = vunpack.c.l.bf16 %v9159_v51  ;;  %v416_v12 = vunpack.c.l.bf16 %v9162_v8  ;;  %v7509_v4 = vrot.slane %v1396_v43, 9  ;;  %v8081_v43 = vld [vmem:[#allocation2 + $0xa4] sm:$0x1] }
  0xd4   : > { %v758_v28 = vsel %vm8232_vm14, %v750_v29, %v757_v60  ;;  %982 = vst [vmem:[#allocation2 + $0x78] sm:$0xf] %v981_v5  ;;  %v985_v15 = vsel %vm8267_vm4, %v759_v40, %v984_v27  ;;  %v1642_v49 = vor.u32 %v1641_v2, %v9164_v45  ;;  %v7513_v44 = vrot.slane %v1400_v33, 9 }
  0xd5   : > { %v1351_v6 = vld [vmem:[#allocation2 + $0x6c] sm:$0xf]  ;;  %983 = vst.msk [vmem:[#allocation2 + $0x7c] sm:$0xf] %vm12587_vm9, %v758_v28  ;;  %v2307_v27 = vrot.slane %v2305_v39, 4  ;;  %v2335_v29 = vrot.slane %v2333_v35, 4  ;;  %v9203_v21 = vpop.f32.mrf.mxu3 }
  0xd6   : > { %v9173_v10 = vpop.f32.mrf.mxu0  ;;  %v9175_v18 = vpop.f32.mrf.mxu2  ;;  %v9188_v0 = vld [vmem:[#allocation2 + $0x6c] sm:$0xff]  ;;  %v1626_v23 = vshrl.u32 %v1351_v6, 16  ;;  %v1629_v19 = vshll.u32 %v1351_v6, 16  ;;  %986 = vst [vmem:[#allocation2 + $0x80] sm:$0x1] %v985_v15  ;;  %v2336_v63 = vrot.slane %v8081_v43, 5  ;;  %v2306_v15 = vsel %vm8338_vm15, %v7509_v4, %v2305_v39 }
  0xd7   : > { %12714 = vst [vmem:[#allocation24_spill] sm:$0xff] %v9175_v18  ;;  %v479_v60 = vmul.f32 0.010009766, %v415_v56  ;;  %vm9195_vm2 = vcmp.ge.f32.partialorder %v415_v56, 0.0  ;;  %v480_v33 = vmul.f32 0.010009766, %v416_v12  ;;  %v1643_v41 = vrot.slane %v1642_v49, 4 }
  0xd8   : > { %v1378_v2 = vld [vmem:[#allocation2 + $0x74] sm:$0x1]  ;;  %v1628_v40 = vrot.slane %v1626_v23, 4  ;;  %v1631_v5 = vrot.slane %v1629_v19, 5  ;;  %v2334_v23 = vsel %vm8338_vm15, %v7513_v44, %v2333_v35  ;;  %v2337_v39 = vsel %vm8338_vm15, %v2335_v29, %v2336_v63  ;;  %vm543_vm7 = vmpackc.low %vm9195_vm2, %vm9195_vm2 }
  0xd9   : > { %v2308_v6 = vrot.slane %v1378_v2, 5  ;;  %v1645_v54 = vshll.u32 %v1378_v2, 16  ;;  %v511_v56 = vpack.c.bf16 %v479_v60, %v479_v60  ;;  %v2135_v49 = vpop.f32.mrf.mxu1  ;;  %vm9211_vm1 = vcmp.ge.f32.partialorder %v416_v12, 0.0 }
  0xda   : > { %7525 = vmatmul.msk.bf16.gmra.mxu2 %vm12589_vm5, %v9152_v14  ;;  %7529 = vmatmul.msk.bf16.vlgmr.msra.gmra.mxu3 %vm12589_vm5, %v9168_v36  ;;  %v1632_v43 = vor.u32 %v1631_v5, %v1628_v40  ;;  %v2372_v35 = vunpack.c.l.b16 %v2306_v15  ;;  %v2380_v59 = vunpack.c.l.b16 %v2334_v23  ;;  %vm544_vm12 = vmpackc.low %vm9211_vm1, %vm9211_vm1 }
  0xdb   : > { %7493 = vmatmul.msk.bf16.gmra.mxu1 %vm12589_vm5, %v9188_v0  ;;  %v2309_v19 = vsel %vm8338_vm15, %v2307_v27, %v2308_v6  ;;  %v1647_v37 = vrot.slane %v1645_v54, 5  ;;  %v1054_v2 = vld [vmem:[#allocation2 + $0x78] sm:$0x2]  ;;  %v512_v27 = vpack.c.bf16 %v480_v33, %v480_v33 }
  0xdc   : > { %7412 = vmatmul.msk.bf16.gmra.mxu0 %vm12589_vm5, %v9170_v53  ;;  %v1633_v44 = vrot.slane %v1632_v43, 4  ;;  %v1198_v60 = vld [vmem:[#allocation2 + $0x7c] sm:$0x8]  ;;  %v2373_v54 = vunpack.c.l.b16 %v2309_v19  ;;  %v7377_v36 = vrot.slane %v1054_v2, 9  ;;  %v1164_v43 = vld [vmem:[#allocation2 + $0x78] sm:$0x1]  ;;  %v2381_v19 = vunpack.c.l.b16 %v2337_v39 }
  0xdd   : > { %v1648_v29 = vsel %vm8403_vm6, %v1643_v41, %v1647_v37  ;;  %v7395_v63 = vrot.slane %v1198_v60, 11  ;;  %v1309_v5 = vld [vmem:[#allocation2 + $0x80] sm:$0x1]  ;;  %v9220_v6 = vld [vmem:[#allocation2 + $0x7c] sm:$0xf]  ;;  %v575_v37 = vsel %vm543_vm7, %v9159_v51, %v511_v56  ;;  %v576_v51 = vsel %vm544_vm12, %v9162_v8, %v512_v27 }
  0xde   : > { %v1915_v4 = vpop.f32.mrf.mxu0  ;;  %v2472_v12 = vpop.f32.mrf.mxu2  ;;  %v1638_v18 = vsel %vm8403_vm6, %v1633_v44, %v9164_v45  ;;  %v1814_v33 = vunpack.c.l.b16 %v1648_v29  ;;  %v2312_v23 = vrot.slane %v9220_v6, 5  ;;  %v1165_v13 = vsel %vm8267_vm4, %v7377_v36, %v1164_v43  ;;  %v1397_v36 = vld [vmem:[#allocation2 + $0x78] sm:$0xe] }
  0xdf   : > { %v2136_v40 = vadd.f32 %v2135_v49, %v1915_v4  ;;  %v1813_v41 = vunpack.c.l.b16 %v1638_v18  ;;  %v1310_v45 = vsel %vm8319_vm8, %v7395_v63, %v1309_v5  ;;  %v1659_v4 = vshll.u32 %v9220_v6, 16  ;;  %1166 = vst [vmem:[#allocation2 + $0x78] sm:$0x1] %v1165_v13  ;;  %v8082_v63 = vld [vmem:[#allocation2 + $0xac] sm:$0xf] }
  0xe0   : > { %1311 = vst [vmem:[#allocation2 + $0x80] sm:$0x1] %v1310_v45  ;;  %v1663_v49 = vshrl.u32 %v9220_v6, 16  ;;  %v9243_v2 = vpack.c.b16 %v2373_v54, %v2372_v35  ;;  %v761_v18 = vshrl.u32 %v575_v37, 16  ;;  %v764_v28 = vshll.u32 %v575_v37, 16 }
  0xe1   : > { %v9225_v15 = vadd.f32 %v2472_v12, %v2136_v40  ;;  %v9246_v56 = vrot.slane %v1659_v4, 5  ;;  %v769_v44 = vshrl.u32 %v576_v51, 16  ;;  %v772_v60 = vshll.u32 %v576_v51, 16  ;;  %v1401_v35 = vld [vmem:[#allocation2 + $0xa8] sm:$0xe] }
  0xe2   : > { %12720 = vst [vmem:[#allocation26_spill] sm:$0xff] %v9243_v2  ;;  %v1665_v39 = vrot.slane %v1663_v49, 4  ;;  %v9248_v40 = vpack.c.b16 %v1814_v33, %v1813_v41  ;;  %v9250_v29 = vpack.c.b16 %v2381_v19, %v2380_v59  ;;  %v2340_v5 = vrot.slane %v8082_v63, 5  ;;  %v987_v12 = vld [vmem:[#allocation2 + $0x84] sm:$0xf]  ;;  %v9254_v8 = vpop.f32.mrf.mxu3 }
  0xe3   : > { %12719 = vst [vmem:[#allocation25_spill] sm:$0xff] %v9225_v15  ;;  %v763_v6 = vrot.slane %v761_v18, 7  ;;  %v771_v54 = vrot.slane %v769_v44, 7  ;;  %v991_v41 = vld [vmem:[#allocation2 + $0x8c] sm:$0x1]  ;;  %v7510_v33 = vrot.slane %v1397_v36, 9 }
  0xe4   : > { %12721 = vst [vmem:[#allocation27_spill] sm:$0xff] %v9248_v40  ;;  %v1666_v27 = vor.u32 %v1665_v39, %v9246_v56  ;;  %v2314_v59 = vrot.slane %v2312_v23, 4  ;;  %v7514_v4 = vrot.slane %v1401_v35, 9  ;;  %v2342_v49 = vrot.slane %v2340_v5, 4  ;;  %v8083_v51 = vld [vmem:[#allocation2 + $0xb0] sm:$0x1] }
  0xe5   : > { %12722 = vst [vmem:[#allocation28_spill] sm:$0xff] %v9250_v29  ;;  %v766_v43 = vor.u32 %v764_v28, %v763_v6  ;;  %v767_v37 = vrot.slane %v763_v6, 4  ;;  %v774_v19 = vor.u32 %v772_v60, %v771_v54  ;;  %v776_v45 = vrot.slane %v771_v54, 4  ;;  %v9265_v60 = vpop.f32.mrf.mxu1 }
  0xe6   : > { %v2343_v18 = vrot.slane %v8083_v51, 5  ;;  %v1353_v44 = vld [vmem:[#allocation2 + $0x78] sm:$0xf]  ;;  %12723 = vst [vmem:[#allocation29_spill] sm:$0xff] %v9265_v60  ;;  %v1667_v15 = vrot.slane %v1666_v27, 4 }
  0xe7   : > { %v1379_v13 = vld [vmem:[#allocation2 + $0x80] sm:$0x1]  ;;  %v988_v28 = vsel %vm8249_vm3, %v766_v43, %v987_v12  ;;  %v9263_v63 = vld [vmem:[#allocation2 + $0x78] sm:$0xff]  ;;  %v775_v6 = vsel %vm8232_vm14, %v767_v37, %v774_v19  ;;  %v992_v54 = vsel %vm8267_vm4, %v776_v45, %v991_v41  ;;  %v1650_v35 = vshrl.u32 %v1353_v44, 16 }
  0xe8   : > { %v2315_v39 = vrot.slane %v1379_v13, 5  ;;  %v1669_v36 = vshll.u32 %v1379_v13, 16  ;;  %989 = vst [vmem:[#allocation2 + $0x84] sm:$0xf] %v988_v28  ;;  %v2313_v12 = vsel %vm8338_vm15, %v7510_v33, %v2312_v23  ;;  %v2341_v41 = vsel %vm8338_vm15, %v7514_v4, %v2340_v5 }
  0xe9   : > { %990 = vst.msk [vmem:[#allocation2 + $0x88] sm:$0xf] %vm12587_vm9, %v775_v6  ;;  %v1652_v37 = vrot.slane %v1650_v35, 4  ;;  %v2344_v27 = vsel %vm8338_vm15, %v2342_v49, %v2343_v18  ;;  %v2374_v45 = vunpack.c.l.b16 %v2313_v12 }
  0xea   : > { %7526 = vmatmul.msk.bf16.gmra.mxu2 %vm12589_vm5, %v9243_v2  ;;  %7530 = vmatmul.msk.bf16.gmra.mxu3 %vm12589_vm5, %v9250_v29  ;;  %v1653_v29 = vshll.u32 %v1353_v44, 16  ;;  %v2316_v43 = vsel %vm8338_vm15, %v2314_v59, %v2315_v39  ;;  %v1671_v13 = vrot.slane %v1669_v36, 5  ;;  %993 = vst [vmem:[#allocation2 + $0x8c] sm:$0x1] %v992_v54  ;;  %v9284_v51 = vpop.f32.mrf.mxu3  ;;  %v2382_v39 = vunpack.c.l.b16 %v2341_v41 }
  0xeb   : > { %7494 = vmatmul.msk.bf16.gmra.mxu1 %vm12589_vm5, %v9263_v63  ;;  %v2375_v23 = vunpack.c.l.b16 %v2316_v43  ;;  %v2383_v44 = vunpack.c.l.b16 %v2344_v27 }
  0xec   : > { %7413 = vmatmul.msk.bf16.gmra.mxu0 %vm12589_vm5, %v9248_v40  ;;  %v1655_v19 = vrot.slane %v1653_v29, 5  ;;  %v1672_v59 = vsel %vm8403_vm6, %v1667_v15, %v1671_v13  ;;  %v9286_v29 = vpop.f32.mrf.mxu0 }
  0xed   : > { %v1816_v36 = vunpack.c.l.b16 %v1672_v59  ;;  %v9288_v5 = vpack.c.b16 %v2375_v23, %v2374_v45  ;;  %v9293_v27 = vpack.c.b16 %v2383_v44, %v2382_v39 }
  0xee   : > { %v1656_v33 = vor.u32 %v1655_v19, %v1652_v37  ;;  %v8084_v19 = vld [vmem:[#allocation2 + $0xb8] sm:$0xf] }
  0xef   : > { %v1055_v6 = vld [vmem:[#allocation2 + $0x84] sm:$0x2]  ;;  %v1167_v54 = vld [vmem:[#allocation2 + $0x84] sm:$0x1]  ;;  %v2347_v41 = vrot.slane %v8084_v19, 5  ;;  %12724 = vst [vmem:[#allocation30_spill] sm:$0xff] %v9293_v27 }
  0xf0   : > { %v1657_v28 = vrot.slane %v1656_v33, 4  ;;  %v1199_v49 = vld [vmem:[#allocation2 + $0x88] sm:$0x8]  ;;  %v7378_v35 = vrot.slane %v1055_v6, 9  ;;  %v1402_v33 = vld [vmem:[#allocation2 + $0xb4] sm:$0xe] }
  0xf1   : > { %v1356_v18 = vld [vmem:[#allocation2 + $0x88] sm:$0xf]  ;;  %v7396_v12 = vrot.slane %v1199_v49, 11  ;;  %v1312_v43 = vld [vmem:[#allocation2 + $0x8c] sm:$0x1]  ;;  %v2349_v49 = vrot.slane %v2347_v41, 4 }
  0xf2   : > { %v1662_v4 = vsel %vm8403_vm6, %v1657_v28, %v9246_v56  ;;  %v2140_v13 = vpop.f32.mrf.mxu1  ;;  %v1683_v37 = vshll.u32 %v1356_v18, 16  ;;  %v1168_v45 = vsel %vm8267_vm4, %v7378_v35, %v1167_v54  ;;  %v1687_v23 = vshrl.u32 %v1356_v18, 16  ;;  %v9299_v56 = vpop.f32.mrf.mxu2  ;;  %v1398_v6 = vld [vmem:[#allocation2 + $0x84] sm:$0xe]  ;;  %v8085_v54 = vld [vmem:[#allocation2 + $0xbc] sm:$0x1] }
  0xf3   : > { %v1815_v15 = vunpack.c.l.b16 %v1662_v4  ;;  %12725 = vst [vmem:[#allocation31_spill] sm:$0xff] %v9299_v56  ;;  %v1313_v28 = vsel %vm8319_vm8, %v7396_v12, %v1312_v43  ;;  %v7515_v4 = vrot.slane %v1402_v33, 9  ;;  %v2350_v35 = vrot.slane %v8085_v54, 5 }
  0xf4   : > { %1169 = vst [vmem:[#allocation2 + $0x84] sm:$0x1] %v1168_v45  ;;  %v1685_v39 = vrot.slane %v1683_v37, 5  ;;  %v1689_v44 = vrot.slane %v1687_v23, 4  ;;  %v7610_v37 = vld [vmem:[%s12533_s5 + $0xe] sm:$0x3] }
  0xf5   : > { %v9297_v59 = vpack.c.b16 %v1816_v36, %v1815_v15  ;;  %1314 = vst [vmem:[#allocation2 + $0x8c] sm:$0x1] %v1313_v28  ;;  %v7511_v36 = vrot.slane %v1398_v6, 9  ;;  %v2319_v15 = vrot.slane %v1356_v18, 5  ;;  %v2348_v45 = vsel %vm8338_vm15, %v7515_v4, %v2347_v41  ;;  %v7589_v18 = vld [vmem:[%s12533_s5 + $0xc] sm:$0x3] }
  0xf6   : > { %v1690_v43 = vor.u32 %v1689_v44, %v1685_v39  ;;  %v2351_v23 = vsel %vm8338_vm15, %v2349_v49, %v2350_v35  ;;  %v3172_v33 = vsel %vm12588_vm0, %v7610_v37, 0  ;;  %v3016_v41 = vsel %vm12588_vm0, %v7589_v18, 0 }
  0xf7   : > { %v2320_v28 = vsel %vm8338_vm15, %v7511_v36, %v2319_v15  ;;  %v2321_v6 = vrot.slane %v2319_v15, 4  ;;  %3181 = vmatpush.bf16.msra.mxu3 %v3172_v33  ;;  %3025 = vmatpush.bf16.msrb.mxu2 %v3016_v41  ;;  %v2384_v36 = vunpack.c.l.b16 %v2348_v45  ;;  %v2385_v56 = vunpack.c.l.b16 %v2351_v23  ;;  %v7572_v33 = vld [vmem:[%s12533_s5 + $0xa] sm:$0x3]  ;;  %v7628_v23 = vld [vmem:[%s12533_s5 + $0x10] sm:$0x3] }
  0xf8   : > { %v1691_v47 = vrot.slane %v1690_v43, 4  ;;  %v2376_v15 = vunpack.c.l.b16 %v2320_v28  ;;  %v2882_v41 = vsel %vm12588_vm0, %v7572_v33, 0 }
  0xf9   : > { %2891 = vmatpush.bf16.msrb.mxu1 %v2882_v41 }
  0xfa   : > { %7527 = vmatmul.msk.bf16.gmra.mxu2 %vm12589_vm5, %v9288_v5  ;;  %7531 = vmatmul.msk.bf16.gmra.mxu3 %vm12589_vm5, %v9293_v27  ;;  %v2142_v35 = vpop.f32.mrf.mxu1 }
  0xfb   : > { %v1355_v54 = vld [vmem:[#allocation2 + $0x84] sm:$0xf] }
  0xfc   : > { %7414 = vmatmul.msk.bf16.gmra.mxu0 %vm12589_vm5, %v9297_v59  ;;  %v9309_v12 = vpop.f32.mrf.mxu3  ;;  %v9324_v27 = vld [vmem:[#allocation2 + $0x84] sm:$0xff]  ;;  %v1380_v4 = vld [vmem:[#allocation2 + $0x8c] sm:$0x1]  ;;  %v1674_v26 = vshrl.u32 %v1355_v54, 16  ;;  %v1677_v49 = vshll.u32 %v1355_v54, 16 }
  0xfd   : > { %v2322_v37 = vrot.slane %v1380_v4, 5  ;;  %v1693_v34 = vshll.u32 %v1380_v4, 16  ;;  %7495 = vmatmul.msk.bf16.gmra.mxu1 %vm12589_vm5, %v9324_v27 }
  0xfe   : > { %v1920_v19 = vpop.f32.mrf.mxu0  ;;  %v1679_v42 = vrot.slane %v1677_v49, 5 }
  0xff   : > { %v2141_v44 = vadd.f32 %v2140_v13, %v1920_v19  ;;  %v1676_v19 = vrot.slane %v1674_v26, 4  ;;  %v2323_v18 = vsel %vm8338_vm15, %v2321_v6, %v2322_v37  ;;  %v1695_v43 = vrot.slane %v1693_v34, 5 }
 0x100   : > { %v2377_v4 = vunpack.c.l.b16 %v2323_v18  ;;  %v3313_v34 = vsel %vm12588_vm0, %v7628_v23, 0  ;;  %v9347_v37 = vpack.c.b16 %v2385_v56, %v2384_v36 }
 0x101   : > { %v2477_v13 = vpop.f32.mrf.mxu2  ;;  %v1680_v60 = vor.u32 %v1679_v42, %v1676_v19  ;;  %v1696_v26 = vsel %vm8403_vm6, %v1691_v47, %v1695_v43  ;;  %3322 = vmatpush.bf16.msra.mxu0 %v3313_v34  ;;  %v8086_v43 = vld [vmem:[#allocation2 + $0x18] sm:$0xff] }
 0x102   : > { %v9334_v54 = vadd.f32 %v2477_v13, %v2141_v44  ;;  %v9344_v28 = vpack.c.b16 %v2377_v4, %v2376_v15  ;;  %v1818_v49 = vunpack.c.l.b16 %v1696_v26  ;;  %12727 = vst [vmem:[#allocation33_spill] sm:$0xff] %v9347_v37  ;;  %v8087_v4 = vld [vmem:[#allocation2 + $0xc] sm:$0xff] }
 0x103   : > { %v1681_v6 = vrot.slane %v1680_v60, 4 }
 0x104   : > { %v9337_v45 = vpop.f32.mrf.mxu3  ;;  %12726 = vst [vmem:[#allocation32_spill] sm:$0xff] %v9344_v28 }
 0x105   : > { %v1686_v13 = vsel %vm8403_vm6, %v1681_v6, %v1685_v39 }
 0x106   : > { %v1922_v44 = vpop.f32.mrf.mxu0  ;;  %v1817_v47 = vunpack.c.l.b16 %v1686_v13 }
 0x107   : > { %v2143_v42 = vadd.f32 %v2142_v35, %v1922_v44 }
 0x108   : > { %v2145_v33 = vpop.f32.mrf.mxu1  ;;  %v9353_v15 = vpack.c.b16 %v1818_v49, %v1817_v47 }
 0x109   : > { %v2479_v19 = vpop.f32.mrf.mxu2 }
 0x10a   : > { %7528 = vmatmul.msk.bf16.gmra.mxu2 %vm12589_vm5, %v9344_v28  ;;  %12728 = vst [vmem:[#allocation34_spill] sm:$0xff] %v9353_v15  ;;  %7532 = vmatmul.msk.bf16.gmra.mxu3 %vm12589_vm5, %v9347_v37  ;;  %v9357_v60 = vadd.f32 %v2479_v19, %v2143_v42 }
 0x10c   : > { %7415 = vmatmul.msk.bf16.gmra.mxu0 %vm12589_vm5, %v9353_v15 }
 0x10d   : > { %v9361_v56 = vpop.f32.mrf.mxu3  ;;  %7573 = vmatmul.msk.bf16.vlgmr.msrb.gmra.mxu1 %vm12589_vm5, %v8488_v50 }
 0x110   : > { %v2147_v39 = vpop.f32.mrf.mxu1 }
 0x115   : > { %v9365_v35 = vpop.f32.mrf.mxu3 }
 0x118   : > { %v2150_v41 = vpop.f32.mrf.mxu1 }
 0x119   : > { %v1925_v36 = vpop.f32.mrf.mxu0 }
 0x11a   : > { %v2146_v18 = vadd.f32 %v2145_v33, %v1925_v36  ;;  %7594 = vmatmul.msk.bf16.vlgmr.msrb.gmra.mxu2 %vm12589_vm5, %v8086_v43  ;;  %7538 = vmatmul.msk.bf16.vlgmr.msrb.gmra.mxu3 %vm12589_vm5, %v8087_v4  ;;  %v8088_v33 = vld [vmem:[#allocation2 + $0x24] sm:$0xff] }
 0x11c   : > { %7555 = vmatmul.msk.bf16.vlgmr.msrb.gmra.mxu0 %vm12589_vm5, %v8542_v20 }
 0x11d   : > { %v2482_v26 = vpop.f32.mrf.mxu2  ;;  %v9373_v6 = vpop.f32.mrf.mxu3  ;;  %7574 = vmatmul.msk.bf16.gmra.mxu1 %vm12589_vm5, %v8566_v32 }
 0x11e   : > { %v9369_v23 = vadd.f32 %v2482_v26, %v2146_v18 }
 0x120   : > { %v2152_v34 = vpop.f32.mrf.mxu1 }
 0x121   : > { %v1927_v50 = vpop.f32.mrf.mxu0 }
 0x122   : > { %v2148_v44 = vadd.f32 %v2147_v39, %v1927_v50 }
 0x125   : > { %v2484_v49 = vpop.f32.mrf.mxu2  ;;  %v9379_v13 = vpop.f32.mrf.mxu3 }
 0x126   : > { %v9377_v42 = vadd.f32 %v2484_v49, %v2148_v44 }
 0x128   : > { %v2155_v36 = vpop.f32.mrf.mxu1 }
 0x129   : > { %v1930_v47 = vpop.f32.mrf.mxu0 }
 0x12a   : > { %v2151_v19 = vadd.f32 %v2150_v41, %v1930_v47  ;;  %7595 = vmatmul.msk.bf16.gmra.mxu2 %vm12589_vm5, %v8088_v33  ;;  %7539 = vmatmul.msk.bf16.gmra.mxu3 %vm12589_vm5, %v8086_v43 }
 0x12c   : > { %7556 = vmatmul.msk.bf16.gmra.mxu0 %vm12589_vm5, %v8617_v57 }
 0x12d   : > { %v2487_v20 = vpop.f32.mrf.mxu2  ;;  %v9387_v39 = vpop.f32.mrf.mxu3  ;;  %7575 = vmatmul.msk.bf16.gmra.mxu1 %vm12589_vm5, %v8758_v7 }
 0x12e   : > { %v9383_v18 = vadd.f32 %v2487_v20, %v2151_v19  ;;  %v8089_v20 = vld [vmem:[#allocation2 + $0x30] sm:$0xff] }
 0x130   : > { %v2157_v41 = vpop.f32.mrf.mxu1 }
 0x131   : > { %v1932_v4 = vpop.f32.mrf.mxu0 }
 0x132   : > { %v2153_v26 = vadd.f32 %v2152_v34, %v1932_v4 }
 0x135   : > { %v2489_v50 = vpop.f32.mrf.mxu2  ;;  %v2192_v49 = vpop.f32.mrf.mxu3 }
 0x136   : > { %v9391_v44 = vadd.f32 %v2489_v50, %v2153_v26  ;;  %v9394_v43 = vadd.f32 %v2192_v49, %v9284_v51 }
 0x138   : > { %v2160_v32 = vpop.f32.mrf.mxu1 }
 0x139   : > { %v1935_v47 = vpop.f32.mrf.mxu0 }
 0x13a   : > { %v2156_v19 = vadd.f32 %v2155_v36, %v1935_v47  ;;  %7596 = vmatmul.msk.bf16.gmra.mxu2 %vm12589_vm5, %v8089_v20  ;;  %7540 = vmatmul.msk.bf16.gmra.mxu3 %vm12589_vm5, %v8088_v33 }
 0x13c   : > { %7557 = vmatmul.msk.bf16.gmra.mxu0 %vm12589_vm5, %v8775_v3  ;;  %v8090_v3 = vld [vmem:[#allocation2 + $0x3c] sm:$0xff] }
 0x13d   : > { %v2492_v34 = vpop.f32.mrf.mxu2  ;;  %v2195_v26 = vpop.f32.mrf.mxu3  ;;  %7576 = vmatmul.msk.bf16.gmra.mxu1 %vm12589_vm5, %v8875_v11 }
 0x13e   : > { %v9398_v4 = vadd.f32 %v2492_v34, %v2156_v19  ;;  %v9403_v50 = vadd.f32 %v2195_v26, %v9309_v12 }
 0x140   : > { %v2162_v36 = vpop.f32.mrf.mxu1 }
 0x141   : > { %v1937_v51 = vpop.f32.mrf.mxu0 }
 0x142   : > { %v2158_v49 = vadd.f32 %v2157_v41, %v1937_v51 }
 0x145   : > { %v2494_v47 = vpop.f32.mrf.mxu2  ;;  %v2197_v33 = vpop.f32.mrf.mxu3 }
 0x146   : > { %v9407_v7 = vadd.f32 %v2494_v47, %v2158_v49  ;;  %v9410_v19 = vadd.f32 %v2197_v33, %v9337_v45 }
 0x148   : > { %v2165_v12 = vpop.f32.mrf.mxu1 }
 0x149   : > { %v1940_v34 = vpop.f32.mrf.mxu0 }
 0x14a   : > { %v2161_v57 = vadd.f32 %v2160_v32, %v1940_v34  ;;  %7597 = vmatmul.msk.bf16.gmra.mxu2 %vm12589_vm5, %v8090_v3  ;;  %7541 = vmatmul.msk.bf16.gmra.mxu3 %vm12589_vm5, %v8089_v20 }
 0x14c   : > { %7558 = vmatmul.msk.bf16.gmra.mxu0 %vm12589_vm5, %v8888_v61  ;;  %v8091_v61 = vld [vmem:[#allocation2 + $0x48] sm:$0xff] }
 0x14d   : > { %v2497_v41 = vpop.f32.mrf.mxu2  ;;  %v2200_v51 = vpop.f32.mrf.mxu3  ;;  %7577 = vmatmul.msk.bf16.gmra.mxu1 %vm12589_vm5, %v8944_v17 }
 0x14e   : > { %v9414_v26 = vadd.f32 %v2497_v41, %v2161_v57  ;;  %v9419_v49 = vadd.f32 %v2200_v51, %v9361_v56  ;;  %v2186_v51 = vadd.f32 %v9373_v6, %v9154_v62 }
 0x150   : > { %v2167_v32 = vpop.f32.mrf.mxu1 }
 0x151   : > { %v1942_v45 = vpop.f32.mrf.mxu0 }
 0x152   : > { %v2163_v47 = vadd.f32 %v2162_v36, %v1942_v45 }
 0x155   : > { %v2499_v33 = vpop.f32.mrf.mxu2  ;;  %v2202_v20 = vpop.f32.mrf.mxu3 }
 0x156   : > { %v9423_v34 = vadd.f32 %v2499_v33, %v2163_v47  ;;  %v9426_v57 = vadd.f32 %v2202_v20, %v9365_v35 }
 0x158   : > { %v2170_v56 = vpop.f32.mrf.mxu1 }
 0x159   : > { %v1945_v41 = vpop.f32.mrf.mxu0 }
 0x15a   : > { %v2166_v11 = vadd.f32 %v2165_v12, %v1945_v41  ;;  %7598 = vmatmul.msk.bf16.gmra.mxu2 %vm12589_vm5, %v8091_v61  ;;  %7542 = vmatmul.msk.bf16.gmra.mxu3 %vm12589_vm5, %v8090_v3  ;;  %v2188_v3 = vadd.f32 %v9379_v13, %v9203_v21 }
 0x15c   : > { %7559 = vmatmul.msk.bf16.gmra.mxu0 %vm12589_vm5, %v8953_v25 }
 0x15d   : > { %v2502_v36 = vpop.f32.mrf.mxu2  ;;  %v2522_v47 = vpop.f32.mrf.mxu3  ;;  %7578 = vmatmul.msk.bf16.gmra.mxu1 %vm12589_vm5, %v8999_v58 }
 0x15e   : > { %v9432_v45 = vadd.f32 %v2502_v36, %v2166_v11  ;;  %v9436_v35 = vadd.f32 %v2522_v47, %v2186_v51  ;;  %v2191_v47 = vadd.f32 %v9387_v39, %v9254_v8 }
 0x160   : > { %v2172_v20 = vpop.f32.mrf.mxu1 }
 0x161   : > { %v1947_v33 = vpop.f32.mrf.mxu0 }
 0x162   : > { %v2168_v12 = vadd.f32 %v2167_v32, %v1947_v33 }
 0x165   : > { %v2504_v41 = vpop.f32.mrf.mxu2  ;;  %v2524_v11 = vpop.f32.mrf.mxu3 }
 0x166   : > { %v9442_v17 = vadd.f32 %v2504_v41, %v2168_v12  ;;  %v9444_v62 = vadd.f32 %v2524_v11, %v2188_v3 }
 0x168   : > { %v2175_v32 = vpop.f32.mrf.mxu1 }
 0x169   : > { %v1950_v6 = vpop.f32.mrf.mxu0 }
 0x16a   : > { %v2171_v36 = vadd.f32 %v2170_v56, %v1950_v6  ;;  %7599 = vmatmul.msk.bf16.gmra.mxu2 %vm12589_vm5, %v9029_v38  ;;  %7543 = vmatmul.msk.bf16.gmra.mxu3 %vm12589_vm5, %v8091_v61 }
 0x16c   : > { %7560 = vmatmul.msk.bf16.gmra.mxu0 %vm12589_vm5, %v9008_v30 }
 0x16d   : > { %v2507_v51 = vpop.f32.mrf.mxu2  ;;  %v2527_v21 = vpop.f32.mrf.mxu3  ;;  %7579 = vmatmul.msk.bf16.gmra.mxu1 %vm12589_vm5, %v9076_v46 }
 0x16e   : > { %v9451_v33 = vadd.f32 %v2507_v51, %v2171_v36  ;;  %v9455_v13 = vadd.f32 %v2527_v21, %v2191_v47 }
 0x170   : > { %v2177_v61 = vpop.f32.mrf.mxu1 }
 0x171   : > { %v1952_v12 = vpop.f32.mrf.mxu0 }
 0x172   : > { %v2173_v56 = vadd.f32 %v2172_v20, %v1952_v12 }
 0x175   : > { %v2509_v41 = vpop.f32.mrf.mxu2  ;;  %v2529_v11 = vpop.f32.mrf.mxu3 }
 0x176   : > { %v9459_v3 = vadd.f32 %v2509_v41, %v2173_v56  ;;  %v9462_v8 = vadd.f32 %v2529_v11, %v9394_v43 }
 0x179   : > { %v1955_v39 = vpop.f32.mrf.mxu0 }
 0x17a   : > { %v2176_v6 = vadd.f32 %v2175_v32, %v1955_v39  ;;  %7600 = vmatmul.msk.bf16.gmra.mxu2 %vm12589_vm5, %v9091_v1  ;;  %7544 = vmatmul.msk.bf16.gmra.mxu3 %vm12589_vm5, %v9029_v38  ;;  %v2180_v47 = vpop.f32.mrf.mxu1 }
 0x17c   : > { %7561 = vmatmul.msk.bf16.gmra.mxu0 %vm12589_vm5, %v9082_v31 }
 0x17d   : > { %v2512_v20 = vpop.f32.mrf.mxu2  ;;  %v2532_v51 = vpop.f32.mrf.mxu3  ;;  %7580 = vmatmul.msk.bf16.gmra.mxu1 %vm12589_vm5, %v9152_v14 }
 0x17e   : > { %v9468_v36 = vadd.f32 %v2512_v20, %v2176_v6  ;;  %v9473_v21 = vadd.f32 %v2532_v51, %v9403_v50 }
 0x181   : > { %v1957_v43 = vpop.f32.mrf.mxu0 }
 0x182   : > { %v2178_v12 = vadd.f32 %v2177_v61, %v1957_v43  ;;  %v2182_v41 = vpop.f32.mrf.mxu1 }
 0x185   : > { %v2514_v32 = vpop.f32.mrf.mxu2  ;;  %v2534_v38 = vpop.f32.mrf.mxu3 }
 0x186   : > { %v9477_v56 = vadd.f32 %v2514_v32, %v2178_v12  ;;  %v9480_v11 = vadd.f32 %v2534_v38, %v9410_v19 }
 0x188   : > { %12729 = vst [vmem:[#allocation35_spill] sm:$0xff] %v9480_v11 }
 0x189   : > { %v1960_v39 = vpop.f32.mrf.mxu0 }
 0x18a   : > { %7601 = vmatmul.msk.bf16.gmra.mxu2 %vm12589_vm5, %v9188_v0  ;;  %v2181_v6 = vadd.f32 %v2180_v47, %v1960_v39  ;;  %7545 = vmatmul.msk.bf16.gmra.mxu3 %vm12589_vm5, %v9091_v1  ;;  %v2893_v51 = vpop.f32.mrf.mxu1 }
 0x18c   : > { %7562 = vmatmul.msk.bf16.gmra.mxu0 %vm12589_vm5, %v9170_v53 }
 0x18d   : > { %v2517_v50 = vpop.f32.mrf.mxu2  ;;  %v2537_v20 = vpop.f32.mrf.mxu3  ;;  %7581 = vmatmul.msk.bf16.gmra.mxu1 %vm12589_vm5, %v9243_v2 }
 0x18e   : > { %v9486_v61 = vadd.f32 %v2517_v50, %v2181_v6  ;;  %v9491_v43 = vadd.f32 %v2537_v20, %v9419_v49 }
 0x190   : > { %12730 = vst [vmem:[#allocation36_spill] sm:$0xff] %v9491_v43 }
 0x191   : > { %v1962_v19 = vpop.f32.mrf.mxu0 }
 0x192   : > { %v2183_v12 = vadd.f32 %v2182_v41, %v1962_v19  ;;  %v2895_v38 = vpop.f32.mrf.mxu1  ;;  %v2128_v19 = vadd.f32 %v9063_v16, %v9078_v55 }
 0x195   : > { %v2519_v47 = vpop.f32.mrf.mxu2  ;;  %v2539_v1 = vpop.f32.mrf.mxu3 }
 0x196   : > { %v9495_v32 = vadd.f32 %v2519_v47, %v2183_v12  ;;  %v9498_v39 = vadd.f32 %v2539_v1, %v9426_v57 }
 0x198   : > { %12731 = vst [vmem:[#allocation37_spill] sm:$0xff] %v9498_v39 }
 0x199   : > { %v2752_v6 = vpop.f32.mrf.mxu0 }
 0x19a   : > { %7602 = vmatmul.msk.bf16.gmra.mxu2 %vm12589_vm5, %v9263_v63  ;;  %7546 = vmatmul.msk.bf16.gmra.mxu3 %vm12589_vm5, %v9188_v0  ;;  %v2898_v50 = vpop.f32.mrf.mxu1  ;;  %v2543_v0 = vadd.f32 %v9084_v24, %v2128_v19 }
 0x19c   : > { %7563 = vmatmul.msk.bf16.gmra.mxu0 %vm12589_vm5, %v9248_v40 }
 0x19d   : > { %v3027_v49 = vpop.f32.mrf.mxu2  ;;  %v2596_v41 = vpop.f32.mrf.mxu3  ;;  %7582 = vmatmul.msk.bf16.gmra.mxu1 %vm12589_vm5, %v9288_v5 }
 0x19e   : > { %v2676_v20 = vadd.f32 %v2596_v41, %v9061_v9 }
 0x1a0   : > { %v2832_v57 = vadd.f32 %v2752_v6, %v2676_v20  ;;  %v12734_v20 = vld [vmem:[#allocation24_spill] sm:$0xff] }
 0x1a1   : > { %v2754_v12 = vpop.f32.mrf.mxu0 }
 0x1a2   : > { %v2973_v47 = vadd.f32 %v2893_v51, %v2832_v57  ;;  %v2900_v2 = vpop.f32.mrf.mxu1 }
 0x1a4   : > { %v9512_v39 = vadd.f32 %v3027_v49, %v2973_v47 }
 0x1a5   : > { %v3029_v1 = vpop.f32.mrf.mxu2  ;;  %v2598_v43 = vpop.f32.mrf.mxu3 }
 0x1a6   : > { %v2677_v40 = vadd.f32 %v2598_v43, %v2543_v0 }
 0x1a8   : > { %v2833_v11 = vadd.f32 %v2754_v12, %v2677_v40  ;;  %v12733_v40 = vld [vmem:[#allocation22_spill] sm:$0xff] }
 0x1a9   : > { %v2757_v9 = vpop.f32.mrf.mxu0  ;;  %v2133_v43 = vadd.f32 %v12733_v40, %v9173_v10  ;;  %v12737_v40 = vld [vmem:[#allocation25_spill] sm:$0xff] }
 0x1aa   : > { %7603 = vmatmul.msk.bf16.gmra.mxu2 %vm12589_vm5, %v9324_v27  ;;  %v2974_v16 = vadd.f32 %v2895_v38, %v2833_v11  ;;  %7547 = vmatmul.msk.bf16.gmra.mxu3 %vm12589_vm5, %v9263_v63  ;;  %v2903_v6 = vpop.f32.mrf.mxu1 }
 0x1ab   : > { %v2545_v19 = vadd.f32 %v12734_v20, %v2133_v43 }
 0x1ac   : > { %7564 = vmatmul.msk.bf16.gmra.mxu0 %vm12589_vm5, %v9297_v59  ;;  %v9520_v51 = vadd.f32 %v3029_v1, %v2974_v16 }
 0x1ad   : > { %v3032_v55 = vpop.f32.mrf.mxu2  ;;  %v2601_v24 = vpop.f32.mrf.mxu3  ;;  %7583 = vmatmul.msk.bf16.gmra.mxu1 %vm12589_vm5, %v9344_v28 }
 0x1ae   : > { %12732 = vst [vmem:[#allocation38_spill] sm:$0xff] %v9520_v51  ;;  %v2678_v49 = vadd.f32 %v2601_v24, %v9148_v22  ;;  %v8092_v22 = vld [vmem:[#allocation2 + $0x90] sm:$0xff] }
 0x1b0   : > { %v2834_v41 = vadd.f32 %v2757_v9, %v2678_v49  ;;  %v393_v49 = vld [vmem:[%s8177_s12 + $0x78] sm:$0xf] }
 0x1b1   : > { %v2759_v11 = vpop.f32.mrf.mxu0 }
 0x1b2   : > { %v2975_v38 = vadd.f32 %v2898_v50, %v2834_v41  ;;  %v2905_v47 = vpop.f32.mrf.mxu1  ;;  %v425_v41 = vunpack.c.l.bf16 %v393_v49 }
 0x1b4   : > { %v9528_v57 = vadd.f32 %v3032_v55, %v2975_v38  ;;  %vm457_vm13 = vcmp.ge.f32.partialorder %v425_v41, 0.0 }
 0x1b5   : > { %v3034_v63 = vpop.f32.mrf.mxu2  ;;  %v2603_v12 = vpop.f32.mrf.mxu3  ;;  %vm553_vm10 = vmpackc.low %vm457_vm13, %vm457_vm13 }
 0x1b6   : > { %12735 = vst [vmem:[#allocation22_spill] sm:$0xff] %v9528_v57  ;;  %v2679_v1 = vadd.f32 %v2603_v12, %v2545_v19  ;;  %v394_v12 = vld [vmem:[%s8177_s12 + $0x7c] sm:$0xf] }
 0x1b8   : > { %v2835_v0 = vadd.f32 %v2759_v11, %v2679_v1  ;;  %v12738_v11 = vld [vmem:[#allocation29_spill] sm:$0xff] }
 0x1b9   : > { %v2762_v10 = vpop.f32.mrf.mxu0  ;;  %v2138_v38 = vadd.f32 %v12738_v11, %v9286_v29 }
 0x1ba   : > { %7604 = vmatmul.msk.bf16.gmra.mxu2 %vm12589_vm5, %v8092_v22  ;;  %v2976_v9 = vadd.f32 %v2900_v2, %v2835_v0  ;;  %7548 = vmatmul.msk.bf16.gmra.mxu3 %vm12589_vm5, %v9324_v27  ;;  %v2908_v24 = vpop.f32.mrf.mxu1  ;;  %v12739_v2 = vld [vmem:[#allocation23_spill] sm:$0xff]  ;;  %v489_v27 = vmul.f32 0.010009766, %v425_v41  ;;  %v426_v0 = vunpack.c.l.bf16 %v394_v12 }
 0x1bb   : > { %v8093_v41 = vld [vmem:[#allocation2 + $0x9c] sm:$0xff] }
 0x1bc   : > { %7565 = vmatmul.msk.bf16.gmra.mxu0 %vm12589_vm5, %v9353_v15  ;;  %v9535_v16 = vadd.f32 %v3034_v63, %v2976_v9  ;;  %v521_v63 = vpack.c.bf16 %v489_v27, %v489_v27  ;;  %vm458_vm11 = vcmp.ge.f32.partialorder %v426_v0, 0.0 }
 0x1bd   : > { %v3037_v50 = vpop.f32.mrf.mxu2  ;;  %v2606_v55 = vpop.f32.mrf.mxu3  ;;  %7584 = vmatmul.msk.bf16.gmra.mxu1 %vm12589_vm5, %v12739_v2  ;;  %vm554_vm2 = vmpackc.low %vm458_vm11, %vm458_vm11 }
 0x1be   : > { %12736 = vst [vmem:[#allocation24_spill] sm:$0xff] %v9535_v16  ;;  %v2680_v43 = vadd.f32 %v2606_v55, %v12737_v40  ;;  %v12740_v16 = vld [vmem:[#allocation31_spill] sm:$0xff]  ;;  %v490_v40 = vmul.f32 0.010009766, %v426_v0  ;;  %v585_v28 = vsel %vm553_vm10, %v393_v49, %v521_v63  ;;  %v1022_v49 = vld [vmem:[#allocation2 + $0xc0] sm:$0xf] }
 0x1bf   : > { %v2547_v57 = vadd.f32 %v12740_v16, %v2138_v38 }
 0x1c0   : > { %v2836_v20 = vadd.f32 %v2762_v10, %v2680_v43  ;;  %v846_v43 = vshrl.u32 %v585_v28, 16  ;;  %v522_v2 = vpack.c.bf16 %v490_v40, %v490_v40 }
 0x1c1   : > { %v2764_v19 = vpop.f32.mrf.mxu0 }
 0x1c2   : > { %v2977_v1 = vadd.f32 %v2903_v6, %v2836_v20  ;;  %v2910_v10 = vpop.f32.mrf.mxu1  ;;  %v848_v15 = vrot.slane %v846_v43, 7  ;;  %v849_v6 = vshll.u32 %v585_v28, 16  ;;  %v586_v27 = vsel %vm554_vm2, %v394_v12, %v522_v2 }
 0x1c4   : > { %v9545_v55 = vadd.f32 %v3037_v50, %v2977_v1  ;;  %v851_v16 = vor.u32 %v849_v6, %v848_v15  ;;  %v854_v50 = vshrl.u32 %v586_v27, 16  ;;  %v852_v12 = vrot.slane %v848_v15, 4 }
 0x1c5   : > { %v3039_v9 = vpop.f32.mrf.mxu2  ;;  %v2608_v29 = vpop.f32.mrf.mxu3 }
 0x1c6   : > { %v2681_v11 = vadd.f32 %v2608_v29, %v2547_v57  ;;  %v856_v63 = vrot.slane %v854_v50, 7  ;;  %v857_v57 = vshll.u32 %v586_v27, 16  ;;  %v1023_v40 = vsel %vm8249_vm3, %v851_v16, %v1022_v49  ;;  %v12742_v29 = vld [vmem:[#allocation9_spill] sm:$0xff]  ;;  %v12744_v27 = vld [vmem:[#allocation28_spill] sm:$0xff] }
 0x1c7   : > { %1024 = vst [vmem:[#allocation2 + $0xc0] sm:$0xf] %v1023_v40  ;;  %v1026_v16 = vld [vmem:[#allocation2 + $0xc8] sm:$0x1] }
 0x1c8   : > { %v2837_v20 = vadd.f32 %v2764_v19, %v2681_v11  ;;  %v859_v43 = vor.u32 %v857_v57, %v856_v63  ;;  %v861_v6 = vrot.slane %v856_v63, 4 }
 0x1c9   : > { %v2767_v51 = vpop.f32.mrf.mxu0 }
 0x1ca   : > { %7605 = vmatmul.msk.bf16.gmra.mxu2 %vm12589_vm5, %v8093_v41  ;;  %v2978_v38 = vadd.f32 %v2905_v47, %v2837_v20  ;;  %7549 = vmatmul.msk.bf16.gmra.mxu3 %vm12589_vm5, %v8092_v22  ;;  %v2913_v19 = vpop.f32.mrf.mxu1  ;;  %v860_v11 = vsel %vm8232_vm14, %v852_v12, %v859_v43 }
 0x1cb   : > { %1025 = vst.msk [vmem:[#allocation2 + $0xc4] sm:$0xf] %vm12587_vm9, %v860_v11 }
 0x1cc   : > { %7566 = vmatmul.msk.bf16.gmra.mxu0 %vm12589_vm5, %v12742_v29  ;;  %v9553_v28 = vadd.f32 %v3039_v9, %v2978_v38  ;;  %v1027_v38 = vsel %vm8267_vm4, %v861_v6, %v1026_v16  ;;  %v8094_v6 = vld [vmem:[#allocation2 + $0xa8] sm:$0xff] }
 0x1cd   : > { %v3042_v1 = vpop.f32.mrf.mxu2  ;;  %v2611_v2 = vpop.f32.mrf.mxu3  ;;  %7585 = vmatmul.msk.bf16.gmra.mxu1 %vm12589_vm5, %v12744_v27  ;;  %1028 = vst [vmem:[#allocation2 + $0xc8] sm:$0x1] %v1027_v38 }
 0x1ce   : > { %v2682_v47 = vadd.f32 %v2611_v2, %v9334_v54  ;;  %v1060_v57 = vld [vmem:[#allocation2 + $0xc0] sm:$0x2] }
 0x1cf   : > { %v7383_v40 = vrot.slane %v1060_v57, 9 }
 0x1d0   : > { %v2838_v20 = vadd.f32 %v2767_v51, %v2682_v47  ;;  %v1182_v51 = vld [vmem:[#allocation2 + $0xc0] sm:$0x1] }
 0x1d1   : > { %v2769_v9 = vpop.f32.mrf.mxu0  ;;  %v1183_v43 = vsel %vm8267_vm4, %v7383_v40, %v1182_v51 }
 0x1d2   : > { %v2979_v49 = vadd.f32 %v2908_v24, %v2838_v20  ;;  %v9565_v63 = vpop.f32.mrf.mxu1  ;;  %1184 = vst [vmem:[#allocation2 + $0xc0] sm:$0x1] %v1183_v43  ;;  %v1204_v47 = vld [vmem:[#allocation2 + $0xc4] sm:$0x8] }
 0x1d3   : > { %12746 = vst [vmem:[#allocation25_spill] sm:$0xff] %v9565_v63  ;;  %v7401_v24 = vrot.slane %v1204_v47, 11  ;;  %v12751_v47 = vld [vmem:[#allocation30_spill] sm:$0xff] }
 0x1d4   : > { %v9563_v54 = vadd.f32 %v3042_v1, %v2979_v49  ;;  %v1327_v1 = vld [vmem:[#allocation2 + $0xc8] sm:$0x1] }
 0x1d5   : > { %v3044_v15 = vpop.f32.mrf.mxu2  ;;  %v2613_v2 = vpop.f32.mrf.mxu3  ;;  %v1328_v49 = vsel %vm8319_vm8, %v7401_v24, %v1327_v1 }
 0x1d6   : > { %v2683_v12 = vadd.f32 %v2613_v2, %v9357_v60  ;;  %1329 = vst [vmem:[#allocation2 + $0xc8] sm:$0x1] %v1328_v49  ;;  %v12748_v60 = vld [vmem:[#allocation11_spill] sm:$0xff] }
 0x1d8   : > { %v2839_v11 = vadd.f32 %v2769_v9, %v2683_v12  ;;  %v1037_v9 = vld [vmem:[#allocation2 + $0xcc] sm:$0xf] }
 0x1d9   : > { %v2772_v20 = vpop.f32.mrf.mxu0  ;;  %v12750_v12 = vld [vmem:[#allocation13_spill] sm:$0xff] }
 0x1da   : > { %7606 = vmatmul.msk.bf16.gmra.mxu2 %vm12589_vm5, %v8094_v6  ;;  %v2980_v16 = vadd.f32 %v2910_v10, %v2839_v11  ;;  %7550 = vmatmul.msk.bf16.gmra.mxu3 %vm12589_vm5, %v8093_v41  ;;  %v2918_v51 = vpop.f32.mrf.mxu1  ;;  %v1038_v43 = vsel %vm8249_vm3, %v12750_v12, %v1037_v9 }
 0x1db   : > { %1039 = vst [vmem:[#allocation2 + $0xcc] sm:$0xf] %v1038_v43  ;;  %v12756_v43 = vld [vmem:[#allocation15_spill] sm:$0xff] }
 0x1dc   : > { %7567 = vmatmul.msk.bf16.gmra.mxu0 %vm12589_vm5, %v12748_v60  ;;  %v9576_v40 = vadd.f32 %v3044_v15, %v2980_v16 }
 0x1dd   : > { %v3047_v57 = vpop.f32.mrf.mxu2  ;;  %v2616_v2 = vpop.f32.mrf.mxu3  ;;  %7586 = vmatmul.msk.bf16.gmra.mxu1 %vm12589_vm5, %v12751_v47 }
 0x1de   : > { %12749 = vst [vmem:[#allocation29_spill] sm:$0xff] %v9576_v40  ;;  %v2684_v10 = vadd.f32 %v2616_v2, %v9369_v23 }
 0x1e0   : > { %v2840_v41 = vadd.f32 %v2772_v20, %v2684_v10  ;;  %v8095_v20 = vld [vmem:[#allocation2 + $0xb4] sm:$0xff]  ;;  %v1366_v10 = vld [vmem:[#allocation2 + $0xc4] sm:$0xf] }
 0x1e1   : > { %v2774_v11 = vpop.f32.mrf.mxu0 }
 0x1e2   : > { %v2981_v24 = vadd.f32 %v2913_v19, %v2840_v41  ;;  %v9588_v49 = vpop.f32.mrf.mxu1  ;;  %v1061_v22 = vld [vmem:[#allocation2 + $0xcc] sm:$0x2]  ;;  %v1185_v12 = vld [vmem:[#allocation2 + $0xcc] sm:$0x1]  ;;  %v2868_v41 = vrot.slane %v1366_v10, 5 }
 0x1e3   : > { %12754 = vst [vmem:[#allocation28_spill] sm:$0xff] %v9588_v49  ;;  %v7384_v9 = vrot.slane %v1061_v22, 9  ;;  %v1365_v22 = vld [vmem:[#allocation2 + $0xc0] sm:$0xf] }
 0x1e4   : > { %v9586_v15 = vadd.f32 %v3047_v57, %v2981_v24 }
 0x1e5   : > { %v9584_v1 = vpop.f32.mrf.mxu2  ;;  %v2618_v16 = vpop.f32.mrf.mxu3  ;;  %v1186_v19 = vsel %vm8267_vm4, %v7384_v9, %v1185_v12  ;;  %v1385_v9 = vld [vmem:[#allocation2 + $0xc8] sm:$0x1]  ;;  %v2709_v12 = vshrl.u32 %v1365_v22, 16 }
 0x1e6   : > { %12752 = vst [vmem:[#allocation31_spill] sm:$0xff] %v9584_v1  ;;  %v2685_v0 = vadd.f32 %v2618_v16, %v9377_v42  ;;  %v2722_v1 = vshrl.u32 %v1366_v10, 16 }
 0x1e7   : > { %12753 = vst [vmem:[#allocation9_spill] sm:$0xff] %v9586_v15  ;;  %v2871_v15 = vrot.slane %v1385_v9, 5 }
 0x1e8   : > { %v9591_v23 = vadd.f32 %v2774_v11, %v2685_v0  ;;  %1187 = vst [vmem:[#allocation2 + $0xcc] sm:$0x1] %v1186_v19  ;;  %v1403_v11 = vld [vmem:[#allocation2 + $0xc0] sm:$0xe]  ;;  %v2712_v19 = vshll.u32 %v1365_v22, 16 }
 0x1e9   : > { %v2777_v2 = vpop.f32.mrf.mxu0  ;;  %v7571_v63 = vrot.slane %v1403_v11, 9 }
 0x1ea   : > { %12755 = vst [vmem:[#allocation11_spill] sm:$0xff] %v9591_v23  ;;  %7607 = vmatmul.msk.bf16.gmra.mxu2 %vm12589_vm5, %v8095_v20  ;;  %7551 = vmatmul.msk.bf16.gmra.mxu3 %vm12589_vm5, %v8094_v6  ;;  %v2923_v24 = vpop.f32.mrf.mxu1  ;;  %v2718_v6 = vshll.u32 %v1366_v10, 16  ;;  %v2870_v23 = vrot.slane %v2868_v41, 4 }
 0x1eb   : > { %v2869_v22 = vsel %vm8338_vm15, %v7571_v63, %v2868_v41  ;;  %v12757_v41 = vld [vmem:[#allocation18_spill] sm:$0xff] }
 0x1ec   : > { %7568 = vmatmul.msk.bf16.gmra.mxu0 %vm12589_vm5, %v12756_v43  ;;  %v2720_v40 = vrot.slane %v2718_v6, 5  ;;  %v2872_v10 = vsel %vm8338_vm15, %v2870_v23, %v2871_v15 }
 0x1ed   : > { %v3052_v57 = vpop.f32.mrf.mxu2  ;;  %v2621_v42 = vpop.f32.mrf.mxu3  ;;  %7587 = vmatmul.msk.bf16.gmra.mxu1 %vm12589_vm5, %v9347_v37  ;;  %v2724_v37 = vrot.slane %v2722_v1, 4  ;;  %v2728_v1 = vshll.u32 %v1385_v9, 16 }
 0x1ee   : > { %v2686_v0 = vadd.f32 %v2621_v42, %v9383_v18  ;;  %v8023_v18 = vld [vmem:[#allocation2 + $0xc0] sm:$0xff]  ;;  %v2711_v42 = vrot.slane %v2709_v12, 4 }
 0x1ef   : > { %v2730_v6 = vrot.slane %v2728_v1, 5 }
 0x1f0   : > { %v2842_v16 = vadd.f32 %v2777_v2, %v2686_v0  ;;  %v2714_v2 = vrot.slane %v2712_v19, 5  ;;  %v2725_v19 = vor.u32 %v2724_v37, %v2720_v40 }
 0x1f1   : > { %v2779_v49 = vpop.f32.mrf.mxu0 }
 0x1f2   : > { %v2983_v47 = vadd.f32 %v2918_v51, %v2842_v16  ;;  %v2875_v51 = vunpack.c.l.b16 %v2869_v22  ;;  %v9614_v16 = vpop.f32.mrf.mxu1  ;;  %v2715_v12 = vor.u32 %v2714_v2, %v2711_v42  ;;  %v2726_v23 = vrot.slane %v2725_v19, 4 }
 0x1f4   : > { %v9604_v43 = vadd.f32 %v3052_v57, %v2983_v47  ;;  %v2876_v47 = vunpack.c.l.b16 %v2872_v10  ;;  %v2731_v9 = vsel %vm8403_vm6, %v2726_v23, %v2730_v6 }
 0x1f5   : > { %v9602_v38 = vpop.f32.mrf.mxu2  ;;  %v2623_v0 = vpop.f32.mrf.mxu3 }
 0x1f6   : > { %v2687_v11 = vadd.f32 %v2623_v0, %v9391_v44  ;;  %v9619_v15 = vpack.c.b16 %v2876_v47, %v2875_v51  ;;  %v2735_v47 = vunpack.c.l.b16 %v2731_v9 }
 0x1f8   : > { %v9611_v50 = vadd.f32 %v2779_v49, %v2687_v11  ;;  %v2716_v49 = vrot.slane %v2715_v12, 4 }
 0x1f9   : > { %v2782_v57 = vpop.f32.mrf.mxu0 }
 0x1fa   : > { %7608 = vmatmul.msk.bf16.gmra.mxu2 %vm12589_vm5, %v8023_v18  ;;  %7552 = vmatmul.msk.bf16.gmra.mxu3 %vm12589_vm5, %v8095_v20  ;;  %v2721_v20 = vsel %vm8403_vm6, %v2716_v49, %v2720_v40  ;;  %v2928_v10 = vpop.f32.mrf.mxu1 }
 0x1fb   : > { %v2734_v51 = vunpack.c.l.b16 %v2721_v20 }
 0x1fc   : > { %7569 = vmatmul.msk.bf16.gmra.mxu0 %vm12589_vm5, %v12757_v41 }
 0x1fd   : > { %v3057_v63 = vpop.f32.mrf.mxu2  ;;  %v2626_v44 = vpop.f32.mrf.mxu3  ;;  %7588 = vmatmul.msk.bf16.gmra.mxu1 %vm12589_vm5, %v9619_v15  ;;  %v9635_v1 = vpack.c.b16 %v2735_v47, %v2734_v51  ;;  %v12758_v51 = vld [vmem:[#allocation12_spill] sm:$0xff] }
 0x1fe   : > { %v2688_v0 = vadd.f32 %v2626_v44, %v9398_v4  ;;  %v8024_v4 = vld [vmem:[#allocation2 + $0xcc] sm:$0xff] }
 0x200   : > { %v2844_v22 = vadd.f32 %v2782_v57, %v2688_v0 }
 0x201   : > { %v2784_v37 = vpop.f32.mrf.mxu0 }
 0x202   : > { %v2985_v42 = vadd.f32 %v2923_v24, %v2844_v22  ;;  %v9641_v44 = vpop.f32.mrf.mxu1 }
 0x204   : > { %v9630_v11 = vadd.f32 %v3057_v63, %v2985_v42 }
 0x205   : > { %v9628_v2 = vpop.f32.mrf.mxu2  ;;  %v2628_v57 = vpop.f32.mrf.mxu3 }
 0x206   : > { %v2689_v12 = vadd.f32 %v2628_v57, %v9407_v7 }
 0x208   : > { %v9633_v19 = vadd.f32 %v2784_v37, %v2689_v12 }
 0x209   : > { %v2787_v40 = vpop.f32.mrf.mxu0 }
 0x20a   : > { %7609 = vmatmul.msk.bf16.gmra.mxu2 %vm12589_vm5, %v8024_v4  ;;  %7553 = vmatmul.msk.bf16.gmra.mxu3 %vm12589_vm5, %v8023_v18  ;;  %v2933_v18 = vpop.f32.mrf.mxu1  ;;  %v12759_v4 = vld [vmem:[#allocation10_spill] sm:$0xff] }
 0x20c   : > { %7570 = vmatmul.msk.bf16.gmra.mxu0 %vm12589_vm5, %v9635_v1 }
 0x20d   : > { %v3062_v24 = vpop.f32.mrf.mxu2  ;;  %v2631_v63 = vpop.f32.mrf.mxu3 }
 0x20e   : > { %v2690_v49 = vadd.f32 %v2631_v63, %v9414_v26 }
 0x210   : > { %v2846_v23 = vadd.f32 %v2787_v40, %v2690_v49 }
 0x211   : > { %v2789_v7 = vpop.f32.mrf.mxu0 }
 0x212   : > { %v2987_v6 = vadd.f32 %v2928_v10, %v2846_v23  ;;  %v9656_v40 = vpop.f32.mrf.mxu1 }
 0x214   : > { %v9646_v22 = vadd.f32 %v3062_v24, %v2987_v6 }
 0x215   : > { %v9644_v0 = vpop.f32.mrf.mxu2  ;;  %v2633_v37 = vpop.f32.mrf.mxu3 }
 0x216   : > { %v2691_v20 = vadd.f32 %v2633_v37, %v9423_v34  ;;  %v12760_v37 = vld [vmem:[#allocation17_spill] sm:$0xff] }
 0x218   : > { %v9649_v9 = vadd.f32 %v2789_v7, %v2691_v20 }
 0x219   : > { %v2792_v42 = vpop.f32.mrf.mxu0 }
 0x21a   : > { %7611 = vmatmul.msk.bf16.vlgmr.msra.gmra.mxu3 %vm12589_vm5, %v12758_v51  ;;  %v2938_v20 = vpop.f32.mrf.mxu1 }
 0x21c   : > { %7629 = vmatmul.msk.bf16.vlgmr.msra.gmra.mxu0 %vm12589_vm5, %v12759_v4 }
 0x21d   : > { %v3067_v47 = vpop.f32.mrf.mxu2  ;;  %v2636_v26 = vpop.f32.mrf.mxu3 }
 0x21e   : > { %v2692_v10 = vadd.f32 %v2636_v26, %v9432_v45  ;;  %v12761_v45 = vld [vmem:[#allocation16_spill] sm:$0xff] }
 0x220   : > { %v2848_v57 = vadd.f32 %v2792_v42, %v2692_v10 }
 0x221   : > { %v2794_v12 = vpop.f32.mrf.mxu0 }
 0x222   : > { %v2989_v24 = vadd.f32 %v2933_v18, %v2848_v57  ;;  %v9672_v57 = vpop.f32.mrf.mxu1 }
 0x224   : > { %v9660_v63 = vadd.f32 %v3067_v47, %v2989_v24 }
 0x225   : > { %v9658_v34 = vpop.f32.mrf.mxu2  ;;  %v2638_v49 = vpop.f32.mrf.mxu3 }
 0x226   : > { %v2693_v23 = vadd.f32 %v2638_v49, %v9442_v17 }
 0x228   : > { %v9663_v7 = vadd.f32 %v2794_v12, %v2693_v23 }
 0x229   : > { %v2797_v6 = vpop.f32.mrf.mxu0 }
 0x22a   : > { %7612 = vmatmul.msk.bf16.gmra.mxu3 %vm12589_vm5, %v12760_v37  ;;  %v12762_v37 = vld [vmem:[#allocation20_spill] sm:$0xff] }
 0x22c   : > { %7630 = vmatmul.msk.bf16.gmra.mxu0 %vm12589_vm5, %v12761_v45  ;;  %v12763_v45 = vld [vmem:[#allocation19_spill] sm:$0xff] }
 0x22d   : > { %v2641_v42 = vpop.f32.mrf.mxu3  ;;  %v3072_v51 = vpop.f32.mrf.mxu2 }
 0x22e   : > { %v2694_v18 = vadd.f32 %v2641_v42, %v9451_v33 }
 0x230   : > { %v2850_v4 = vadd.f32 %v2797_v6, %v2694_v18 }
 0x231   : > { %v2799_v47 = vpop.f32.mrf.mxu0 }
 0x232   : > { %v2991_v26 = vadd.f32 %v2938_v20, %v2850_v4  ;;  %v2943_v20 = vpop.f32.mrf.mxu1 }
 0x234   : > { %v9670_v10 = vadd.f32 %v3072_v51, %v2991_v26 }
 0x235   : > { %v2643_v17 = vpop.f32.mrf.mxu3  ;;  %v9675_v24 = vpop.f32.mrf.mxu2 }
 0x236   : > { %v2695_v12 = vadd.f32 %v2643_v17, %v9459_v3 }
 0x238   : > { %v9677_v49 = vadd.f32 %v2799_v47, %v2695_v12 }
 0x239   : > { %v2802_v23 = vpop.f32.mrf.mxu0 }
 0x23a   : > { %7613 = vmatmul.msk.bf16.gmra.mxu3 %vm12589_vm5, %v12762_v37  ;;  %v12764_v37 = vld [vmem:[#allocation21_spill] sm:$0xff] }
 0x23c   : > { %7631 = vmatmul.msk.bf16.gmra.mxu0 %vm12589_vm5, %v12763_v45 }
 0x23d   : > { %v2646_v33 = vpop.f32.mrf.mxu3  ;;  %v3077_v18 = vpop.f32.mrf.mxu2 }
 0x23e   : > { %v2696_v6 = vadd.f32 %v2646_v33, %v9468_v36 }
 0x240   : > { %v2852_v42 = vadd.f32 %v2802_v23, %v2696_v6 }
 0x241   : > { %v2804_v51 = vpop.f32.mrf.mxu0 }
 0x242   : > { %v2993_v4 = vadd.f32 %v2943_v20, %v2852_v42 }
 0x244   : > { %v9684_v3 = vadd.f32 %v3077_v18, %v2993_v4 }
 0x245   : > { %v2648_v26 = vpop.f32.mrf.mxu3 }
 0x246   : > { %v2697_v47 = vadd.f32 %v2648_v26, %v9477_v56 }
 0x248   : > { %v9687_v17 = vadd.f32 %v2804_v51, %v2697_v47 }
 0x249   : > { %v2807_v12 = vpop.f32.mrf.mxu0 }
 0x24a   : > { %7614 = vmatmul.msk.bf16.gmra.mxu3 %vm12589_vm5, %v8953_v25 }
 0x24c   : > { %7632 = vmatmul.msk.bf16.gmra.mxu0 %vm12589_vm5, %v12764_v37 }
 0x24d   : > { %v2651_v36 = vpop.f32.mrf.mxu3 }
 0x24e   : > { %v2698_v23 = vadd.f32 %v2651_v36, %v9486_v61 }
 0x250   : > { %v9694_v45 = vadd.f32 %v2807_v12, %v2698_v23 }
 0x251   : > { %v2809_v33 = vpop.f32.mrf.mxu0 }
 0x255   : > { %v2653_v6 = vpop.f32.mrf.mxu3 }
 0x256   : > { %v2699_v20 = vadd.f32 %v2653_v6, %v9495_v32 }
 0x258   : > { %v9697_v42 = vadd.f32 %v2809_v33, %v2699_v20  ;;  %v12769_v20 = vld [vmem:[#allocation35_spill] sm:$0xff] }
 0x259   : > { %v2812_v56 = vpop.f32.mrf.mxu0 }
 0x25a   : > { %7615 = vmatmul.msk.bf16.gmra.mxu3 %vm12589_vm5, %v9008_v30 }
 0x25c   : > { %7633 = vmatmul.msk.bf16.gmra.mxu0 %vm12589_vm5, %v8999_v58 }
 0x25d   : > { %v2656_v25 = vpop.f32.mrf.mxu3 }
 0x25e   : > { %v2700_v51 = vadd.f32 %v2656_v25, %v9436_v35 }
 0x260   : > { %v9704_v18 = vadd.f32 %v2812_v56, %v2700_v51  ;;  %v12771_v51 = vld [vmem:[#allocation27_spill] sm:$0xff] }
 0x261   : > { %v2814_v61 = vpop.f32.mrf.mxu0 }
 0x265   : > { %v2658_v4 = vpop.f32.mrf.mxu3 }
 0x266   : > { %v2701_v26 = vadd.f32 %v2658_v4, %v9444_v62 }
 0x268   : > { %v9707_v47 = vadd.f32 %v2814_v61, %v2701_v26  ;;  %v12772_v61 = vld [vmem:[#allocation26_spill] sm:$0xff] }
 0x269   : > { %v2817_v32 = vpop.f32.mrf.mxu0 }
 0x26a   : > { %12765 = vst [vmem:[#allocation13_spill] sm:$0xff] %v9707_v47  ;;  %7616 = vmatmul.msk.bf16.gmra.mxu3 %vm12589_vm5, %v9082_v31 }
 0x26c   : > { %7634 = vmatmul.msk.bf16.gmra.mxu0 %vm12589_vm5, %v9076_v46 }
 0x26d   : > { %v2661_v30 = vpop.f32.mrf.mxu3 }
 0x26e   : > { %v2702_v58 = vadd.f32 %v2661_v30, %v9455_v13  ;;  %v12775_v30 = vld [vmem:[#allocation37_spill] sm:$0xff] }
 0x270   : > { %v9714_v12 = vadd.f32 %v2817_v32, %v2702_v58 }
 0x271   : > { %v2819_v35 = vpop.f32.mrf.mxu0 }
 0x272   : > { %12766 = vst [vmem:[#allocation18_spill] sm:$0xff] %v9714_v12 }
 0x275   : > { %v2663_v37 = vpop.f32.mrf.mxu3 }
 0x276   : > { %v2703_v36 = vadd.f32 %v2663_v37, %v9462_v8 }
 0x278   : > { %v9717_v23 = vadd.f32 %v2819_v35, %v2703_v36 }
 0x279   : > { %v2822_v62 = vpop.f32.mrf.mxu0 }
 0x27a   : > { %12767 = vst [vmem:[#allocation12_spill] sm:$0xff] %v9717_v23  ;;  %7617 = vmatmul.msk.bf16.gmra.mxu3 %vm12589_vm5, %v9170_v53 }
 0x27c   : > { %7635 = vmatmul.msk.bf16.gmra.mxu0 %vm12589_vm5, %v9152_v14  ;;  %v12773_v14 = vld [vmem:[#allocation36_spill] sm:$0xff] }
 0x27d   : > { %v2666_v31 = vpop.f32.mrf.mxu3 }
 0x27e   : > { %v2704_v46 = vadd.f32 %v2666_v31, %v9473_v21 }
 0x280   : > { %v9724_v33 = vadd.f32 %v2822_v62, %v2704_v46 }
 0x281   : > { %v2824_v13 = vpop.f32.mrf.mxu0 }
 0x282   : > { %12768 = vst [vmem:[#allocation10_spill] sm:$0xff] %v9724_v33 }
 0x285   : > { %v2668_v6 = vpop.f32.mrf.mxu3 }
 0x286   : > { %v2705_v56 = vadd.f32 %v2668_v6, %v12769_v20  ;;  %v12778_v6 = vld [vmem:[#allocation38_spill] sm:$0xff] }
 0x288   : > { %v9727_v25 = vadd.f32 %v2824_v13, %v2705_v56 }
 0x289   : > { %v2827_v8 = vpop.f32.mrf.mxu0 }
 0x28a   : > { %12770 = vst [vmem:[#allocation17_spill] sm:$0xff] %v9727_v25  ;;  %7618 = vmatmul.msk.bf16.gmra.mxu3 %vm12589_vm5, %v12771_v51  ;;  %v12780_v51 = vld [vmem:[#allocation34_spill] sm:$0xff] }
 0x28c   : > { %7636 = vmatmul.msk.bf16.gmra.mxu0 %vm12589_vm5, %v12772_v61  ;;  %v12781_v61 = vld [vmem:[#allocation32_spill] sm:$0xff] }
 0x28d   : > { %v2671_v53 = vpop.f32.mrf.mxu3 }
 0x28e   : > { %v2706_v4 = vadd.f32 %v2671_v53, %v12773_v14 }
 0x290   : > { %v9734_v26 = vadd.f32 %v2827_v8, %v2706_v4 }
 0x291   : > { %v2829_v21 = vpop.f32.mrf.mxu0 }
 0x292   : > { %12774 = vst [vmem:[#allocation16_spill] sm:$0xff] %v9734_v26 }
 0x295   : > { %v2673_v32 = vpop.f32.mrf.mxu3 }
 0x296   : > { %v2707_v58 = vadd.f32 %v2673_v32, %v12775_v30 }
 0x298   : > { %v9737_v35 = vadd.f32 %v2829_v21, %v2707_v58  ;;  %v12784_v21 = vld [vmem:[#allocation24_spill] sm:$0xff] }
 0x299   : > { %v3324_v37 = vpop.f32.mrf.mxu0 }
 0x29a   : > { %12776 = vst [vmem:[#allocation20_spill] sm:$0xff] %v9737_v35  ;;  %7619 = vmatmul.msk.bf16.gmra.mxu3 %vm12589_vm5, %v9297_v59 }
 0x29c   : > { %7637 = vmatmul.msk.bf16.gmra.mxu0 %vm12589_vm5, %v9288_v5  ;;  %v12782_v5 = vld [vmem:[#allocation22_spill] sm:$0xff] }
 0x29d   : > { %v3183_v36 = vpop.f32.mrf.mxu3 }
 0x29e   : > { %v3263_v62 = vadd.f32 %v3183_v36, %v9512_v39 }
 0x2a0   : > { %v9744_v31 = vadd.f32 %v3324_v37, %v3263_v62  ;;  %v12785_v37 = vld [vmem:[#allocation23_spill] sm:$0xff] }
 0x2a1   : > { %v3326_v46 = vpop.f32.mrf.mxu0 }
 0x2a2   : > { %12777 = vst [vmem:[#allocation19_spill] sm:$0xff] %v9744_v31 }
 0x2a5   : > { %v3185_v13 = vpop.f32.mrf.mxu3 }
 0x2a6   : > { %v3264_v20 = vadd.f32 %v3185_v13, %v12778_v6 }
 0x2a8   : > { %v9747_v56 = vadd.f32 %v3326_v46, %v3264_v20 }
 0x2a9   : > { %v3329_v8 = vpop.f32.mrf.mxu0 }
 0x2aa   : > { %12779 = vst [vmem:[#allocation21_spill] sm:$0xff] %v9747_v56  ;;  %7620 = vmatmul.msk.bf16.gmra.mxu3 %vm12589_vm5, %v12780_v51 }
 0x2ac   : > { %7638 = vmatmul.msk.bf16.gmra.mxu0 %vm12589_vm5, %v12781_v61 }
 0x2ad   : > { %v3188_v59 = vpop.f32.mrf.mxu3 }
 0x2ae   : > { %v3265_v53 = vadd.f32 %v3188_v59, %v12782_v5 }
 0x2b0   : > { %v9754_v14 = vadd.f32 %v3329_v8, %v3265_v53  ;;  %v12787_v53 = vld [vmem:[#allocation14_spill] sm:$0xff] }
 0x2b1   : > { %v3331_v39 = vpop.f32.mrf.mxu0 }
 0x2b2   : > { %12783 = vst [vmem:[#allocation35_spill] sm:$0xff] %v9754_v14 }
 0x2b5   : > { %v3190_v4 = vpop.f32.mrf.mxu3 }
 0x2b6   : > { %v3266_v32 = vadd.f32 %v3190_v4, %v12784_v21 }
 0x2b8   : > { %v9757_v30 = vadd.f32 %v3331_v39, %v3266_v32  ;;  %v12788_v39 = vrot.slane %v12787_v53, 4  ;;  %v12790_v32 = vld [vmem:[#allocation29_spill] sm:$0xff] }
 0x2b9   : > { %v3334_v58 = vpop.f32.mrf.mxu0 }
 0x2ba   : > { %7621 = vmatmul.msk.bf16.gmra.mxu3 %vm12589_vm5, %v12742_v29 }
 0x2bc   : > { %7639 = vmatmul.msk.bf16.gmra.mxu0 %vm12589_vm5, %v12785_v37 }
 0x2bd   : > { %v3193_v36 = vpop.f32.mrf.mxu3 }
 0x2be   : > { %v3267_v62 = vadd.f32 %v3193_v36, %v9545_v55  ;;  %v1041_v55 = vld [vmem:[#allocation2 + $0xd4] sm:$0x1] }
 0x2c0   : > { %v9764_v46 = vadd.f32 %v3334_v58, %v3267_v62 }
 0x2c1   : > { %v3336_v13 = vpop.f32.mrf.mxu0 }
 0x2c2   : > { %12786 = vst [vmem:[#allocation27_spill] sm:$0xff] %v9764_v46 }
 0x2c5   : > { %v3195_v6 = vpop.f32.mrf.mxu3 }
 0x2c6   : > { %v3268_v20 = vadd.f32 %v3195_v6, %v9553_v28  ;;  %v1042_v28 = vsel %vm8267_vm4, %v12788_v39, %v1041_v55 }
 0x2c7   : > { %1043 = vst [vmem:[#allocation2 + $0xd4] sm:$0x1] %v1042_v28  ;;  %v12795_v28 = vld [vmem:[#allocation33_spill] sm:$0xff] }
 0x2c8   : > { %v9767_v8 = vadd.f32 %v3336_v13, %v3268_v20  ;;  %v12793_v20 = vld [vmem:[#allocation30_spill] sm:$0xff] }
 0x2c9   : > { %v3339_v51 = vpop.f32.mrf.mxu0 }
 0x2ca   : > { %7622 = vmatmul.msk.bf16.gmra.mxu3 %vm12589_vm5, %v12748_v60  ;;  %v1205_v60 = vld [vmem:[#allocation2 + $0xd0] sm:$0x8] }
 0x2cc   : > { %7640 = vmatmul.msk.bf16.gmra.mxu0 %vm12589_vm5, %v12744_v27  ;;  %v7402_v27 = vrot.slane %v1205_v60, 11 }
 0x2cd   : > { %v3198_v29 = vpop.f32.mrf.mxu3 }
 0x2ce   : > { %v3269_v61 = vadd.f32 %v3198_v29, %v9563_v54  ;;  %v1330_v62 = vld [vmem:[#allocation2 + $0xd4] sm:$0x1]  ;;  %v12791_v54 = vld [vmem:[#allocation15_spill] sm:$0xff]  ;;  %v12794_v29 = vld [vmem:[#allocation9_spill] sm:$0xff] }
 0x2cf   : > { %v1331_v6 = vsel %vm8319_vm8, %v7402_v27, %v1330_v62 }
 0x2d0   : > { %v9774_v59 = vadd.f32 %v3339_v51, %v3269_v61  ;;  %1332 = vst [vmem:[#allocation2 + $0xd4] sm:$0x1] %v1331_v6 }
 0x2d1   : > { %v3341_v5 = vpop.f32.mrf.mxu0 }
 0x2d5   : > { %v3200_v21 = vpop.f32.mrf.mxu3 }
 0x2d6   : > { %v3270_v58 = vadd.f32 %v3200_v21, %v12790_v32  ;;  %v1367_v21 = vld [vmem:[#allocation2 + $0xcc] sm:$0xf]  ;;  %v1368_v32 = vld [vmem:[#allocation2 + $0xd0] sm:$0xf] }
 0x2d7   : > { %v3140_v27 = vshrl.u32 %v1367_v21, 16  ;;  %v3143_v62 = vshll.u32 %v1367_v21, 16  ;;  %v1386_v13 = vld [vmem:[#allocation2 + $0xd4] sm:$0x1] }
 0x2d8   : > { %v9781_v37 = vadd.f32 %v3341_v5, %v3270_v58  ;;  %v3159_v35 = vshll.u32 %v1386_v13, 16 }
 0x2d9   : > { %v3344_v36 = vpop.f32.mrf.mxu0 }
 0x2da   : > { %7623 = vmatmul.msk.bf16.gmra.mxu3 %vm12589_vm5, %v12791_v54  ;;  %v3153_v54 = vshrl.u32 %v1368_v32, 16 }
 0x2dc   : > { %7641 = vmatmul.msk.bf16.gmra.mxu0 %vm12589_vm5, %v12793_v20 }
 0x2dd   : > { %v3203_v51 = vpop.f32.mrf.mxu3 }
 0x2de   : > { %v3271_v61 = vadd.f32 %v3203_v51, %v12794_v29  ;;  %v3142_v51 = vrot.slane %v3140_v27, 4  ;;  %v3145_v29 = vrot.slane %v3143_v62, 5  ;;  %v1404_v27 = vld [vmem:[#allocation2 + $0xcc] sm:$0xe] }
 0x2df   : > { %v7627_v25 = vrot.slane %v1404_v27, 9 }
 0x2e0   : > { %v9790_v55 = vadd.f32 %v3344_v36, %v3271_v61  ;;  %v3149_v36 = vshll.u32 %v1368_v32, 16  ;;  %v3146_v21 = vor.u32 %v3145_v29, %v3142_v51 }
 0x2e1   : > { %v9792_v5 = vpop.f32.mrf.mxu0 }
 0x2e2   : > { %v3151_v61 = vrot.slane %v3149_v36, 5  ;;  %v3147_v62 = vrot.slane %v3146_v21, 4 }
 0x2e4   : > { %v3152_v29 = vsel %vm8403_vm6, %v3147_v62, %v3151_v61 }
 0x2e5   : > { %v9794_v53 = vpop.f32.mrf.mxu3 }
 0x2e9   : > { %v3349_v39 = vpop.f32.mrf.mxu0 }
 0x2ea   : > { %7624 = vmatmul.msk.bf16.gmra.mxu3 %vm12589_vm5, %v12757_v41  ;;  %v3155_v41 = vrot.slane %v3153_v54, 4  ;;  %v3161_v54 = vrot.slane %v3159_v35, 5 }
 0x2ec   : > { %7642 = vmatmul.msk.bf16.gmra.mxu0 %vm12589_vm5, %v12795_v28  ;;  %v7681_v28 = vld [vmem:[%s12534_s6 + $0x2] sm:$0x3] }
 0x2ed   : > { %v3208_v58 = vpop.f32.mrf.mxu3 }
 0x2ee   : > { %v3273_v60 = vadd.f32 %v3208_v58, %v9604_v43  ;;  %v5132_v43 = vsel %vm12588_vm0, %v7681_v28, 0  ;;  %v3156_v58 = vor.u32 %v3155_v41, %v3151_v61  ;;  %v3302_v28 = vrot.slane %v1386_v13, 5 }
 0x2ef   : > { %5141 = vmatpush.bf16.msra.mxu1 %v5132_v43  ;;  %v3165_v43 = vunpack.c.l.b16 %v3152_v29 }
 0x2f0   : > { %v9801_v6 = vadd.f32 %v3349_v39, %v3273_v60  ;;  %v3299_v60 = vrot.slane %v1368_v32, 5  ;;  %v3157_v36 = vrot.slane %v3156_v58, 4 }
 0x2f1   : > { %v9803_v20 = vpop.f32.mrf.mxu0 }
 0x2f2   : > { %v3301_v33 = vrot.slane %v3299_v60, 4  ;;  %v3162_v32 = vsel %vm8403_vm6, %v3157_v36, %v3161_v54  ;;  %v3300_v35 = vsel %vm8338_vm15, %v7627_v25, %v3299_v60 }
 0x2f3   : > { %v3166_v13 = vunpack.c.l.b16 %v3162_v32  ;;  %v3306_v21 = vunpack.c.l.b16 %v3300_v35  ;;  %v9846_v35 = vpop.f32.mrf.mxu1 }
 0x2f5   : > { %v9805_v4 = vpop.f32.mrf.mxu3  ;;  %v3167_v61 = vpack.c.b16 %v3166_v13, %v3165_v43 }
 0x2f9   : > { %v3354_v39 = vpop.f32.mrf.mxu0 }
 0x2fa   : > { %7625 = vmatmul.msk.bf16.gmra.mxu3 %vm12589_vm5, %v9635_v1 }
 0x2fc   : > { %7643 = vmatmul.msk.bf16.gmra.mxu0 %vm12589_vm5, %v9619_v15  ;;  %v3303_v15 = vsel %vm8338_vm15, %v3301_v33, %v3302_v28 }
 0x2fd   : > { %v3213_v26 = vpop.f32.mrf.mxu3 }
 0x2fe   : > { %v3275_v51 = vadd.f32 %v3213_v26, %v9630_v11  ;;  %v3307_v11 = vunpack.c.l.b16 %v3303_v15 }
 0x300   : > { %v9820_v1 = vadd.f32 %v3354_v39, %v3275_v51  ;;  %v3308_v58 = vpack.c.b16 %v3307_v11, %v3306_v21 }
 0x301   : > { %v9822_v41 = vpop.f32.mrf.mxu0 }
 0x305   : > { %v9828_v26 = vpop.f32.mrf.mxu3 }
 0x309   : > { %v3359_v27 = vpop.f32.mrf.mxu0 }
 0x30a   : > { %7626 = vmatmul.msk.bf16.gmra.mxu3 %vm12589_vm5, %v3167_v61  ;;  %v9855_v61 = vpop.f32.mrf.mxu1 }
 0x30c   : > { %7644 = vmatmul.msk.bf16.gmra.mxu0 %vm12589_vm5, %v3308_v58 }
 0x30d   : > { %v3218_v39 = vpop.f32.mrf.mxu3 }
 0x30e   : > { %v3277_v62 = vadd.f32 %v3218_v39, %v9646_v22  ;;  %v9848_v22 = vpop.f32.mrf.mxu2 }
 0x310   : > { %v9833_v25 = vadd.f32 %v3359_v27, %v3277_v62 }
 0x311   : > { %v9835_v60 = vpop.f32.mrf.mxu0 }
 0x312   : > { %v9861_v39 = vpop.f32.mrf.mxu1 }
 0x315   : > { %v9837_v33 = vpop.f32.mrf.mxu3 }
 0x316   : > { %v9859_v58 = vpop.f32.mrf.mxu2 }
 0x319   : > { %v3364_v36 = vpop.f32.mrf.mxu0 }
 0x31a   : > { %v9876_v48 = vpop.f32.mrf.mxu1 }
 0x31d   : > { %v3223_v54 = vpop.f32.mrf.mxu3 }
 0x31e   : > { %v3279_v28 = vadd.f32 %v3223_v54, %v9660_v63 }
 0x320   : > { %v9840_v51 = vadd.f32 %v3364_v36, %v3279_v28  ;;  %v4648_v36 = vld [vmem:[%s12534_s6] sm:$0x3] }
 0x321   : > { %v9842_v29 = vpop.f32.mrf.mxu0  ;;  %v5352_v54 = vsel %vm12588_vm0, %v4648_v36, 0 }
 0x322   : > { %12796 = vst [vmem:[#allocation26_spill] sm:$0xff] %v9840_v51  ;;  %5361 = vmatpush.bf16.msra.mxu2 %v5352_v54  ;;  %v3439_v51 = vsel %vm12589_vm5, %v9754_v14, 0.0 }
 0x325   : > { %v9844_v32 = vpop.f32.mrf.mxu3 }
 0x329   : > { %v3369_v15 = vpop.f32.mrf.mxu0 }
 0x32d   : > { %v3228_v43 = vpop.f32.mrf.mxu3 }
 0x32e   : > { %v3281_v13 = vadd.f32 %v3228_v43, %v9670_v10 }
 0x330   : > { %v9851_v21 = vadd.f32 %v3369_v15, %v3281_v13  ;;  %v9870_v15 = vpop.f32.mrf.mxu2 }
 0x331   : > { %v9853_v11 = vpop.f32.mrf.mxu0 }
 0x332   : > { %12797 = vst [vmem:[#allocation36_spill] sm:$0xff] %v9851_v21 }
 0x333   : > { %12798 = vst [vmem:[#allocation37_spill] sm:$0xff] %v9853_v11 }
 0x335   : > { %v9857_v63 = vpop.f32.mrf.mxu3 }
 0x336   : > { %12799 = vst [vmem:[#allocation38_spill] sm:$0xff] %v9857_v63 }
 0x338   : > { %v9880_v21 = vpop.f32.mrf.mxu2 }
 0x339   : > { %v3374_v27 = vpop.f32.mrf.mxu0  ;;  %12804 = vst [vmem:[#allocation23_spill] sm:$0xff] %v9880_v21 }
 0x33d   : > { %v3233_v62 = vpop.f32.mrf.mxu3 }
 0x33e   : > { %v3283_v10 = vadd.f32 %v3233_v62, %v9684_v3  ;;  %v9884_v3 = vpop.f32.mrf.mxu1 }
 0x33f   : > { %12806 = vst [vmem:[#allocation29_spill] sm:$0xff] %v9884_v3 }
 0x340   : > { %v9868_v28 = vadd.f32 %v3374_v27, %v3283_v10  ;;  %v9888_v27 = vpop.f32.mrf.mxu2 }
 0x341   : > { %v9872_v43 = vpop.f32.mrf.mxu0  ;;  %12808 = vst [vmem:[#allocation30_spill] sm:$0xff] %v9888_v27  ;;  %v3507_v27 = vmul.f32 %v9754_v14, %v9754_v14  ;;  %v3509_v14 = vmul.f32 %v9764_v46, %v9764_v46 }
 0x342   : > { %12800 = vst [vmem:[#allocation34_spill] sm:$0xff] %v9868_v28  ;;  %v3506_v28 = vmul.f32 %v9747_v56, %v9747_v56 }
 0x343   : > { %12801 = vst [vmem:[#allocation32_spill] sm:$0xff] %v9872_v43  ;;  %v12813_v43 = vld [vmem:[#allocation25_spill] sm:$0xff] }
 0x344   : > { %v3538_v23 = vsel %vm12589_vm5, %v3506_v28, 0.0  ;;  %v3441_v28 = vsel %vm12589_vm5, %v9757_v30, 0.0 }
 0x345   : > { %v9874_v13 = vpop.f32.mrf.mxu3 }
 0x346   : > { %12802 = vst [vmem:[#allocation22_spill] sm:$0xff] %v9874_v13  ;;  %v9894_v54 = vpop.f32.mrf.mxu1 }
 0x347   : > { %12811 = vst [vmem:[#allocation39_spill] sm:$0xff] %v9894_v54 }
 0x348   : > { %v9918_v3 = vpop.f32.mrf.mxu2 }
 0x349   : > { %v9878_v52 = vpop.f32.mrf.mxu0 }
 0x34a   : > { %12803 = vst [vmem:[#allocation24_spill] sm:$0xff] %v9878_v52  ;;  %v12812_v52 = vld [vmem:[#allocation11_spill] sm:$0xff] }
 0x34b   : > { %v2982_v13 = vadd.f32 %v12813_v43, %v12812_v52  ;;  %v3508_v52 = vmul.f32 %v9757_v30, %v9757_v30  ;;  %v12815_v43 = vld [vmem:[#allocation31_spill] sm:$0xff] }
 0x34d   : > { %v9882_v11 = vpop.f32.mrf.mxu3  ;;  %v3116_v54 = vadd.f32 %v12815_v43, %v2982_v13 }
 0x34e   : > { %12805 = vst [vmem:[#allocation14_spill] sm:$0xff] %v9882_v11  ;;  %v3505_v11 = vmul.f32 %v9744_v31, %v9744_v31 }
 0x34f   : > { %v3272_v13 = vadd.f32 %v9794_v53, %v3116_v54  ;;  %v3544_v53 = vsel %vm12589_vm5, %v3509_v14, 0.0 }
 0x351   : > { %v9886_v62 = vpop.f32.mrf.mxu0 }
 0x352   : > { %12807 = vst [vmem:[#allocation15_spill] sm:$0xff] %v9886_v62  ;;  %v3437_v62 = vsel %vm12589_vm5, %v9747_v56, 0.0  ;;  %v12816_v56 = vld [vmem:[#allocation28_spill] sm:$0xff] }
 0x353   : > { %v2984_v12 = vadd.f32 %v12816_v56, %v9611_v50  ;;  %v3542_v50 = vsel %vm12589_vm5, %v3508_v52, 0.0  ;;  %v3443_v56 = vsel %vm12589_vm5, %v9764_v46, 0.0  ;;  %v9945_v46 = vadd.f32 %v9792_v5, %v3272_v13 }
 0x354   : > { %v2988_v5 = vadd.f32 %v9641_v44, %v9649_v9  ;;  %v3449_v13 = vsel %vm12589_vm5, %v9781_v37, 0.0  ;;  %v3451_v9 = vsel %vm12589_vm5, %v9790_v55, 0.0 }
 0x355   : > { %v9890_v36 = vpop.f32.mrf.mxu3 }
 0x356   : > { %12809 = vst [vmem:[#allocation9_spill] sm:$0xff] %v9890_v36 }
 0x359   : > { %v9892_v10 = vpop.f32.mrf.mxu0 }
 0x35a   : > { %12810 = vst [vmem:[#allocation33_spill] sm:$0xff] %v9892_v10  ;;  %v3436_v10 = vsel %vm12589_vm5, %v9744_v31, 0.0  ;;  %v3540_v31 = vsel %vm12589_vm5, %v3507_v27, 0.0 }
 0x35b   : > { %v3438_v47 = vadd.f32 %v3437_v62, %v3436_v10  ;;  %v2986_v62 = vadd.f32 %v9614_v16, %v9633_v19 }
 0x35d   : > { %v9906_v36 = vpop.f32.mrf.mxu3  ;;  %v3440_v63 = vadd.f32 %v3439_v51, %v3438_v47  ;;  %v9937_v47 = vpop.f32.mrf.mxu1  ;;  %v3445_v51 = vsel %vm12589_vm5, %v9767_v8, 0.0  ;;  %v3120_v14 = vadd.f32 %v9628_v2, %v2986_v62  ;;  %v3514_v62 = vmul.f32 %v9945_v46, %v9945_v46 }
 0x35e   : > { %12814 = vst [vmem:[#allocation11_spill] sm:$0xff] %v9906_v36  ;;  %v3537_v36 = vsel %vm12589_vm5, %v3505_v11, 0.0  ;;  %v3510_v11 = vmul.f32 %v9767_v8, %v9767_v8 }
 0x35f   : > { %v3539_v21 = vadd.f32 %v3538_v23, %v3537_v36  ;;  %v3442_v10 = vadd.f32 %v3441_v28, %v3440_v63  ;;  %v3118_v23 = vadd.f32 %v9602_v38, %v2984_v12  ;;  %v3511_v36 = vmul.f32 %v9774_v59, %v9774_v59 }
 0x360   : > { %v3546_v19 = vsel %vm12589_vm5, %v3510_v11, 0.0  ;;  %v3447_v38 = vsel %vm12589_vm5, %v9774_v59, 0.0  ;;  %v3512_v12 = vmul.f32 %v9781_v37, %v9781_v37  ;;  %v9965_v11 = vpop.f32.mrf.mxu2 }
 0x361   : > { %v9927_v43 = vpop.f32.mrf.mxu0  ;;  %v3541_v27 = vadd.f32 %v3540_v31, %v3539_v21  ;;  %v3444_v52 = vadd.f32 %v3443_v56, %v3442_v10  ;;  %v3274_v31 = vadd.f32 %v9805_v4, %v3118_v23  ;;  %v3548_v28 = vsel %vm12589_vm5, %v3511_v36, 0.0 }
 0x362   : > { %v2990_v56 = vadd.f32 %v9656_v40, %v9663_v7  ;;  %v3550_v44 = vsel %vm12589_vm5, %v3512_v12, 0.0  ;;  %v3276_v23 = vadd.f32 %v9828_v26, %v3120_v14  ;;  %v2992_v40 = vadd.f32 %v9672_v57, %v9677_v49 }
 0x363   : > { %v3543_v54 = vadd.f32 %v3542_v50, %v3541_v27  ;;  %v3446_v63 = vadd.f32 %v3445_v51, %v3444_v52  ;;  %v3513_v50 = vmul.f32 %v9790_v55, %v9790_v55  ;;  %v9975_v10 = vadd.f32 %v9803_v20, %v3274_v31 }
 0x364   : > { %v3122_v51 = vadd.f32 %v9644_v0, %v2988_v5  ;;  %v3515_v52 = vmul.f32 %v9801_v6, %v9801_v6  ;;  %v3124_v20 = vadd.f32 %v9658_v34, %v2990_v56  ;;  %v3554_v26 = vsel %vm12589_vm5, %v3514_v62, 0.0 }
 0x365   : > { %v9947_v16 = vpop.f32.mrf.mxu3  ;;  %v3545_v21 = vadd.f32 %v3544_v53, %v3543_v54  ;;  %v3448_v2 = vadd.f32 %v3447_v38, %v3446_v63  ;;  %v3552_v36 = vsel %vm12589_vm5, %v3513_v50, 0.0  ;;  %v3453_v54 = vsel %vm12589_vm5, %v9945_v46, 0.0  ;;  %v9990_v57 = vpop.f32.mrf.mxu1 }
 0x366   : > { %v3455_v0 = vsel %vm12589_vm5, %v9801_v6, 0.0  ;;  %v3516_v49 = vmul.f32 %v9975_v10, %v9975_v10  ;;  %v9997_v31 = vadd.f32 %v9822_v41, %v3276_v23  ;;  %v3278_v14 = vadd.f32 %v9837_v33, %v3122_v51 }
 0x367   : > { %v3547_v4 = vadd.f32 %v3546_v19, %v3545_v21  ;;  %v3450_v53 = vadd.f32 %v3449_v13, %v3448_v2  ;;  %v3126_v34 = vadd.f32 %v9675_v24, %v2992_v40  ;;  %v2994_v21 = vadd.f32 %v9846_v35, %v9687_v17 }
 0x368   : > { %v3556_v13 = vsel %vm12589_vm5, %v3515_v52, 0.0  ;;  %v3457_v50 = vsel %vm12589_vm5, %v9975_v10, 0.0  ;;  %v3517_v41 = vmul.f32 %v9820_v1, %v9820_v1  ;;  %v2996_v33 = vadd.f32 %v9861_v39, %v9697_v42  ;;  %v10026_v39 = vpop.f32.mrf.mxu2 }
 0x369   : > { %v9969_v27 = vpop.f32.mrf.mxu0  ;;  %v3549_v7 = vadd.f32 %v3548_v28, %v3547_v4  ;;  %v3452_v38 = vadd.f32 %v3451_v9, %v3450_v53  ;;  %v2995_v28 = vadd.f32 %v9855_v61, %v9694_v45  ;;  %v3280_v17 = vadd.f32 %v9844_v32, %v3124_v20  ;;  %v12818_v20 = vld [vmem:[#allocation23_spill] sm:$0xff] }
 0x36a   : > { %v3558_v4 = vsel %vm12589_vm5, %v3516_v49, 0.0  ;;  %v3459_v45 = vsel %vm12589_vm5, %v9820_v1, 0.0  ;;  %v3518_v61 = vmul.f32 %v9997_v31, %v9997_v31  ;;  %v10021_v2 = vadd.f32 %v9835_v60, %v3278_v14  ;;  %v12821_v49 = vld [vmem:[#allocation18_spill] sm:$0xff]  ;;  %v12822_v14 = vld [vmem:[#allocation39_spill] sm:$0xff] }
 0x36b   : > { %v3551_v19 = vadd.f32 %v3550_v44, %v3549_v7  ;;  %v3454_v5 = vadd.f32 %v3453_v54, %v3452_v38  ;;  %v3128_v62 = vadd.f32 %v9848_v22, %v2994_v21  ;;  %v2997_v42 = vadd.f32 %v9876_v48, %v9704_v18  ;;  %v12817_v54 = vld [vmem:[#allocation38_spill] sm:$0xff]  ;;  %v12820_v38 = vld [vmem:[#allocation29_spill] sm:$0xff] }
 0x36c   : > { %v3129_v9 = vadd.f32 %v9859_v58, %v2995_v28  ;;  %v3560_v23 = vsel %vm12589_vm5, %v3517_v41, 0.0  ;;  %v3461_v40 = vsel %vm12589_vm5, %v9997_v31, 0.0  ;;  %v3519_v60 = vmul.f32 %v9833_v25, %v9833_v25 }
 0x36d   : > { %v9988_v12 = vpop.f32.mrf.mxu3  ;;  %v3553_v63 = vadd.f32 %v3552_v36, %v3551_v19  ;;  %v3456_v56 = vadd.f32 %v3455_v0, %v3454_v5  ;;  %v3130_v7 = vadd.f32 %v9870_v15, %v2996_v33  ;;  %v10036_v48 = vadd.f32 %v9842_v29, %v3280_v17  ;;  %v12819_v15 = vld [vmem:[#allocation13_spill] sm:$0xff] }
 0x36e   : > { %v3562_v51 = vsel %vm12589_vm5, %v3518_v61, 0.0  ;;  %v3463_v58 = vsel %vm12589_vm5, %v9833_v25, 0.0  ;;  %v3520_v36 = vmul.f32 %v10021_v2, %v10021_v2  ;;  %v3282_v52 = vadd.f32 %v12817_v54, %v3126_v34  ;;  %v12824_v34 = vld [vmem:[#allocation12_spill] sm:$0xff]  ;;  %v12825_v61 = vld [vmem:[#allocation37_spill] sm:$0xff] }
 0x36f   : > { %v3555_v24 = vadd.f32 %v3554_v26, %v3553_v63  ;;  %v3458_v44 = vadd.f32 %v3457_v50, %v3456_v56  ;;  %v3131_v19 = vadd.f32 %v12818_v20, %v2997_v42  ;;  %v2998_v26 = vadd.f32 %v12820_v38, %v12819_v15  ;;  %v2965_v63 = vpop.f32.mrf.mxu1  ;;  %v12829_v54 = vld [vmem:[#allocation36_spill] sm:$0xff] }
 0x370   : > { %v2999_v21 = vadd.f32 %v12822_v14, %v12821_v49  ;;  %v3564_v5 = vsel %vm12589_vm5, %v3519_v60, 0.0  ;;  %v3465_v28 = vsel %vm12589_vm5, %v10021_v2, 0.0  ;;  %v3000_v41 = vadd.f32 %v9937_v47, %v12824_v34  ;;  %v3099_v15 = vpop.f32.mrf.mxu2  ;;  %v12831_v14 = vld [vmem:[#allocation9_spill] sm:$0xff]  ;;  %v12833_v34 = vld [vmem:[#allocation24_spill] sm:$0xff] }
 0x371   : > { %v10013_v35 = vpop.f32.mrf.mxu0  ;;  %v3557_v32 = vadd.f32 %v3556_v13, %v3555_v24  ;;  %v3460_v53 = vadd.f32 %v3459_v45, %v3458_v44  ;;  %v12823_v13 = vld [vmem:[#allocation26_spill] sm:$0xff]  ;;  %v3522_v56 = vmul.f32 %v10036_v48, %v10036_v48  ;;  %v10066_v42 = vadd.f32 %v12825_v61, %v3282_v52 }
 0x372   : > { %v3521_v50 = vmul.f32 %v12823_v13, %v12823_v13  ;;  %v3467_v45 = vsel %vm12589_vm5, %v12823_v13, 0.0  ;;  %v3523_v20 = vmul.f32 %v12829_v54, %v12829_v54  ;;  %v3134_v52 = vadd.f32 %v9965_v11, %v3000_v41 }
 0x373   : > { %v3559_v22 = vadd.f32 %v3558_v4, %v3557_v32  ;;  %v3462_v29 = vadd.f32 %v3461_v40, %v3460_v53  ;;  %v3566_v4 = vsel %vm12589_vm5, %v3520_v36, 0.0  ;;  %v12826_v32 = vld [vmem:[#allocation22_spill] sm:$0xff]  ;;  %v3469_v36 = vsel %vm12589_vm5, %v10036_v48, 0.0 }
 0x374   : > { %v3284_v44 = vadd.f32 %v12826_v32, %v3128_v62  ;;  %v12836_v32 = vld [vmem:[#allocation17_spill] sm:$0xff] }
 0x375   : > { %v10038_v18 = vpop.f32.mrf.mxu3  ;;  %v3561_v0 = vadd.f32 %v3560_v23, %v3559_v22  ;;  %v3464_v24 = vadd.f32 %v3463_v58, %v3462_v29  ;;  %v12827_v23 = vld [vmem:[#allocation30_spill] sm:$0xff]  ;;  %v3568_v58 = vsel %vm12589_vm5, %v3521_v50, 0.0  ;;  %v12830_v29 = vld [vmem:[#allocation32_spill] sm:$0xff] }
 0x376   : > { %v3132_v40 = vadd.f32 %v12827_v23, %v2998_v26  ;;  %v12828_v22 = vld [vmem:[#allocation14_spill] sm:$0xff]  ;;  %v3570_v26 = vsel %vm12589_vm5, %v3522_v56, 0.0  ;;  %v10084_v49 = vadd.f32 %v12830_v29, %v3284_v44 }
 0x377   : > { %v3563_v33 = vadd.f32 %v3562_v51, %v3561_v0  ;;  %v3466_v60 = vadd.f32 %v3465_v28, %v3464_v24  ;;  %v3285_v53 = vadd.f32 %v12828_v22, %v3129_v9  ;;  %v3133_v51 = vadd.f32 %v9918_v3, %v2999_v21  ;;  %v12834_v56 = vld [vmem:[#allocation34_spill] sm:$0xff] }
 0x378   : > { %v3471_v9 = vsel %vm12589_vm5, %v12829_v54, 0.0  ;;  %v3524_v3 = vmul.f32 %v10066_v42, %v10066_v42  ;;  %v3286_v21 = vadd.f32 %v12831_v14, %v3130_v7  ;;  %v3473_v24 = vsel %vm12589_vm5, %v10066_v42, 0.0 }
 0x379   : > { %v10060_v17 = vpop.f32.mrf.mxu0  ;;  %v3565_v47 = vadd.f32 %v3564_v5, %v3563_v33  ;;  %v3468_v38 = vadd.f32 %v3467_v45, %v3466_v60  ;;  %v12832_v5 = vld [vmem:[#allocation10_spill] sm:$0xff]  ;;  %v10090_v41 = vadd.f32 %v12833_v34, %v3285_v53  ;;  %v3572_v33 = vsel %vm12589_vm5, %v3523_v20, 0.0  ;;  %v12835_v45 = vld [vmem:[#allocation11_spill] sm:$0xff] }
 0x37a   : > { %v3001_v11 = vadd.f32 %v9990_v57, %v12832_v5  ;;  %v3287_v61 = vadd.f32 %v12835_v45, %v3131_v19  ;;  %v3002_v7 = vadd.f32 %v2965_v63, %v12836_v32  ;;  %v3288_v57 = vadd.f32 %v9947_v16, %v3132_v40 }
 0x37b   : > { %v3567_v62 = vadd.f32 %v3566_v4, %v3565_v47  ;;  %v3470_v50 = vadd.f32 %v3469_v36, %v3468_v38  ;;  %v3525_v4 = vmul.f32 %v12834_v56, %v12834_v56  ;;  %v2968_v47 = vpop.f32.mrf.mxu1  ;;  %v3574_v60 = vsel %vm12589_vm5, %v3524_v3, 0.0 }
 0x37c   : > { %v3475_v22 = vsel %vm12589_vm5, %v12834_v56, 0.0  ;;  %v3526_v53 = vmul.f32 %v10084_v49, %v10084_v49  ;;  %v3135_v19 = vadd.f32 %v10026_v39, %v3001_v11  ;;  %v3477_v38 = vsel %vm12589_vm5, %v10084_v49, 0.0 }
 0x37d   : > { %v3253_v0 = vpop.f32.mrf.mxu3  ;;  %v3569_v28 = vadd.f32 %v3568_v58, %v3567_v62  ;;  %v3472_v23 = vadd.f32 %v3471_v9, %v3470_v50  ;;  %v12837_v58 = vld [vmem:[#allocation15_spill] sm:$0xff]  ;;  %v3527_v62 = vmul.f32 %v10090_v41, %v10090_v41  ;;  %v3576_v40 = vsel %vm12589_vm5, %v3525_v4, 0.0 }
 0x37e   : > { %v10106_v36 = vadd.f32 %v12837_v58, %v3286_v21  ;;  %v3289_v3 = vadd.f32 %v9988_v12, %v3133_v51  ;;  %v3136_v29 = vadd.f32 %v3099_v15, %v3002_v7  ;;  %v10119_v39 = vadd.f32 %v9927_v43, %v3288_v57  ;;  %v3102_v12 = vpop.f32.mrf.mxu2 }
 0x37f   : > { %v3571_v44 = vadd.f32 %v3570_v26, %v3569_v28  ;;  %v3474_v63 = vadd.f32 %v3473_v24, %v3472_v23  ;;  %v12838_v26 = vld [vmem:[#allocation33_spill] sm:$0xff]  ;;  %v3578_v11 = vsel %vm12589_vm5, %v3526_v53, 0.0  ;;  %v3479_v28 = vsel %vm12589_vm5, %v10090_v41, 0.0 }
 0x380   : > { %v10115_v9 = vadd.f32 %v12838_v26, %v3287_v61  ;;  %v3528_v50 = vmul.f32 %v10106_v36, %v10106_v36  ;;  %v3290_v34 = vadd.f32 %v10038_v18, %v3134_v52  ;;  %v3580_v4 = vsel %vm12589_vm5, %v3527_v62, 0.0 }
 0x381   : > { %v3573_v20 = vadd.f32 %v3572_v33, %v3571_v44  ;;  %v3396_v16 = vpop.f32.mrf.mxu0  ;;  %v3476_v21 = vadd.f32 %v3475_v22, %v3474_v63  ;;  %v12839_v33 = vld [vmem:[#allocation16_spill] sm:$0xff]  ;;  %v3481_v43 = vsel %vm12589_vm5, %v10106_v36, 0.0  ;;  %v10134_v61 = vadd.f32 %v9969_v27, %v3289_v3 }
 0x382   : > { %v3003_v24 = vadd.f32 %v2968_v47, %v12839_v33  ;;  %v3529_v45 = vmul.f32 %v10115_v9, %v10115_v9  ;;  %v3291_v32 = vadd.f32 %v3253_v0, %v3135_v19  ;;  %v3530_v18 = vmul.f32 %v10119_v39, %v10119_v39 }
 0x383   : > { %v3575_v14 = vadd.f32 %v3574_v60, %v3573_v20  ;;  %v3478_v15 = vadd.f32 %v3477_v38, %v3476_v21  ;;  %v3582_v52 = vsel %vm12589_vm5, %v3528_v50, 0.0  ;;  %v3483_v23 = vsel %vm12589_vm5, %v10115_v9, 0.0  ;;  %v2970_v27 = vpop.f32.mrf.mxu1  ;;  %v12840_v21 = vld [vmem:[#allocation20_spill] sm:$0xff] }
 0x384   : > { %v10142_v57 = vadd.f32 %v10013_v35, %v3290_v34  ;;  %v3137_v60 = vadd.f32 %v3102_v12, %v3003_v24  ;;  %v3584_v0 = vsel %vm12589_vm5, %v3529_v45, 0.0  ;;  %v3485_v58 = vsel %vm12589_vm5, %v10119_v39, 0.0 }
 0x385   : > { %v3255_v5 = vpop.f32.mrf.mxu3  ;;  %v3577_v51 = vadd.f32 %v3576_v40, %v3575_v14  ;;  %v3480_v44 = vadd.f32 %v3479_v28, %v3478_v15  ;;  %v3531_v19 = vmul.f32 %v10134_v61, %v10134_v61  ;;  %v10150_v20 = vadd.f32 %v10060_v17, %v3291_v32 }
 0x386   : > { %v3292_v47 = vadd.f32 %v3255_v5, %v3136_v29  ;;  %v3586_v35 = vsel %vm12589_vm5, %v3530_v18, 0.0  ;;  %v3487_v26 = vsel %vm12589_vm5, %v10134_v61, 0.0  ;;  %v3532_v3 = vmul.f32 %v10142_v57, %v10142_v57  ;;  %v3104_v24 = vpop.f32.mrf.mxu2 }
 0x387   : > { %v3579_v7 = vadd.f32 %v3578_v11, %v3577_v51  ;;  %v3482_v53 = vadd.f32 %v3481_v43, %v3480_v44  ;;  %v3004_v5 = vadd.f32 %v2970_v27, %v12840_v21  ;;  %v3588_v28 = vsel %vm12589_vm5, %v3531_v19, 0.0 }
 0x388   : > { %v10157_v29 = vadd.f32 %v3396_v16, %v3292_v47  ;;  %v3489_v50 = vsel %vm12589_vm5, %v10142_v57, 0.0  ;;  %v3533_v34 = vmul.f32 %v10150_v20, %v10150_v20  ;;  %v3590_v16 = vsel %vm12589_vm5, %v3532_v3, 0.0 }
 0x389   : > { %v3581_v22 = vadd.f32 %v3580_v4, %v3579_v7  ;;  %v3484_v62 = vadd.f32 %v3483_v23, %v3482_v53  ;;  %v3399_v40 = vpop.f32.mrf.mxu0  ;;  %v3491_v15 = vsel %vm12589_vm5, %v10150_v20, 0.0  ;;  %v3138_v32 = vadd.f32 %v3104_v24, %v3004_v5 }
 0x38a   : > { %v3534_v4 = vmul.f32 %v10157_v29, %v10157_v29  ;;  %v3592_v7 = vsel %vm12589_vm5, %v3533_v34, 0.0  ;;  %v3493_v44 = vsel %vm12589_vm5, %v10157_v29, 0.0 }
 0x38b   : > { %v3583_v63 = vadd.f32 %v3582_v52, %v3581_v22  ;;  %v3486_v17 = vadd.f32 %v3485_v58, %v3484_v62 }
 0x38d   : > { %v3258_v38 = vpop.f32.mrf.mxu3  ;;  %v3585_v11 = vadd.f32 %v3584_v0, %v3583_v63  ;;  %v3488_v51 = vadd.f32 %v3487_v26, %v3486_v17 }
 0x38e   : > { %v3293_v14 = vadd.f32 %v3258_v38, %v3137_v60  ;;  %v3594_v60 = vsel %vm12589_vm5, %v3534_v4, 0.0 }
 0x38f   : > { %v3587_v12 = vadd.f32 %v3586_v35, %v3585_v11  ;;  %v3490_v45 = vadd.f32 %v3489_v50, %v3488_v51 }
 0x390   : > { %v10165_v33 = vadd.f32 %v3399_v40, %v3293_v14 }
 0x391   : > { %v3589_v43 = vadd.f32 %v3588_v28, %v3587_v12  ;;  %v3492_v23 = vadd.f32 %v3491_v15, %v3490_v45  ;;  %v3401_v58 = vpop.f32.mrf.mxu0 }
 0x392   : > { %v3535_v18 = vmul.f32 %v10165_v33, %v10165_v33  ;;  %v3495_v22 = vsel %vm12589_vm5, %v10165_v33, 0.0 }
 0x393   : > { %v3591_v52 = vadd.f32 %v3590_v16, %v3589_v43  ;;  %v3494_v0 = vadd.f32 %v3493_v44, %v3492_v23 }
 0x394   : > { %v3596_v19 = vsel %vm12589_vm5, %v3535_v18, 0.0 }
 0x395   : > { %v3260_v47 = vpop.f32.mrf.mxu3  ;;  %v3593_v27 = vadd.f32 %v3592_v7, %v3591_v52  ;;  %v3496_v35 = vadd.f32 %v3495_v22, %v3494_v0 }
 0x396   : > { %v3294_v53 = vadd.f32 %v3260_v47, %v3138_v32 }
 0x397   : > { %v3595_v62 = vadd.f32 %v3594_v60, %v3593_v27 }
 0x398   : > { %v10181_v63 = vadd.f32 %v3401_v58, %v3294_v53 }
 0x399   : > { %v3597_v26 = vadd.f32 %v3596_v19, %v3595_v62 }
 0x39a   : > { %v3497_v40 = vsel %vm12589_vm5, %v10181_v63, 0.0  ;;  %v3536_v38 = vmul.f32 %v10181_v63, %v10181_v63 }
 0x39b   : > { %v3498_v3 = vadd.f32 %v3497_v40, %v3496_v35 }
 0x39c   : > { %v3598_v14 = vsel %vm12589_vm5, %v3536_v38, 0.0 }
 0x39d   : > { %v3499_v21 = vrot.slane %v3498_v3, 4  ;;  %v3599_v5 = vadd.f32 %v3598_v14, %v3597_v26 }
 0x39f   : > { %v3500_v11 = vadd.f32 %v3499_v21, %v3498_v3  ;;  %v3600_v17 = vrot.slane %v3599_v5, 4 }
 0x3a1   : > { %v3501_v28 = vrot.slane %v3500_v11, 2  ;;  %v3601_v50 = vadd.f32 %v3600_v17, %v3599_v5  ;;  %v3625_v5 = vld [vmem:[%s350_s16] sm:$0x1] }
 0x3a3   : > { %v3502_v34 = vadd.f32 %v3501_v28, %v3500_v11  ;;  %v3602_v24 = vrot.slane %v3601_v50, 2 }
 0x3a5   : > { %v3503_v12 = vrot.slane %v3502_v34, 1  ;;  %v3603_v51 = vadd.f32 %v3602_v24, %v3601_v50  ;;  %v7811_v24 = vld [vmem:[%s12534_s6 + $0x6] sm:$0x3] }
 0x3a7   : > { %v3504_v16 = vadd.f32 %v3503_v12, %v3502_v34  ;;  %v3604_v15 = vrot.slane %v3603_v51, 1  ;;  %v3641_v34 = vld [vmem:[%s347_s19] sm:$0x1] }
 0x3a9   : > { %v3606_v4 = vmul.f32 0.00390625, %v3504_v16  ;;  %v3605_v45 = vadd.f32 %v3604_v15, %v3603_v51  ;;  %v5820_v16 = vsel %vm12588_vm0, %v7811_v24, 0 }
 0x3aa   : > { %5829 = vmatpush.bf16.msrb.mxu0 %v5820_v16 }
 0x3ab   : > { %v3607_v43 = vmul.f32 256.0, %v3606_v4 }
 0x3ad   : > { %v3608_v32 = vmul.f32 %v3607_v43, %v3606_v4 }
 0x3af   : > { %v3609_v7 = vsub.f32 %v3605_v45, %v3608_v32 }
 0x3b1   : > { %v3610_v44 = vmul.f32 0.003921569, %v3609_v7  ;;  %v12841_v7 = vld [vmem:[#allocation35_spill] sm:$0xff] }
 0x3b3   : > { %v3611_v18 = vmax.f32 %v3610_v44, 0.0 }
 0x3b5   : > { %8070 = vrsqrt.f32 %v3611_v18  ;;  %vm3619_vm1 = vcmp.eq.f32.partialorder %v3611_v18, inf  ;;  %v3622_v0 = vand.u32 2147483648, %v3611_v18  ;;  %vm3621_vm7 = vcmp.eq.f32.partialorder %v3611_v18, 0.0 }
 0x3bb   : > { %v8071_v52 = vpop.eup %8070 }
 0x3bc   : > { %v3613_v23 = vmul.f32 %v8071_v52, %v3611_v18 }
 0x3be   : > { %v3614_v47 = vmul.f32 %v8071_v52, %v3613_v23 }
 0x3c0   : > { %v3615_v60 = vmul.f32 0.5, %v3614_v47 }
 0x3c2   : > { %v3616_v22 = vsub.f32 1.5, %v3615_v60 }
 0x3c4   : > { %v3617_v53 = vmul.f32 %v8071_v52, %v3616_v22 }
 0x3c6   : > { %v3618_v27 = vmul.f32 %v3617_v53, %v3611_v18 }
 0x3c8   : > { %v3620_v58 = vsel %vm3619_vm1, %v3611_v18, %v3618_v27  ;;  %v12842_v18 = vld [vmem:[#allocation27_spill] sm:$0xff] }
 0x3c9   : > { %v3623_v19 = vsel %vm3621_vm7, %v3622_v0, %v3620_v58 }
 0x3ca   : > { %v3624_v62 = vadd.f32 1e-06, %v3623_v19 }
 0x3cc   : > { %8072 = vrcp.f32 %v3624_v62  ;;  %v3637_v26 = vand.u32 2147483648, %v3624_v62  ;;  %v3635_v14 = vand.u32 2147483647, %v3624_v62  ;;  %vm3631_vm13 = vweird.f32 %v3624_v62 }
 0x3ce   : > { %v3638_v11 = vor.u32 1.1754944e-38, %v3637_v26  ;;  %vm3636_vm11 = vcmp.eq.f32.partialorder %v3635_v14, 8.507059e+37 }
 0x3d2   : > { %v8073_v35 = vpop.eup %8072 }
 0x3d3   : > { %v3627_v40 = vmul.f32 %v8073_v35, %v3624_v62  ;;  %vm3632_vm12 = vweird.f32 %v8073_v35 }
 0x3d4   : > { %vm3633_vm10 = vmor %vm3631_vm13, %vm3632_vm12 }
 0x3d5   : > { %v3628_v38 = vsub.f32 1.0, %v3627_v40 }
 0x3d7   : > { %v3629_v3 = vmul.f32 %v8073_v35, %v3628_v38 }
 0x3d9   : > { %v3630_v21 = vadd.f32 %v8073_v35, %v3629_v3 }
 0x3db   : > { %v3634_v17 = vsel %vm3633_vm10, %v8073_v35, %v3630_v21 }
 0x3dc   : > { %v3639_v28 = vsel %vm3636_vm11, %v3638_v11, %v3634_v17 }
 0x3dd   : > { %v3640_v50 = vmul.f32 %v3639_v28, %v3625_v5 }
 0x3df   : > { %v3642_v12 = vmul.f32 %v3640_v50, %v3606_v4  ;;  %v10199_v51 = vperm.slane %v3640_v50, 0 }
 0x3e1   : > { %v3643_v15 = vsub.f32 %v3641_v34, %v3642_v12  ;;  %v3677_v43 = vmul.f32 %v10199_v51, %v10165_v33  ;;  %v3678_v45 = vmul.f32 %v10199_v51, %v10181_v63  ;;  %v3649_v44 = vmul.f32 %v10199_v51, %v12841_v7 }
 0x3e2   : > { %v3650_v4 = vmul.f32 %v10199_v51, %v9757_v30  ;;  %v3651_v52 = vmul.f32 %v10199_v51, %v12842_v18  ;;  %v3652_v23 = vmul.f32 %v10199_v51, %v9767_v8  ;;  %v3653_v33 = vmul.f32 %v10199_v51, %v9774_v59 }
 0x3e3   : > { %v10206_v32 = vperm.slane %v3643_v15, 0  ;;  %v3654_v63 = vmul.f32 %v10199_v51, %v9781_v37  ;;  %v3655_v47 = vmul.f32 %v10199_v51, %v9790_v55  ;;  %v3656_v30 = vmul.f32 %v10199_v51, %v9945_v46 }
 0x3e4   : > { %v3657_v53 = vmul.f32 %v10199_v51, %v9801_v6  ;;  %v3658_v8 = vmul.f32 %v10199_v51, %v9975_v10  ;;  %v3659_v59 = vmul.f32 %v10199_v51, %v9820_v1  ;;  %v3660_v37 = vmul.f32 %v10199_v51, %v9997_v31 }
 0x3e5   : > { %v3712_v60 = vadd.f32 %v10206_v32, %v3677_v43  ;;  %v3713_v22 = vadd.f32 %v10206_v32, %v3678_v45  ;;  %v3661_v55 = vmul.f32 %v10199_v51, %v9833_v25  ;;  %v3662_v46 = vmul.f32 %v10199_v51, %v10021_v2  ;;  %v4257_v43 = vld [vmem:[#allocation2 + $0xb0] sm:$0x1] }
 0x3e6   : > { %v3663_v6 = vmul.f32 %v10199_v51, %v12823_v13  ;;  %v3664_v10 = vmul.f32 %v10199_v51, %v10036_v48  ;;  %v3665_v1 = vmul.f32 %v10199_v51, %v12829_v54  ;;  %v3666_v25 = vmul.f32 %v10199_v51, %v10066_v42 }
 0x3e7   : > { %vm3744_vm2 = vcmp.ge.f32.partialorder %v3712_v60, 0.0  ;;  %vm3745_vm1 = vcmp.ge.f32.partialorder %v3713_v22, 0.0  ;;  %v3776_v27 = vmul.f32 0.01, %v3712_v60  ;;  %v3777_v0 = vmul.f32 0.01, %v3713_v22 }
 0x3e8   : > { %v3667_v19 = vmul.f32 %v10199_v51, %v12834_v56  ;;  %v3668_v13 = vmul.f32 %v10199_v51, %v10084_v49  ;;  %v3669_v48 = vmul.f32 %v10199_v51, %v10090_v41  ;;  %v3670_v54 = vmul.f32 %v10199_v51, %v10106_v36 }
 0x3e9   : > { %v3808_v31 = vsel %vm3744_vm2, %v3712_v60, %v3776_v27  ;;  %v3809_v58 = vsel %vm3745_vm1, %v3713_v22, %v3777_v0  ;;  %v3671_v35 = vmul.f32 %v10199_v51, %v10115_v9  ;;  %v3672_v42 = vmul.f32 %v10199_v51, %v10119_v39 }
 0x3ea   : > { %v10248_v62 = vpack.c.bf16 %v3808_v31, %v3808_v31  ;;  %v3841_v2 = vpack.c.bf16 %v3809_v58, %v3809_v58  ;;  %v3673_v56 = vmul.f32 %v10199_v51, %v10134_v61  ;;  %v3674_v49 = vmul.f32 %v10199_v51, %v10142_v57  ;;  %v4271_v57 = vld [vmem:[#allocation2 + $0xc8] sm:$0x1] }
 0x3eb   : > { %v3675_v41 = vmul.f32 %v10199_v51, %v10150_v20  ;;  %v3676_v36 = vmul.f32 %v10199_v51, %v10157_v29  ;;  %v3684_v9 = vadd.f32 %v10206_v32, %v3649_v44  ;;  %v3685_v39 = vadd.f32 %v10206_v32, %v3650_v4 }
 0x3ec   : > { %v4098_v40 = vshrl.u32 %v10248_v62, 16  ;;  %v4106_v38 = vshrl.u32 %v3841_v2, 16  ;;  %v4109_v26 = vshll.u32 %v3841_v2, 16  ;;  %v10274_v14 = vadd.f32 %v10206_v32, %v3651_v52 }
 0x3ed   : > { %v10277_v21 = vadd.f32 %v10206_v32, %v3652_v23  ;;  %v10280_v20 = vadd.f32 %v10206_v32, %v3653_v33  ;;  %v10283_v5 = vadd.f32 %v10206_v32, %v3654_v63  ;;  %v10286_v29 = vadd.f32 %v10206_v32, %v3655_v47 }
 0x3ee   : > { %v10271_v3 = vrot.slane %v4098_v40, 7  ;;  %v4108_v61 = vrot.slane %v4106_v38, 7  ;;  %v10289_v11 = vadd.f32 %v10206_v32, %v3656_v30  ;;  %v10293_v34 = vadd.f32 %v10206_v32, %v3657_v53 }
 0x3ef   : > { %v10296_v24 = vadd.f32 %v10206_v32, %v3658_v8  ;;  %v10299_v12 = vadd.f32 %v10206_v32, %v3659_v59  ;;  %v10302_v16 = vadd.f32 %v10206_v32, %v3660_v37  ;;  %v10305_v15 = vadd.f32 %v10206_v32, %v3661_v55 }
 0x3f0   : > { %v4104_v17 = vrot.slane %v10271_v3, 4  ;;  %v4111_v28 = vor.u32 %v4109_v26, %v4108_v61  ;;  %v4113_v50 = vrot.slane %v4108_v61, 4  ;;  %v10312_v4 = vadd.f32 %v10206_v32, %v3662_v46  ;;  %v4274_v26 = vld [vmem:[#allocation2] sm:$0xf] }
 0x3f1   : > { %v10315_v18 = vadd.f32 %v10206_v32, %v3663_v6  ;;  %v10319_v52 = vadd.f32 %v10206_v32, %v3664_v10  ;;  %v10322_v23 = vadd.f32 %v10206_v32, %v3665_v1  ;;  %v10325_v33 = vadd.f32 %v10206_v32, %v3666_v25 }
 0x3f2   : > { %v4112_v45 = vsel %vm8232_vm14, %v4104_v17, %v4111_v28  ;;  %v4272_v44 = vsel %vm8267_vm4, %v4113_v50, %v4271_v57  ;;  %v10328_v63 = vadd.f32 %v10206_v32, %v3667_v19  ;;  %v10331_v47 = vadd.f32 %v10206_v32, %v3668_v13 }
 0x3f3   : > { %4270 = vst.msk [vmem:[#allocation2 + $0xc4] sm:$0xf] %vm12587_vm9, %v4112_v45  ;;  %v10334_v60 = vadd.f32 %v10206_v32, %v3669_v48  ;;  %v10337_v22 = vadd.f32 %v10206_v32, %v3670_v54  ;;  %v10340_v30 = vadd.f32 %v10206_v32, %v3671_v35  ;;  %v10343_v53 = vadd.f32 %v10206_v32, %v3672_v42  ;;  %v12846_v54 = vld [vmem:[#allocation19_spill] sm:$0xff]  ;;  %v12847_v42 = vld [vmem:[#allocation21_spill] sm:$0xff] }
 0x3f4   : > { %4273 = vst [vmem:[#allocation2 + $0xc8] sm:$0x1] %v4272_v44  ;;  %v10346_v8 = vadd.f32 %v10206_v32, %v3673_v56  ;;  %v10349_v59 = vadd.f32 %v10206_v32, %v3674_v49  ;;  %v10352_v37 = vadd.f32 %v10206_v32, %v3675_v41  ;;  %v10355_v55 = vadd.f32 %v10206_v32, %v3676_v36 }
 0x3f5   : > { %vm3716_vm7 = vcmp.ge.f32.partialorder %v3684_v9, 0.0  ;;  %vm3717_vm12 = vcmp.ge.f32.partialorder %v3685_v39, 0.0  ;;  %v3748_v27 = vmul.f32 0.01, %v3684_v9  ;;  %v3749_v0 = vmul.f32 0.01, %v3685_v39 }
 0x3f6   : > { %v3647_v35 = vmul.f32 %v10199_v51, %v12846_v54  ;;  %v3648_v56 = vmul.f32 %v10199_v51, %v12847_v42  ;;  %v4101_v44 = vshll.u32 %v10248_v62, 16  ;;  %v10399_v42 = vmul.f32 0.01, %v10289_v11 }
 0x3f7   : > { %v3780_v46 = vsel %vm3716_vm7, %v3684_v9, %v3748_v27  ;;  %v3781_v6 = vsel %vm3717_vm12, %v3685_v39, %v3749_v0  ;;  %v4169_v0 = vld [vmem:[#allocation2 + $0x18] sm:$0xf]  ;;  %vm3727_vm12 = vcmp.ge.f32.partialorder %v10302_v16, 0.0  ;;  %vm3734_vm11 = vcmp.ge.f32.partialorder %v10328_v63, 0.0 }
 0x3f8   : > { %v3812_v1 = vpack.c.bf16 %v3780_v46, %v3780_v46  ;;  %v3813_v31 = vpack.c.bf16 %v3781_v6, %v3781_v6  ;;  %v3682_v36 = vadd.f32 %v10206_v32, %v3647_v35  ;;  %v3683_v9 = vadd.f32 %v10206_v32, %v3648_v56  ;;  %v4267_v6 = vld [vmem:[#allocation2 + $0xc0] sm:$0xf] }
 0x3f9   : > { %v4103_v46 = vor.u32 %v4101_v44, %v10271_v3  ;;  %v10387_v3 = vmul.f32 0.01, %v10283_v5  ;;  %v10402_v56 = vmul.f32 0.01, %v10293_v34  ;;  %vm3738_vm1 = vcmp.ge.f32.partialorder %v10340_v30, 0.0 }
 0x3fa   : > { %v4448_v10 = vld [vmem:[#allocation2 + $0xc4] sm:$0x8]  ;;  %v3860_v19 = vshrl.u32 %v3812_v1, 16  ;;  %v3868_v2 = vshrl.u32 %v3813_v31, 16  ;;  %v3863_v38 = vshll.u32 %v3812_v1, 16  ;;  %v3871_v41 = vshll.u32 %v3813_v31, 16 }
 0x3fb   : > { %v7679_v58 = vrot.slane %v4448_v10, 11  ;;  %v4570_v25 = vld [vmem:[#allocation2 + $0xc8] sm:$0x1]  ;;  %v3746_v50 = vmul.f32 0.01, %v3682_v36  ;;  %vm3714_vm13 = vcmp.ge.f32.partialorder %v3682_v36, 0.0 }
 0x3fc   : > { %v3862_v40 = vrot.slane %v3860_v19, 7  ;;  %v10363_v49 = vrot.slane %v3868_v2, 7  ;;  %v3747_v45 = vmul.f32 0.01, %v3683_v9  ;;  %vm3715_vm10 = vcmp.ge.f32.partialorder %v3683_v9, 0.0 }
 0x3fd   : > { %v4571_v48 = vsel %vm8319_vm8, %v7679_v58, %v4570_v25  ;;  %v3778_v32 = vsel %vm3714_vm13, %v3682_v36, %v3746_v50  ;;  %v10376_v1 = vmul.f32 0.01, %v10274_v14  ;;  %v10379_v25 = vmul.f32 0.01, %v10277_v21 }
 0x3fe   : > { %4572 = vst [vmem:[#allocation2 + $0xc8] sm:$0x1] %v4571_v48  ;;  %v3865_v39 = vor.u32 %v3863_v38, %v3862_v40  ;;  %v3866_v61 = vrot.slane %v3862_v40, 4  ;;  %v3873_v57 = vor.u32 %v3871_v41, %v10363_v49  ;;  %v3779_v27 = vsel %vm3715_vm10, %v3683_v9, %v3747_v45 }
 0x3ff   : > { %v3810_v31 = vpack.c.bf16 %v3778_v32, %v3778_v32  ;;  %v10382_v19 = vmul.f32 0.01, %v10280_v20  ;;  %v3811_v2 = vpack.c.bf16 %v3779_v27, %v3779_v27  ;;  %v10390_v48 = vmul.f32 0.01, %v10286_v29 }
 0x400   : > { %v3874_v17 = vsel %vm8232_vm14, %v3866_v61, %v3873_v57  ;;  %v4275_v51 = vsel %vm8249_vm3, %v3865_v39, %v4274_v26  ;;  %v4170_v54 = vsel %vm8249_vm3, %v3865_v39, %v4169_v0  ;;  %v4268_v40 = vsel %vm8249_vm3, %v4103_v46, %v4267_v6  ;;  %v4162_v26 = vld [vmem:[#allocation2 + $0xc] sm:$0xf]  ;;  %v4173_v39 = vld [vmem:[#allocation2 + $0x20] sm:$0x1] }
 0x401   : > { %4276 = vst [vmem:[#allocation2] sm:$0xf] %v4275_v51  ;;  %v10410_v38 = vmul.f32 0.01, %v10296_v24  ;;  %v3843_v41 = vshrl.u32 %v3810_v31, 16  ;;  %v3851_v9 = vshrl.u32 %v3811_v2, 16 }
 0x402   : > { %4277 = vst.msk [vmem:[#allocation2 + $0x4] sm:$0xf] %vm12587_vm9, %v3874_v17  ;;  %v10416_v36 = vmul.f32 0.01, %v10299_v12  ;;  %v10423_v61 = vmul.f32 0.01, %v10302_v16 }
 0x403   : > { %4172 = vst.msk [vmem:[#allocation2 + $0x1c] sm:$0xf] %vm12587_vm9, %v3874_v17  ;;  %v3845_v57 = vrot.slane %v3843_v41, 7  ;;  %v3846_v17 = vshll.u32 %v3810_v31, 16  ;;  %v4278_v51 = vld [vmem:[#allocation2 + $0x8] sm:$0x1] }
 0x404   : > { %4171 = vst [vmem:[#allocation2 + $0x18] sm:$0xf] %v4170_v54  ;;  %v3760_v50 = vmul.f32 0.01, %v10305_v15  ;;  %v3875_v45 = vrot.slane %v10363_v49, 4  ;;  %v10430_v44 = vrot.slane %v3851_v9, 7 }
 0x405   : > { %4269 = vst [vmem:[#allocation2 + $0xc0] sm:$0xf] %v4268_v40  ;;  %v3854_v32 = vshll.u32 %v3811_v2, 16  ;;  %v3761_v27 = vmul.f32 0.01, %v10312_v4  ;;  %v3848_v46 = vor.u32 %v3846_v17, %v3845_v57  ;;  %v3849_v6 = vrot.slane %v3845_v57, 4 }
 0x406   : > { %v3762_v0 = vmul.f32 0.01, %v10315_v18  ;;  %vm3737_vm10 = vcmp.ge.f32.partialorder %v10337_v22, 0.0  ;;  %v3763_v49 = vmul.f32 0.01, %v10319_v52  ;;  %vm3740_vm2 = vcmp.ge.f32.partialorder %v10346_v8, 0.0 }
 0x407   : > { %v3856_v31 = vor.u32 %v3854_v32, %v10430_v44  ;;  %v3765_v2 = vmul.f32 0.01, %v10325_v33  ;;  %v3767_v54 = vmul.f32 0.01, %v10331_v47  ;;  %v3768_v41 = vmul.f32 0.01, %v10334_v60 }
 0x408   : > { %v4288_v10 = vld [vmem:[#allocation2] sm:$0x2]  ;;  %v4378_v62 = vld [vmem:[#allocation2] sm:$0x1]  ;;  %v4174_v57 = vsel %vm8267_vm4, %v3875_v45, %v4173_v39  ;;  %vm3743_vm7 = vcmp.ge.f32.partialorder %v10355_v55, 0.0  ;;  %vm12849_vm13 = vcmp.ge.f32.partialorder %v10274_v14, 0.0 }
 0x409   : > { %v7645_v58 = vrot.slane %v4288_v10, 9  ;;  %v3764_v10 = vmul.f32 0.01, %v10322_v23  ;;  %v3857_v9 = vsel %vm8232_vm14, %v3849_v6, %v3856_v31  ;;  %v3769_v17 = vmul.f32 0.01, %v10337_v22 }
 0x40a   : > { %4165 = vst.msk [vmem:[#allocation2 + $0x10] sm:$0xf] %vm12587_vm9, %v3857_v9  ;;  %v3771_v6 = vmul.f32 0.01, %v10343_v53  ;;  %v3782_v39 = vsel %vm12849_vm13, %v10274_v14, %v10376_v1  ;;  %vm12850_vm9 = vcmp.ge.f32.partialorder %v10277_v21, 0.0  ;;  %vm12852_vm13 = vcmp.ge.f32.partialorder %v10283_v5, 0.0 }
 0x40b   : > { %v4379_v35 = vsel %vm8267_vm4, %v7645_v58, %v4378_v62  ;;  %v7794_v58 = vld [vmem:[%s12534_s6 + $0x4] sm:$0x3]  ;;  %v3766_v62 = vmul.f32 0.01, %v10328_v63  ;;  %v3783_v31 = vsel %vm12850_vm9, %v10277_v21, %v10379_v25  ;;  %4175 = vst [vmem:[#allocation2 + $0x20] sm:$0x1] %v4174_v57  ;;  %v3785_v14 = vsel %vm12852_vm13, %v10283_v5, %v10387_v3 }
 0x40c   : > { %4380 = vst [vmem:[#allocation2] sm:$0x1] %v4379_v35  ;;  %v4163_v35 = vsel %vm8249_vm3, %v3848_v46, %v4162_v26  ;;  %v4279_v26 = vsel %vm8267_vm4, %v3875_v45, %v4278_v51  ;;  %v5686_v32 = vsel %vm12588_vm0, %v7794_v58, 0  ;;  %v3770_v46 = vmul.f32 0.01, %v10340_v30 }
 0x40d   : > { %4164 = vst [vmem:[#allocation2 + $0xc] sm:$0xf] %v4163_v35  ;;  %5695 = vmatpush.bf16.msrb.mxu3 %v5686_v32  ;;  %v3772_v51 = vmul.f32 0.01, %v10346_v8  ;;  %v3773_v45 = vmul.f32 0.01, %v10349_v59  ;;  %v3791_v3 = vsel %vm3727_vm12, %v10302_v16, %v10423_v61  ;;  %v3801_v61 = vsel %vm3737_vm10, %v10337_v22, %v3769_v17 }
 0x40e   : > { %vm12851_vm0 = vcmp.ge.f32.partialorder %v10280_v20, 0.0  ;;  %4280 = vst [vmem:[#allocation2 + $0x8] sm:$0x1] %v4279_v26  ;;  %v3774_v1 = vmul.f32 0.01, %v10352_v37  ;;  %vm12853_vm9 = vcmp.ge.f32.partialorder %v10286_v29, 0.0  ;;  %v10588_v57 = vpack.c.bf16 %v3791_v3, %v3791_v3 }
 0x40f   : > { %v3784_v58 = vsel %vm12851_vm0, %v10280_v20, %v10382_v19  ;;  %v4432_v21 = vld [vmem:[#allocation2 + $0x4] sm:$0x8]  ;;  %v3786_v25 = vsel %vm12853_vm9, %v10286_v29, %v10390_v48  ;;  %v3858_v20 = vrot.slane %v10430_v44, 4  ;;  %v4166_v19 = vld [vmem:[#allocation2 + $0x14] sm:$0x1]  ;;  %vm12855_vm0 = vcmp.ge.f32.partialorder %v10293_v34, 0.0 }
 0x410   : > { %v3788_v5 = vsel %vm12855_vm0, %v10293_v34, %v10402_v56  ;;  %vm12856_vm13 = vcmp.ge.f32.partialorder %v10296_v24, 0.0  ;;  %vm12857_vm9 = vcmp.ge.f32.partialorder %v10299_v12, 0.0  ;;  %vm12859_vm0 = vcmp.ge.f32.partialorder %v10312_v4, 0.0 }
 0x411   : > { %v3789_v29 = vsel %vm12856_vm13, %v10296_v24, %v10410_v38  ;;  %v3793_v34 = vsel %vm12859_vm0, %v10312_v4, %v3761_v27  ;;  %vm12860_vm13 = vcmp.ge.f32.partialorder %v10315_v18, 0.0  ;;  %vm12862_vm12 = vcmp.ge.f32.partialorder %v10322_v23, 0.0 }
 0x412   : > { %v3794_v24 = vsel %vm12860_vm13, %v10315_v18, %v3762_v0  ;;  %v3796_v16 = vsel %vm12862_vm12, %v10322_v23, %v3764_v10  ;;  %v7663_v56 = vrot.slane %v4432_v21, 11  ;;  %v3798_v4 = vsel %vm3734_vm11, %v10328_v63, %v3766_v62 }
 0x413   : > { %v8025_v40 = vld [vmem:[#allocation2] sm:$0xff]  ;;  %vm12864_vm0 = vcmp.ge.f32.partialorder %v10331_v47, 0.0  ;;  %vm12865_vm13 = vcmp.ge.f32.partialorder %v10334_v60, 0.0  ;;  %v3802_v63 = vsel %vm3738_vm1, %v10340_v30, %v3770_v46  ;;  %vm12866_vm11 = vcmp.ge.f32.partialorder %v10343_v53, 0.0 }
 0x414   : > { %7762 = vmatmul.msk.bf16.vlgmr.msra.gmra.mxu2 %vm12589_vm5, %v8025_v40  ;;  %vm12854_vm5 = vcmp.ge.f32.partialorder %v10289_v11, 0.0  ;;  %v3775_v40 = vmul.f32 0.01, %v10355_v55  ;;  %v3799_v18 = vsel %vm12864_vm0, %v10331_v47, %v3767_v54  ;;  %v4381_v23 = vld [vmem:[#allocation2 + $0xc] sm:$0x1]  ;;  %v3803_v47 = vsel %vm12866_vm11, %v10343_v53, %v3771_v6 }
 0x415   : > { %v3787_v35 = vsel %vm12854_vm5, %v10289_v11, %v10399_v42  ;;  %v3790_v11 = vsel %vm12857_vm9, %v10299_v12, %v10416_v36  ;;  %vm12858_vm5 = vcmp.ge.f32.partialorder %v10305_v15, 0.0  ;;  %v4289_v42 = vld [vmem:[#allocation2 + $0xc] sm:$0x2]  ;;  %vm12861_vm9 = vcmp.ge.f32.partialorder %v10319_v52, 0.0  ;;  %v10539_v36 = vld [vmem:[#allocation2 + $0x4] sm:$0xf] }
 0x416   : > { %v3792_v48 = vsel %vm12858_vm5, %v10305_v15, %v3760_v50  ;;  %v3795_v12 = vsel %vm12861_vm9, %v10319_v52, %v3763_v49  ;;  %vm12863_vm5 = vcmp.ge.f32.partialorder %v10325_v33, 0.0  ;;  %v7646_v38 = vrot.slane %v4289_v42, 9  ;;  %v4630_v50 = vld [vmem:[#allocation2] sm:$0xe]  ;;  %v4522_v27 = vld [vmem:[#allocation2 + $0x8] sm:$0x1] }
 0x417   : > { %v3797_v15 = vsel %vm12863_vm5, %v10325_v33, %v3765_v2  ;;  %v4167_v52 = vsel %vm8267_vm4, %v3858_v20, %v4166_v19  ;;  %v3800_v33 = vsel %vm12865_vm13, %v10334_v60, %v3768_v41  ;;  %v3804_v60 = vsel %vm3740_vm2, %v10346_v8, %v3772_v51 }
 0x418   : > { %4168 = vst [vmem:[#allocation2 + $0x14] sm:$0x1] %v4167_v52  ;;  %v4382_v44 = vsel %vm8267_vm4, %v7646_v38, %v4381_v23  ;;  %vm12867_vm10 = vcmp.ge.f32.partialorder %v10349_v59, 0.0  ;;  %vm12868_vm1 = vcmp.ge.f32.partialorder %v10352_v37, 0.0  ;;  %v3807_v53 = vsel %vm3743_vm7, %v10355_v55, %v3775_v40 }
 0x419   : > { %v3805_v22 = vsel %vm12867_vm10, %v10349_v59, %v3773_v45  ;;  %v3806_v30 = vsel %vm12868_vm1, %v10352_v37, %v3774_v1  ;;  %4383 = vst [vmem:[#allocation2 + $0xc] sm:$0x1] %v4382_v44  ;;  %v10567_v0 = vpack.c.bf16 %v3782_v39, %v3782_v39  ;;  %v10569_v49 = vpack.c.bf16 %v3783_v31, %v3783_v31 }
 0x41a   : > { %v4523_v8 = vsel %vm8319_vm8, %v7663_v56, %v4522_v27  ;;  %v10573_v10 = vpack.c.bf16 %v3784_v58, %v3784_v58  ;;  %v10575_v59 = vpack.c.bf16 %v3785_v14, %v3785_v14  ;;  %v7778_v2 = vrot.slane %v4630_v50, 9 }
 0x41b   : > { %4524 = vst [vmem:[#allocation2 + $0x8] sm:$0x1] %v4523_v8  ;;  %v5477_v37 = vrot.slane %v10539_v36, 5  ;;  %v10578_v62 = vpack.c.bf16 %v3786_v25, %v3786_v25  ;;  %v10580_v54 = vpack.c.bf16 %v3787_v35, %v3787_v35  ;;  %v10582_v55 = vpack.c.bf16 %v3788_v5, %v3788_v5 }
 0x41c   : > { %v10584_v41 = vpack.c.bf16 %v3789_v29, %v3789_v29  ;;  %v10586_v9 = vpack.c.bf16 %v3790_v11, %v3790_v11  ;;  %v10590_v17 = vpack.c.bf16 %v3792_v48, %v3792_v48  ;;  %v10592_v26 = vpack.c.bf16 %v3793_v34, %v3793_v34 }
 0x41d   : > { %v10594_v32 = vpack.c.bf16 %v3794_v24, %v3794_v24  ;;  %v10596_v46 = vpack.c.bf16 %v3795_v12, %v3795_v12  ;;  %v10598_v6 = vpack.c.bf16 %v3796_v16, %v3796_v16  ;;  %v10600_v39 = vpack.c.bf16 %v3797_v15, %v3797_v15 }
 0x41e   : > { %v10602_v31 = vpack.c.bf16 %v3798_v4, %v3798_v4  ;;  %v10604_v51 = vpack.c.bf16 %v3799_v18, %v3799_v18  ;;  %v10606_v45 = vpack.c.bf16 %v3800_v33, %v3800_v33  ;;  %v5478_v14 = vsel %vm8338_vm15, %v7778_v2, %v5477_v37 }
 0x41f   : > { %v10610_v1 = vpack.c.bf16 %v3801_v61, %v3801_v61  ;;  %v10612_v21 = vpack.c.bf16 %v3802_v63, %v3802_v63  ;;  %v10614_v25 = vpack.c.bf16 %v3803_v47, %v3803_v47  ;;  %v10616_v35 = vpack.c.bf16 %v3804_v60, %v3804_v60 }
 0x420   : > { %v8026_v20 = vld [vmem:[#allocation2 + $0xc] sm:$0xff]  ;;  %v10618_v19 = vpack.c.bf16 %v3805_v22, %v3805_v22  ;;  %v10620_v40 = vpack.c.bf16 %v3806_v30, %v3806_v30  ;;  %v10622_v5 = vpack.c.bf16 %v3807_v53, %v3807_v53  ;;  %v3877_v29 = vshrl.u32 %v10567_v0, 16 }
 0x421   : > { %12870 = vst [vmem:[#allocation25_spill] sm:$0xff] %v10616_v35  ;;  %v5479_v3 = vrot.slane %v5477_v37, 4  ;;  %v5589_v48 = vunpack.c.l.b16 %v5478_v14  ;;  %v3885_v34 = vshrl.u32 %v10569_v49, 16  ;;  %v3888_v24 = vshll.u32 %v10569_v49, 16 }
 0x422   : > { %v10625_v11 = vld [vmem:[#allocation2 + $0x8] sm:$0x1]  ;;  %vm12871_vm2 = vcmask 31744   ;;  %v3894_v12 = vshrl.u32 %v10573_v10, 16  ;;  %v3902_v16 = vshrl.u32 %v10575_v59, 16  ;;  %v3905_v15 = vshll.u32 %v10575_v59, 16 }
 0x423   : > { %7816 = vmatmul.msk.bf16.vlgmr.msrb.gmra.mxu0 %vm12871_vm2, %v8026_v20  ;;  %v5480_v42 = vrot.slane %v10625_v11, 5  ;;  %vm12872_vm7 = vmmov %vm12871_vm2  ;;  %v3911_v56 = vshrl.u32 %v10578_v62, 16  ;;  %v3919_v38 = vshrl.u32 %v10580_v54, 16  ;;  %v3922_v4 = vshll.u32 %v10580_v54, 16 }
 0x424   : > { %7763 = vmatmul.msk.bf16.gmra.mxu2 %vm12872_vm7, %v8026_v20  ;;  %v3928_v18 = vshrl.u32 %v10582_v55, 16  ;;  %v3936_v23 = vshrl.u32 %v10584_v41, 16  ;;  %v3939_v33 = vshll.u32 %v10584_v41, 16  ;;  %v3945_v61 = vshrl.u32 %v10586_v9, 16  ;;  %vm12873_vm9 = vmmov %vm12871_vm2 }
 0x425   : > { %v5481_v52 = vsel %vm8338_vm15, %v5479_v3, %v5480_v42  ;;  %v3953_v47 = vshrl.u32 %v10588_v57, 16  ;;  %v3956_v50 = vshll.u32 %v10588_v57, 16  ;;  %v3962_v44 = vshrl.u32 %v10590_v17, 16 }
 0x426   : > { %v5590_v63 = vunpack.c.l.b16 %v5481_v52  ;;  %v3970_v60 = vshrl.u32 %v10592_v26, 16  ;;  %v3973_v22 = vshll.u32 %v10592_v26, 16  ;;  %v3979_v30 = vshrl.u32 %v10594_v32, 16 }
 0x427   : > { %v3987_v27 = vshrl.u32 %v10596_v46, 16  ;;  %v10651_v49 = vrot.slane %v3877_v29, 7  ;;  %v10653_v8 = vrot.slane %v3885_v34, 7  ;;  %v10655_v59 = vrot.slane %v3894_v12, 7 }
 0x428   : > { %v5621_v53 = vpack.c.b16 %v5590_v63, %v5589_v48  ;;  %v10657_v2 = vrot.slane %v3902_v16, 7  ;;  %v10659_v37 = vrot.slane %v3911_v56, 7  ;;  %v10661_v54 = vrot.slane %v3919_v38, 7 }
 0x429   : > { %v10663_v41 = vrot.slane %v3928_v18, 7  ;;  %v3990_v57 = vshll.u32 %v10596_v46, 16  ;;  %v3996_v26 = vshrl.u32 %v10598_v6, 16  ;;  %v3883_v14 = vrot.slane %v10651_v49, 4 }
 0x42a   : > { %7795 = vmatmul.msk.bf16.vlgmr.msrb.gmra.mxu3 %vm12873_vm9, %v5621_v53  ;;  %v3890_v20 = vor.u32 %v3888_v24, %v10653_v8  ;;  %v4004_v29 = vshrl.u32 %v10600_v39, 16  ;;  %v4007_v3 = vshll.u32 %v10600_v39, 16  ;;  %v3900_v48 = vrot.slane %v10655_v59, 4 }
 0x42b   : > { %v3907_v34 = vor.u32 %v3905_v15, %v10657_v2  ;;  %v4013_v42 = vshrl.u32 %v10602_v31, 16  ;;  %v3917_v46 = vrot.slane %v10659_v37, 4  ;;  %v3924_v16 = vor.u32 %v3922_v4, %v10661_v54 }
 0x42c   : > { %v3891_v12 = vsel %vm8232_vm14, %v3883_v14, %v3890_v20  ;;  %v4021_v56 = vshrl.u32 %v10604_v51, 16  ;;  %v4024_v24 = vshll.u32 %v10604_v51, 16  ;;  %v3934_v38 = vrot.slane %v10663_v41, 4 }
 0x42d   : > { %v3908_v39 = vsel %vm8232_vm14, %v3900_v48, %v3907_v34  ;;  %vm12874_vm12 = vcmask 27648   ;;  %v3925_v15 = vsel %vm8232_vm14, %v3917_v46, %v3924_v16  ;;  %v10687_v18 = vrot.slane %v3936_v23, 7 }
 0x42e   : > { %4179 = vst.msk [vmem:[#allocation2 + $0x28] sm:$0xf] %vm12874_vm12, %v3891_v12  ;;  %v10689_v52 = vrot.slane %v3945_v61, 7  ;;  %v10691_v63 = vrot.slane %v3953_v47, 7  ;;  %vm12875_vm5 = vmmov %vm12874_vm12  ;;  %v10694_v4 = vrot.slane %v3962_v44, 7  ;;  %v10696_v51 = vrot.slane %v3970_v60, 7 }
 0x42f   : > { %4186 = vst.msk [vmem:[#allocation2 + $0x34] sm:$0xf] %vm12875_vm5, %v3908_v39  ;;  %v10698_v53 = vrot.slane %v3979_v30, 7  ;;  %v10700_v14 = vrot.slane %v3987_v27, 7  ;;  %vm12876_vm0 = vmmov %vm12875_vm5  ;;  %v4030_v20 = vshrl.u32 %v10606_v45, 16  ;;  %v4038_v23 = vshrl.u32 %v10610_v1, 16 }
 0x430   : > { %4193 = vst.msk [vmem:[#allocation2 + $0x40] sm:$0xf] %vm12876_vm0, %v3925_v15  ;;  %v3941_v61 = vor.u32 %v3939_v33, %v10687_v18  ;;  %v3951_v47 = vrot.slane %v10689_v52, 4  ;;  %v4041_v48 = vshll.u32 %v10610_v1, 16  ;;  %v4047_v44 = vshrl.u32 %v10612_v21, 16  ;;  %vm12877_vm13 = vmmov %vm12876_vm0 }
 0x431   : > { %v3958_v60 = vor.u32 %v3956_v50, %v10691_v63  ;;  %v3968_v30 = vrot.slane %v10694_v4, 4  ;;  %v4055_v27 = vshrl.u32 %v10614_v25, 16  ;;  %v4058_v34 = vshll.u32 %v10614_v25, 16  ;;  %vm12879_vm11 = vmmov %vm12876_vm0 }
 0x432   : > { %v3942_v12 = vsel %vm8232_vm14, %v3934_v38, %v3941_v61  ;;  %v3975_v46 = vor.u32 %v3973_v22, %v10696_v51  ;;  %v4064_v33 = vshrl.u32 %v10616_v35, 16  ;;  %v3985_v16 = vrot.slane %v10698_v53, 4  ;;  %vm12881_vm10 = vmmov %vm12876_vm0  ;;  %v4229_v35 = vld [vmem:[#allocation2 + $0x80] sm:$0x1] }
 0x433   : > { %v3959_v1 = vsel %vm8232_vm14, %v3951_v47, %v3958_v60  ;;  %v3992_v50 = vor.u32 %v3990_v57, %v10700_v14  ;;  %4200 = vst.msk [vmem:[#allocation2 + $0x4c] sm:$0xf] %vm12877_vm13, %v3942_v12  ;;  %v10724_v25 = vrot.slane %v3996_v26, 7  ;;  %v10726_v15 = vrot.slane %v4004_v29, 7  ;;  %vm12882_vm1 = vmmov %vm12876_vm0 }
 0x434   : > { %v3976_v39 = vsel %vm8232_vm14, %v3968_v30, %v3975_v46  ;;  %v10728_v38 = vrot.slane %v4013_v42, 7  ;;  %4207 = vst.msk [vmem:[#allocation2 + $0x58] sm:$0xf] %vm12879_vm11, %v3959_v1  ;;  %v10733_v61 = vrot.slane %v4021_v56, 7  ;;  %v10735_v47 = vrot.slane %v4030_v20, 7  ;;  %vm12884_vm2 = vmmov %vm12876_vm0 }
 0x435   : > { %v3993_v22 = vsel %vm8232_vm14, %v3985_v16, %v3992_v50  ;;  %v10737_v57 = vrot.slane %v4038_v23, 7  ;;  %4214 = vst.msk [vmem:[#allocation2 + $0x64] sm:$0xf] %vm12881_vm10, %v3976_v39  ;;  %v4072_v26 = vshrl.u32 %v10618_v19, 16  ;;  %v4081_v29 = vshrl.u32 %v10620_v40, 16  ;;  %vm12886_vm7 = vmmov %vm12876_vm0 }
 0x436   : > { %12878 = vst [vmem:[#allocation31_spill] sm:$0xff] %v10728_v38  ;;  %v4002_v42 = vrot.slane %v10724_v25, 4  ;;  %v4009_v60 = vor.u32 %v4007_v3, %v10726_v15  ;;  %v4075_v30 = vshll.u32 %v10618_v19, 16  ;;  %v4089_v56 = vshrl.u32 %v10622_v5, 16  ;;  %v4180_v3 = vld [vmem:[#allocation2 + $0x2c] sm:$0x1]  ;;  %vm12887_vm9 = vmmov %vm12876_vm0 }
 0x437   : > { %12880 = vst [vmem:[#allocation28_spill] sm:$0xff] %v10735_v47  ;;  %v4019_v20 = vrot.slane %v10728_v38, 4  ;;  %v4026_v23 = vor.u32 %v4024_v24, %v10733_v61  ;;  %v4092_v12 = vshll.u32 %v10622_v5, 16  ;;  %v4036_v1 = vrot.slane %v10735_v47, 4  ;;  %v4187_v5 = vld [vmem:[#allocation2 + $0x38] sm:$0x1]  ;;  %vm12888_vm12 = vmmov %vm12876_vm0 }
 0x438   : > { %4221 = vst.msk [vmem:[#allocation2 + $0x70] sm:$0xf] %vm12882_vm1, %v3993_v22  ;;  %v4010_v46 = vsel %vm8232_vm14, %v4002_v42, %v4009_v60  ;;  %v4043_v16 = vor.u32 %v4041_v48, %v10737_v57  ;;  %v3892_v50 = vrot.slane %v10653_v8, 4  ;;  %v10757_v39 = vrot.slane %v4047_v44, 7  ;;  %v4194_v8 = vld [vmem:[#allocation2 + $0x44] sm:$0x1]  ;;  %vm12890_vm5 = vmmov %vm12876_vm0 }
 0x439   : > { %v4027_v19 = vsel %vm8232_vm14, %v4019_v20, %v4026_v23  ;;  %v10759_v22 = vrot.slane %v4055_v27, 7  ;;  %4228 = vst.msk [vmem:[#allocation2 + $0x7c] sm:$0xf] %vm12884_vm2, %v4010_v46  ;;  %v10764_v42 = vrot.slane %v4064_v33, 7  ;;  %v10766_v60 = vrot.slane %v4072_v26, 7 }
 0x43a   : > { %12883 = vst [vmem:[#allocation38_spill] sm:$0xff] %v10757_v39  ;;  %v4044_v24 = vsel %vm8232_vm14, %v4036_v1, %v4043_v16  ;;  %v10768_v48 = vrot.slane %v4081_v29, 7  ;;  %v4201_v20 = vld [vmem:[#allocation2 + $0x50] sm:$0x1]  ;;  %v3909_v44 = vrot.slane %v10657_v2, 4  ;;  %v3926_v27 = vrot.slane %v10661_v54, 4 }
 0x43b   : > { %12885 = vst [vmem:[#allocation23_spill] sm:$0xff] %v10764_v42  ;;  %v4053_v23 = vrot.slane %v10757_v39, 4  ;;  %v4060_v46 = vor.u32 %v4058_v34, %v10759_v22  ;;  %v4208_v33 = vld [vmem:[#allocation2 + $0x5c] sm:$0x1]  ;;  %v4215_v1 = vld [vmem:[#allocation2 + $0x68] sm:$0x1] }
 0x43c   : > { %4235 = vst.msk [vmem:[#allocation2 + $0x88] sm:$0xf] %vm12886_vm7, %v4027_v19  ;;  %v3943_v26 = vrot.slane %v10687_v18, 4  ;;  %v3960_v29 = vrot.slane %v10691_v63, 4  ;;  %v4070_v16 = vrot.slane %v10764_v42, 4  ;;  %v4077_v19 = vor.u32 %v4075_v30, %v10766_v60 }
 0x43d   : > { %4242 = vst.msk [vmem:[#allocation2 + $0x94] sm:$0xf] %vm12887_vm9, %v4044_v24  ;;  %v4222_v47 = vld [vmem:[#allocation2 + $0x74] sm:$0x1]  ;;  %v10780_v2 = vld [vmem:[#allocation2 + $0x10] sm:$0x8]  ;;  %v4061_v34 = vsel %vm8232_vm14, %v4053_v23, %v4060_v46  ;;  %v4181_v30 = vsel %vm8267_vm4, %v3892_v50, %v4180_v3  ;;  %v4195_v3 = vsel %vm8267_vm4, %v3926_v27, %v4194_v8 }
 0x43e   : > { %v3977_v54 = vrot.slane %v10696_v51, 4  ;;  %v4087_v24 = vrot.slane %v10768_v48, 4  ;;  %v10786_v39 = vrot.slane %v4089_v56, 7  ;;  %v3994_v18 = vrot.slane %v10700_v14, 4  ;;  %4249 = vst.msk [vmem:[#allocation2 + $0xa0] sm:$0xf] %vm12888_vm12, %v4061_v34 }
 0x43f   : > { %v4078_v63 = vsel %vm8232_vm14, %v4070_v16, %v4077_v19  ;;  %v4236_v42 = vld [vmem:[#allocation2 + $0x8c] sm:$0x1]  ;;  %v10794_v51 = vld [vmem:[#allocation2 + $0x1c] sm:$0x8]  ;;  %v4011_v23 = vrot.slane %v10726_v15, 4  ;;  %v4188_v56 = vsel %vm8267_vm4, %v3909_v44, %v4187_v5  ;;  %v7664_v38 = vrot.slane %v10780_v2, 11 }
 0x440   : > { %v4094_v46 = vor.u32 %v4092_v12, %v10786_v39  ;;  %4182 = vst [vmem:[#allocation2 + $0x2c] sm:$0x1] %v4181_v30  ;;  %v4243_v14 = vld [vmem:[#allocation2 + $0x98] sm:$0x1]  ;;  %v4028_v16 = vrot.slane %v10733_v61, 4  ;;  %v4202_v50 = vsel %vm8267_vm4, %v3943_v26, %v4201_v20  ;;  %v4045_v15 = vrot.slane %v10737_v57, 4 }
 0x441   : > { %4189 = vst [vmem:[#allocation2 + $0x38] sm:$0x1] %v4188_v56  ;;  %v4250_v19 = vld [vmem:[#allocation2 + $0xa4] sm:$0x1]  ;;  %v4209_v5 = vsel %vm8267_vm4, %v3960_v29, %v4208_v33  ;;  %v4216_v61 = vsel %vm8267_vm4, %v3977_v54, %v4215_v1  ;;  %v7665_v44 = vrot.slane %v10794_v51, 11  ;;  %v3880_v8 = vshll.u32 %v10567_v0, 16 }
 0x442   : > { %v10809_v12 = vsel %vm8232_vm14, %v4087_v24, %v4094_v46  ;;  %4196 = vst [vmem:[#allocation2 + $0x44] sm:$0x1] %v4195_v3  ;;  %v4062_v20 = vrot.slane %v10759_v22, 4  ;;  %v4223_v57 = vsel %vm8267_vm4, %v3994_v18, %v4222_v47  ;;  %v3897_v27 = vshll.u32 %v10573_v10, 16  ;;  %v4281_v34 = vld [vmem:[#allocation2 + $0xcc] sm:$0xf]  ;;  %vm12889_vm14 = vmmov %vm12876_vm0 }
 0x443   : > { %4203 = vst [vmem:[#allocation2 + $0x50] sm:$0x1] %v4202_v50  ;;  %v3914_v26 = vshll.u32 %v10578_v62, 16  ;;  %v3931_v33 = vshll.u32 %v10582_v55, 16  ;;  %v4230_v1 = vsel %vm8267_vm4, %v4011_v23, %v4229_v35  ;;  %v3948_v29 = vshll.u32 %v10586_v9, 16 }
 0x444   : > { %4210 = vst [vmem:[#allocation2 + $0x5c] sm:$0x1] %v4209_v5  ;;  %v4084_v54 = vshll.u32 %v10620_v40, 16  ;;  %v4079_v22 = vrot.slane %v10766_v60, 4  ;;  %v4237_v47 = vsel %vm8267_vm4, %v4028_v16, %v4236_v42  ;;  %v4264_v24 = vld [vmem:[#allocation2 + $0xbc] sm:$0x1]  ;;  %v4244_v35 = vsel %vm8267_vm4, %v4045_v15, %v4243_v14 }
 0x445   : > { %4217 = vst [vmem:[#allocation2 + $0x68] sm:$0x1] %v4216_v61  ;;  %v3965_v18 = vshll.u32 %v10590_v17, 16  ;;  %v3982_v30 = vshll.u32 %v10594_v32, 16  ;;  %v3999_v46 = vshll.u32 %v10598_v6, 16  ;;  %v4096_v42 = vrot.slane %v10786_v39, 4 }
 0x446   : > { %4224 = vst [vmem:[#allocation2 + $0x74] sm:$0x1] %v4223_v57  ;;  %v4285_v23 = vld [vmem:[#allocation2 + $0xd4] sm:$0x1]  ;;  %v10837_v60 = vor.u32 %v4084_v54, %v10768_v48  ;;  %v4251_v56 = vsel %vm8267_vm4, %v4062_v20, %v4250_v19  ;;  %v4435_v16 = vld [vmem:[#allocation2 + $0x28] sm:$0x8]  ;;  %v4258_v50 = vsel %vm8267_vm4, %v4079_v22, %v4257_v43 }
 0x447   : > { %4231 = vst [vmem:[#allocation2 + $0x80] sm:$0x1] %v4230_v1  ;;  %v4436_v3 = vld [vmem:[#allocation2 + $0x34] sm:$0x8]  ;;  %v4437_v14 = vld [vmem:[#allocation2 + $0x40] sm:$0x8]  ;;  %v4265_v39 = vsel %vm8267_vm4, %v4096_v42, %v4264_v24  ;;  %v4286_v57 = vsel %vm8267_vm4, %v4096_v42, %v4285_v23  ;;  %v10950_v55 = vor.u32 %v3965_v18, %v10694_v4 }
 0x448   : > { %4238 = vst [vmem:[#allocation2 + $0x8c] sm:$0x1] %v4237_v47  ;;  %v4438_v15 = vld [vmem:[#allocation2 + $0x4c] sm:$0x8]  ;;  %v10844_v5 = vld [vmem:[#allocation2 + $0x58] sm:$0x8]  ;;  %v4282_v19 = vsel %vm8249_vm3, %v10837_v60, %v4281_v34 }
 0x449   : > { %4245 = vst [vmem:[#allocation2 + $0x98] sm:$0x1] %v4244_v35  ;;  %v4576_v48 = vld [vmem:[#allocation2] sm:$0xf]  ;;  %v10852_v61 = vld [vmem:[#allocation2 + $0x64] sm:$0x8] }
 0x44a   : > { %4252 = vst [vmem:[#allocation2 + $0xa4] sm:$0x1] %v4251_v56  ;;  %v10854_v20 = vld [vmem:[#allocation2 + $0x70] sm:$0x8]  ;;  %v10858_v43 = vld [vmem:[#allocation2 + $0x7c] sm:$0x8] }
 0x44b   : > { %4256 = vst.msk [vmem:[#allocation2 + $0xac] sm:$0xf] %vm12889_vm14, %v4078_v63  ;;  %v7666_v1 = vrot.slane %v4435_v16, 11  ;;  %v7667_v54 = vrot.slane %v4436_v3, 11  ;;  %v7668_v63 = vrot.slane %v4437_v14, 11  ;;  %v7669_v24 = vrot.slane %v4438_v15, 11 }
 0x44c   : > { %4259 = vst [vmem:[#allocation2 + $0xb0] sm:$0x1] %v4258_v50  ;;  %v4525_v22 = vld [vmem:[#allocation2 + $0x14] sm:$0x1]  ;;  %v4528_v47 = vld [vmem:[#allocation2 + $0x20] sm:$0x1] }
 0x44d   : > { %4263 = vst.msk [vmem:[#allocation2 + $0xb8] sm:$0xf] %vm12890_vm5, %v10809_v12  ;;  %v7670_v34 = vrot.slane %v10844_v5, 11  ;;  %v4650_v35 = vshrl.u32 %v4576_v48, 16  ;;  %v4653_v56 = vshll.u32 %v4576_v48, 16  ;;  %v7671_v23 = vrot.slane %v10852_v61, 11 }
 0x44e   : > { %4266 = vst [vmem:[#allocation2 + $0xbc] sm:$0x1] %v4265_v39  ;;  %v10863_v50 = vld [vmem:[#allocation2 + $0x88] sm:$0x8]  ;;  %v7672_v42 = vrot.slane %v10854_v20, 11  ;;  %v4659_v16 = vshll.u32 %v10539_v36, 16  ;;  %v4526_v14 = vsel %vm8319_vm8, %v7664_v38, %v4525_v22  ;;  %v4529_v61 = vsel %vm8319_vm8, %v7665_v44, %v4528_v47 }
 0x44f   : > { %v4663_v3 = vshrl.u32 %v10539_v36, 16  ;;  %4283 = vst [vmem:[#allocation2 + $0xcc] sm:$0xf] %v4282_v19  ;;  %v4531_v15 = vld [vmem:[#allocation2 + $0x2c] sm:$0x1]  ;;  %v4652_v5 = vrot.slane %v4650_v35, 4  ;;  %v10941_v20 = vor.u32 %v3948_v29, %v10689_v52 }
 0x450   : > { %v4655_v48 = vrot.slane %v4653_v56, 5  ;;  %4284 = vst.msk [vmem:[#allocation2 + $0xd0] sm:$0xf] %vm12876_vm0, %v10809_v12  ;;  %v10875_v39 = vld [vmem:[#allocation2 + $0x94] sm:$0x8]  ;;  %v4661_v19 = vrot.slane %v4659_v16, 5  ;;  %v4532_v38 = vsel %vm8319_vm8, %v7666_v1, %v4531_v15 }
 0x451   : > { %v4534_v36 = vld [vmem:[#allocation2 + $0x38] sm:$0x1]  ;;  %v4665_v40 = vrot.slane %v4663_v3, 4  ;;  %4287 = vst [vmem:[#allocation2 + $0xd4] sm:$0x1] %v4286_v57  ;;  %v7673_v2 = vrot.slane %v10858_v43, 11 }
 0x452   : > { %v4537_v22 = vld [vmem:[#allocation2 + $0x44] sm:$0x1]  ;;  %v4656_v35 = vor.u32 %v4655_v48, %v4652_v5  ;;  %v4669_v12 = vshll.u32 %v10625_v11, 16  ;;  %v10885_v56 = vld [vmem:[#allocation2 + $0xa0] sm:$0x8]  ;;  %v4535_v51 = vsel %vm8319_vm8, %v7667_v54, %v4534_v36  ;;  %v7674_v43 = vrot.slane %v10863_v50, 11 }
 0x453   : > { %4527 = vst [vmem:[#allocation2 + $0x14] sm:$0x1] %v4526_v14  ;;  %v4540_v44 = vld [vmem:[#allocation2 + $0x50] sm:$0x1]  ;;  %v4666_v47 = vor.u32 %v4665_v40, %v4661_v19  ;;  %v7832_v57 = vld [vmem:[%s12534_s6 + $0x8] sm:$0x3]  ;;  %v4538_v1 = vsel %vm8319_vm8, %v7668_v63, %v4537_v22 }
 0x454   : > { %4530 = vst [vmem:[#allocation2 + $0x20] sm:$0x1] %v4529_v61  ;;  %v4543_v16 = vld [vmem:[#allocation2 + $0x5c] sm:$0x1]  ;;  %v4657_v11 = vrot.slane %v4656_v35, 4  ;;  %v4541_v3 = vsel %vm8319_vm8, %v7669_v24, %v4540_v44  ;;  %v4671_v15 = vrot.slane %v4669_v12, 5 }
 0x455   : > { %4533 = vst [vmem:[#allocation2 + $0x2c] sm:$0x1] %v4532_v38  ;;  %v4546_v14 = vld [vmem:[#allocation2 + $0x68] sm:$0x1]  ;;  %v4667_v54 = vrot.slane %v4666_v47, 4  ;;  %v7675_v5 = vrot.slane %v10875_v39, 11  ;;  %v4544_v50 = vsel %vm8319_vm8, %v7670_v34, %v4543_v16  ;;  %v10912_v34 = vor.u32 %v3880_v8, %v10651_v49 }
 0x456   : > { %v4446_v40 = vld [vmem:[#allocation2 + $0xac] sm:$0x8]  ;;  %4536 = vst [vmem:[#allocation2 + $0x38] sm:$0x1] %v4535_v51  ;;  %v4549_v48 = vld [vmem:[#allocation2 + $0x74] sm:$0x1]  ;;  %v4662_v63 = vsel %vm8403_vm6, %v4657_v11, %v4661_v19  ;;  %v4547_v12 = vsel %vm8319_vm8, %v7671_v23, %v4546_v14  ;;  %v10918_v23 = vor.u32 %v3897_v27, %v10655_v59  ;;  %v10923_v16 = vor.u32 %v3914_v26, %v10659_v37 }
 0x457   : > { %v4552_v61 = vld [vmem:[#allocation2 + $0x80] sm:$0x1]  ;;  %vm12892_vm13 = vcmask 1041408   ;;  %v10903_v22 = vld [vmem:[#allocation2 + $0x24] sm:$0xf]  ;;  %v4672_v39 = vsel %vm8403_vm6, %v4667_v54, %v4671_v15  ;;  %v5035_v51 = vunpack.c.l.b16 %v4662_v63  ;;  %v7676_v47 = vrot.slane %v10885_v56, 11 }
 0x458   : > { %v5976_v38 = vsel %vm12892_vm13, %v7832_v57, 0  ;;  %v4305_v24 = vld [vmem:[#allocation2 + $0xcc] sm:$0x2]  ;;  %v4447_v35 = vld [vmem:[#allocation2 + $0xb8] sm:$0x8]  ;;  %v4550_v49 = vsel %vm8319_vm8, %v7672_v42, %v4549_v48  ;;  %v4553_v8 = vsel %vm8319_vm8, %v7673_v2, %v4552_v61  ;;  %v7677_v59 = vrot.slane %v4446_v40, 11 }
 0x459   : > { %4539 = vst [vmem:[#allocation2 + $0x44] sm:$0x1] %v4538_v1  ;;  %5985 = vmatpush.bf16.msrb.mxu1 %v5976_v38  ;;  %v7662_v19 = vrot.slane %v4305_v24, 9  ;;  %v4449_v44 = vld [vmem:[#allocation2 + $0xd0] sm:$0x8]  ;;  %v5036_v1 = vunpack.c.l.b16 %v4672_v39  ;;  %v7678_v27 = vrot.slane %v4447_v35, 11  ;;  %v10936_v26 = vor.u32 %v3931_v33, %v10663_v41 }
 0x45a   : > { %4542 = vst [vmem:[#allocation2 + $0x50] sm:$0x1] %v4541_v3  ;;  %v4555_v57 = vld [vmem:[#allocation2 + $0x8c] sm:$0x1]  ;;  %v4558_v56 = vld [vmem:[#allocation2 + $0x98] sm:$0x1]  ;;  %v4177_v9 = vsel %vm8249_vm3, %v10912_v34, %v10903_v22 }
 0x45b   : > { %v4429_v0 = vld [vmem:[#allocation2 + $0xcc] sm:$0x1]  ;;  %4545 = vst [vmem:[#allocation2 + $0x5c] sm:$0x1] %v4544_v50  ;;  %v4561_v62 = vld [vmem:[#allocation2 + $0xa4] sm:$0x1]  ;;  %v5067_v37 = vpack.c.b16 %v5036_v1, %v5035_v51  ;;  %v4556_v2 = vsel %vm8319_vm8, %v7674_v43, %v4555_v57  ;;  %v4559_v41 = vsel %vm8319_vm8, %v7675_v5, %v4558_v56 }
 0x45c   : > { %v4430_v10 = vsel %vm8267_vm4, %v7662_v19, %v4429_v0  ;;  %4548 = vst [vmem:[#allocation2 + $0x68] sm:$0x1] %v4547_v12  ;;  %v7680_v42 = vrot.slane %v4449_v44, 11  ;;  %v4564_v11 = vld [vmem:[#allocation2 + $0xb0] sm:$0x1]  ;;  %vm12893_vm11 = vcmask 31744   ;;  %v4562_v29 = vsel %vm8319_vm8, %v7676_v47, %v4561_v62 }
 0x45d   : > { %4431 = vst [vmem:[#allocation2 + $0xcc] sm:$0x1] %v4430_v10  ;;  %v4567_v3 = vld [vmem:[#allocation2 + $0xbc] sm:$0x1]  ;;  %v4579_v14 = vld [vmem:[#allocation2 + $0x10] sm:$0xf]  ;;  %7682 = vmatmul.msk.bf16.vlgmr.msra.gmra.mxu1 %vm12893_vm11, %v5067_v37  ;;  %v4565_v40 = vsel %vm8319_vm8, %v7677_v59, %v4564_v11  ;;  %v3984_v62 = vor.u32 %v3982_v30, %v10698_v53 }
 0x45e   : > { %v10945_v54 = vld [vmem:[#allocation2 + $0x30] sm:$0xf]  ;;  %4551 = vst [vmem:[#allocation2 + $0x74] sm:$0x1] %v4550_v49  ;;  %v4613_v52 = vld [vmem:[#allocation2 + $0x14] sm:$0x1]  ;;  %v4568_v5 = vsel %vm8319_vm8, %v7678_v27, %v4567_v3 }
 0x45f   : > { %v4631_v33 = vld [vmem:[#allocation2 + $0xc] sm:$0xe]  ;;  %4554 = vst [vmem:[#allocation2 + $0x80] sm:$0x1] %v4553_v8  ;;  %v4573_v17 = vld [vmem:[#allocation2 + $0xd4] sm:$0x1]  ;;  %v4184_v47 = vsel %vm8249_vm3, %v10918_v23, %v10945_v54 }
 0x460   : > { %v7779_v4 = vrot.slane %v4631_v33, 9  ;;  %v5484_v18 = vrot.slane %v4579_v14, 5  ;;  %v5487_v43 = vrot.slane %v4613_v52, 5  ;;  %v4190_v15 = vld [vmem:[#allocation2 + $0x3c] sm:$0xf]  ;;  %v4683_v48 = vshll.u32 %v4579_v14, 16 }
 0x461   : > { %4557 = vst [vmem:[#allocation2 + $0x8c] sm:$0x1] %v4556_v2  ;;  %v4578_v50 = vld [vmem:[#allocation2 + $0xc] sm:$0xf]  ;;  %v4687_v61 = vshrl.u32 %v4579_v14, 16  ;;  %v4574_v39 = vsel %vm8319_vm8, %v7680_v42, %v4573_v17  ;;  %v4693_v19 = vshll.u32 %v4613_v52, 16  ;;  %v4191_v23 = vsel %vm8249_vm3, %v10923_v16, %v4190_v15  ;;  %vm12898_vm8 = vmmov %vm12893_vm11 }
 0x462   : > { %v4197_v63 = vld [vmem:[#allocation2 + $0x48] sm:$0xf]  ;;  %4560 = vst [vmem:[#allocation2 + $0x98] sm:$0x1] %v4559_v41  ;;  %v5485_v38 = vsel %vm8338_vm15, %v7779_v4, %v5484_v18  ;;  %v5486_v22 = vrot.slane %v5484_v18, 4  ;;  %v4674_v24 = vshrl.u32 %v4578_v50, 16  ;;  %v4001_v2 = vor.u32 %v3999_v46, %v10724_v25  ;;  %vm12901_vm10 = vmmov %vm12898_vm8 }
 0x463   : > { %v4677_v35 = vshll.u32 %v4578_v50, 16  ;;  %v4204_v12 = vld [vmem:[#allocation2 + $0x54] sm:$0xf]  ;;  %4563 = vst [vmem:[#allocation2 + $0xa4] sm:$0x1] %v4562_v29  ;;  %v4685_v51 = vrot.slane %v4683_v48, 5  ;;  %v5591_v8 = vunpack.c.l.b16 %v5485_v38  ;;  %v4198_v11 = vsel %vm8249_vm3, %v10936_v26, %v4197_v63 }
 0x464   : > { %v4689_v34 = vrot.slane %v4687_v61, 4  ;;  %v4211_v44 = vld [vmem:[#allocation2 + $0x60] sm:$0xf]  ;;  %4566 = vst [vmem:[#allocation2 + $0xb0] sm:$0x1] %v4565_v40  ;;  %v5488_v57 = vsel %vm8338_vm15, %v5486_v22, %v5487_v43  ;;  %v4676_v1 = vrot.slane %v4674_v24, 4  ;;  %v4205_v6 = vsel %vm8249_vm3, %v10941_v20, %v4204_v12 }
 0x465   : > { %v4679_v0 = vrot.slane %v4677_v35, 5  ;;  %v4218_v49 = vld [vmem:[#allocation2 + $0x6c] sm:$0xf]  ;;  %4569 = vst [vmem:[#allocation2 + $0xbc] sm:$0x1] %v4568_v5  ;;  %v5592_v13 = vunpack.c.l.b16 %v5488_v57  ;;  %v4695_v10 = vrot.slane %v4693_v19, 5  ;;  %v4212_v52 = vsel %vm8249_vm3, %v10950_v55, %v4211_v44 }
 0x466   : > { %v4690_v56 = vor.u32 %v4689_v34, %v4685_v51  ;;  %v4225_v59 = vld [vmem:[#allocation2 + $0x78] sm:$0xf]  ;;  %v4033_v27 = vshll.u32 %v10606_v45, 16  ;;  %4575 = vst [vmem:[#allocation2 + $0xd4] sm:$0x1] %v4574_v39  ;;  %v4050_v16 = vshll.u32 %v10612_v21, 16  ;;  %v4219_v29 = vsel %vm8249_vm3, %v3984_v62, %v4218_v49 }
 0x467   : > { %v4680_v37 = vor.u32 %v4679_v0, %v4676_v1  ;;  %v4232_v42 = vld [vmem:[#allocation2 + $0x84] sm:$0xf]  ;;  %4178 = vst [vmem:[#allocation2 + $0x24] sm:$0xf] %v4177_v9  ;;  %v10988_v45 = vpack.c.b16 %v5592_v13, %v5591_v8  ;;  %v10990_v53 = vld [vmem:[#allocation2 + $0x1c] sm:$0xf]  ;;  %v4226_v40 = vsel %vm8249_vm3, %v4001_v2, %v4225_v59 }
 0x468   : > { %v4691_v32 = vrot.slane %v4690_v56, 4  ;;  %v4239_v30 = vld [vmem:[#allocation2 + $0x90] sm:$0xf]  ;;  %v12894_v3 = vld [vmem:[#allocation31_spill] sm:$0xff]  ;;  %v12895_v14 = vshll.u32 %v10602_v31, 16  ;;  %v12896_v46 = vld [vmem:[#allocation25_spill] sm:$0xff] }
 0x469   : > { %4185 = vst [vmem:[#allocation2 + $0x30] sm:$0xf] %v4184_v47  ;;  %v4681_v25 = vrot.slane %v4680_v37, 4  ;;  %v4067_v26 = vshll.u32 %v12896_v46, 16  ;;  %v12897_v9 = vld [vmem:[#allocation28_spill] sm:$0xff]  ;;  %7796 = vmatmul.msk.bf16.gmra.mxu3 %vm12898_vm8, %v10988_v45  ;;  %v12899_v20 = vld [vmem:[#allocation38_spill] sm:$0xff] }
 0x46a   : > { %v4018_v54 = vor.u32 %v12895_v14, %v12894_v3  ;;  %v4035_v41 = vor.u32 %v4033_v27, %v12897_v9  ;;  %4192 = vst [vmem:[#allocation2 + $0x3c] sm:$0xf] %v4191_v23  ;;  %v4696_v31 = vsel %vm8403_vm6, %v4691_v32, %v4695_v10  ;;  %v11008_v21 = vld [vmem:[#allocation2 + $0x20] sm:$0x1]  ;;  %v4052_v33 = vor.u32 %v4050_v16, %v12899_v20  ;;  %v4290_v17 = vld [vmem:[#allocation2 + $0x18] sm:$0x2] }
 0x46b   : > { %4199 = vst [vmem:[#allocation2 + $0x48] sm:$0xf] %v4198_v11  ;;  %v4686_v4 = vsel %vm8403_vm6, %v4681_v25, %v4685_v51  ;;  %v5491_v55 = vrot.slane %v10990_v53, 5  ;;  %v4246_v18 = vld [vmem:[#allocation2 + $0x9c] sm:$0xf]  ;;  %v5038_v50 = vunpack.c.l.b16 %v4696_v31  ;;  %v5494_v38 = vrot.slane %v11008_v21, 5 }
 0x46c   : > { %v12900_v43 = vld [vmem:[#allocation23_spill] sm:$0xff]  ;;  %4206 = vst [vmem:[#allocation2 + $0x54] sm:$0xf] %v4205_v6  ;;  %v5037_v5 = vunpack.c.l.b16 %v4686_v4  ;;  %v4253_v61 = vld [vmem:[#allocation2 + $0xa8] sm:$0xf]  ;;  %v4233_v63 = vsel %vm8249_vm3, %v4018_v54, %v4232_v42  ;;  %v4240_v24 = vsel %vm8249_vm3, %v4035_v41, %v4239_v30  ;;  %v7647_v35 = vrot.slane %v4290_v17, 9 }
 0x46d   : > { %v4069_v15 = vor.u32 %v4067_v26, %v12900_v43  ;;  %v4632_v48 = vld [vmem:[#allocation2 + $0x18] sm:$0xe]  ;;  %4213 = vst [vmem:[#allocation2 + $0x60] sm:$0xf] %v4212_v52  ;;  %v4260_v22 = vld [vmem:[#allocation2 + $0xb4] sm:$0xf]  ;;  %v4247_v39 = vsel %vm8249_vm3, %v4052_v33, %v4246_v18 }
 0x46e   : > { %4220 = vst [vmem:[#allocation2 + $0x6c] sm:$0xf] %v4219_v29  ;;  %v11024_v12 = vpack.c.b16 %v5038_v50, %v5037_v5  ;;  %v4291_v51 = vld [vmem:[#allocation2 + $0x24] sm:$0x2]  ;;  %v7780_v34 = vrot.slane %v4632_v48, 9  ;;  %v5493_v19 = vrot.slane %v5491_v55, 4  ;;  %v4261_v1 = vsel %vm8249_vm3, %v10837_v60, %v4260_v22 }
 0x46f   : > { %4227 = vst [vmem:[#allocation2 + $0x78] sm:$0xf] %v4226_v40  ;;  %v4254_v44 = vsel %vm8249_vm3, %v4069_v15, %v4253_v61  ;;  %v7648_v47 = vrot.slane %v4291_v51, 9  ;;  %v4384_v0 = vld [vmem:[#allocation2 + $0x18] sm:$0x1]  ;;  %v4707_v10 = vshll.u32 %v10990_v53, 16  ;;  %vm12902_vm3 = vmmov %vm12898_vm8 }
 0x470   : > { %4234 = vst [vmem:[#allocation2 + $0x84] sm:$0xf] %v4233_v63  ;;  %7683 = vmatmul.msk.bf16.gmra.mxu1 %vm12901_vm10, %v11024_v12  ;;  %v4292_v57 = vld [vmem:[#allocation2 + $0x30] sm:$0x2]  ;;  %v5495_v49 = vsel %vm8338_vm15, %v5493_v19, %v5494_v38  ;;  %v4385_v13 = vsel %vm8267_vm4, %v7647_v35, %v4384_v0  ;;  %v4387_v56 = vld [vmem:[#allocation2 + $0x24] sm:$0x1]  ;;  %v5492_v28 = vsel %vm8338_vm15, %v7780_v34, %v5491_v55  ;;  %vm12903_vm1 = vmmov %vm12902_vm3 }
 0x471   : > { %4241 = vst [vmem:[#allocation2 + $0x90] sm:$0xf] %v4240_v24  ;;  %v7649_v8 = vrot.slane %v4292_v57, 9  ;;  %v4388_v59 = vsel %vm8267_vm4, %v7648_v47, %v4387_v56  ;;  %v4390_v60 = vld [vmem:[#allocation2 + $0x30] sm:$0x1]  ;;  %v5594_v62 = vunpack.c.l.b16 %v5495_v49  ;;  %v4711_v23 = vshrl.u32 %v10990_v53, 16  ;;  %vm12904_vm2 = vmmov %vm12903_vm1 }
 0x472   : > { %4248 = vst [vmem:[#allocation2 + $0x9c] sm:$0xf] %v4247_v39  ;;  %v4293_v27 = vld [vmem:[#allocation2 + $0x3c] sm:$0x2]  ;;  %v4393_v2 = vld [vmem:[#allocation2 + $0x3c] sm:$0x1]  ;;  %v5593_v11 = vunpack.c.l.b16 %v5492_v28  ;;  %vm12906_vm7 = vmmov %vm12903_vm1 }
 0x473   : > { %4255 = vst [vmem:[#allocation2 + $0xa8] sm:$0xf] %v4254_v44  ;;  %v4391_v37 = vsel %vm8267_vm4, %v7649_v8, %v4390_v60  ;;  %v7650_v42 = vrot.slane %v4293_v27, 9  ;;  %v4294_v30 = vld [vmem:[#allocation2 + $0x48] sm:$0x2]  ;;  %v4709_v3 = vrot.slane %v4707_v10, 5  ;;  %vm12907_vm9 = vmmov %vm12903_vm1 }
 0x474   : > { %4262 = vst [vmem:[#allocation2 + $0xb4] sm:$0xf] %v4261_v1  ;;  %v11049_v16 = vpack.c.b16 %v5594_v62, %v5593_v11  ;;  %v4713_v14 = vrot.slane %v4711_v23, 4  ;;  %v4583_v54 = vld [vmem:[#allocation2 + $0x28] sm:$0xf]  ;;  %v4717_v53 = vshll.u32 %v11008_v21, 16  ;;  %vm12908_vm12 = vmmov %vm12903_vm1 }
 0x475   : > { %4386 = vst [vmem:[#allocation2 + $0x18] sm:$0x1] %v4385_v13  ;;  %v4394_v32 = vsel %vm8267_vm4, %v7650_v42, %v4393_v2  ;;  %v11054_v6 = vld [vmem:[#allocation2 + $0x2c] sm:$0x1]  ;;  %v7651_v25 = vrot.slane %v4294_v30, 9  ;;  %v5498_v26 = vrot.slane %v4583_v54, 5  ;;  %vm12909_vm14 = vmmov %vm12903_vm1 }
 0x476   : > { %4389 = vst [vmem:[#allocation2 + $0x24] sm:$0x1] %v4388_v59  ;;  %v4633_v46 = vld [vmem:[#allocation2 + $0x24] sm:$0xe]  ;;  %v4714_v52 = vor.u32 %v4713_v14, %v4709_v3  ;;  %v4396_v31 = vld [vmem:[#allocation2 + $0x48] sm:$0x1]  ;;  %vm12911_vm5 = vmmov %vm12903_vm1 }
 0x477   : > { %4392 = vst [vmem:[#allocation2 + $0x30] sm:$0x1] %v4391_v37  ;;  %v5501_v29 = vrot.slane %v11054_v6, 5  ;;  %v4397_v17 = vsel %vm8267_vm4, %v7651_v25, %v4396_v31  ;;  %v4719_v21 = vrot.slane %v4717_v53, 5  ;;  %v7781_v43 = vrot.slane %v4633_v46, 9  ;;  %vm12912_vm0 = vmmov %vm12903_vm1 }
 0x478   : > { %4395 = vst [vmem:[#allocation2 + $0x3c] sm:$0x1] %v4394_v32  ;;  %v5500_v15 = vrot.slane %v5498_v26, 4  ;;  %v4715_v40 = vrot.slane %v4714_v52, 4  ;;  %v4295_v63 = vld [vmem:[#allocation2 + $0x54] sm:$0x2]  ;;  %vm12913_vm13 = vmmov %vm12912_vm0 }
 0x479   : > { %7797 = vmatmul.msk.bf16.gmra.mxu3 %vm12902_vm3, %v11049_v16  ;;  %4398 = vst [vmem:[#allocation2 + $0x48] sm:$0x1] %v4397_v17  ;;  %v5499_v24 = vsel %vm8338_vm15, %v7781_v43, %v5498_v26  ;;  %v4731_v39 = vshll.u32 %v4583_v54, 16  ;;  %v4735_v51 = vshrl.u32 %v4583_v54, 16  ;;  %v7652_v34 = vrot.slane %v4295_v63, 9  ;;  %vm12914_vm11 = vmmov %vm12912_vm0 }
 0x47a   : > { %v5502_v50 = vsel %vm8338_vm15, %v5500_v15, %v5501_v29  ;;  %v4720_v22 = vsel %vm8403_vm6, %v4715_v40, %v4719_v21  ;;  %v4399_v57 = vld [vmem:[#allocation2 + $0x54] sm:$0x1]  ;;  %v5595_v49 = vunpack.c.l.b16 %v5499_v24  ;;  %v4616_v27 = vld [vmem:[#allocation2 + $0x38] sm:$0x1]  ;;  %v4296_v62 = vld [vmem:[#allocation2 + $0x60] sm:$0x2] }
 0x47b   : > { %v5596_v35 = vunpack.c.l.b16 %v5502_v50  ;;  %v5040_v0 = vunpack.c.l.b16 %v4720_v22  ;;  %v4400_v8 = vsel %vm8267_vm4, %v7652_v34, %v4399_v57  ;;  %v4733_v10 = vrot.slane %v4731_v39, 5  ;;  %v4585_v28 = vld [vmem:[#allocation2 + $0x34] sm:$0xf]  ;;  %v4634_v11 = vld [vmem:[#allocation2 + $0x30] sm:$0xe]  ;;  %vm12917_vm10 = vmmov %vm12912_vm0 }
 0x47c   : > { %v8027_v9 = vld [vmem:[#allocation2 + $0x18] sm:$0xff]  ;;  %4401 = vst [vmem:[#allocation2 + $0x54] sm:$0x1] %v4400_v8  ;;  %v4737_v59 = vrot.slane %v4735_v51, 4  ;;  %v4741_v23 = vshll.u32 %v11054_v6, 16  ;;  %v5505_v37 = vrot.slane %v4585_v28, 5  ;;  %vm12918_vm3 = vmmov %vm12912_vm0 }
 0x47d   : > { %v4580_v41 = vld [vmem:[#allocation2 + $0x18] sm:$0xf]  ;;  %7817 = vmatmul.msk.bf16.gmra.mxu0 %vm12903_vm1, %v8027_v9  ;;  %7764 = vmatmul.msk.bf16.gmra.mxu2 %vm12904_vm2, %v8027_v9  ;;  %v4582_v4 = vld [vmem:[#allocation2 + $0x24] sm:$0xf]  ;;  %v11073_v56 = vpack.c.b16 %v5596_v35, %v5595_v49  ;;  %v5508_v30 = vrot.slane %v4616_v27, 5  ;;  %v7782_v25 = vrot.slane %v4634_v11, 9  ;;  %vm12919_vm1 = vmmov %vm12912_vm0 }
 0x47e   : > { %v4698_v20 = vshrl.u32 %v4580_v41, 16  ;;  %v4701_v33 = vshll.u32 %v4580_v41, 16  ;;  %v4722_v48 = vshrl.u32 %v4582_v4, 16  ;;  %v4725_v61 = vshll.u32 %v4582_v4, 16  ;;  %v8028_v42 = vld [vmem:[#allocation2 + $0x24] sm:$0xff]  ;;  %vm12920_vm2 = vmmov %vm12912_vm0 }
 0x47f   : > { %12905 = vst [vmem:[#allocation13_spill] sm:$0xff] %v11073_v56  ;;  %v4738_v2 = vor.u32 %v4737_v59, %v4733_v10  ;;  %v4584_v14 = vld [vmem:[#allocation2 + $0x30] sm:$0xf]  ;;  %v4402_v54 = vld [vmem:[#allocation2 + $0x60] sm:$0x1]  ;;  %v4743_v53 = vrot.slane %v4741_v23, 5  ;;  %v5506_v29 = vsel %vm8338_vm15, %v7782_v25, %v5505_v37 }
 0x480   : > { %v4700_v55 = vrot.slane %v4698_v20, 4  ;;  %v4703_v18 = vrot.slane %v4701_v33, 5  ;;  %v4724_v44 = vrot.slane %v4722_v48, 4  ;;  %v4727_v47 = vrot.slane %v4725_v61, 5  ;;  %v4297_v20 = vld [vmem:[#allocation2 + $0x6c] sm:$0x2] }
 0x481   : > { %v5507_v46 = vrot.slane %v5505_v37, 4  ;;  %v4739_v6 = vrot.slane %v4738_v2, 4  ;;  %v4746_v52 = vshrl.u32 %v4584_v14, 16  ;;  %v4749_v31 = vshll.u32 %v4584_v14, 16  ;;  %v4405_v50 = vld [vmem:[#allocation2 + $0x6c] sm:$0x1] }
 0x482   : > { %v4704_v5 = vor.u32 %v4703_v18, %v4700_v55  ;;  %v4728_v60 = vor.u32 %v4727_v47, %v4724_v44  ;;  %v4755_v4 = vshll.u32 %v4585_v28, 16  ;;  %v4759_v55 = vshrl.u32 %v4585_v28, 16  ;;  %v4587_v24 = vld [vmem:[#allocation2 + $0x40] sm:$0xf]  ;;  %v11102_v51 = vld [vmem:[#allocation2 + $0x44] sm:$0x1] }
 0x483   : > { %v5509_v41 = vsel %vm8338_vm15, %v5507_v46, %v5508_v30  ;;  %v4744_v33 = vsel %vm8403_vm6, %v4739_v6, %v4743_v53  ;;  %v4748_v18 = vrot.slane %v4746_v52, 4  ;;  %v4751_v43 = vrot.slane %v4749_v31, 5  ;;  %v4298_v34 = vld [vmem:[#allocation2 + $0x78] sm:$0x2]  ;;  %v8029_v44 = vld [vmem:[#allocation2 + $0x30] sm:$0xff] }
 0x484   : > { %v4705_v38 = vrot.slane %v4704_v5, 4  ;;  %v4729_v32 = vrot.slane %v4728_v60, 4  ;;  %v5598_v21 = vunpack.c.l.b16 %v5509_v41  ;;  %v7654_v15 = vrot.slane %v4297_v20, 9  ;;  %v4635_v57 = vld [vmem:[#allocation2 + $0x3c] sm:$0xe] }
 0x485   : > { %v5042_v40 = vunpack.c.l.b16 %v4744_v33  ;;  %v5597_v5 = vunpack.c.l.b16 %v5506_v29  ;;  %v4761_v22 = vrot.slane %v4759_v55, 4  ;;  %v4752_v35 = vor.u32 %v4751_v43, %v4748_v18  ;;  %v4586_v59 = vld [vmem:[#allocation2 + $0x3c] sm:$0xf]  ;;  %v4408_v28 = vld [vmem:[#allocation2 + $0x78] sm:$0x1] }
 0x486   : > { %v4710_v19 = vsel %vm8403_vm6, %v4705_v38, %v4709_v3  ;;  %v7653_v3 = vrot.slane %v4296_v62, 9  ;;  %v4734_v9 = vsel %vm8403_vm6, %v4729_v32, %v4733_v10  ;;  %v4406_v48 = vsel %vm8267_vm4, %v7654_v15, %v4405_v50  ;;  %v7850_v10 = vld [vmem:[%s12534_s6 + $0xa] sm:$0x3]  ;;  %v4299_v30 = vld [vmem:[#allocation2 + $0x84] sm:$0x2] }
 0x487   : > { %v5039_v1 = vunpack.c.l.b16 %v4710_v19  ;;  %v5041_v17 = vunpack.c.l.b16 %v4734_v9  ;;  %v11096_v63 = vpack.c.b16 %v5598_v21, %v5597_v5  ;;  %v4757_v38 = vrot.slane %v4755_v4, 5  ;;  %4407 = vst [vmem:[#allocation2 + $0x6c] sm:$0x1] %v4406_v48  ;;  %v4411_v41 = vld [vmem:[#allocation2 + $0x84] sm:$0x1]  ;;  %v8030_v5 = vld [vmem:[#allocation2 + $0x3c] sm:$0xff] }
 0x488   : > { %v4403_v26 = vsel %vm8267_vm4, %v7653_v3, %v4402_v54  ;;  %v4765_v39 = vshll.u32 %v4616_v27, 16  ;;  %v5512_v19 = vrot.slane %v4587_v24, 5  ;;  %v5515_v49 = vrot.slane %v11102_v51, 5  ;;  %v4589_v4 = vld [vmem:[#allocation2 + $0x4c] sm:$0xf] }
 0x489   : > { %v11071_v13 = vpack.c.b16 %v5040_v0, %v5039_v1  ;;  %7798 = vmatmul.msk.bf16.gmra.mxu3 %vm12907_vm9, %v11073_v56  ;;  %4404 = vst [vmem:[#allocation2 + $0x60] sm:$0x1] %v4403_v26  ;;  %v11094_v61 = vpack.c.b16 %v5042_v40, %v5041_v17  ;;  %v4762_v47 = vor.u32 %v4761_v22, %v4757_v38  ;;  %v4753_v1 = vrot.slane %v4752_v35, 4  ;;  %v4300_v18 = vld [vmem:[#allocation2 + $0x90] sm:$0x2]  ;;  %vm12923_vm9 = vmmov %vm12912_vm0 }
 0x48a   : > { %12910 = vst [vmem:[#allocation29_spill] sm:$0xff] %v11096_v63  ;;  %v4767_v0 = vrot.slane %v4765_v39, 5  ;;  %v7655_v8 = vrot.slane %v4298_v34, 9  ;;  %vm12915_vm8 = vcmask 1041408   ;;  %v7783_v27 = vrot.slane %v4635_v57, 9 }
 0x48b   : > { %7684 = vmatmul.msk.bf16.gmra.mxu1 %vm12906_vm7, %v11071_v13  ;;  %v6117_v60 = vsel %vm12915_vm8, %v7850_v10, 0  ;;  %v5514_v62 = vrot.slane %v5512_v19, 4  ;;  %v4763_v37 = vrot.slane %v4762_v47, 4  ;;  %v4770_v11 = vshrl.u32 %v4586_v59, 16  ;;  %v4618_v43 = vld [vmem:[#allocation2 + $0x50] sm:$0x1]  ;;  %vm12922_vm7 = vmmov %vm12912_vm0 }
 0x48c   : > { %v4409_v23 = vsel %vm8267_vm4, %v7655_v8, %v4408_v28  ;;  %6126 = vmatpush.bf16.msrb.mxu2 %v6117_v60  ;;  %v4773_v32 = vshll.u32 %v4586_v59, 16  ;;  %v5513_v14 = vsel %vm8338_vm15, %v7783_v27, %v5512_v19  ;;  %v4779_v54 = vshll.u32 %v4587_v24, 16  ;;  %v4636_v48 = vld [vmem:[#allocation2 + $0x48] sm:$0xe]  ;;  %v4414_v35 = vld [vmem:[#allocation2 + $0x90] sm:$0x1]  ;;  %vm12931_vm8 = vmmov %vm12912_vm0 }
 0x48d   : > { %7818 = vmatmul.msk.bf16.gmra.mxu0 %vm12908_vm12, %v8028_v42  ;;  %7765 = vmatmul.msk.bf16.gmra.mxu2 %vm12909_vm14, %v8028_v42  ;;  %4410 = vst [vmem:[#allocation2 + $0x78] sm:$0x1] %v4409_v23  ;;  %v4758_v42 = vsel %vm8403_vm6, %v4753_v1, %v4757_v38  ;;  %v5516_v2 = vsel %vm8338_vm15, %v5514_v62, %v5515_v49  ;;  %v4783_v46 = vshrl.u32 %v4587_v24, 16  ;;  %v7656_v26 = vrot.slane %v4299_v30, 9  ;;  %v4588_v39 = vld [vmem:[#allocation2 + $0x48] sm:$0xf]  ;;  %vm12924_vm12 = vmmov %vm12912_vm0 }
 0x48e   : > { %v4768_v3 = vsel %vm8403_vm6, %v4763_v37, %v4767_v0  ;;  %v5043_v53 = vunpack.c.l.b16 %v4758_v42  ;;  %v5600_v25 = vunpack.c.l.b16 %v5516_v2  ;;  %v4772_v6 = vrot.slane %v4770_v11, 4  ;;  %v4301_v57 = vld [vmem:[#allocation2 + $0x9c] sm:$0x2]  ;;  %v4417_v23 = vld [vmem:[#allocation2 + $0x9c] sm:$0x1]  ;;  %vm12925_vm14 = vmmov %vm12912_vm0 }
 0x48f   : > { %v4775_v9 = vrot.slane %v4773_v32, 5  ;;  %v5044_v52 = vunpack.c.l.b16 %v4768_v3  ;;  %v5599_v31 = vunpack.c.l.b16 %v5513_v14  ;;  %v4412_v20 = vsel %vm8267_vm4, %v7656_v26, %v4411_v41 }
 0x490   : > { %4413 = vst [vmem:[#allocation2 + $0x84] sm:$0x1] %v4412_v20  ;;  %v4781_v17 = vrot.slane %v4779_v54, 5  ;;  %v4785_v21 = vrot.slane %v4783_v46, 4  ;;  %v4789_v15 = vshll.u32 %v11102_v51, 16  ;;  %v5519_v40 = vrot.slane %v4589_v4, 5 }
 0x491   : > { %v11123_v33 = vpack.c.b16 %v5044_v52, %v5043_v53  ;;  %v11125_v29 = vpack.c.b16 %v5600_v25, %v5599_v31  ;;  %v4776_v55 = vor.u32 %v4775_v9, %v4772_v6  ;;  %v7657_v38 = vrot.slane %v4300_v18, 9  ;;  %v4591_v54 = vld [vmem:[#allocation2 + $0x58] sm:$0xf]  ;;  %v4302_v53 = vld [vmem:[#allocation2 + $0xa8] sm:$0x2] }
 0x492   : > { %v4786_v50 = vor.u32 %v4785_v21, %v4781_v17  ;;  %v5522_v24 = vrot.slane %v4618_v43, 5  ;;  %v4791_v19 = vrot.slane %v4789_v15, 5  ;;  %v5521_v47 = vrot.slane %v5519_v40, 4  ;;  %v4619_v6 = vld [vmem:[#allocation2 + $0x5c] sm:$0x1]  ;;  %v8031_v31 = vld [vmem:[#allocation2 + $0x48] sm:$0xff] }
 0x493   : > { %12916 = vst [vmem:[#allocation18_spill] sm:$0xff] %v11125_v29  ;;  %v4777_v22 = vrot.slane %v4776_v55, 4  ;;  %v4415_v34 = vsel %vm8267_vm4, %v7657_v38, %v4414_v35  ;;  %v4794_v49 = vshrl.u32 %v4588_v39, 16  ;;  %v4797_v8 = vshll.u32 %v4588_v39, 16  ;;  %v4637_v20 = vld [vmem:[#allocation2 + $0x54] sm:$0xe] }
 0x494   : > { %4416 = vst [vmem:[#allocation2 + $0x90] sm:$0x1] %v4415_v34  ;;  %v4787_v51 = vrot.slane %v4786_v50, 4  ;;  %v5523_v0 = vsel %vm8338_vm15, %v5521_v47, %v5522_v24  ;;  %v7658_v28 = vrot.slane %v4301_v57, 9  ;;  %v4803_v62 = vshll.u32 %v4589_v4, 16 }
 0x495   : > { %v4782_v1 = vsel %vm8403_vm6, %v4777_v22, %v4781_v17  ;;  %v5602_v27 = vunpack.c.l.b16 %v5523_v0  ;;  %v4796_v37 = vrot.slane %v4794_v49, 4  ;;  %v4799_v42 = vrot.slane %v4797_v8, 5  ;;  %v4420_v17 = vld [vmem:[#allocation2 + $0xa8] sm:$0x1]  ;;  %v4590_v18 = vld [vmem:[#allocation2 + $0x54] sm:$0xf] }
 0x496   : > { %v4792_v10 = vsel %vm8403_vm6, %v4787_v51, %v4791_v19  ;;  %v5045_v60 = vunpack.c.l.b16 %v4782_v1  ;;  %v4807_v2 = vshrl.u32 %v4589_v4, 16  ;;  %v4418_v11 = vsel %vm8267_vm4, %v7658_v28, %v4417_v23  ;;  %v4303_v38 = vld [vmem:[#allocation2 + $0xb4] sm:$0x2]  ;;  %v4423_v1 = vld [vmem:[#allocation2 + $0xb4] sm:$0x1] }
 0x497   : > { %v5046_v32 = vunpack.c.l.b16 %v4792_v10  ;;  %4419 = vst [vmem:[#allocation2 + $0x9c] sm:$0x1] %v4418_v11  ;;  %v4800_v25 = vor.u32 %v4799_v42, %v4796_v37  ;;  %v4805_v46 = vrot.slane %v4803_v62, 5  ;;  %v4813_v9 = vshll.u32 %v4618_v43, 16  ;;  %v4304_v28 = vld [vmem:[#allocation2 + $0xc0] sm:$0x2] }
 0x498   : > { %v4809_v26 = vrot.slane %v4807_v2, 4  ;;  %v5526_v41 = vrot.slane %v4591_v54, 5  ;;  %v7659_v52 = vrot.slane %v4302_v53, 9  ;;  %v5529_v55 = vrot.slane %v4619_v6, 5  ;;  %v4593_v23 = vld [vmem:[#allocation2 + $0x64] sm:$0xf] }
 0x499   : > { %7799 = vmatmul.msk.bf16.gmra.mxu3 %vm12912_vm0, %v11096_v63  ;;  %v11146_v3 = vpack.c.b16 %v5046_v32, %v5045_v60  ;;  %v4801_v21 = vrot.slane %v4800_v25, 4  ;;  %v4818_v50 = vshrl.u32 %v4590_v18, 16  ;;  %v7660_v19 = vrot.slane %v4303_v38, 9  ;;  %v4620_v2 = vld [vmem:[#allocation2 + $0x68] sm:$0x1]  ;;  %v11176_v53 = vld [vmem:[#allocation2 + $0x54] sm:$0xff] }
 0x49a   : > { %v4810_v4 = vor.u32 %v4809_v26, %v4805_v46  ;;  %v4421_v15 = vsel %vm8267_vm4, %v7659_v52, %v4420_v17  ;;  %v5528_v43 = vrot.slane %v5526_v41, 4  ;;  %v4827_v0 = vshll.u32 %v4591_v54, 16  ;;  %v4592_v52 = vld [vmem:[#allocation2 + $0x60] sm:$0xf] }
 0x49b   : > { %7685 = vmatmul.msk.bf16.gmra.mxu1 %vm12911_vm5, %v11094_v61  ;;  %4422 = vst [vmem:[#allocation2 + $0xa8] sm:$0x1] %v4421_v15  ;;  %v4806_v22 = vsel %vm8403_vm6, %v4801_v21, %v4805_v46  ;;  %v4820_v51 = vrot.slane %v4818_v50, 4  ;;  %v4831_v49 = vshrl.u32 %v4591_v54, 16  ;;  %v4424_v8 = vsel %vm8267_vm4, %v7660_v19, %v4423_v1  ;;  %vm12927_vm5 = vmmov %vm12912_vm0  ;;  %v4426_v54 = vld [vmem:[#allocation2 + $0xc0] sm:$0x1] }
 0x49c   : > { %v4811_v24 = vrot.slane %v4810_v4, 4  ;;  %v5530_v35 = vsel %vm8338_vm15, %v5528_v43, %v5529_v55  ;;  %4425 = vst [vmem:[#allocation2 + $0xb4] sm:$0x1] %v4424_v8  ;;  %v4829_v37 = vrot.slane %v4827_v0, 5  ;;  %v7661_v11 = vrot.slane %v4304_v28, 9  ;;  %v11202_v28 = vld [vmem:[#allocation2 + $0x60] sm:$0xff] }
 0x49d   : > { %7819 = vmatmul.msk.bf16.gmra.mxu0 %vm12913_vm13, %v8029_v44  ;;  %7766 = vmatmul.msk.bf16.gmra.mxu2 %vm12914_vm11, %v8029_v44  ;;  %v7784_v44 = vrot.slane %v4636_v48, 9  ;;  %v4821_v48 = vshll.u32 %v4590_v18, 16  ;;  %v5604_v47 = vunpack.c.l.b16 %v5530_v35  ;;  %v4833_v42 = vrot.slane %v4831_v49, 4  ;;  %v4638_v46 = vld [vmem:[#allocation2 + $0x60] sm:$0xe]  ;;  %vm12928_vm13 = vmmov %vm12912_vm0 }
 0x49e   : > { %v4837_v32 = vshll.u32 %v4619_v6, 16  ;;  %v4427_v26 = vsel %vm8267_vm4, %v7661_v11, %v4426_v54  ;;  %vm12929_vm11 = vmmov %vm12912_vm0  ;;  %v4842_v4 = vshrl.u32 %v4592_v52, 16  ;;  %v4845_v55 = vshll.u32 %v4592_v52, 16  ;;  %v11196_v1 = vld [vmem:[#allocation2 + $0x74] sm:$0x1] }
 0x49f   : > { %v5520_v59 = vsel %vm8338_vm15, %v7784_v44, %v5519_v40  ;;  %v4815_v40 = vrot.slane %v4813_v9, 5  ;;  %v5047_v44 = vunpack.c.l.b16 %v4806_v22  ;;  %v4823_v57 = vrot.slane %v4821_v48, 5  ;;  %4428 = vst [vmem:[#allocation2 + $0xc0] sm:$0x1] %v4427_v26  ;;  %vm12930_vm4 = vmmov %vm12912_vm0  ;;  %v4611_v49 = vld [vmem:[#allocation2 + $0xd0] sm:$0xf] }
 0x4a0   : > { %v5601_v30 = vunpack.c.l.b16 %v5520_v59  ;;  %v4834_v9 = vor.u32 %v4833_v42, %v4829_v37  ;;  %v4839_v6 = vrot.slane %v4837_v32, 5  ;;  %v4851_v43 = vshll.u32 %v4593_v23, 16  ;;  %v4647_v8 = vld [vmem:[#allocation2 + $0xcc] sm:$0xe] }
 0x4a1   : > { %v4816_v39 = vsel %vm8403_vm6, %v4811_v24, %v4815_v40  ;;  %v4824_v62 = vor.u32 %v4823_v57, %v4820_v51  ;;  %v4855_v50 = vshrl.u32 %v4593_v23, 16  ;;  %v4844_v48 = vrot.slane %v4842_v4, 4  ;;  %v5363_v24 = vpop.f32.mrf.mxu2  ;;  %v4594_v32 = vld [vmem:[#allocation2 + $0x6c] sm:$0xf] }
 0x4a2   : > { %v11148_v14 = vpack.c.b16 %v5602_v27, %v5601_v30  ;;  %v5048_v10 = vunpack.c.l.b16 %v4816_v39  ;;  %v5533_v30 = vrot.slane %v4593_v23, 5  ;;  %v4835_v21 = vrot.slane %v4834_v9, 4  ;;  %v4629_v23 = vld [vmem:[#allocation2 + $0xd4] sm:$0x1] }
 0x4a3   : > { %v4825_v25 = vrot.slane %v4824_v62, 4  ;;  %v4847_v38 = vrot.slane %v4845_v55, 5  ;;  %v4853_v19 = vrot.slane %v4851_v43, 5  ;;  %v4861_v0 = vshll.u32 %v4620_v2, 16 }
 0x4a4   : > { %12921 = vst [vmem:[#allocation39_spill] sm:$0xff] %v11148_v14  ;;  %v11168_v60 = vpack.c.b16 %v5048_v10, %v5047_v44  ;;  %v4840_v18 = vsel %vm8403_vm6, %v4835_v21, %v4839_v6  ;;  %v4857_v44 = vrot.slane %v4855_v50, 4  ;;  %v4639_v10 = vld [vmem:[#allocation2 + $0x6c] sm:$0xe]  ;;  %v5543_v11 = vrot.slane %v11196_v1, 5 }
 0x4a5   : > { %v4830_v17 = vsel %vm8403_vm6, %v4825_v25, %v4829_v37  ;;  %v5050_v22 = vunpack.c.l.b16 %v4840_v18  ;;  %v4848_v57 = vor.u32 %v4847_v38, %v4844_v48  ;;  %v6534_v54 = vrot.slane %v4611_v49, 5  ;;  %v11225_v49 = vpop.f32.mrf.mxu0 }
 0x4a6   : > { %v5049_v40 = vunpack.c.l.b16 %v4830_v17  ;;  %v4858_v62 = vor.u32 %v4857_v44, %v4853_v19  ;;  %v4863_v25 = vrot.slane %v4861_v0, 5  ;;  %v6537_v52 = vrot.slane %v4629_v23, 5 }
 0x4a7   : > { %v4849_v42 = vrot.slane %v4848_v57, 4  ;;  %v4866_v17 = vshrl.u32 %v4594_v32, 16  ;;  %v4869_v4 = vshll.u32 %v4594_v32, 16  ;;  %v4885_v32 = vshll.u32 %v11196_v1, 16 }
 0x4a8   : > { %v11192_v39 = vpack.c.b16 %v5050_v22, %v5049_v40 }
 0x4a9   : > { %7800 = vmatmul.msk.bf16.gmra.mxu3 %vm12918_vm3, %v11125_v29  ;;  %vm12933_vm3 = vmmov %vm12912_vm0  ;;  %v4854_v21 = vsel %vm8403_vm6, %v4849_v42, %v4853_v19  ;;  %v4868_v19 = vrot.slane %v4866_v17, 4  ;;  %v4871_v44 = vrot.slane %v4869_v4, 5 }
 0x4aa   : > { %v5051_v48 = vunpack.c.l.b16 %v4854_v21 }
 0x4ab   : > { %7686 = vmatmul.msk.bf16.gmra.mxu1 %vm12917_vm10, %v11123_v33  ;;  %vm12932_vm10 = vmmov %vm12912_vm0 }
 0x4ad   : > { %7820 = vmatmul.msk.bf16.gmra.mxu0 %vm12919_vm1, %v8030_v5  ;;  %7767 = vmatmul.msk.bf16.gmra.mxu2 %vm12920_vm2, %v8030_v5  ;;  %v7785_v5 = vrot.slane %v4637_v20, 9  ;;  %v5535_v20 = vrot.slane %v5533_v30, 4  ;;  %v5697_v51 = vpop.f32.mrf.mxu3  ;;  %vm12935_vm1 = vmmov %vm12912_vm0  ;;  %v11246_v4 = vpop.f32.mrf.mxu0 }
 0x4ae   : > { %vm12936_vm2 = vmmov %vm12912_vm0 }
 0x4af   : > { %v5527_v34 = vsel %vm8338_vm15, %v7785_v5, %v5526_v41  ;;  %v5536_v41 = vrot.slane %v4620_v2, 5 }
 0x4b0   : > { %v5603_v59 = vunpack.c.l.b16 %v5527_v34 }
 0x4b1   : > { %v5537_v7 = vsel %vm8338_vm15, %v5535_v20, %v5536_v41  ;;  %v6536_v41 = vrot.slane %v6534_v54, 4  ;;  %v5365_v20 = vpop.f32.mrf.mxu2 }
 0x4b2   : > { %v11170_v27 = vpack.c.b16 %v5604_v47, %v5603_v59  ;;  %v5606_v5 = vunpack.c.l.b16 %v5537_v7  ;;  %v4595_v47 = vld [vmem:[#allocation2 + $0x70] sm:$0xf] }
 0x4b3   : > { %v5540_v59 = vrot.slane %v4595_v47, 5  ;;  %v6538_v55 = vsel %vm8338_vm15, %v6536_v41, %v6537_v52  ;;  %v4875_v50 = vshll.u32 %v4595_v47, 16  ;;  %v4879_v22 = vshrl.u32 %v4595_v47, 16 }
 0x4b4   : > { %12926 = vst [vmem:[#allocation26_spill] sm:$0xff] %v11170_v27  ;;  %v4872_v47 = vor.u32 %v4871_v44, %v4868_v19 }
 0x4b5   : > { %v5542_v26 = vrot.slane %v5540_v59, 4  ;;  %v4881_v23 = vrot.slane %v4879_v22, 4 }
 0x4b7   : > { %v5544_v7 = vsel %vm8338_vm15, %v5542_v26, %v5543_v11  ;;  %v4622_v11 = vld [vmem:[#allocation2 + $0x80] sm:$0x1] }
 0x4b8   : > { %v5608_v38 = vunpack.c.l.b16 %v5544_v7  ;;  %v5550_v41 = vrot.slane %v4622_v11, 5 }
 0x4b9   : > { %7801 = vmatmul.msk.bf16.gmra.mxu3 %vm12923_vm9, %v11148_v14  ;;  %v5368_v42 = vpop.f32.mrf.mxu2  ;;  %vm12938_vm9 = vmmov %vm12912_vm0 }
 0x4bb   : > { %7687 = vmatmul.msk.bf16.gmra.mxu1 %vm12922_vm7, %v11146_v3  ;;  %vm12937_vm7 = vmmov %vm12912_vm0 }
 0x4bd   : > { %7821 = vmatmul.msk.bf16.gmra.mxu0 %vm12924_vm12, %v8031_v31  ;;  %7768 = vmatmul.msk.bf16.gmra.mxu2 %vm12925_vm14, %v8031_v31  ;;  %v7786_v31 = vrot.slane %v4638_v46, 9  ;;  %v7787_v46 = vrot.slane %v4639_v10, 9  ;;  %vm12941_vm12 = vmmov %vm12912_vm0 }
 0x4be   : > { %vm12942_vm14 = vmmov %vm12912_vm0 }
 0x4bf   : > { %v5534_v15 = vsel %vm8338_vm15, %v7786_v31, %v5533_v30  ;;  %v7905_v30 = vrot.slane %v4647_v8, 9  ;;  %v4859_v31 = vrot.slane %v4858_v62, 4  ;;  %v5541_v43 = vsel %vm8338_vm15, %v7787_v46, %v5540_v59 }
 0x4c0   : > { %v5605_v35 = vunpack.c.l.b16 %v5534_v15  ;;  %v6542_v15 = vunpack.c.l.b16 %v6538_v55  ;;  %v5607_v0 = vunpack.c.l.b16 %v5541_v43  ;;  %v4877_v8 = vrot.slane %v4875_v50, 5 }
 0x4c1   : > { %v6535_v9 = vsel %vm8338_vm15, %v7905_v30, %v6534_v54  ;;  %v4864_v40 = vsel %vm8403_vm6, %v4859_v31, %v4863_v25  ;;  %v11238_v54 = vld [vmem:[#allocation2 + $0x6c] sm:$0xff]  ;;  %v4640_v25 = vld [vmem:[#allocation2 + $0x78] sm:$0xe] }
 0x4c2   : > { %v11194_v34 = vpack.c.b16 %v5606_v5, %v5605_v35  ;;  %v6541_v18 = vunpack.c.l.b16 %v6535_v9  ;;  %v5699_v5 = vpop.f32.mrf.mxu3  ;;  %v11231_v59 = vpack.c.b16 %v5608_v38, %v5607_v0  ;;  %v4873_v9 = vrot.slane %v4872_v47, 4  ;;  %v4596_v31 = vld [vmem:[#allocation2 + $0x78] sm:$0xf] }
 0x4c3   : > { %v7788_v17 = vrot.slane %v4640_v25, 9 }
 0x4c4   : > { %v4878_v55 = vsel %vm8403_vm6, %v4873_v9, %v4877_v8  ;;  %v4909_v9 = vshll.u32 %v4622_v11, 16 }
 0x4c5   : > { %v5053_v50 = vunpack.c.l.b16 %v4878_v55  ;;  %v4598_v55 = vld [vmem:[#allocation2 + $0x84] sm:$0xf] }
 0x4c6   : > { %v4917_v11 = vshll.u32 %v4598_v55, 16 }
 0x4c9   : > { %7802 = vmatmul.msk.bf16.gmra.mxu3 %vm12912_vm0, %v11170_v27 }
 0x4cb   : > { %7688 = vmatmul.msk.bf16.gmra.mxu1 %vm12927_vm5, %v11168_v60  ;;  %vm12943_vm5 = vmmov %vm12912_vm0 }
 0x4cd   : > { %7822 = vmatmul.msk.bf16.gmra.mxu0 %vm12928_vm13, %v11176_v53  ;;  %7769 = vmatmul.msk.bf16.gmra.mxu2 %vm12929_vm11, %v11176_v53  ;;  %vm12947_vm13 = vmmov %vm12912_vm0 }
 0x4ce   : > { %vm12948_vm11 = vmmov %vm12912_vm0 }
 0x4d9   : > { %7803 = vmatmul.msk.bf16.gmra.mxu3 %vm12931_vm8, %v11194_v34  ;;  %vm12951_vm8 = vmmov %vm12912_vm0 }
 0x4da   : > { %v5143_v37 = vpop.f32.mrf.mxu1 }
 0x4db   : > { %7689 = vmatmul.msk.bf16.gmra.mxu1 %vm12930_vm4, %v11192_v39  ;;  %v5364_v2 = vadd.f32 %v5363_v24, %v5143_v37  ;;  %v11223_v24 = vpack.c.b16 %v6542_v15, %v6541_v18  ;;  %v4597_v37 = vld [vmem:[#allocation2 + $0x7c] sm:$0xf]  ;;  %v4890_v15 = vshrl.u32 %v4596_v31, 16  ;;  %vm12950_vm4 = vmmov %vm12912_vm0 }
 0x4dc   : > { %v5547_v30 = vrot.slane %v4597_v37, 5 }
 0x4dd   : > { %7823 = vmatmul.msk.bf16.gmra.mxu0 %vm12932_vm10, %v11202_v28  ;;  %7770 = vmatmul.msk.bf16.gmra.mxu2 %vm12933_vm3, %v11202_v28  ;;  %v11211_v6 = vadd.f32 %v5697_v51, %v5364_v2  ;;  %12934 = vst [vmem:[#allocation12_spill] sm:$0xff] %v11223_v24  ;;  %v5052_v51 = vunpack.c.l.b16 %v4864_v40  ;;  %v4882_v2 = vor.u32 %v4881_v23, %v4877_v8  ;;  %v4893_v40 = vshll.u32 %v4596_v31, 16  ;;  %v4641_v31 = vld [vmem:[#allocation2 + $0x84] sm:$0xe]  ;;  %vm12956_vm10 = vmmov %vm12912_vm0 }
 0x4de   : > { %v5549_v1 = vrot.slane %v5547_v30, 4  ;;  %v5548_v43 = vsel %vm8338_vm15, %v7788_v17, %v5547_v30  ;;  %v4892_v19 = vrot.slane %v4890_v15, 4  ;;  %v7789_v15 = vrot.slane %v4641_v31, 9  ;;  %vm12957_vm3 = vmmov %vm12912_vm0 }
 0x4df   : > { %v11227_v10 = vpack.c.b16 %v5052_v51, %v5051_v48  ;;  %v4883_v7 = vrot.slane %v4882_v2, 4  ;;  %v5370_v48 = vpop.f32.mrf.mxu2  ;;  %v4895_v44 = vrot.slane %v4893_v40, 5  ;;  %v4899_v51 = vshll.u32 %v4597_v37, 16  ;;  %v4599_v2 = vld [vmem:[#allocation2 + $0x88] sm:$0xf] }
 0x4e0   : > { %v5551_v18 = vsel %vm8338_vm15, %v5549_v1, %v5550_v41  ;;  %v5609_v23 = vunpack.c.l.b16 %v5548_v43  ;;  %v5554_v41 = vrot.slane %v4599_v2, 5 }
 0x4e1   : > { %v5610_v38 = vunpack.c.l.b16 %v5551_v18  ;;  %v4896_v30 = vor.u32 %v4895_v44, %v4892_v19  ;;  %v4901_v25 = vrot.slane %v4899_v51, 5  ;;  %v4911_v18 = vrot.slane %v4909_v9, 5 }
 0x4e2   : > { %v5145_v35 = vpop.f32.mrf.mxu1  ;;  %v5556_v40 = vrot.slane %v5554_v41, 4  ;;  %v5555_v19 = vsel %vm8338_vm15, %v7789_v15, %v5554_v41 }
 0x4e3   : > { %v5366_v57 = vadd.f32 %v5365_v20, %v5145_v35  ;;  %v4887_v20 = vrot.slane %v4885_v32, 5  ;;  %v11260_v32 = vpack.c.b16 %v5610_v38, %v5609_v23  ;;  %v4897_v17 = vrot.slane %v4896_v30, 4 }
 0x4e4   : > { %v4923_v23 = vshll.u32 %v4599_v2, 16  ;;  %v4927_v30 = vshrl.u32 %v4599_v2, 16  ;;  %v11294_v2 = vld [vmem:[#allocation2 + $0x98] sm:$0x1] }
 0x4e5   : > { %v11229_v62 = vadd.f32 %v5699_v5, %v5366_v57  ;;  %v4888_v5 = vsel %vm8403_vm6, %v4883_v7, %v4887_v20  ;;  %v4903_v57 = vshrl.u32 %v4597_v37, 16  ;;  %12940 = vst [vmem:[#allocation22_spill] sm:$0xff] %v11260_v32  ;;  %v4623_v37 = vld [vmem:[#allocation2 + $0x8c] sm:$0x1] }
 0x4e6   : > { %v5054_v0 = vunpack.c.l.b16 %v4888_v5  ;;  %v5557_v7 = vrot.slane %v4623_v37, 5  ;;  %v4914_v5 = vshrl.u32 %v4598_v55, 16  ;;  %v4601_v55 = vld [vmem:[#allocation2 + $0x94] sm:$0xf]  ;;  %v4929_v41 = vrot.slane %v4927_v30, 4 }
 0x4e8   : > { %v11256_v47 = vpack.c.b16 %v5054_v0, %v5053_v50  ;;  %v4902_v50 = vsel %vm8403_vm6, %v4897_v17, %v4901_v25  ;;  %v5558_v38 = vsel %vm8338_vm15, %v5556_v40, %v5557_v7  ;;  %v4919_v0 = vrot.slane %v4917_v11, 5 }
 0x4e9   : > { %7804 = vmatmul.msk.bf16.gmra.mxu3 %vm12936_vm2, %v11231_v59  ;;  %v5055_v44 = vunpack.c.l.b16 %v4902_v50  ;;  %v5612_v51 = vunpack.c.l.b16 %v5558_v38  ;;  %v4925_v40 = vrot.slane %v4923_v23, 5  ;;  %v4933_v11 = vshll.u32 %v4623_v37, 16  ;;  %v11298_v50 = vld [vmem:[#allocation2 + $0x84] sm:$0xff]  ;;  %v4642_v38 = vld [vmem:[#allocation2 + $0x90] sm:$0xe]  ;;  %vm12960_vm2 = vmmov %vm12912_vm0 }
 0x4eb   : > { %7690 = vmatmul.msk.bf16.gmra.mxu1 %vm12935_vm1, %v11227_v10  ;;  %vm12959_vm1 = vmmov %vm12912_vm0 }
 0x4ec   : > { %v5702_v26 = vpop.f32.mrf.mxu3 }
 0x4ed   : > { %v5148_v46 = vpop.f32.mrf.mxu1  ;;  %7824 = vmatmul.msk.bf16.gmra.mxu0 %vm12937_vm7, %v11238_v54  ;;  %7771 = vmatmul.msk.bf16.gmra.mxu2 %vm12938_vm9, %v11238_v54  ;;  %vm12966_vm7 = vmmov %vm12912_vm0 }
 0x4ee   : > { %v5369_v52 = vadd.f32 %v5368_v42, %v5148_v46  ;;  %v4905_v46 = vrot.slane %v4903_v57, 4  ;;  %v4916_v57 = vrot.slane %v4914_v5, 4  ;;  %vm12967_vm9 = vmmov %vm12912_vm0 }
 0x4f0   : > { %v11244_v21 = vadd.f32 %v5702_v26, %v5369_v52  ;;  %v11268_v52 = vld [vmem:[#allocation2 + $0x78] sm:$0xff]  ;;  %v4906_v1 = vor.u32 %v4905_v46, %v4901_v25  ;;  %v5611_v46 = vunpack.c.l.b16 %v5555_v19  ;;  %v4920_v7 = vor.u32 %v4919_v0, %v4916_v57 }
 0x4f1   : > { %v4930_v19 = vor.u32 %v4929_v41, %v4925_v40  ;;  %v4935_v57 = vrot.slane %v4933_v11, 5  ;;  %v7790_v0 = vrot.slane %v4642_v38, 9  ;;  %v4947_v38 = vshll.u32 %v4601_v55, 16 }
 0x4f4   : > { %v5704_v35 = vpop.f32.mrf.mxu3 }
 0x4f5   : > { %v5150_v22 = vpop.f32.mrf.mxu1 }
 0x4f6   : > { %v5371_v8 = vadd.f32 %v5370_v48, %v5150_v22  ;;  %v4907_v48 = vrot.slane %v4906_v1, 4  ;;  %v11286_v1 = vpack.c.b16 %v5612_v51, %v5611_v46  ;;  %v4931_v46 = vrot.slane %v4930_v19, 4 }
 0x4f8   : > { %v11258_v42 = vadd.f32 %v5704_v35, %v5371_v8  ;;  %v4912_v35 = vsel %vm8403_vm6, %v4907_v48, %v4911_v18  ;;  %12945 = vst [vmem:[#allocation14_spill] sm:$0xff] %v11286_v1  ;;  %v4921_v48 = vrot.slane %v4920_v7, 4  ;;  %v4936_v11 = vsel %vm8403_vm6, %v4931_v46, %v4935_v57  ;;  %v4603_v46 = vld [vmem:[#allocation2 + $0xa0] sm:$0xf] }
 0x4f9   : > { %7805 = vmatmul.msk.bf16.gmra.mxu3 %vm12942_vm14, %v11260_v32  ;;  %v5056_v25 = vunpack.c.l.b16 %v4912_v35  ;;  %vm12971_vm14 = vmmov %vm12912_vm0 }
 0x4fa   : > { %12939 = vst [vmem:[#allocation37_spill] sm:$0xff] %v11258_v42  ;;  %v11266_v26 = vpop.f32.mrf.mxu0  ;;  %v4926_v30 = vsel %vm8403_vm6, %v4921_v48, %v4925_v40  ;;  %v4951_v48 = vshrl.u32 %v4601_v55, 16 }
 0x4fb   : > { %7691 = vmatmul.msk.bf16.gmra.mxu1 %vm12941_vm12, %v11256_v47  ;;  %v11284_v17 = vpack.c.b16 %v5056_v25, %v5055_v44  ;;  %v4600_v44 = vld [vmem:[#allocation2 + $0x90] sm:$0xf]  ;;  %vm12970_vm12 = vmmov %vm12912_vm0 }
 0x4fc   : > { %v5707_v20 = vpop.f32.mrf.mxu3  ;;  %v4941_v7 = vshll.u32 %v4600_v44, 16  ;;  %v4953_v57 = vrot.slane %v4951_v48, 4 }
 0x4fd   : > { %7825 = vmatmul.msk.bf16.gmra.mxu0 %vm12943_vm5, %v11268_v52  ;;  %7772 = vmatmul.msk.bf16.gmra.mxu2 %vm12912_vm0, %v11268_v52  ;;  %vm12977_vm5 = vmmov %vm12912_vm0 }
 0x500   : > { %v5373_v43 = vpop.f32.mrf.mxu2 }
 0x502   : > { %v11278_v22 = vpop.f32.mrf.mxu0 }
 0x503   : > { %12944 = vst [vmem:[#allocation30_spill] sm:$0xff] %v11278_v22 }
 0x504   : > { %v5709_v8 = vpop.f32.mrf.mxu3 }
 0x508   : > { %v5153_v9 = vpop.f32.mrf.mxu1  ;;  %v5375_v18 = vpop.f32.mrf.mxu2 }
 0x509   : > { %v5374_v31 = vadd.f32 %v5373_v43, %v5153_v9  ;;  %7806 = vmatmul.msk.bf16.gmra.mxu3 %vm12948_vm11, %v11286_v1  ;;  %v5561_v43 = vrot.slane %v4601_v55, 5  ;;  %v11327_v55 = vld [vmem:[#allocation2 + $0xa4] sm:$0x1]  ;;  %vm12980_vm11 = vmmov %vm12912_vm0 }
 0x50a   : > { %v11296_v5 = vpop.f32.mrf.mxu0 }
 0x50b   : > { %v11288_v15 = vadd.f32 %v5707_v20, %v5374_v31  ;;  %7692 = vmatmul.msk.bf16.gmra.mxu1 %vm12947_vm13, %v11284_v17  ;;  %12949 = vst [vmem:[#allocation32_spill] sm:$0xff] %v11296_v5  ;;  %v5564_v20 = vrot.slane %v11294_v2, 5  ;;  %v5563_v37 = vrot.slane %v5561_v43, 4  ;;  %v4938_v31 = vshrl.u32 %v4600_v44, 16  ;;  %vm12979_vm13 = vmmov %vm12912_vm0 }
 0x50c   : > { %v5712_v35 = vpop.f32.mrf.mxu3 }
 0x50d   : > { %12946 = vst [vmem:[#allocation36_spill] sm:$0xff] %v11288_v15  ;;  %7826 = vmatmul.msk.bf16.gmra.mxu0 %vm12950_vm4, %v11298_v50  ;;  %7773 = vmatmul.msk.bf16.gmra.mxu2 %vm12951_vm8, %v11298_v50  ;;  %v5565_v9 = vsel %vm8338_vm15, %v5563_v37, %v5564_v20  ;;  %v4940_v5 = vrot.slane %v4938_v31, 4  ;;  %v4943_v15 = vrot.slane %v4941_v7, 5  ;;  %v5058_v20 = vunpack.c.l.b16 %v4936_v11  ;;  %v11332_v31 = vld [vmem:[#allocation2 + $0x90] sm:$0xff]  ;;  %v4643_v11 = vld [vmem:[#allocation2 + $0x9c] sm:$0xe]  ;;  %vm12983_vm4 = vmmov %vm12912_vm0 }
 0x50e   : > { %v5614_v40 = vunpack.c.l.b16 %v5565_v9  ;;  %v5568_v9 = vrot.slane %v4603_v46, 5  ;;  %vm12984_vm8 = vmmov %vm12912_vm0 }
 0x510   : > { %v5155_v51 = vpop.f32.mrf.mxu1  ;;  %v5378_v25 = vpop.f32.mrf.mxu2 }
 0x511   : > { %v5376_v23 = vadd.f32 %v5375_v18, %v5155_v51  ;;  %v5562_v18 = vsel %vm8338_vm15, %v7790_v0, %v5561_v43  ;;  %v5057_v51 = vunpack.c.l.b16 %v4926_v30  ;;  %v4944_v43 = vor.u32 %v4943_v15, %v4940_v5 }
 0x512   : > { %v11311_v24 = vpop.f32.mrf.mxu0  ;;  %v5613_v37 = vunpack.c.l.b16 %v5562_v18  ;;  %v4602_v18 = vld [vmem:[#allocation2 + $0x9c] sm:$0xf] }
 0x513   : > { %v11309_v41 = vadd.f32 %v5709_v8, %v5376_v23  ;;  %12953 = vst [vmem:[#allocation10_spill] sm:$0xff] %v11311_v24  ;;  %v4949_v8 = vrot.slane %v4947_v38, 5  ;;  %v4945_v5 = vrot.slane %v4944_v43, 4  ;;  %v4965_v43 = vshll.u32 %v4602_v18, 16 }
 0x514   : > { %v5714_v19 = vpop.f32.mrf.mxu3  ;;  %v11319_v24 = vpack.c.b16 %v5614_v40, %v5613_v37  ;;  %v7791_v40 = vrot.slane %v4643_v11, 9 }
 0x515   : > { %12952 = vst [vmem:[#allocation9_spill] sm:$0xff] %v11309_v41  ;;  %v11317_v41 = vpack.c.b16 %v5058_v20, %v5057_v51  ;;  %v4954_v7 = vor.u32 %v4953_v57, %v4949_v8  ;;  %v4962_v57 = vshrl.u32 %v4602_v18, 16  ;;  %v4967_v22 = vrot.slane %v4965_v43, 5  ;;  %v4644_v43 = vld [vmem:[#allocation2 + $0xa8] sm:$0xe] }
 0x516   : > { %12954 = vst [vmem:[#allocation24_spill] sm:$0xff] %v11319_v24 }
 0x517   : > { %v4955_v20 = vrot.slane %v4954_v7, 4  ;;  %v4971_v7 = vshll.u32 %v4603_v46, 16 }
 0x518   : > { %v5158_v44 = vpop.f32.mrf.mxu1  ;;  %v5380_v1 = vpop.f32.mrf.mxu2 }
 0x519   : > { %v5379_v23 = vadd.f32 %v5378_v25, %v5158_v44  ;;  %7807 = vmatmul.msk.bf16.gmra.mxu3 %vm12957_vm3, %v11319_v24  ;;  %v4957_v25 = vshll.u32 %v11294_v2, 16  ;;  %v5570_v2 = vrot.slane %v5568_v9, 4  ;;  %v4950_v44 = vsel %vm8403_vm6, %v4945_v5, %v4949_v8  ;;  %vm12986_vm3 = vmmov %vm12912_vm0 }
 0x51a   : > { %v11329_v30 = vpop.f32.mrf.mxu0  ;;  %v5059_v11 = vunpack.c.l.b16 %v4950_v44  ;;  %v4975_v24 = vshrl.u32 %v4603_v46, 16  ;;  %v4964_v5 = vrot.slane %v4962_v57, 4  ;;  %v11361_v46 = vld [vmem:[#allocation2 + $0xb0] sm:$0x1]  ;;  %v11366_v57 = vld [vmem:[#allocation2 + $0x9c] sm:$0xff] }
 0x51b   : > { %v11321_v0 = vadd.f32 %v5712_v35, %v5379_v23  ;;  %7693 = vmatmul.msk.bf16.gmra.mxu1 %vm12956_vm10, %v11317_v41  ;;  %12958 = vst [vmem:[#allocation11_spill] sm:$0xff] %v11329_v30  ;;  %v5571_v35 = vrot.slane %v11327_v55, 5  ;;  %v4959_v51 = vrot.slane %v4957_v25, 5  ;;  %vm12985_vm10 = vcmask 1041408  }
 0x51c   : > { %v5717_v15 = vpop.f32.mrf.mxu3  ;;  %12969 = vst [vmem:[#allocation27_spill] sm:$0xff] %v11366_v57 }
 0x51d   : > { %12955 = vst [vmem:[#allocation34_spill] sm:$0xff] %v11321_v0  ;;  %7827 = vmatmul.msk.bf16.gmra.mxu0 %vm12959_vm1, %v11332_v31  ;;  %7774 = vmatmul.msk.bf16.gmra.mxu2 %vm12960_vm2, %v11332_v31  ;;  %v5572_v23 = vsel %vm8338_vm15, %v5570_v2, %v5571_v35  ;;  %v4960_v25 = vsel %vm8403_vm6, %v4955_v20, %v4959_v51  ;;  %v4977_v51 = vrot.slane %v4975_v24, 4  ;;  %v4605_v20 = vld [vmem:[#allocation2 + $0xac] sm:$0xf]  ;;  %vm12987_vm1 = vmmov %vm12912_vm0 }
 0x51e   : > { %v5060_v35 = vunpack.c.l.b16 %v4960_v25  ;;  %v5578_v25 = vrot.slane %v11361_v46, 5  ;;  %vm12988_vm2 = vmmov %vm12985_vm10 }
 0x520   : > { %v5160_v38 = vpop.f32.mrf.mxu1  ;;  %v5383_v37 = vpop.f32.mrf.mxu2 }
 0x521   : > { %v5381_v48 = vadd.f32 %v5380_v1, %v5160_v38  ;;  %v5569_v1 = vsel %vm8338_vm15, %v7791_v40, %v5568_v9  ;;  %v5616_v38 = vunpack.c.l.b16 %v5572_v23  ;;  %v4968_v9 = vor.u32 %v4967_v22, %v4964_v5 }
 0x522   : > { %v11345_v0 = vpop.f32.mrf.mxu0  ;;  %v5615_v2 = vunpack.c.l.b16 %v5569_v1  ;;  %v5575_v23 = vrot.slane %v4605_v20, 5  ;;  %v4604_v1 = vld [vmem:[#allocation2 + $0xa8] sm:$0xf] }
 0x523   : > { %v11343_v30 = vadd.f32 %v5714_v19, %v5381_v48  ;;  %12962 = vst [vmem:[#allocation15_spill] sm:$0xff] %v11345_v0  ;;  %v4973_v19 = vrot.slane %v4971_v7, 5 }
 0x524   : > { %v5719_v8 = vpop.f32.mrf.mxu3  ;;  %v11353_v0 = vpack.c.b16 %v5616_v38, %v5615_v2  ;;  %v7792_v38 = vrot.slane %v4644_v43, 9 }
 0x525   : > { %12961 = vst [vmem:[#allocation17_spill] sm:$0xff] %v11343_v30  ;;  %v11351_v30 = vpack.c.b16 %v5060_v35, %v5059_v11  ;;  %v4978_v24 = vor.u32 %v4977_v51, %v4973_v19  ;;  %v4986_v51 = vshrl.u32 %v4604_v1, 16 }
 0x526   : > { %12964 = vst [vmem:[#allocation16_spill] sm:$0xff] %v11353_v0 }
 0x527   : > { %12963 = vst [vmem:[#allocation33_spill] sm:$0xff] %v11351_v30  ;;  %v4979_v35 = vrot.slane %v4978_v24, 4  ;;  %v4995_v24 = vshll.u32 %v4605_v20, 16 }
 0x528   : > { %v5163_v18 = vpop.f32.mrf.mxu1  ;;  %v5385_v42 = vpop.f32.mrf.mxu2 }
 0x529   : > { %v5384_v48 = vadd.f32 %v5383_v37, %v5163_v18  ;;  %7808 = vmatmul.msk.bf16.gmra.mxu3 %vm12967_vm9, %v11353_v0  ;;  %v4981_v37 = vshll.u32 %v11327_v55, 16  ;;  %v5577_v55 = vrot.slane %v5575_v23, 4  ;;  %v4999_v0 = vshrl.u32 %v4605_v20, 16  ;;  %v4627_v20 = vld [vmem:[#allocation2 + $0xbc] sm:$0x1]  ;;  %vm12990_vm9 = vmmov %vm12912_vm0 }
 0x52a   : > { %v11363_v44 = vpop.f32.mrf.mxu0 }
 0x52b   : > { %v11355_v40 = vadd.f32 %v5717_v15, %v5384_v48  ;;  %7694 = vmatmul.msk.bf16.gmra.mxu1 %vm12966_vm7, %v11351_v30  ;;  %12968 = vst [vmem:[#allocation35_spill] sm:$0xff] %v11363_v44  ;;  %v4969_v15 = vrot.slane %v4968_v9, 4  ;;  %v4983_v11 = vrot.slane %v4981_v37, 5  ;;  %v5579_v48 = vsel %vm8338_vm15, %v5577_v55, %v5578_v25  ;;  %vm12989_vm7 = vmmov %vm12988_vm2 }
 0x52c   : > { %v5722_v22 = vpop.f32.mrf.mxu3  ;;  %v4989_v9 = vshll.u32 %v4604_v1, 16 }
 0x52d   : > { %12965 = vst [vmem:[#allocation20_spill] sm:$0xff] %v11355_v40  ;;  %7828 = vmatmul.msk.bf16.gmra.mxu0 %vm12970_vm12, %v11366_v57  ;;  %7775 = vmatmul.msk.bf16.gmra.mxu2 %vm12971_vm14, %v11366_v57  ;;  %v4974_v18 = vsel %vm8403_vm6, %v4969_v15, %v4973_v19  ;;  %v4984_v37 = vsel %vm8403_vm6, %v4979_v35, %v4983_v11  ;;  %v4988_v15 = vrot.slane %v4986_v51, 4  ;;  %v5001_v11 = vrot.slane %v4999_v0, 4  ;;  %v4607_v35 = vld [vmem:[#allocation2 + $0xb8] sm:$0xf]  ;;  %v11398_v51 = vld [vmem:[#allocation2 + $0xa8] sm:$0xff]  ;;  %vm12991_vm12 = vmmov %vm12912_vm0 }
 0x52e   : > { %v5061_v43 = vunpack.c.l.b16 %v4974_v18  ;;  %v4991_v30 = vrot.slane %v4989_v9, 5  ;;  %v5062_v25 = vunpack.c.l.b16 %v4984_v37  ;;  %v5005_v18 = vshll.u32 %v11361_v46, 16  ;;  %v4645_v9 = vld [vmem:[#allocation2 + $0xb4] sm:$0xe]  ;;  %vm12992_vm14 = vmmov %vm12912_vm0 }
 0x52f   : > { %v7793_v46 = vrot.slane %v4645_v9, 9 }
 0x530   : > { %v5165_v7 = vpop.f32.mrf.mxu1  ;;  %v5388_v2 = vpop.f32.mrf.mxu2 }
 0x531   : > { %v5386_v5 = vadd.f32 %v5385_v42, %v5165_v7  ;;  %v5576_v42 = vsel %vm8338_vm15, %v7792_v38, %v5575_v23  ;;  %v5618_v7 = vunpack.c.l.b16 %v5579_v48  ;;  %v4992_v23 = vor.u32 %v4991_v30, %v4988_v15 }
 0x532   : > { %v11379_v40 = vpop.f32.mrf.mxu0  ;;  %v5617_v55 = vunpack.c.l.b16 %v5576_v42  ;;  %v4606_v42 = vld [vmem:[#allocation2 + $0xb4] sm:$0xf] }
 0x533   : > { %v11377_v44 = vadd.f32 %v5719_v8, %v5386_v5  ;;  %12973 = vst [vmem:[#allocation5_spill] sm:$0xff] %v11379_v40  ;;  %v4997_v8 = vrot.slane %v4995_v24, 5  ;;  %v4993_v30 = vrot.slane %v4992_v23, 4  ;;  %v5013_v23 = vshll.u32 %v4606_v42, 16 }
 0x534   : > { %v5724_v19 = vpop.f32.mrf.mxu3  ;;  %v11387_v40 = vpack.c.b16 %v5618_v7, %v5617_v55 }
 0x535   : > { %12972 = vst [vmem:[#allocation3_spill] sm:$0xff] %v11377_v44  ;;  %v11385_v44 = vpack.c.b16 %v5062_v25, %v5061_v43  ;;  %v5002_v0 = vor.u32 %v5001_v11, %v4997_v8  ;;  %v5007_v43 = vrot.slane %v5005_v18, 5  ;;  %v5010_v11 = vshrl.u32 %v4606_v42, 16 }
 0x536   : > { %12975 = vst [vmem:[#allocation19_spill] sm:$0xff] %v11387_v40 }
 0x537   : > { %12974 = vst [vmem:[#allocation6_spill] sm:$0xff] %v11385_v44  ;;  %v5003_v25 = vrot.slane %v5002_v0, 4 }
 0x538   : > { %v5168_v1 = vpop.f32.mrf.mxu1  ;;  %v5390_v57 = vpop.f32.mrf.mxu2 }
 0x539   : > { %v5389_v5 = vadd.f32 %v5388_v2, %v5168_v1  ;;  %7809 = vmatmul.msk.bf16.gmra.mxu3 %vm12912_vm0, %v11387_v40  ;;  %v5582_v2 = vrot.slane %v4607_v35, 5  ;;  %v4998_v1 = vsel %vm8403_vm6, %v4993_v30, %v4997_v8  ;;  %v5015_v40 = vrot.slane %v5013_v23, 5 }
 0x53a   : > { %v11396_v48 = vpop.f32.mrf.mxu0  ;;  %v5063_v9 = vunpack.c.l.b16 %v4998_v1  ;;  %v5023_v8 = vshrl.u32 %v4607_v35, 16 }
 0x53b   : > { %v11389_v38 = vadd.f32 %v5722_v22, %v5389_v5  ;;  %7695 = vmatmul.msk.bf16.gmra.mxu1 %vm12977_vm5, %v11385_v44  ;;  %12978 = vst [vmem:[#allocation4_spill] sm:$0xff] %v11396_v48  ;;  %v5585_v22 = vrot.slane %v4627_v20, 5  ;;  %v5584_v7 = vrot.slane %v5582_v2, 4  ;;  %v5583_v18 = vsel %vm8338_vm15, %v7793_v46, %v5582_v2  ;;  %vm12993_vm5 = vmmov %vm12912_vm0 }
 0x53c   : > { %v5727_v37 = vpop.f32.mrf.mxu3  ;;  %v5019_v44 = vshll.u32 %v4607_v35, 16  ;;  %v5025_v46 = vrot.slane %v5023_v8, 4  ;;  %v5029_v35 = vshll.u32 %v4627_v20, 16  ;;  %v7867_v20 = vld [vmem:[%s12534_s6 + $0xc] sm:$0x3] }
 0x53d   : > { %12976 = vst [vmem:[#allocation21_spill] sm:$0xff] %v11389_v38  ;;  %7829 = vmatmul.msk.bf16.gmra.mxu0 %vm12979_vm13, %v11398_v51  ;;  %7776 = vmatmul.msk.bf16.gmra.mxu2 %vm12980_vm11, %v11398_v51  ;;  %v5586_v5 = vsel %vm8338_vm15, %v5584_v7, %v5585_v22  ;;  %v5008_v38 = vsel %vm8403_vm6, %v5003_v25, %v5007_v43  ;;  %v5619_v7 = vunpack.c.l.b16 %v5583_v18  ;;  %v6251_v18 = vsel %vm12988_vm2, %v7867_v20, 0  ;;  %vm12994_vm13 = vmmov %vm12912_vm0 }
 0x53e   : > { %v5064_v22 = vunpack.c.l.b16 %v5008_v38  ;;  %v5021_v2 = vrot.slane %v5019_v44, 5  ;;  %v7888_v38 = vld [vmem:[%s12534_s6 + $0xe] sm:$0x3]  ;;  %v5031_v23 = vrot.slane %v5029_v35, 5  ;;  %6260 = vmatpush.bf16.msra.mxu3 %v6251_v18  ;;  %vm12995_vm11 = vmmov %vm12912_vm0 }
 0x53f   : > { %vm13004_vm2 = vmmov %vm12912_vm0 }
 0x540   : > { %v5170_v24 = vpop.f32.mrf.mxu1  ;;  %v5393_v55 = vpop.f32.mrf.mxu2 }
 0x541   : > { %v5391_v15 = vadd.f32 %v5390_v57, %v5170_v24  ;;  %v5620_v57 = vunpack.c.l.b16 %v5586_v5  ;;  %v5012_v24 = vrot.slane %v5010_v11, 4  ;;  %v6407_v5 = vsel %vm12985_vm10, %v7888_v38, 0  ;;  %vm12999_vm10 = vmmov %vm12912_vm0 }
 0x542   : > { %v11414_v30 = vpop.f32.mrf.mxu0  ;;  %v5026_v11 = vor.u32 %v5025_v46, %v5021_v2  ;;  %6416 = vmatpush.bf16.msra.mxu0 %v6407_v5 }
 0x543   : > { %v11408_v48 = vadd.f32 %v5724_v19, %v5391_v15  ;;  %v11416_v15 = vpack.c.b16 %v5064_v22, %v5063_v9  ;;  %v5016_v25 = vor.u32 %v5015_v40, %v5012_v24 }
 0x544   : > { %v5729_v0 = vpop.f32.mrf.mxu3  ;;  %v5027_v22 = vrot.slane %v5026_v11, 4  ;;  %v8096_v11 = vld [vmem:[#allocation2 + $0x18] sm:$0xff] }
 0x545   : > { %12981 = vst [vmem:[#allocation7_spill] sm:$0xff] %v11408_v48  ;;  %v11418_v48 = vpack.c.b16 %v5620_v57, %v5619_v7  ;;  %v5017_v44 = vrot.slane %v5016_v25, 4 }
 0x547   : > { %12982 = vst [vmem:[#allocation8_spill] sm:$0xff] %v11418_v48  ;;  %v5022_v8 = vsel %vm8403_vm6, %v5017_v44, %v5021_v2 }
 0x548   : > { %v5173_v42 = vpop.f32.mrf.mxu1  ;;  %v5395_v43 = vpop.f32.mrf.mxu2  ;;  %v5065_v25 = vunpack.c.l.b16 %v5022_v8 }
 0x549   : > { %v5394_v19 = vadd.f32 %v5393_v55, %v5173_v42  ;;  %7810 = vmatmul.msk.bf16.gmra.mxu3 %vm12984_vm8, %v11418_v48  ;;  %v11429_v55 = vld [vmem:[#allocation2 + $0xb4] sm:$0xff]  ;;  %v5032_v42 = vsel %vm8403_vm6, %v5027_v22, %v5031_v23  ;;  %vm12998_vm8 = vmmov %vm12912_vm0 }
 0x54a   : > { %v11440_v9 = vpop.f32.mrf.mxu0 }
 0x54b   : > { %v11420_v1 = vadd.f32 %v5727_v37, %v5394_v19  ;;  %7696 = vmatmul.msk.bf16.gmra.mxu1 %vm12983_vm4, %v11416_v15  ;;  %v7906_v19 = vld [vmem:[%s12534_s6 + $0x10] sm:$0x3]  ;;  %vm12996_vm4 = vmmov %vm12912_vm0 }
 0x54c   : > { %v5732_v40 = vpop.f32.mrf.mxu3  ;;  %v6548_v46 = vsel %vm12989_vm7, %v7906_v19, 0  ;;  %vm13005_vm7 = vmmov %vm12912_vm0 }
 0x54d   : > { %7830 = vmatmul.msk.bf16.gmra.mxu0 %vm12986_vm3, %v11429_v55  ;;  %7777 = vmatmul.msk.bf16.gmra.mxu2 %vm12987_vm1, %v11429_v55  ;;  %vm13000_vm3 = vmmov %vm12912_vm0 }
 0x54e   : > { %6557 = vmatpush.bf16.msra.mxu1 %v6548_v46  ;;  %vm13001_vm1 = vmmov %vm12912_vm0 }
 0x550   : > { %v5175_v37 = vpop.f32.mrf.mxu1  ;;  %v5398_v24 = vpop.f32.mrf.mxu2 }
 0x551   : > { %v5396_v57 = vadd.f32 %v5395_v43, %v5175_v37  ;;  %v5066_v43 = vunpack.c.l.b16 %v5032_v42  ;;  %v11461_v37 = vld [vmem:[#allocation2 + $0xc0] sm:$0xff] }
 0x553   : > { %v11444_v7 = vadd.f32 %v5729_v0, %v5396_v57  ;;  %v11452_v20 = vpack.c.b16 %v5066_v43, %v5065_v25  ;;  %v11454_v0 = vpop.f32.mrf.mxu0  ;;  %v8097_v43 = vld [vmem:[#allocation2 + $0x24] sm:$0xff] }
 0x554   : > { %v5734_v35 = vpop.f32.mrf.mxu3 }
 0x558   : > { %v5178_v38 = vpop.f32.mrf.mxu1  ;;  %v5400_v2 = vpop.f32.mrf.mxu2 }
 0x559   : > { %v5399_v5 = vadd.f32 %v5398_v24, %v5178_v38  ;;  %7872 = vmatmul.msk.bf16.vlgmr.msra.gmra.mxu3 %vm12991_vm12, %v8096_v11  ;;  %vm13007_vm12 = vmmov %vm12912_vm0 }
 0x55b   : > { %v11456_v44 = vadd.f32 %v5732_v40, %v5399_v5  ;;  %7697 = vmatmul.msk.bf16.gmra.mxu1 %vm12990_vm9, %v11452_v20  ;;  %v11469_v8 = vpop.f32.mrf.mxu0  ;;  %vm13006_vm9 = vmmov %vm12912_vm0 }
 0x55c   : > { %v5737_v23 = vpop.f32.mrf.mxu3 }
 0x55d   : > { %7831 = vmatmul.msk.bf16.gmra.mxu0 %vm12992_vm14, %v11461_v37  ;;  %7851 = vmatmul.msk.bf16.vlgmr.msrb.gmra.mxu2 %vm12993_vm5, %v10988_v45  ;;  %vm13010_vm14 = vmmov %vm12912_vm0 }
 0x55e   : > { %vm13011_vm5 = vmmov %vm12912_vm0 }
 0x560   : > { %v5180_v18 = vpop.f32.mrf.mxu1  ;;  %v5403_v24 = vpop.f32.mrf.mxu2 }
 0x561   : > { %v5401_v57 = vadd.f32 %v5400_v2, %v5180_v18 }
 0x563   : > { %v11467_v40 = vadd.f32 %v5734_v35, %v5401_v57  ;;  %v11476_v38 = vpop.f32.mrf.mxu0 }
 0x564   : > { %v5739_v22 = vpop.f32.mrf.mxu3 }
 0x565   : > { %v5926_v36 = vadd.f32 %v11476_v38, %v11467_v40 }
 0x568   : > { %v5183_v42 = vpop.f32.mrf.mxu1  ;;  %v5405_v25 = vpop.f32.mrf.mxu2 }
 0x569   : > { %v5404_v19 = vadd.f32 %v5403_v24, %v5183_v42  ;;  %7873 = vmatmul.msk.bf16.gmra.mxu3 %vm12994_vm13, %v8097_v43  ;;  %vm13012_vm13 = vmmov %vm12912_vm0 }
 0x56b   : > { %v11471_v46 = vadd.f32 %v5737_v23, %v5404_v19  ;;  %7833 = vmatmul.msk.bf16.vlgmr.msrb.gmra.mxu1 %vm12912_vm0, %v11024_v12  ;;  %v11484_v12 = vpop.f32.mrf.mxu0  ;;  %v8098_v19 = vld [vmem:[#allocation2 + $0x30] sm:$0xff] }
 0x56c   : > { %v5742_v45 = vpop.f32.mrf.mxu3 }
 0x56d   : > { %7889 = vmatmul.msk.bf16.vlgmr.msra.gmra.mxu0 %vm12995_vm11, %v11071_v13  ;;  %7852 = vmatmul.msk.bf16.gmra.mxu2 %vm12996_vm4, %v11049_v16  ;;  %vm13013_vm11 = vcmask 1041408   ;;  %vm13014_vm4 = vmmov %vm12912_vm0 }
 0x570   : > { %v5185_v35 = vpop.f32.mrf.mxu1  ;;  %v5408_v2 = vpop.f32.mrf.mxu2 }
 0x571   : > { %v5406_v5 = vadd.f32 %v5405_v25, %v5185_v35 }
 0x573   : > { %v11482_v11 = vadd.f32 %v5739_v22, %v5406_v5  ;;  %v11495_v5 = vpop.f32.mrf.mxu0 }
 0x574   : > { %v5744_v23 = vpop.f32.mrf.mxu3 }
 0x575   : > { %v5928_v38 = vadd.f32 %v11495_v5, %v11482_v11 }
 0x578   : > { %v5188_v18 = vpop.f32.mrf.mxu1  ;;  %v5410_v24 = vpop.f32.mrf.mxu2 }
 0x579   : > { %v5409_v57 = vadd.f32 %v5408_v2, %v5188_v18  ;;  %7874 = vmatmul.msk.bf16.gmra.mxu3 %vm12999_vm10, %v8098_v19  ;;  %v8099_v19 = vld [vmem:[#allocation2 + $0x3c] sm:$0xff]  ;;  %vm13016_vm10 = vmmov %vm12912_vm0 }
 0x57b   : > { %v11486_v42 = vadd.f32 %v5742_v45, %v5409_v57  ;;  %7834 = vmatmul.msk.bf16.gmra.mxu1 %vm12998_vm8, %v11071_v13  ;;  %vm13015_vm8 = vmmov %vm12912_vm0 }
 0x57c   : > { %v5747_v43 = vpop.f32.mrf.mxu3 }
 0x57d   : > { %12997 = vst [vmem:[#allocation31_spill] sm:$0xff] %v11486_v42  ;;  %7890 = vmatmul.msk.bf16.gmra.mxu0 %vm13000_vm3, %v11094_v61  ;;  %7853 = vmatmul.msk.bf16.gmra.mxu2 %vm13001_vm1, %v11073_v56  ;;  %v11504_v56 = vpop.f32.mrf.mxu0  ;;  %vm13017_vm3 = vmmov %vm12912_vm0 }
 0x57e   : > { %vm13018_vm1 = vmmov %vm12912_vm0 }
 0x580   : > { %v5190_v22 = vpop.f32.mrf.mxu1  ;;  %v5413_v35 = vpop.f32.mrf.mxu2 }
 0x581   : > { %v5411_v25 = vadd.f32 %v5410_v24, %v5190_v22 }
 0x583   : > { %v11497_v45 = vadd.f32 %v5744_v23, %v5411_v25 }
 0x584   : > { %v5749_v2 = vpop.f32.mrf.mxu3 }
 0x585   : > { %13002 = vst [vmem:[#allocation25_spill] sm:$0xff] %v11497_v45  ;;  %v8100_v45 = vld [vmem:[#allocation2 + $0x48] sm:$0xff] }
 0x588   : > { %v5193_v18 = vpop.f32.mrf.mxu1  ;;  %v5415_v57 = vpop.f32.mrf.mxu2 }
 0x589   : > { %v5414_v13 = vadd.f32 %v5413_v35, %v5193_v18  ;;  %7875 = vmatmul.msk.bf16.gmra.mxu3 %vm13005_vm7, %v8099_v19  ;;  %v11512_v18 = vpop.f32.mrf.mxu0  ;;  %vm13020_vm7 = vmmov %vm12912_vm0 }
 0x58b   : > { %v11499_v42 = vadd.f32 %v5747_v43, %v5414_v13  ;;  %7835 = vmatmul.msk.bf16.gmra.mxu1 %vm13004_vm2, %v11094_v61  ;;  %vm13019_vm2 = vmmov %vm12912_vm0 }
 0x58c   : > { %v5752_v24 = vpop.f32.mrf.mxu3  ;;  %v13105_v11 = vld [vmem:[#allocation25_spill] sm:$0xff] }
 0x58d   : > { %13003 = vst [vmem:[#allocation28_spill] sm:$0xff] %v11499_v42  ;;  %7891 = vmatmul.msk.bf16.gmra.mxu0 %vm13006_vm9, %v11123_v33  ;;  %7854 = vmatmul.msk.bf16.gmra.mxu2 %vm13007_vm12, %v11096_v63  ;;  %vm13021_vm9 = vmmov %vm12912_vm0  ;;  %v5930_v5 = vadd.f32 %v11512_v18, %v13105_v11 }
 0x58e   : > { %vm13023_vm12 = vmmov %vm12912_vm0 }
 0x590   : > { %v5195_v23 = vpop.f32.mrf.mxu1  ;;  %v5418_v25 = vpop.f32.mrf.mxu2 }
 0x591   : > { %v5416_v22 = vadd.f32 %v5415_v57, %v5195_v23  ;;  %v11527_v23 = vpop.f32.mrf.mxu0 }
 0x593   : > { %v11510_v43 = vadd.f32 %v5749_v2, %v5416_v22  ;;  %v6912_v2 = vld [vmem:[%s12535_s7] sm:$0x3] }
 0x594   : > { %v5754_v35 = vpop.f32.mrf.mxu3 }
 0x595   : > { %13008 = vst [vmem:[#allocation38_spill] sm:$0xff] %v11510_v43 }
 0x598   : > { %v5198_v61 = vpop.f32.mrf.mxu1  ;;  %v5420_v19 = vpop.f32.mrf.mxu2 }
 0x599   : > { %v5419_v13 = vadd.f32 %v5418_v25, %v5198_v61  ;;  %7876 = vmatmul.msk.bf16.gmra.mxu3 %vm13011_vm5, %v8100_v45  ;;  %v11531_v43 = vpop.f32.mrf.mxu0  ;;  %vm13025_vm5 = vmmov %vm12912_vm0 }
 0x59b   : > { %v11514_v42 = vadd.f32 %v5752_v24, %v5419_v13  ;;  %7836 = vmatmul.msk.bf16.gmra.mxu1 %vm13010_vm14, %v11123_v33  ;;  %v7042_v24 = vsel %vm13013_vm11, %v6912_v2, 0  ;;  %vm13024_vm14 = vmmov %vm12912_vm0 }
 0x59c   : > { %v5757_v63 = vpop.f32.mrf.mxu3  ;;  %7051 = vmatpush.bf16.msra.mxu2 %v7042_v24  ;;  %vm13029_vm11 = vmmov %vm12912_vm0 }
 0x59d   : > { %13009 = vst [vmem:[#allocation23_spill] sm:$0xff] %v11514_v42  ;;  %7892 = vmatmul.msk.bf16.gmra.mxu0 %vm12912_vm0, %v11146_v3  ;;  %7855 = vmatmul.msk.bf16.gmra.mxu2 %vm13012_vm13, %v11125_v29  ;;  %vm13028_vm13 = vmmov %vm12912_vm0 }
 0x5a0   : > { %v5200_v57 = vpop.f32.mrf.mxu1  ;;  %v5423_v22 = vpop.f32.mrf.mxu2 }
 0x5a1   : > { %v5421_v33 = vadd.f32 %v5420_v19, %v5200_v57 }
 0x5a3   : > { %v11529_v45 = vadd.f32 %v5754_v35, %v5421_v33 }
 0x5a4   : > { %v5759_v25 = vpop.f32.mrf.mxu3 }
 0x5a8   : > { %v5203_v61 = vpop.f32.mrf.mxu1  ;;  %v5425_v42 = vpop.f32.mrf.mxu2 }
 0x5a9   : > { %v5424_v13 = vadd.f32 %v5423_v22, %v5203_v61  ;;  %7877 = vmatmul.msk.bf16.gmra.mxu3 %vm13015_vm8, %v11176_v53  ;;  %vm13031_vm8 = vmmov %vm12912_vm0 }
 0x5ab   : > { %v11533_v29 = vadd.f32 %v5757_v63, %v5424_v13  ;;  %7837 = vmatmul.msk.bf16.gmra.mxu1 %vm13014_vm4, %v11146_v3  ;;  %v11545_v63 = vpop.f32.mrf.mxu0  ;;  %vm13030_vm4 = vmmov %vm12912_vm0 }
 0x5ac   : > { %v5762_v2 = vpop.f32.mrf.mxu3 }
 0x5ad   : > { %7893 = vmatmul.msk.bf16.gmra.mxu0 %vm13016_vm10, %v11168_v60  ;;  %7856 = vmatmul.msk.bf16.gmra.mxu2 %vm13017_vm3, %v11148_v14  ;;  %vm13033_vm10 = vmmov %vm12912_vm0 }
 0x5ae   : > { %vm13034_vm3 = vmmov %vm12912_vm0 }
 0x5b0   : > { %v5205_v35 = vpop.f32.mrf.mxu1  ;;  %v5428_v57 = vpop.f32.mrf.mxu2 }
 0x5b1   : > { %v5426_v19 = vadd.f32 %v5425_v42, %v5205_v35 }
 0x5b3   : > { %v11543_v24 = vadd.f32 %v5759_v25, %v5426_v19  ;;  %v11553_v14 = vpop.f32.mrf.mxu0 }
 0x5b4   : > { %v5764_v33 = vpop.f32.mrf.mxu3 }
 0x5b8   : > { %v5208_v22 = vpop.f32.mrf.mxu1  ;;  %v5430_v61 = vpop.f32.mrf.mxu2 }
 0x5b9   : > { %v5429_v3 = vadd.f32 %v5428_v57, %v5208_v22  ;;  %7878 = vmatmul.msk.bf16.gmra.mxu3 %vm13019_vm2, %v11202_v28  ;;  %vm13037_vm2 = vmmov %vm12912_vm0 }
 0x5bb   : > { %v11547_v13 = vadd.f32 %v5762_v2, %v5429_v3  ;;  %7838 = vmatmul.msk.bf16.gmra.mxu1 %vm13018_vm1, %v11168_v60  ;;  %v11561_v60 = vpop.f32.mrf.mxu0  ;;  %vm13036_vm1 = vmmov %vm12912_vm0 }
 0x5bc   : > { %v5767_v53 = vpop.f32.mrf.mxu3 }
 0x5bd   : > { %7894 = vmatmul.msk.bf16.gmra.mxu0 %vm13020_vm7, %v11192_v39  ;;  %7857 = vmatmul.msk.bf16.gmra.mxu2 %vm13021_vm9, %v11170_v27  ;;  %vm13039_vm7 = vmmov %vm12912_vm0 }
 0x5be   : > { %vm13040_vm9 = vmmov %vm12912_vm0 }
 0x5c0   : > { %v5210_v42 = vpop.f32.mrf.mxu1  ;;  %v5433_v35 = vpop.f32.mrf.mxu2 }
 0x5c1   : > { %v5431_v25 = vadd.f32 %v5430_v61, %v5210_v42 }
 0x5c3   : > { %v11559_v2 = vadd.f32 %v5764_v33, %v5431_v25  ;;  %v11573_v25 = vpop.f32.mrf.mxu0 }
 0x5c4   : > { %v5769_v19 = vpop.f32.mrf.mxu3 }
 0x5c8   : > { %v5213_v57 = vpop.f32.mrf.mxu1  ;;  %v5435_v28 = vpop.f32.mrf.mxu2 }
 0x5c9   : > { %v5434_v22 = vadd.f32 %v5433_v35, %v5213_v57  ;;  %7879 = vmatmul.msk.bf16.gmra.mxu3 %vm13024_vm14, %v11238_v54  ;;  %vm13046_vm14 = vmmov %vm12912_vm0 }
 0x5cb   : > { %v11563_v3 = vadd.f32 %v5767_v53, %v5434_v22  ;;  %7839 = vmatmul.msk.bf16.gmra.mxu1 %vm13023_vm12, %v11192_v39  ;;  %v11583_v54 = vpop.f32.mrf.mxu0  ;;  %vm13042_vm12 = vmmov %vm12912_vm0 }
 0x5cc   : > { %v5772_v27 = vpop.f32.mrf.mxu3 }
 0x5cd   : > { %13022 = vst [vmem:[#allocation40_spill] sm:$0xff] %v11563_v3  ;;  %7895 = vmatmul.msk.bf16.gmra.mxu0 %vm13025_vm5, %v11227_v10  ;;  %7858 = vmatmul.msk.bf16.gmra.mxu2 %vm12912_vm0, %v11194_v34  ;;  %vm13050_vm5 = vmmov %vm12912_vm0 }
 0x5d0   : > { %v5215_v33 = vpop.f32.mrf.mxu1  ;;  %v5438_v42 = vpop.f32.mrf.mxu2 }
 0x5d1   : > { %v5436_v61 = vadd.f32 %v5435_v28, %v5215_v33 }
 0x5d3   : > { %v11575_v53 = vadd.f32 %v5769_v19, %v5436_v61 }
 0x5d4   : > { %v5774_v35 = vpop.f32.mrf.mxu3 }
 0x5d5   : > { %13026 = vst [vmem:[#allocation41_spill] sm:$0xff] %v11575_v53 }
 0x5d8   : > { %v5218_v57 = vpop.f32.mrf.mxu1  ;;  %v5440_v22 = vpop.f32.mrf.mxu2 }
 0x5d9   : > { %v5439_v39 = vadd.f32 %v5438_v42, %v5218_v57  ;;  %7880 = vmatmul.msk.bf16.gmra.mxu3 %vm13029_vm11, %v11268_v52  ;;  %v11591_v57 = vpop.f32.mrf.mxu0  ;;  %vm13059_vm11 = vmmov %vm12912_vm0 }
 0x5db   : > { %v11577_v3 = vadd.f32 %v5772_v27, %v5439_v39  ;;  %7840 = vmatmul.msk.bf16.gmra.mxu1 %vm13028_vm13, %v11227_v10  ;;  %v5911_v10 = vadd.f32 %v11225_v49, %v11211_v6  ;;  %vm13055_vm13 = vmmov %vm12912_vm0 }
 0x5dc   : > { %v6262_v28 = vpop.f32.mrf.mxu3 }
 0x5dd   : > { %13027 = vst [vmem:[#allocation42_spill] sm:$0xff] %v11577_v3  ;;  %7896 = vmatmul.msk.bf16.gmra.mxu0 %vm13030_vm4, %v11256_v47  ;;  %7859 = vmatmul.msk.bf16.gmra.mxu2 %vm13031_vm8, %v11231_v59  ;;  %vm13063_vm4 = vmmov %vm12912_vm0 }
 0x5de   : > { %vm13064_vm8 = vmmov %vm12912_vm0 }
 0x5e0   : > { %v5220_v19 = vpop.f32.mrf.mxu1  ;;  %v6128_v61 = vpop.f32.mrf.mxu2 }
 0x5e1   : > { %v5441_v33 = vadd.f32 %v5440_v22, %v5220_v19  ;;  %v5912_v19 = vadd.f32 %v11246_v4, %v11229_v62  ;;  %v11607_v49 = vpop.f32.mrf.mxu0 }
 0x5e3   : > { %v11589_v27 = vadd.f32 %v5774_v35, %v5441_v33 }
 0x5e4   : > { %v6264_v42 = vpop.f32.mrf.mxu3 }
 0x5e5   : > { %13032 = vst [vmem:[#allocation43_spill] sm:$0xff] %v11589_v27 }
 0x5e8   : > { %v5987_v52 = vpop.f32.mrf.mxu1  ;;  %v6130_v3 = vpop.f32.mrf.mxu2 }
 0x5e9   : > { %v6067_v39 = vadd.f32 %v5987_v52, %v5911_v10  ;;  %7881 = vmatmul.msk.bf16.gmra.mxu3 %vm13034_vm3, %v11298_v50  ;;  %vm13071_vm3 = vmmov %vm12912_vm0 }
 0x5eb   : > { %v6208_v53 = vadd.f32 %v6128_v61, %v6067_v39  ;;  %7841 = vmatmul.msk.bf16.gmra.mxu1 %vm13033_vm10, %v11256_v47  ;;  %vm13067_vm10 = vmmov %vm12912_vm0 }
 0x5ec   : > { %v6267_v35 = vpop.f32.mrf.mxu3 }
 0x5ed   : > { %v11599_v22 = vadd.f32 %v6262_v28, %v6208_v53  ;;  %7897 = vmatmul.msk.bf16.gmra.mxu0 %vm13036_vm1, %v11284_v17  ;;  %7860 = vmatmul.msk.bf16.gmra.mxu2 %vm13037_vm2, %v11260_v32  ;;  %v5913_v53 = vadd.f32 %v11266_v26, %v11244_v21  ;;  %v13044_v21 = vld [vmem:[#allocation30_spill] sm:$0xff]  ;;  %vm13076_vm1 = vmmov %vm12912_vm0 }
 0x5ee   : > { %vm13077_vm2 = vmmov %vm12912_vm0 }
 0x5ef   : > { %13035 = vst [vmem:[#allocation44_spill] sm:$0xff] %v11599_v22  ;;  %v11613_v22 = vpop.f32.mrf.mxu0 }
 0x5f0   : > { %v5989_v6 = vpop.f32.mrf.mxu1  ;;  %v6133_v47 = vpop.f32.mrf.mxu2 }
 0x5f1   : > { %v6068_v33 = vadd.f32 %v5989_v6, %v5912_v19  ;;  %v13045_v19 = vld [vmem:[#allocation14_spill] sm:$0xff] }
 0x5f3   : > { %v6209_v61 = vadd.f32 %v6130_v3, %v6068_v33 }
 0x5f4   : > { %v6269_v50 = vpop.f32.mrf.mxu3 }
 0x5f5   : > { %v11609_v10 = vadd.f32 %v6264_v42, %v6209_v61  ;;  %v13043_v42 = vld [vmem:[#allocation37_spill] sm:$0xff] }
 0x5f6   : > { %v5914_v26 = vadd.f32 %v13044_v21, %v13043_v42  ;;  %v13051_v42 = vld [vmem:[#allocation27_spill] sm:$0xff] }
 0x5f7   : > { %13038 = vst [vmem:[#allocation45_spill] sm:$0xff] %v11609_v10 }
 0x5f8   : > { %v5992_v28 = vpop.f32.mrf.mxu1  ;;  %v6135_v39 = vpop.f32.mrf.mxu2 }
 0x5f9   : > { %v6069_v52 = vadd.f32 %v5992_v28, %v5913_v53  ;;  %7882 = vmatmul.msk.bf16.gmra.mxu3 %vm13040_vm9, %v11332_v31  ;;  %v13049_v28 = vld [vmem:[#allocation32_spill] sm:$0xff]  ;;  %vm13084_vm9 = vmmov %vm12912_vm0 }
 0x5fb   : > { %v6210_v62 = vadd.f32 %v6133_v47, %v6069_v52  ;;  %7842 = vmatmul.msk.bf16.gmra.mxu1 %vm13039_vm7, %v11284_v17  ;;  %v11627_v17 = vpop.f32.mrf.mxu0  ;;  %vm13080_vm7 = vmmov %vm12912_vm0 }
 0x5fc   : > { %v6272_v3 = vpop.f32.mrf.mxu3 }
 0x5fd   : > { %v11619_v4 = vadd.f32 %v6267_v35, %v6210_v62  ;;  %7898 = vmatmul.msk.bf16.gmra.mxu0 %vm13042_vm12, %v11317_v41  ;;  %7861 = vmatmul.msk.bf16.gmra.mxu2 %vm13046_vm14, %v13045_v19  ;;  %v13048_v35 = vld [vmem:[#allocation36_spill] sm:$0xff]  ;;  %vm13089_vm12 = vmmov %vm12912_vm0 }
 0x5fe   : > { %v5915_v52 = vadd.f32 %v13049_v28, %v13048_v35  ;;  %v13058_v35 = vld [vmem:[#allocation24_spill] sm:$0xff]  ;;  %vm13090_vm14 = vmmov %vm12912_vm0 }
 0x5ff   : > { %13041 = vst [vmem:[#allocation46_spill] sm:$0xff] %v11619_v4 }
 0x600   : > { %v5994_v6 = vpop.f32.mrf.mxu1  ;;  %v6138_v47 = vpop.f32.mrf.mxu2 }
 0x601   : > { %v6070_v33 = vadd.f32 %v5994_v6, %v5914_v26  ;;  %v13056_v6 = vld [vmem:[#allocation9_spill] sm:$0xff] }
 0x603   : > { %v6211_v61 = vadd.f32 %v6135_v39, %v6070_v33  ;;  %v11639_v26 = vpop.f32.mrf.mxu0  ;;  %v13057_v33 = vld [vmem:[#allocation10_spill] sm:$0xff] }
 0x604   : > { %v6274_v31 = vpop.f32.mrf.mxu3  ;;  %13053 = vst [vmem:[#allocation36_spill] sm:$0xff] %v11639_v26 }
 0x605   : > { %v11629_v53 = vadd.f32 %v6269_v50, %v6211_v61  ;;  %v13054_v50 = vld [vmem:[#allocation33_spill] sm:$0xff]  ;;  %v5916_v61 = vadd.f32 %v13057_v33, %v13056_v6 }
 0x606   : > { %v13068_v33 = vld [vmem:[#allocation17_spill] sm:$0xff] }
 0x607   : > { %13047 = vst [vmem:[#allocation37_spill] sm:$0xff] %v11629_v53 }
 0x608   : > { %v5997_v62 = vpop.f32.mrf.mxu1  ;;  %v6140_v10 = vpop.f32.mrf.mxu2 }
 0x609   : > { %v6071_v4 = vadd.f32 %v5997_v62, %v5915_v52  ;;  %7883 = vmatmul.msk.bf16.gmra.mxu3 %vm12912_vm0, %v13051_v42  ;;  %v13062_v62 = vld [vmem:[#allocation11_spill] sm:$0xff] }
 0x60b   : > { %v6212_v32 = vadd.f32 %v6138_v47, %v6071_v4  ;;  %7843 = vmatmul.msk.bf16.gmra.mxu1 %vm13050_vm5, %v11317_v41  ;;  %v11651_v53 = vpop.f32.mrf.mxu0  ;;  %vm13092_vm5 = vmmov %vm12912_vm0 }
 0x60c   : > { %v6277_v39 = vpop.f32.mrf.mxu3 }
 0x60d   : > { %v11637_v21 = vadd.f32 %v6272_v3, %v6212_v32  ;;  %7899 = vmatmul.msk.bf16.gmra.mxu0 %vm13055_vm13, %v13054_v50  ;;  %7862 = vmatmul.msk.bf16.gmra.mxu2 %vm13059_vm11, %v13058_v35  ;;  %v13061_v3 = vld [vmem:[#allocation34_spill] sm:$0xff]  ;;  %vm13095_vm13 = vmmov %vm12912_vm0 }
 0x60e   : > { %v5917_v42 = vadd.f32 %v13062_v62, %v13061_v3  ;;  %vm13096_vm11 = vmmov %vm12912_vm0 }
 0x60f   : > { %13052 = vst [vmem:[#allocation30_spill] sm:$0xff] %v11637_v21 }
 0x610   : > { %v5999_v4 = vpop.f32.mrf.mxu1  ;;  %v6143_v41 = vpop.f32.mrf.mxu2 }
 0x611   : > { %v6072_v47 = vadd.f32 %v5999_v4, %v5916_v61  ;;  %v13069_v61 = vld [vmem:[#allocation15_spill] sm:$0xff] }
 0x612   : > { %v5918_v4 = vadd.f32 %v13069_v61, %v13068_v33 }
 0x613   : > { %v6213_v28 = vadd.f32 %v6140_v10, %v6072_v47  ;;  %v13070_v47 = vld [vmem:[#allocation16_spill] sm:$0xff] }
 0x614   : > { %v6279_v32 = vpop.f32.mrf.mxu3 }
 0x615   : > { %v11647_v52 = vadd.f32 %v6274_v31, %v6213_v28  ;;  %v13066_v31 = vld [vmem:[#allocation6_spill] sm:$0xff]  ;;  %v11665_v28 = vpop.f32.mrf.mxu0 }
 0x616   : > { %13072 = vst [vmem:[#allocation33_spill] sm:$0xff] %v11665_v28 }
 0x617   : > { %13060 = vst [vmem:[#allocation32_spill] sm:$0xff] %v11647_v52 }
 0x618   : > { %v6002_v21 = vpop.f32.mrf.mxu1  ;;  %v6145_v26 = vpop.f32.mrf.mxu2 }
 0x619   : > { %v6073_v19 = vadd.f32 %v6002_v21, %v5917_v42  ;;  %7884 = vmatmul.msk.bf16.gmra.mxu3 %vm13064_vm8, %v11398_v51  ;;  %vm13099_vm8 = vmmov %vm12912_vm0 }
 0x61b   : > { %v6214_v27 = vadd.f32 %v6143_v41, %v6073_v19  ;;  %7844 = vmatmul.msk.bf16.gmra.mxu1 %vm13063_vm4, %v13054_v50  ;;  %vm13098_vm4 = vmmov %vm12912_vm0 }
 0x61c   : > { %v6282_v10 = vpop.f32.mrf.mxu3 }
 0x61d   : > { %v11657_v6 = vadd.f32 %v6277_v39, %v6214_v27  ;;  %7900 = vmatmul.msk.bf16.gmra.mxu0 %vm13067_vm10, %v13066_v31  ;;  %7863 = vmatmul.msk.bf16.gmra.mxu2 %vm13071_vm3, %v13070_v47  ;;  %v13074_v27 = vld [vmem:[#allocation20_spill] sm:$0xff]  ;;  %v13075_v39 = vld [vmem:[#allocation35_spill] sm:$0xff]  ;;  %v11675_v33 = vpop.f32.mrf.mxu0  ;;  %vm13100_vm10 = vmmov %vm12912_vm0 }
 0x61e   : > { %v5919_v62 = vadd.f32 %v13075_v39, %v13074_v27  ;;  %13078 = vst [vmem:[#allocation10_spill] sm:$0xff] %v11675_v33  ;;  %v4608_v27 = vld [vmem:[#allocation2 + $0xc0] sm:$0xf]  ;;  %vm13104_vm3 = vmmov %vm12912_vm0 }
 0x61f   : > { %13065 = vst [vmem:[#allocation27_spill] sm:$0xff] %v11657_v6 }
 0x620   : > { %v6004_v21 = vpop.f32.mrf.mxu1  ;;  %v6148_v41 = vpop.f32.mrf.mxu2 }
 0x621   : > { %v6074_v19 = vadd.f32 %v6004_v21, %v5918_v4  ;;  %v13082_v4 = vld [vmem:[#allocation5_spill] sm:$0xff] }
 0x623   : > { %v6215_v50 = vadd.f32 %v6145_v26, %v6074_v19  ;;  %v13083_v19 = vld [vmem:[#allocation19_spill] sm:$0xff] }
 0x624   : > { %v6284_v51 = vpop.f32.mrf.mxu3 }
 0x625   : > { %v11667_v3 = vadd.f32 %v6279_v32, %v6215_v50  ;;  %v13081_v32 = vld [vmem:[#allocation3_spill] sm:$0xff] }
 0x626   : > { %v5920_v21 = vadd.f32 %v13082_v4, %v13081_v32 }
 0x627   : > { %13073 = vst [vmem:[#allocation9_spill] sm:$0xff] %v11667_v3  ;;  %v13088_v3 = vld [vmem:[#allocation4_spill] sm:$0xff] }
 0x628   : > { %v6007_v42 = vpop.f32.mrf.mxu1  ;;  %v6150_v52 = vpop.f32.mrf.mxu2 }
 0x629   : > { %v6075_v6 = vadd.f32 %v6007_v42, %v5919_v62  ;;  %7885 = vmatmul.msk.bf16.gmra.mxu3 %vm13077_vm2, %v11429_v55  ;;  %v5947_v62 = vshll.u32 %v4608_v27, 16  ;;  %v11687_v42 = vpop.f32.mrf.mxu0  ;;  %vm13110_vm2 = vmmov %vm12912_vm0 }
 0x62a   : > { %13086 = vst [vmem:[#allocation6_spill] sm:$0xff] %v11687_v42 }
 0x62b   : > { %v6216_v35 = vadd.f32 %v6148_v41, %v6075_v6  ;;  %7845 = vmatmul.msk.bf16.gmra.mxu1 %vm13076_vm1, %v13066_v31  ;;  %vm13108_vm1 = vmmov %vm12912_vm0 }
 0x62c   : > { %v6287_v26 = vpop.f32.mrf.mxu3 }
 0x62d   : > { %v11677_v61 = vadd.f32 %v6282_v10, %v6216_v35  ;;  %7901 = vmatmul.msk.bf16.gmra.mxu0 %vm13080_vm7, %v11416_v15  ;;  %7864 = vmatmul.msk.bf16.gmra.mxu2 %vm13084_vm9, %v13083_v19  ;;  %v4609_v35 = vld [vmem:[#allocation2 + $0xc4] sm:$0xf]  ;;  %v5944_v10 = vshrl.u32 %v4608_v27, 16  ;;  %vm13113_vm7 = vmmov %vm12912_vm0 }
 0x62e   : > { %v5953_v33 = vshll.u32 %v4609_v35, 16  ;;  %v5957_v19 = vshrl.u32 %v4609_v35, 16  ;;  %vm13114_vm9 = vmmov %vm12912_vm0 }
 0x62f   : > { %13079 = vst [vmem:[#allocation34_spill] sm:$0xff] %v11677_v61  ;;  %v13087_v61 = vld [vmem:[#allocation21_spill] sm:$0xff] }
 0x630   : > { %v6009_v6 = vpop.f32.mrf.mxu1  ;;  %v6153_v31 = vpop.f32.mrf.mxu2  ;;  %v5921_v47 = vadd.f32 %v13088_v3, %v13087_v61  ;;  %v5959_v27 = vrot.slane %v5957_v19, 4 }
 0x631   : > { %v6076_v41 = vadd.f32 %v6009_v6, %v5920_v21  ;;  %v5946_v21 = vrot.slane %v5944_v10, 4  ;;  %v5949_v6 = vrot.slane %v5947_v62, 5  ;;  %v6103_v62 = vrot.slane %v4609_v35, 5 }
 0x633   : > { %v6217_v50 = vadd.f32 %v6150_v52, %v6076_v41  ;;  %v4628_v41 = vld [vmem:[#allocation2 + $0xc8] sm:$0x1]  ;;  %v5950_v3 = vor.u32 %v5949_v6, %v5946_v21  ;;  %v6105_v42 = vrot.slane %v6103_v62, 4 }
 0x634   : > { %v6289_v39 = vpop.f32.mrf.mxu3  ;;  %v6106_v21 = vrot.slane %v4628_v41, 5 }
 0x635   : > { %v11685_v55 = vadd.f32 %v6284_v51, %v6217_v50  ;;  %v5955_v50 = vrot.slane %v5953_v33, 5  ;;  %v4646_v33 = vld [vmem:[#allocation2 + $0xc0] sm:$0xe]  ;;  %v5951_v19 = vrot.slane %v5950_v3, 4 }
 0x636   : > { %v6107_v35 = vsel %vm8338_vm15, %v6105_v42, %v6106_v21  ;;  %v8101_v21 = vld [vmem:[#allocation2 + $0xd0] sm:$0xf] }
 0x637   : > { %13085 = vst [vmem:[#allocation11_spill] sm:$0xff] %v11685_v55  ;;  %v7849_v55 = vrot.slane %v4646_v33, 9 }
 0x638   : > { %v6012_v32 = vpop.f32.mrf.mxu1  ;;  %v6155_v28 = vpop.f32.mrf.mxu2 }
 0x639   : > { %v6077_v4 = vadd.f32 %v6012_v32, %v5921_v47  ;;  %7886 = vmatmul.msk.bf16.gmra.mxu3 %vm13090_vm14, %v11461_v37  ;;  %v13093_v47 = vld [vmem:[#allocation7_spill] sm:$0xff]  ;;  %v11703_v37 = vpop.f32.mrf.mxu0  ;;  %v5960_v32 = vor.u32 %v5959_v27, %v5955_v50  ;;  %vm13117_vm14 = vmmov %vm12912_vm0 }
 0x63a   : > { %v5922_v10 = vadd.f32 %v11414_v30, %v13093_v47 }
 0x63b   : > { %v6218_v52 = vadd.f32 %v6153_v31, %v6077_v4  ;;  %7846 = vmatmul.msk.bf16.gmra.mxu1 %vm13089_vm12, %v11416_v15  ;;  %v5963_v31 = vshll.u32 %v4628_v41, 16  ;;  %v5961_v47 = vrot.slane %v5960_v32, 4  ;;  %v5923_v41 = vadd.f32 %v11440_v9, %v11420_v1  ;;  %vm13116_vm12 = vmmov %vm12912_vm0 }
 0x63c   : > { %v6292_v61 = vpop.f32.mrf.mxu3  ;;  %v6111_v32 = vunpack.c.l.b16 %v6107_v35 }
 0x63d   : > { %v11695_v51 = vadd.f32 %v6287_v26, %v6218_v52  ;;  %7902 = vmatmul.msk.bf16.gmra.mxu0 %vm13092_vm5, %v11452_v20  ;;  %7865 = vmatmul.msk.bf16.gmra.mxu2 %vm12912_vm0, %v11418_v48  ;;  %v4610_v52 = vld [vmem:[#allocation2 + $0xcc] sm:$0xf]  ;;  %v5956_v48 = vsel %vm8403_vm6, %v5951_v19, %v5955_v50  ;;  %vm13119_vm5 = vmmov %vm12912_vm0 }
 0x63e   : > { %v6375_v27 = vshrl.u32 %v4610_v52, 16  ;;  %v8042_v50 = vld [vmem:[#allocation2 + $0xcc] sm:$0xff] }
 0x63f   : > { %13091 = vst [vmem:[#allocation17_spill] sm:$0xff] %v11695_v51  ;;  %v5965_v51 = vrot.slane %v5963_v31, 5  ;;  %v5969_v31 = vunpack.c.l.b16 %v5956_v48 }
 0x640   : > { %v6014_v15 = vpop.f32.mrf.mxu1  ;;  %v6158_v4 = vpop.f32.mrf.mxu2  ;;  %v6377_v19 = vrot.slane %v6375_v27, 4  ;;  %v5924_v27 = vadd.f32 %v11454_v0, %v11444_v7 }
 0x641   : > { %v6078_v26 = vadd.f32 %v6014_v15, %v5922_v10  ;;  %v6378_v15 = vshll.u32 %v4610_v52, 16  ;;  %v6388_v52 = vshrl.u32 %v8101_v21, 16 }
 0x643   : > { %v6219_v6 = vadd.f32 %v6155_v28, %v6078_v26  ;;  %v5966_v28 = vsel %vm8403_vm6, %v5961_v47, %v5965_v51  ;;  %v6380_v42 = vrot.slane %v6378_v15, 5  ;;  %v6390_v35 = vrot.slane %v6388_v52, 4 }
 0x644   : > { %v6294_v10 = vpop.f32.mrf.mxu3  ;;  %v5970_v1 = vunpack.c.l.b16 %v5966_v28 }
 0x645   : > { %v11705_v30 = vadd.f32 %v6289_v39, %v6219_v6  ;;  %v6104_v39 = vsel %vm8338_vm15, %v7849_v55, %v6103_v62  ;;  %v6384_v6 = vshll.u32 %v8101_v21, 16  ;;  %v6381_v62 = vor.u32 %v6380_v42, %v6377_v19  ;;  %vm13097_vm15 = vmmov %vm12912_vm0 }
 0x646   : > { %v6110_v51 = vunpack.c.l.b16 %v6104_v39  ;;  %v5971_v58 = vpack.c.b16 %v5970_v1, %v5969_v31  ;;  %v5925_v19 = vadd.f32 %v11469_v8, %v11456_v44 }
 0x647   : > { %13094 = vst [vmem:[#allocation15_spill] sm:$0xff] %v11705_v30  ;;  %v11717_v30 = vpop.f32.mrf.mxu0  ;;  %v6386_v47 = vrot.slane %v6384_v6, 5 }
 0x648   : > { %v6017_v3 = vpop.f32.mrf.mxu1  ;;  %v6160_v33 = vpop.f32.mrf.mxu2  ;;  %v11724_v55 = vpack.c.b16 %v6111_v32, %v6110_v51 }
 0x649   : > { %v6079_v26 = vadd.f32 %v6017_v3, %v5923_v41  ;;  %7887 = vmatmul.msk.bf16.gmra.mxu3 %vm13096_vm11, %v8042_v50  ;;  %v6391_v3 = vor.u32 %v6390_v35, %v6386_v47  ;;  %vm13123_vm11 = vmmov %vm12912_vm0 }
 0x64b   : > { %v6220_v9 = vadd.f32 %v6158_v4, %v6079_v26  ;;  %7847 = vmatmul.msk.bf16.gmra.mxu1 %vm13095_vm13, %v11452_v20  ;;  %v8102_v4 = vld [vmem:[#allocation2 + $0xd4] sm:$0x1]  ;;  %v6392_v0 = vrot.slane %v6391_v3, 4  ;;  %vm13121_vm13 = vmmov %vm12912_vm0 }
 0x64c   : > { %v6394_v15 = vshll.u32 %v8102_v4, 16  ;;  %v6297_v41 = vpop.f32.mrf.mxu3 }
 0x64d   : > { %v11722_v48 = vadd.f32 %v6292_v61, %v6220_v9  ;;  %7903 = vmatmul.msk.bf16.gmra.mxu0 %vm13097_vm15, %v5971_v58  ;;  %7866 = vmatmul.msk.bf16.gmra.mxu2 %vm13098_vm4, %v11724_v55  ;;  %v6382_v61 = vrot.slane %v6381_v62, 4  ;;  %vm13126_vm15 = vmmov %vm12912_vm0 }
 0x64e   : > { %v6396_v26 = vrot.slane %v6394_v15, 5  ;;  %vm13130_vm4 = vmmov %vm12912_vm0 }
 0x64f   : > { %v11731_v32 = vpop.f32.mrf.mxu0  ;;  %v6387_v7 = vsel %vm8403_vm6, %v6382_v61, %v6386_v47 }
 0x650   : > { %v6019_v20 = vpop.f32.mrf.mxu1  ;;  %v6163_v39 = vpop.f32.mrf.mxu2  ;;  %v6397_v42 = vsel %vm8403_vm6, %v6392_v0, %v6396_v26  ;;  %v6400_v6 = vunpack.c.l.b16 %v6387_v7  ;;  %vm13101_vm6 = vmmov %vm12912_vm0 }
 0x651   : > { %v6080_v28 = vadd.f32 %v6019_v20, %v5924_v27  ;;  %v6401_v9 = vunpack.c.l.b16 %v6397_v42 }
 0x653   : > { %v6221_v31 = vadd.f32 %v6160_v33, %v6080_v28 }
 0x654   : > { %v6299_v33 = vpop.f32.mrf.mxu3 }
 0x655   : > { %v11733_v50 = vadd.f32 %v6294_v10, %v6221_v31  ;;  %v6402_v10 = vpack.c.b16 %v6401_v9, %v6400_v6 }
 0x657   : > { %v11744_v47 = vpop.f32.mrf.mxu0 }
 0x658   : > { %v6022_v21 = vpop.f32.mrf.mxu1  ;;  %v6165_v1 = vpop.f32.mrf.mxu2 }
 0x659   : > { %v6081_v52 = vadd.f32 %v6022_v21, %v5925_v19 }
 0x65b   : > { %v6222_v51 = vadd.f32 %v6163_v39, %v6081_v52  ;;  %7848 = vmatmul.msk.bf16.gmra.mxu1 %vm13099_vm8, %v5971_v58  ;;  %v5927_v58 = vadd.f32 %v11484_v12, %v11471_v46  ;;  %v13102_v46 = vld [vmem:[#allocation31_spill] sm:$0xff]  ;;  %v13103_v52 = vld [vmem:[#allocation13_spill] sm:$0xff]  ;;  %vm13134_vm8 = vmmov %vm12912_vm0 }
 0x65c   : > { %v6302_v20 = vpop.f32.mrf.mxu3  ;;  %v5929_v12 = vadd.f32 %v11504_v56, %v13102_v46  ;;  %v13111_v46 = vld [vmem:[#allocation23_spill] sm:$0xff] }
 0x65d   : > { %v11742_v62 = vadd.f32 %v6297_v41, %v6222_v51  ;;  %7904 = vmatmul.msk.bf16.gmra.mxu0 %vm13100_vm10, %v6402_v10  ;;  %vm13138_vm10 = vmmov %vm12912_vm0 }
 0x65f   : > { %v11769_v9 = vpop.f32.mrf.mxu0 }
 0x660   : > { %v6024_v44 = vpop.f32.mrf.mxu1  ;;  %v6168_v35 = vpop.f32.mrf.mxu2 }
 0x661   : > { %v6082_v8 = vadd.f32 %v6024_v44, %v5926_v36 }
 0x663   : > { %v6223_v27 = vadd.f32 %v6165_v1, %v6082_v8  ;;  %v13106_v8 = vld [vmem:[#allocation28_spill] sm:$0xff] }
 0x664   : > { %v6304_v40 = vpop.f32.mrf.mxu3 }
 0x665   : > { %v11749_v4 = vadd.f32 %v6299_v33, %v6223_v27 }
 0x667   : > { %v11779_v18 = vpop.f32.mrf.mxu0 }
 0x668   : > { %v6027_v15 = vpop.f32.mrf.mxu1  ;;  %v6170_v28 = vpop.f32.mrf.mxu2 }
 0x669   : > { %v6083_v41 = vadd.f32 %v6027_v15, %v5927_v58 }
 0x66b   : > { %v6224_v61 = vadd.f32 %v6168_v35, %v6083_v41  ;;  %7907 = vmatmul.msk.bf16.vlgmr.msra.gmra.mxu1 %vm13101_vm6, %v11049_v16  ;;  %v5931_v35 = vadd.f32 %v11527_v23, %v13106_v8  ;;  %v13107_v41 = vld [vmem:[#allocation29_spill] sm:$0xff]  ;;  %vm13143_vm6 = vmmov %vm12912_vm0 }
 0x66c   : > { %v6307_v42 = vpop.f32.mrf.mxu3 }
 0x66d   : > { %v11755_v3 = vadd.f32 %v6302_v20, %v6224_v61 }
 0x670   : > { %v6029_v39 = vpop.f32.mrf.mxu1  ;;  %v6173_v26 = vpop.f32.mrf.mxu2 }
 0x671   : > { %v6084_v31 = vadd.f32 %v6029_v39, %v5928_v38 }
 0x673   : > { %v6225_v7 = vadd.f32 %v6170_v28, %v6084_v31 }
 0x674   : > { %v6309_v10 = vpop.f32.mrf.mxu3 }
 0x675   : > { %v11759_v0 = vadd.f32 %v6304_v40, %v6225_v7  ;;  %v13109_v40 = vld [vmem:[#allocation38_spill] sm:$0xff]  ;;  %v11788_v7 = vpop.f32.mrf.mxu0 }
 0x676   : > { %v5932_v38 = vadd.f32 %v11531_v43, %v13109_v40  ;;  %v13112_v43 = vld [vmem:[#allocation18_spill] sm:$0xff] }
 0x678   : > { %v6032_v19 = vpop.f32.mrf.mxu1  ;;  %v6175_v6 = vpop.f32.mrf.mxu2 }
 0x679   : > { %v6085_v21 = vadd.f32 %v6032_v19, %v5929_v12  ;;  %v5933_v12 = vadd.f32 %v11545_v63, %v13111_v46  ;;  %v8044_v63 = vld [vmem:[%s8177_s12 + $0x8] sm:$0xff] }
 0x67b   : > { %v6226_v16 = vadd.f32 %v6173_v26, %v6085_v21  ;;  %7908 = vmatmul.msk.bf16.gmra.mxu1 %vm13104_vm3, %v13103_v52  ;;  %v8043_v26 = vld [vmem:[%s8177_s12] sm:$0xff]  ;;  %vm13147_vm3 = vmmov %vm12912_vm0 }
 0x67c   : > { %v6312_v28 = vpop.f32.mrf.mxu3  ;;  %7987 = vmatmul.msk.bf16.vlgmr.msra.gmra.mxu2 %vm13110_vm2, %v8043_v26  ;;  %vm13154_vm2 = vmmov %vm12912_vm0 }
 0x67d   : > { %v11765_v1 = vadd.f32 %v6307_v42, %v6226_v16  ;;  %v5934_v16 = vadd.f32 %v11553_v14, %v11529_v45  ;;  %v11801_v52 = vpop.f32.mrf.mxu0  ;;  %v13115_v45 = vld [vmem:[#allocation39_spill] sm:$0xff] }
 0x680   : > { %v6034_v33 = vpop.f32.mrf.mxu1  ;;  %v6178_v36 = vpop.f32.mrf.mxu2 }
 0x681   : > { %v6086_v51 = vadd.f32 %v6034_v33, %v5930_v5 }
 0x683   : > { %v6227_v56 = vadd.f32 %v6175_v6, %v6086_v51  ;;  %v5935_v51 = vadd.f32 %v11561_v60, %v11533_v29  ;;  %v8045_v60 = vld [vmem:[%s8177_s12 + $0x10] sm:$0xff] }
 0x685   : > { %v11771_v44 = vadd.f32 %v6309_v10, %v6227_v56  ;;  %v11809_v56 = vpop.f32.mrf.mxu0 }
 0x688   : > { %v6037_v27 = vpop.f32.mrf.mxu1  ;;  %v11775_v58 = vpop.f32.mrf.mxu2 }
 0x689   : > { %v6087_v20 = vadd.f32 %v6037_v27, %v5931_v35  ;;  %v5936_v35 = vadd.f32 %v11573_v25, %v11543_v24 }
 0x68b   : > { %v6228_v15 = vadd.f32 %v6178_v36, %v6087_v20  ;;  %7909 = vmatmul.msk.bf16.gmra.mxu1 %vm13108_vm1, %v13107_v41  ;;  %v5937_v41 = vadd.f32 %v11583_v54, %v11547_v13  ;;  %v13120_v54 = vld [vmem:[#allocation40_spill] sm:$0xff]  ;;  %vm13151_vm1 = vmmov %vm12912_vm0 }
 0x68c   : > { %7988 = vmatmul.msk.bf16.gmra.mxu2 %vm13114_vm9, %v8044_v63  ;;  %vm13160_vm9 = vmmov %vm12912_vm0 }
 0x68d   : > { %v11781_v61 = vadd.f32 %v6312_v28, %v6228_v15  ;;  %v11821_v29 = vpop.f32.mrf.mxu0 }
 0x690   : > { %v6039_v39 = vpop.f32.mrf.mxu1  ;;  %v6183_v23 = vpop.f32.mrf.mxu2 }
 0x691   : > { %v11785_v31 = vadd.f32 %v6039_v39, %v5932_v38  ;;  %v13118_v39 = vld [vmem:[#allocation26_spill] sm:$0xff] }
 0x695   : > { %v11833_v25 = vpop.f32.mrf.mxu0 }
 0x698   : > { %v6042_v19 = vpop.f32.mrf.mxu1  ;;  %v11793_v21 = vpop.f32.mrf.mxu2 }
 0x699   : > { %v6089_v42 = vadd.f32 %v6042_v19, %v5933_v12  ;;  %v8046_v12 = vld [vmem:[%s8177_s12 + $0x18] sm:$0xff]  ;;  %v5939_v19 = vadd.f32 %v11607_v49, %v13120_v54  ;;  %v8047_v49 = vld [vmem:[%s8177_s12 + $0x20] sm:$0xff] }
 0x69b   : > { %v11795_v6 = vadd.f32 %v6183_v23, %v6089_v42  ;;  %7910 = vmatmul.msk.bf16.gmra.mxu1 %vm13113_vm7, %v13112_v43  ;;  %v5938_v23 = vadd.f32 %v11591_v57, %v11559_v2  ;;  %v13122_v2 = vld [vmem:[#allocation41_spill] sm:$0xff]  ;;  %vm13157_vm7 = vmmov %vm12912_vm0 }
 0x69c   : > { %7989 = vmatmul.msk.bf16.gmra.mxu2 %vm13117_vm14, %v8045_v60  ;;  %v5940_v57 = vadd.f32 %v11613_v22, %v13122_v2  ;;  %v13127_v60 = vld [vmem:[#allocation43_spill] sm:$0xff]  ;;  %vm13166_vm14 = vmmov %vm12912_vm0 }
 0x69d   : > { %v11843_v42 = vpop.f32.mrf.mxu0 }
 0x6a0   : > { %v6044_v11 = vpop.f32.mrf.mxu1  ;;  %v6188_v33 = vpop.f32.mrf.mxu2 }
 0x6a1   : > { %v11803_v5 = vadd.f32 %v6044_v11, %v5934_v16 }
 0x6a8   : > { %v6047_v10 = vpop.f32.mrf.mxu1  ;;  %v11811_v8 = vpop.f32.mrf.mxu2 }
 0x6a9   : > { %v6091_v36 = vadd.f32 %v6047_v10, %v5935_v51  ;;  %v11855_v10 = vpop.f32.mrf.mxu0 }
 0x6ab   : > { %v11813_v14 = vadd.f32 %v6188_v33, %v6091_v36  ;;  %7911 = vmatmul.msk.bf16.gmra.mxu1 %vm13116_vm12, %v13115_v45  ;;  %v13124_v36 = vld [vmem:[#allocation42_spill] sm:$0xff]  ;;  %vm13163_vm12 = vmmov %vm12912_vm0 }
 0x6ac   : > { %7990 = vmatmul.msk.bf16.gmra.mxu2 %vm12912_vm0, %v8046_v12  ;;  %v5941_v45 = vadd.f32 %v11627_v17, %v13124_v36  ;;  %v13131_v17 = vld [vmem:[#allocation44_spill] sm:$0xff]  ;;  %v13139_v36 = vld [vmem:[#allocation46_spill] sm:$0xff] }
 0x6ad   : > { %v6498_v12 = vadd.f32 %v11651_v53, %v13131_v17  ;;  %v13140_v53 = vld [vmem:[#allocation10_spill] sm:$0xff] }
 0x6b0   : > { %v6049_v27 = vpop.f32.mrf.mxu1  ;;  %v6193_v15 = vpop.f32.mrf.mxu2 }
 0x6b1   : > { %v11819_v20 = vadd.f32 %v6049_v27, %v5936_v35  ;;  %v11865_v22 = vpop.f32.mrf.mxu0 }
 0x6b8   : > { %v6052_v28 = vpop.f32.mrf.mxu1  ;;  %v11831_v24 = vpop.f32.mrf.mxu2 }
 0x6b9   : > { %v6093_v40 = vadd.f32 %v6052_v28, %v5937_v41  ;;  %v13128_v41 = vld [vmem:[#allocation36_spill] sm:$0xff] }
 0x6ba   : > { %v5942_v28 = vadd.f32 %v13128_v41, %v13127_v60  ;;  %v13142_v60 = vld [vmem:[#allocation14_spill] sm:$0xff] }
 0x6bb   : > { %v11827_v38 = vadd.f32 %v6193_v15, %v6093_v40  ;;  %7912 = vmatmul.msk.bf16.gmra.mxu1 %vm13119_vm5, %v13118_v39  ;;  %vm13171_vm5 = vmmov %vm12912_vm0 }
 0x6bc   : > { %7991 = vmatmul.msk.bf16.gmra.mxu2 %vm13123_vm11, %v8047_v49  ;;  %v8049_v49 = vld [vmem:[%s8177_s12 + $0x30] sm:$0xff]  ;;  %vm13178_vm11 = vmmov %vm12912_vm0 }
 0x6c0   : > { %v6054_v26 = vpop.f32.mrf.mxu1  ;;  %v6198_v13 = vpop.f32.mrf.mxu2 }
 0x6c1   : > { %v11837_v46 = vadd.f32 %v6054_v26, %v5938_v23  ;;  %v8048_v23 = vld [vmem:[%s8177_s12 + $0x28] sm:$0xff]  ;;  %v11872_v26 = vpop.f32.mrf.mxu0 }
 0x6c8   : > { %v6057_v43 = vpop.f32.mrf.mxu1  ;;  %v11851_v33 = vpop.f32.mrf.mxu2 }
 0x6c9   : > { %v6095_v16 = vadd.f32 %v6057_v43, %v5939_v19  ;;  %v13135_v19 = vld [vmem:[#allocation45_spill] sm:$0xff]  ;;  %v11883_v2 = vpop.f32.mrf.mxu0 }
 0x6ca   : > { %v13136_v43 = vld [vmem:[#allocation33_spill] sm:$0xff] }
 0x6cb   : > { %v11845_v11 = vadd.f32 %v6198_v13, %v6095_v16  ;;  %7913 = vmatmul.msk.bf16.gmra.mxu1 %vm13121_vm13, %v11194_v34  ;;  %v6499_v16 = vadd.f32 %v13136_v43, %v13135_v19  ;;  %vm13176_vm13 = vmmov %vm12912_vm0 }
 0x6cc   : > { %7992 = vmatmul.msk.bf16.gmra.mxu2 %vm13130_vm4, %v8048_v23  ;;  %vm13182_vm4 = vmmov %vm12912_vm0 }
 0x6d0   : > { %v6059_v63 = vpop.f32.mrf.mxu1  ;;  %v6203_v34 = vpop.f32.mrf.mxu2 }
 0x6d1   : > { %v11853_v51 = vadd.f32 %v6059_v63, %v5940_v57 }
 0x6d8   : > { %v6062_v35 = vpop.f32.mrf.mxu1 }
 0x6d9   : > { %v6097_v27 = vadd.f32 %v6062_v35, %v5941_v45  ;;  %v6500_v45 = vadd.f32 %v13140_v53, %v13139_v36 }
 0x6db   : > { %v11861_v15 = vadd.f32 %v6203_v34, %v6097_v27  ;;  %7914 = vmatmul.msk.bf16.gmra.mxu1 %vm13126_vm15, %v11231_v59  ;;  %v13133_v59 = vld [vmem:[#allocation22_spill] sm:$0xff]  ;;  %v6468_v34 = vpop.f32.mrf.mxu0  ;;  %vm13180_vm15 = vmmov %vm12912_vm0 }
 0x6dc   : > { %7993 = vmatmul.msk.bf16.gmra.mxu2 %vm13138_vm10, %v8049_v49  ;;  %v11896_v41 = vadd.f32 %v6468_v34, %v11781_v61  ;;  %v13152_v61 = vld [vmem:[#allocation32_spill] sm:$0xff]  ;;  %vm13188_vm10 = vmmov %vm12912_vm0 }
 0x6dd   : > { %13125 = vst [vmem:[#allocation20_spill] sm:$0xff] %v11861_v15  ;;  %v6503_v49 = vadd.f32 %v11717_v30, %v13152_v61  ;;  %v13164_v61 = vld [vmem:[#allocation11_spill] sm:$0xff] }
 0x6e0   : > { %v6064_v40 = vpop.f32.mrf.mxu1 }
 0x6e1   : > { %v11869_v39 = vadd.f32 %v6064_v40, %v5942_v28  ;;  %v13144_v28 = vld [vmem:[#allocation37_spill] sm:$0xff]  ;;  %v13145_v40 = vld [vmem:[#allocation6_spill] sm:$0xff] }
 0x6e2   : > { %v6501_v23 = vadd.f32 %v13145_v40, %v13144_v28  ;;  %v13156_v28 = vld [vmem:[#allocation16_spill] sm:$0xff]  ;;  %v13158_v40 = vld [vmem:[#allocation9_spill] sm:$0xff] }
 0x6e3   : > { %13129 = vst [vmem:[#allocation35_spill] sm:$0xff] %v11869_v39 }
 0x6e8   : > { %v6559_v13 = vpop.f32.mrf.mxu1 }
 0x6e9   : > { %v11877_v54 = vadd.f32 %v6559_v13, %v6498_v12  ;;  %v8050_v13 = vld [vmem:[%s8177_s12 + $0x38] sm:$0xff] }
 0x6eb   : > { %13132 = vst [vmem:[#allocation3_spill] sm:$0xff] %v11877_v54  ;;  %7915 = vmatmul.msk.bf16.gmra.mxu1 %vm13134_vm8, %v13133_v59  ;;  %v13148_v59 = vld [vmem:[#allocation30_spill] sm:$0xff]  ;;  %vm13185_vm8 = vmmov %vm12912_vm0 }
 0x6ec   : > { %7994 = vmatmul.msk.bf16.gmra.mxu2 %vm13147_vm3, %v8050_v13  ;;  %v6502_v19 = vadd.f32 %v11703_v37, %v13148_v59  ;;  %v8052_v13 = vld [vmem:[%s8177_s12 + $0x48] sm:$0xff]  ;;  %v13161_v59 = vld [vmem:[#allocation34_spill] sm:$0xff] }
 0x6f0   : > { %v6561_v57 = vpop.f32.mrf.mxu1 }
 0x6f1   : > { %v11885_v63 = vadd.f32 %v6561_v57, %v6499_v16  ;;  %v13150_v57 = vld [vmem:[#allocation24_spill] sm:$0xff] }
 0x6f3   : > { %13137 = vst [vmem:[#allocation5_spill] sm:$0xff] %v11885_v63 }
 0x6f8   : > { %v6564_v35 = vpop.f32.mrf.mxu1 }
 0x6f9   : > { %v11891_v27 = vadd.f32 %v6564_v35, %v6500_v45  ;;  %v8051_v45 = vld [vmem:[%s8177_s12 + $0x40] sm:$0xff]  ;;  %v13155_v35 = vld [vmem:[#allocation27_spill] sm:$0xff] }
 0x6fa   : > { %v6504_v34 = vadd.f32 %v11731_v32, %v13155_v35  ;;  %v11940_v35 = vpop.f32.mrf.mxu2 }
 0x6fb   : > { %13141 = vst [vmem:[#allocation21_spill] sm:$0xff] %v11891_v27  ;;  %7916 = vmatmul.msk.bf16.gmra.mxu1 %vm13143_vm6, %v13142_v60  ;;  %vm6671_vm6 = vcmask 64512  }
 0x6fc   : > { %7995 = vmatmul.msk.bf16.gmra.mxu2 %vm13154_vm2, %v8051_v45  ;;  %v8053_v45 = vld [vmem:[%s8177_s12 + $0x50] sm:$0xff]  ;;  %13167 = vst [vmem:[#allocation28_spill] sm:$0xff] %v11940_v35 }
 0x700   : > { %v6566_v17 = vpop.f32.mrf.mxu1 }
 0x701   : > { %v11900_v12 = vadd.f32 %v6566_v17, %v6501_v23  ;;  %v6505_v23 = vadd.f32 %v11744_v47, %v13158_v40  ;;  %v13170_v40 = vld [vmem:[#allocation8_spill] sm:$0xff] }
 0x703   : > { %13146 = vst [vmem:[#allocation4_spill] sm:$0xff] %v11900_v12 }
 0x708   : > { %v6569_v43 = vpop.f32.mrf.mxu1 }
 0x709   : > { %v11906_v16 = vadd.f32 %v6569_v43, %v6502_v19  ;;  %v6506_v19 = vadd.f32 %v11769_v9, %v13161_v59 }
 0x70b   : > { %13149 = vst [vmem:[#allocation7_spill] sm:$0xff] %v11906_v16  ;;  %7917 = vmatmul.msk.bf16.gmra.mxu1 %vm13151_vm1, %v13150_v57  ;;  %v13162_v57 = vld [vmem:[#allocation19_spill] sm:$0xff]  ;;  %v6679_v39 = vsel %vm6671_vm6, %v11906_v16, 0.0 }
 0x70c   : > { %7996 = vmatmul.msk.bf16.gmra.mxu2 %vm13160_vm9, %v8052_v13 }
 0x710   : > { %v6571_v36 = vpop.f32.mrf.mxu1 }
 0x711   : > { %v11912_v53 = vadd.f32 %v6571_v36, %v6503_v49  ;;  %v6507_v49 = vadd.f32 %v11779_v18, %v13164_v61  ;;  %v13173_v18 = vld [vmem:[#allocation15_spill] sm:$0xff] }
 0x713   : > { %13153 = vst [vmem:[#allocation31_spill] sm:$0xff] %v11912_v53 }
 0x718   : > { %v6574_v37 = vpop.f32.mrf.mxu1 }
 0x719   : > { %v11918_v60 = vadd.f32 %v6574_v37, %v6504_v34  ;;  %v13168_v34 = vld [vmem:[#allocation17_spill] sm:$0xff] }
 0x71a   : > { %v6508_v9 = vadd.f32 %v11788_v7, %v13168_v34  ;;  %v6510_v7 = vadd.f32 %v11809_v56, %v11722_v48  ;;  %v6512_v48 = vadd.f32 %v11833_v25, %v11742_v62  ;;  %v6514_v62 = vadd.f32 %v11855_v10, %v11755_v3 }
 0x71b   : > { %7918 = vmatmul.msk.bf16.gmra.mxu1 %vm13157_vm7, %v13156_v28  ;;  %v6516_v3 = vadd.f32 %v11872_v26, %v11765_v1 }
 0x71c   : > { %7997 = vmatmul.msk.bf16.gmra.mxu2 %vm13166_vm14, %v8053_v45  ;;  %v8055_v45 = vld [vmem:[%s8177_s12 + $0x60] sm:$0xff] }
 0x720   : > { %v6576_v30 = vpop.f32.mrf.mxu1 }
 0x721   : > { %v11924_v17 = vadd.f32 %v6576_v30, %v6505_v23  ;;  %v11948_v23 = vpop.f32.mrf.mxu2  ;;  %v6509_v30 = vadd.f32 %v11801_v52, %v13173_v18  ;;  %v6511_v52 = vadd.f32 %v11821_v29, %v11733_v50  ;;  %v6513_v50 = vadd.f32 %v11843_v42, %v11749_v4  ;;  %v8056_v18 = vld [vmem:[%s8177_s12 + $0x68] sm:$0xff] }
 0x722   : > { %13172 = vst [vmem:[#allocation38_spill] sm:$0xff] %v11948_v23 }
 0x723   : > { %13159 = vst [vmem:[#allocation13_spill] sm:$0xff] %v11924_v17 }
 0x728   : > { %v6579_v32 = vpop.f32.mrf.mxu1 }
 0x729   : > { %v11930_v43 = vadd.f32 %v6579_v32, %v6506_v19  ;;  %v8054_v19 = vld [vmem:[%s8177_s12 + $0x58] sm:$0xff] }
 0x72b   : > { %7919 = vmatmul.msk.bf16.gmra.mxu1 %vm13163_vm12, %v13162_v57  ;;  %v11958_v57 = vpop.f32.mrf.mxu2 }
 0x72c   : > { %7998 = vmatmul.msk.bf16.gmra.mxu2 %vm12912_vm0, %v8054_v19  ;;  %13174 = vst [vmem:[#allocation23_spill] sm:$0xff] %v11958_v57  ;;  %v6515_v19 = vadd.f32 %v11865_v22, %v11759_v0  ;;  %v6517_v22 = vadd.f32 %v11883_v2, %v11771_v44 }
 0x730   : > { %v6581_v47 = vpop.f32.mrf.mxu1 }
 0x731   : > { %v11936_v36 = vadd.f32 %v6581_v47, %v6507_v49 }
 0x733   : > { %13165 = vst [vmem:[#allocation25_spill] sm:$0xff] %v11936_v36  ;;  %v11969_v34 = vpop.f32.mrf.mxu2 }
 0x734   : > { %13177 = vst [vmem:[#allocation39_spill] sm:$0xff] %v11969_v34 }
 0x738   : > { %v6584_v37 = vpop.f32.mrf.mxu1 }
 0x739   : > { %v11944_v28 = vadd.f32 %v6584_v37, %v6508_v9  ;;  %v13179_v37 = vld [vmem:[#allocation12_spill] sm:$0xff] }
 0x73b   : > { %13169 = vst [vmem:[#allocation29_spill] sm:$0xff] %v11944_v28  ;;  %7920 = vmatmul.msk.bf16.gmra.mxu1 %vm13171_vm5, %v13170_v40 }
 0x73c   : > { %7999 = vmatmul.msk.bf16.gmra.mxu2 %vm13178_vm11, %v8055_v45  ;;  %v12006_v45 = vpop.f32.mrf.mxu0 }
 0x740   : > { %v6586_v13 = vpop.f32.mrf.mxu1 }
 0x741   : > { %v11952_v59 = vadd.f32 %v6586_v13, %v6509_v30 }
 0x748   : > { %v6589_v32 = vpop.f32.mrf.mxu1 }
 0x749   : > { %v11960_v61 = vadd.f32 %v6589_v32, %v6510_v7  ;;  %v8057_v32 = vld [vmem:[%s8177_s12 + $0x70] sm:$0xff] }
 0x74b   : > { %13175 = vst [vmem:[#allocation18_spill] sm:$0xff] %v11960_v61  ;;  %7921 = vmatmul.msk.bf16.gmra.mxu1 %vm13176_vm13, %v11724_v55  ;;  %v11978_v55 = vpop.f32.mrf.mxu2 }
 0x74c   : > { %13181 = vst [vmem:[#allocation26_spill] sm:$0xff] %v11978_v55  ;;  %8000 = vmatmul.msk.bf16.gmra.mxu2 %vm13182_vm4, %v8056_v18 }
 0x750   : > { %v6591_v49 = vpop.f32.mrf.mxu1 }
 0x751   : > { %v11966_v47 = vadd.f32 %v6591_v49, %v6511_v52  ;;  %v11999_v52 = vpop.f32.mrf.mxu3 }
 0x753   : > { %v11986_v30 = vpop.f32.mrf.mxu2 }
 0x754   : > { %13183 = vst [vmem:[#allocation40_spill] sm:$0xff] %v11986_v30 }
 0x758   : > { %v6594_v56 = vpop.f32.mrf.mxu1 }
 0x759   : > { %v11974_v9 = vadd.f32 %v6594_v56, %v6512_v48  ;;  %v12012_v48 = vpop.f32.mrf.mxu3 }
 0x75b   : > { %7922 = vmatmul.msk.bf16.gmra.mxu1 %vm13180_vm15, %v13179_v37  ;;  %v11994_v4 = vpop.f32.mrf.mxu2 }
 0x75c   : > { %13184 = vst [vmem:[#allocation41_spill] sm:$0xff] %v11994_v4  ;;  %8001 = vmatmul.msk.bf16.gmra.mxu2 %vm13185_vm8, %v8057_v32  ;;  %v6675_v4 = vsel %vm6671_vm6, %v11891_v27, 0.0 }
 0x760   : > { %v6596_v29 = vpop.f32.mrf.mxu1 }
 0x761   : > { %v11982_v40 = vadd.f32 %v6596_v29, %v6513_v50  ;;  %v8058_v50 = vld [vmem:[%s8177_s12 + $0x78] sm:$0xff]  ;;  %v12017_v29 = vpop.f32.mrf.mxu0 }
 0x763   : > { %v12008_v0 = vpop.f32.mrf.mxu2 }
 0x764   : > { %13186 = vst [vmem:[#allocation42_spill] sm:$0xff] %v12008_v0 }
 0x768   : > { %v6599_v25 = vpop.f32.mrf.mxu1 }
 0x769   : > { %v11990_v13 = vadd.f32 %v6599_v25, %v6514_v62  ;;  %v12025_v62 = vpop.f32.mrf.mxu3  ;;  %v12027_v25 = vpop.f32.mrf.mxu0 }
 0x76b   : > { %v12019_v18 = vpop.f32.mrf.mxu2 }
 0x76c   : > { %13187 = vst [vmem:[#allocation43_spill] sm:$0xff] %v12019_v18  ;;  %8002 = vmatmul.msk.bf16.gmra.mxu2 %vm13188_vm10, %v8058_v50  ;;  %v6672_v18 = vsel %vm6671_vm6, %v11877_v54, 0.0 }
 0x770   : > { %v6601_v7 = vpop.f32.mrf.mxu1 }
 0x771   : > { %v11996_v42 = vadd.f32 %v6601_v7, %v6515_v19  ;;  %v12033_v19 = vpop.f32.mrf.mxu3  ;;  %v12035_v7 = vpop.f32.mrf.mxu0 }
 0x773   : > { %v12029_v44 = vpop.f32.mrf.mxu2 }
 0x774   : > { %13189 = vst [vmem:[#allocation36_spill] sm:$0xff] %v12029_v44  ;;  %v6673_v44 = vsel %vm6671_vm6, %v11885_v63, 0.0 }
 0x775   : > { %v6674_v55 = vadd.f32 %v6673_v44, %v6672_v18  ;;  %v6746_v18 = vmul.f32 %v11912_v53, %v11912_v53 }
 0x778   : > { %v6604_v10 = vpop.f32.mrf.mxu1 }
 0x779   : > { %v12004_v49 = vadd.f32 %v6604_v10, %v6516_v3  ;;  %v12041_v10 = vpop.f32.mrf.mxu3 }
 0x77b   : > { %v12039_v3 = vpop.f32.mrf.mxu2 }
 0x77c   : > { %13190 = vst [vmem:[#allocation44_spill] sm:$0xff] %v12039_v3  ;;  %v6743_v3 = vmul.f32 %v11891_v27, %v11891_v27  ;;  %v6676_v27 = vadd.f32 %v6675_v4, %v6674_v55 }
 0x77e   : > { %v6776_v23 = vsel %vm6671_vm6, %v6743_v3, 0.0 }
 0x780   : > { %v6606_v56 = vpop.f32.mrf.mxu1 }
 0x781   : > { %v12014_v37 = vadd.f32 %v6606_v56, %v6517_v22  ;;  %v12045_v22 = vpop.f32.mrf.mxu0  ;;  %v6742_v56 = vmul.f32 %v11885_v63, %v11885_v63  ;;  %v12064_v30 = vpop.f32.mrf.mxu3  ;;  %v6677_v63 = vsel %vm6671_vm6, %v11900_v12, 0.0 }
 0x782   : > { %v6678_v3 = vadd.f32 %v6677_v63, %v6676_v27 }
 0x783   : > { %v12049_v50 = vpop.f32.mrf.mxu2  ;;  %v6774_v0 = vsel %vm6671_vm6, %v6742_v56, 0.0  ;;  %v6745_v56 = vmul.f32 %v11906_v16, %v11906_v16  ;;  %v6683_v16 = vsel %vm6671_vm6, %v11918_v60, 0.0 }
 0x784   : > { %13191 = vst [vmem:[#allocation22_spill] sm:$0xff] %v12049_v50  ;;  %v6744_v50 = vmul.f32 %v11900_v12, %v11900_v12  ;;  %v6681_v12 = vsel %vm6671_vm6, %v11912_v53, 0.0  ;;  %v6685_v53 = vsel %vm6671_vm6, %v11924_v17, 0.0 }
 0x785   : > { %v6780_v15 = vsel %vm6671_vm6, %v6745_v56, 0.0 }
 0x786   : > { %v6778_v35 = vsel %vm6671_vm6, %v6744_v50, 0.0  ;;  %v6782_v50 = vsel %vm6671_vm6, %v6746_v18, 0.0 }
 0x788   : > { %v6609_v1 = vpop.f32.mrf.mxu1 }
 0x789   : > { %v12023_v26 = vadd.f32 %v6609_v1, %v11896_v41  ;;  %v6741_v1 = vmul.f32 %v11877_v54, %v11877_v54  ;;  %v12079_v44 = vpop.f32.mrf.mxu0 }
 0x78b   : > { %v6773_v57 = vsel %vm6671_vm6, %v6741_v1, 0.0  ;;  %v12086_v55 = vpop.f32.mrf.mxu2 }
 0x78c   : > { %v6775_v54 = vadd.f32 %v6774_v0, %v6773_v57  ;;  %v6747_v57 = vmul.f32 %v11918_v60, %v11918_v60  ;;  %13192 = vst [vmem:[#allocation45_spill] sm:$0xff] %v12086_v55  ;;  %v6680_v0 = vadd.f32 %v6679_v39, %v6678_v3  ;;  %v6749_v39 = vmul.f32 %v11930_v43, %v11930_v43 }
 0x78d   : > { %v6689_v55 = vsel %vm6671_vm6, %v11936_v36, 0.0 }
 0x78e   : > { %v6777_v1 = vadd.f32 %v6776_v23, %v6775_v54  ;;  %v6748_v54 = vmul.f32 %v11924_v17, %v11924_v17  ;;  %v6682_v27 = vadd.f32 %v6681_v12, %v6680_v0  ;;  %v6784_v56 = vsel %vm6671_vm6, %v6747_v57, 0.0 }
 0x78f   : > { %v6750_v12 = vmul.f32 %v11936_v36, %v11936_v36  ;;  %v6788_v0 = vsel %vm6671_vm6, %v6749_v39, 0.0  ;;  %v6751_v17 = vmul.f32 %v11944_v28, %v11944_v28 }
 0x790   : > { %v12031_v2 = vpop.f32.mrf.mxu1  ;;  %v6779_v4 = vadd.f32 %v6778_v35, %v6777_v1  ;;  %v12100_v35 = vpop.f32.mrf.mxu3  ;;  %v6684_v1 = vadd.f32 %v6683_v16, %v6682_v27  ;;  %v6786_v3 = vsel %vm6671_vm6, %v6748_v54, 0.0  ;;  %v6691_v27 = vsel %vm6671_vm6, %v11944_v28, 0.0 }
 0x791   : > { %v6792_v36 = vsel %vm6671_vm6, %v6751_v17, 0.0  ;;  %v6695_v28 = vsel %vm6671_vm6, %v11960_v61, 0.0 }
 0x792   : > { %v6781_v63 = vadd.f32 %v6780_v15, %v6779_v4  ;;  %v6687_v15 = vsel %vm6671_vm6, %v11930_v43, 0.0  ;;  %v6686_v57 = vadd.f32 %v6685_v53, %v6684_v1  ;;  %v6752_v53 = vmul.f32 %v11952_v59, %v11952_v59 }
 0x794   : > { %v6783_v18 = vadd.f32 %v6782_v50, %v6781_v63  ;;  %v12112_v50 = vpop.f32.mrf.mxu0  ;;  %v6688_v54 = vadd.f32 %v6687_v15, %v6686_v57  ;;  %v6790_v63 = vsel %vm6671_vm6, %v6750_v12, 0.0  ;;  %v6753_v15 = vmul.f32 %v11960_v61, %v11960_v61 }
 0x795   : > { %v6794_v57 = vsel %vm6671_vm6, %v6752_v53, 0.0 }
 0x796   : > { %v6785_v4 = vadd.f32 %v6784_v56, %v6783_v18  ;;  %v12119_v56 = vpop.f32.mrf.mxu2  ;;  %v6690_v18 = vadd.f32 %v6689_v55, %v6688_v54  ;;  %v6754_v55 = vmul.f32 %v11966_v47, %v11966_v47  ;;  %v6229_v54 = vadd.f32 %v11775_v58, %v11785_v31 }
 0x797   : > { %13193 = vst [vmem:[#allocation33_spill] sm:$0xff] %v12119_v56  ;;  %v6796_v56 = vsel %vm6671_vm6, %v6753_v15, 0.0  ;;  %v6756_v58 = vmul.f32 %v11982_v40, %v11982_v40  ;;  %v6233_v31 = vadd.f32 %v11811_v8, %v11819_v20  ;;  %v6364_v8 = vadd.f32 %v12012_v48, %v11795_v6 }
 0x798   : > { %v12037_v32 = vpop.f32.mrf.mxu1  ;;  %v6787_v16 = vadd.f32 %v6786_v3, %v6785_v4  ;;  %v6693_v3 = vsel %vm6671_vm6, %v11952_v59, 0.0  ;;  %v6692_v4 = vadd.f32 %v6691_v27, %v6690_v18  ;;  %v6755_v27 = vmul.f32 %v11974_v9, %v11974_v9 }
 0x799   : > { %v6231_v18 = vadd.f32 %v11793_v21, %v11803_v5  ;;  %v6798_v61 = vsel %vm6671_vm6, %v6754_v55, 0.0  ;;  %v6701_v5 = vsel %vm6671_vm6, %v11982_v40, 0.0  ;;  %v6759_v48 = vmul.f32 %v12004_v49, %v12004_v49 }
 0x79a   : > { %v6789_v39 = vadd.f32 %v6788_v0, %v6787_v16  ;;  %v12133_v0 = vpop.f32.mrf.mxu3  ;;  %v6694_v17 = vadd.f32 %v6693_v3, %v6692_v4  ;;  %v6800_v21 = vsel %vm6671_vm6, %v6755_v27, 0.0  ;;  %v6367_v27 = vadd.f32 %v12041_v10, %v6233_v31 }
 0x79b   : > { %v6707_v31 = vsel %vm6671_vm6, %v12004_v49, 0.0 }
 0x79c   : > { %v6791_v12 = vadd.f32 %v6790_v63, %v6789_v39  ;;  %v6697_v63 = vsel %vm6671_vm6, %v11966_v47, 0.0  ;;  %v6696_v39 = vadd.f32 %v6695_v28, %v6694_v17  ;;  %v12151_v3 = vpop.f32.mrf.mxu0  ;;  %v6363_v28 = vadd.f32 %v11999_v52, %v6229_v54 }
 0x79d   : > { %v6802_v17 = vsel %vm6671_vm6, %v6756_v58, 0.0  ;;  %v6703_v52 = vsel %vm6671_vm6, %v11990_v13, 0.0  ;;  %v6758_v54 = vmul.f32 %v11996_v42, %v11996_v42 }
 0x79e   : > { %v6793_v16 = vadd.f32 %v6792_v36, %v6791_v12  ;;  %v6699_v36 = vsel %vm6671_vm6, %v11974_v9, 0.0  ;;  %v6698_v12 = vadd.f32 %v6697_v63, %v6696_v39  ;;  %v12161_v55 = vpop.f32.mrf.mxu2  ;;  %v6366_v63 = vadd.f32 %v12033_v19, %v11813_v14 }
 0x79f   : > { %v6520_v19 = vadd.f32 %v12017_v29, %v6364_v8  ;;  %v6806_v10 = vsel %vm6671_vm6, %v6758_v54, 0.0  ;;  %v6808_v29 = vsel %vm6671_vm6, %v6759_v48, 0.0 }
 0x7a0   : > { %v12043_v41 = vpop.f32.mrf.mxu1  ;;  %v6795_v53 = vadd.f32 %v6794_v57, %v6793_v16  ;;  %v6757_v57 = vmul.f32 %v11990_v13, %v11990_v13  ;;  %v6365_v16 = vadd.f32 %v12025_v62, %v6231_v18  ;;  %v6519_v62 = vadd.f32 %v12006_v45, %v6363_v28 }
 0x7a1   : > { %v6235_v18 = vadd.f32 %v11831_v24, %v11837_v46  ;;  %v6368_v45 = vadd.f32 %v12064_v30, %v11827_v38  ;;  %v12200_v8 = vadd.f32 %v12037_v32, %v6520_v19 }
 0x7a2   : > { %v6797_v15 = vadd.f32 %v6796_v56, %v6795_v53  ;;  %v6700_v56 = vadd.f32 %v6699_v36, %v6698_v12  ;;  %v6804_v6 = vsel %vm6671_vm6, %v6757_v57, 0.0  ;;  %v6334_v36 = vpop.f32.mrf.mxu3  ;;  %v12189_v12 = vadd.f32 %v12031_v2, %v6519_v62 }
 0x7a3   : > { %v6521_v28 = vadd.f32 %v12027_v25, %v6365_v16  ;;  %v6761_v57 = vmul.f32 %v12023_v26, %v12023_v26  ;;  %v6369_v2 = vadd.f32 %v12100_v35, %v6235_v18  ;;  %v6711_v16 = vsel %vm6671_vm6, %v12023_v26, 0.0 }
 0x7a4   : > { %v6799_v20 = vadd.f32 %v6798_v61, %v6797_v15  ;;  %v6702_v39 = vadd.f32 %v6701_v5, %v6700_v56  ;;  %v6705_v61 = vsel %vm6671_vm6, %v11996_v42, 0.0  ;;  %v6760_v15 = vmul.f32 %v12014_v37, %v12014_v37 }
 0x7a5   : > { %v6709_v5 = vsel %vm6671_vm6, %v12014_v37, 0.0  ;;  %v6522_v56 = vadd.f32 %v12035_v7, %v6366_v63  ;;  %v12212_v32 = vadd.f32 %v12043_v41, %v6521_v28  ;;  %v6237_v35 = vadd.f32 %v11851_v33, %v11853_v51 }
 0x7a6   : > { %v6801_v53 = vadd.f32 %v6800_v21, %v6799_v20  ;;  %v6704_v14 = vadd.f32 %v6703_v52, %v6702_v39  ;;  %v6490_v20 = vpop.f32.mrf.mxu0  ;;  %v6810_v25 = vsel %vm6671_vm6, %v6760_v15, 0.0  ;;  %v12209_v52 = vpop.f32.mrf.mxu2  ;;  %v6523_v7 = vadd.f32 %v12045_v22, %v6367_v27 }
 0x7a7   : > { %v6812_v63 = vsel %vm6671_vm6, %v6761_v57, 0.0  ;;  %v6713_v39 = vsel %vm6671_vm6, %v12189_v12, 0.0  ;;  %v6370_v41 = vadd.f32 %v12133_v0, %v11845_v11  ;;  %v6524_v51 = vadd.f32 %v12079_v44, %v6368_v45 }
 0x7a8   : > { %v12066_v34 = vpop.f32.mrf.mxu1  ;;  %v6803_v58 = vadd.f32 %v6802_v17, %v6801_v53  ;;  %v6706_v46 = vadd.f32 %v6705_v61, %v6704_v14  ;;  %v6762_v17 = vmul.f32 %v12189_v12, %v12189_v12  ;;  %v6715_v27 = vsel %vm6671_vm6, %v12200_v8, 0.0 }
 0x7a9   : > { %v12223_v61 = vadd.f32 %v12066_v34, %v6522_v56  ;;  %v6764_v62 = vmul.f32 %v12212_v32, %v12212_v32  ;;  %v6371_v34 = vadd.f32 %v6334_v36, %v6237_v35  ;;  %v6525_v11 = vadd.f32 %v12112_v50, %v6369_v2  ;;  %v13196_v35 = vld [vmem:[#allocation28_spill] sm:$0xff] }
 0x7aa   : > { %v6805_v24 = vadd.f32 %v6804_v6, %v6803_v58  ;;  %v6708_v30 = vadd.f32 %v6707_v31, %v6706_v46  ;;  %v6763_v6 = vmul.f32 %v12200_v8, %v12200_v8  ;;  %v6814_v22 = vsel %vm6671_vm6, %v6762_v17, 0.0  ;;  %v6337_v58 = vpop.f32.mrf.mxu3  ;;  %v13195_v17 = vld [vmem:[#allocation35_spill] sm:$0xff] }
 0x7ab   : > { %v6765_v31 = vmul.f32 %v12223_v61, %v12223_v61  ;;  %v6526_v46 = vadd.f32 %v12151_v3, %v6370_v41  ;;  %v6818_v50 = vsel %vm6671_vm6, %v6764_v62, 0.0  ;;  %v6719_v28 = vsel %vm6671_vm6, %v12223_v61, 0.0 }
 0x7ac   : > { %v6807_v38 = vadd.f32 %v6806_v10, %v6805_v24  ;;  %v6710_v53 = vadd.f32 %v6709_v5, %v6708_v30  ;;  %v6816_v44 = vsel %vm6671_vm6, %v6763_v6, 0.0  ;;  %v6717_v10 = vsel %vm6671_vm6, %v12212_v32, 0.0 }
 0x7ad   : > { %v6820_v56 = vsel %vm6671_vm6, %v6765_v31, 0.0 }
 0x7ae   : > { %v6809_v54 = vadd.f32 %v6808_v29, %v6807_v38  ;;  %v6712_v33 = vadd.f32 %v6711_v16, %v6710_v53  ;;  %v6493_v57 = vpop.f32.mrf.mxu0  ;;  %v6527_v38 = vadd.f32 %v6490_v20, %v6371_v34  ;;  %v12255_v30 = vpop.f32.mrf.mxu2 }
 0x7b0   : > { %v12093_v23 = vpop.f32.mrf.mxu1  ;;  %v6811_v48 = vadd.f32 %v6810_v25, %v6809_v54  ;;  %v6714_v19 = vadd.f32 %v6713_v39, %v6712_v33 }
 0x7b1   : > { %v12234_v18 = vadd.f32 %v12093_v23, %v6523_v7  ;;  %v13194_v23 = vld [vmem:[#allocation20_spill] sm:$0xff] }
 0x7b2   : > { %v6813_v14 = vadd.f32 %v6812_v63, %v6811_v48  ;;  %v6372_v45 = vadd.f32 %v6337_v58, %v13194_v23  ;;  %v6716_v24 = vadd.f32 %v6715_v27, %v6714_v19  ;;  %v6339_v62 = vpop.f32.mrf.mxu3 }
 0x7b3   : > { %v6766_v29 = vmul.f32 %v12234_v18, %v12234_v18  ;;  %v6721_v3 = vsel %vm6671_vm6, %v12234_v18, 0.0 }
 0x7b4   : > { %v6815_v36 = vadd.f32 %v6814_v22, %v6813_v14  ;;  %v6718_v2 = vadd.f32 %v6717_v10, %v6716_v24  ;;  %v6528_v7 = vadd.f32 %v6493_v57, %v6372_v45 }
 0x7b5   : > { %v6822_v20 = vsel %vm6671_vm6, %v6766_v29, 0.0 }
 0x7b6   : > { %v6720_v53 = vadd.f32 %v6719_v28, %v6718_v2 }
 0x7b8   : > { %v12121_v1 = vpop.f32.mrf.mxu1  ;;  %v6722_v48 = vadd.f32 %v6721_v3, %v6720_v53 }
 0x7b9   : > { %v12243_v15 = vadd.f32 %v12121_v1, %v6524_v51  ;;  %v6817_v1 = vadd.f32 %v6816_v44, %v6815_v36  ;;  %v6495_v36 = vpop.f32.mrf.mxu0 }
 0x7bb   : > { %v6767_v25 = vmul.f32 %v12243_v15, %v12243_v15  ;;  %v6819_v54 = vadd.f32 %v6818_v50, %v6817_v1  ;;  %v6723_v63 = vsel %vm6671_vm6, %v12243_v15, 0.0  ;;  %v12290_v50 = vpop.f32.mrf.mxu2 }
 0x7bc   : > { %v6724_v58 = vadd.f32 %v6723_v63, %v6722_v48 }
 0x7bd   : > { %v6821_v41 = vadd.f32 %v6820_v56, %v6819_v54  ;;  %v6824_v33 = vsel %vm6671_vm6, %v6767_v25, 0.0 }
 0x7bf   : > { %v6823_v34 = vadd.f32 %v6822_v20, %v6821_v41 }
 0x7c0   : > { %v12153_v4 = vpop.f32.mrf.mxu1 }
 0x7c1   : > { %v12253_v5 = vadd.f32 %v12153_v4, %v6525_v11  ;;  %v6239_v4 = vadd.f32 %v13196_v35, %v13195_v17  ;;  %v6825_v44 = vadd.f32 %v6824_v33, %v6823_v34 }
 0x7c3   : > { %v6768_v39 = vmul.f32 %v12253_v5, %v12253_v5  ;;  %v6725_v51 = vsel %vm6671_vm6, %v12253_v5, 0.0  ;;  %v6373_v14 = vadd.f32 %v6339_v62, %v6239_v4  ;;  %v12303_v48 = vpop.f32.mrf.mxu2 }
 0x7c4   : > { %v6726_v10 = vadd.f32 %v6725_v51, %v6724_v58 }
 0x7c5   : > { %v6826_v19 = vsel %vm6671_vm6, %v6768_v39, 0.0  ;;  %v6529_v57 = vadd.f32 %v6495_v36, %v6373_v14 }
 0x7c6   : > { %v6827_v24 = vadd.f32 %v6826_v19, %v6825_v44 }
 0x7c8   : > { %v6629_v21 = vpop.f32.mrf.mxu1 }
 0x7c9   : > { %v12262_v16 = vadd.f32 %v6629_v21, %v6526_v46 }
 0x7cb   : > { %v6769_v22 = vmul.f32 %v12262_v16, %v12262_v16  ;;  %v6727_v11 = vsel %vm6671_vm6, %v12262_v16, 0.0 }
 0x7cc   : > { %v6728_v46 = vadd.f32 %v6727_v11, %v6726_v10  ;;  %v12305_v11 = vpop.f32.mrf.mxu2 }
 0x7cd   : > { %v6828_v31 = vsel %vm6671_vm6, %v6769_v22, 0.0 }
 0x7ce   : > { %v6829_v1 = vadd.f32 %v6828_v31, %v6827_v24 }
 0x7d0   : > { %v6631_v0 = vpop.f32.mrf.mxu1 }
 0x7d1   : > { %v12271_v6 = vadd.f32 %v6631_v0, %v6527_v38 }
 0x7d3   : > { %v6770_v0 = vmul.f32 %v12271_v6, %v12271_v6  ;;  %v6729_v23 = vsel %vm6671_vm6, %v12271_v6, 0.0 }
 0x7d4   : > { %v6730_v2 = vadd.f32 %v6729_v23, %v6728_v46  ;;  %v12307_v36 = vpop.f32.mrf.mxu2 }
 0x7d5   : > { %v6830_v28 = vsel %vm6671_vm6, %v6770_v0, 0.0 }
 0x7d6   : > { %v6831_v25 = vadd.f32 %v6830_v28, %v6829_v1 }
 0x7d8   : > { %v6634_v21 = vpop.f32.mrf.mxu1 }
 0x7d9   : > { %v12278_v27 = vadd.f32 %v6634_v21, %v6528_v7 }
 0x7db   : > { %v6771_v45 = vmul.f32 %v12278_v27, %v12278_v27  ;;  %v6731_v29 = vsel %vm6671_vm6, %v12278_v27, 0.0 }
 0x7dc   : > { %v6732_v17 = vadd.f32 %v6731_v29, %v6730_v2  ;;  %v12309_v28 = vpop.f32.mrf.mxu2 }
 0x7dd   : > { %v6832_v56 = vsel %vm6671_vm6, %v6771_v45, 0.0 }
 0x7de   : > { %v6833_v54 = vadd.f32 %v6832_v56, %v6831_v25 }
 0x7e0   : > { %v6636_v38 = vpop.f32.mrf.mxu1 }
 0x7e1   : > { %v12296_v3 = vadd.f32 %v6636_v38, %v6529_v57 }
 0x7e3   : > { %v6733_v35 = vsel %vm6671_vm6, %v12296_v3, 0.0  ;;  %v6772_v4 = vmul.f32 %v12296_v3, %v12296_v3 }
 0x7e4   : > { %v6734_v53 = vadd.f32 %v6733_v35, %v6732_v17  ;;  %v12311_v25 = vpop.f32.mrf.mxu2 }
 0x7e5   : > { %v6834_v7 = vsel %vm6671_vm6, %v6772_v4, 0.0 }
 0x7e6   : > { %v6735_v20 = vrot.slane %v6734_v53, 4  ;;  %v6835_v63 = vadd.f32 %v6834_v7, %v6833_v54 }
 0x7e8   : > { %v6736_v39 = vadd.f32 %v6735_v20, %v6734_v53  ;;  %v6836_v41 = vrot.slane %v6835_v63, 4 }
 0x7ea   : > { %v6737_v21 = vrot.slane %v6736_v39, 2  ;;  %v6837_v33 = vadd.f32 %v6836_v41, %v6835_v63 }
 0x7ec   : > { %v6738_v51 = vadd.f32 %v6737_v21, %v6736_v39  ;;  %v6838_v22 = vrot.slane %v6837_v33, 2  ;;  %v12313_v53 = vpop.f32.mrf.mxu2 }
 0x7ee   : > { %v6739_v62 = vrot.slane %v6738_v51, 1  ;;  %v6839_v34 = vadd.f32 %v6838_v22, %v6837_v33  ;;  %v6861_v33 = vld [vmem:[%s356_s18] sm:$0x1] }
 0x7f0   : > { %v6740_v58 = vadd.f32 %v6739_v62, %v6738_v51  ;;  %v6840_v14 = vrot.slane %v6839_v34, 1 }
 0x7f2   : > { %v6842_v19 = vmul.f32 0.00390625, %v6740_v58  ;;  %v6841_v44 = vadd.f32 %v6840_v14, %v6839_v34  ;;  %v6877_v14 = vld [vmem:[%s353_s21] sm:$0x1] }
 0x7f4   : > { %v6843_v0 = vmul.f32 256.0, %v6842_v19  ;;  %v12323_v34 = vpop.f32.mrf.mxu2 }
 0x7f6   : > { %v6844_v10 = vmul.f32 %v6843_v0, %v6842_v19 }
 0x7f8   : > { %v6845_v31 = vsub.f32 %v6841_v44, %v6844_v10 }
 0x7fa   : > { %v6846_v23 = vmul.f32 0.003921569, %v6845_v31 }
 0x7fc   : > { %v6847_v45 = vmax.f32 %v6846_v23, 0.0  ;;  %v12329_v23 = vpop.f32.mrf.mxu2 }
 0x7fe   : > { %8074 = vrsqrt.f32 %v6847_v45  ;;  %vm6855_vm3 = vcmp.eq.f32.partialorder %v6847_v45, inf  ;;  %v6858_v56 = vand.u32 2147483648, %v6847_v45  ;;  %vm6857_vm1 = vcmp.eq.f32.partialorder %v6847_v45, 0.0 }
 0x804   : > { %v8075_v24 = vpop.eup %8074 }
 0x805   : > { %v6849_v46 = vmul.f32 %v8075_v24, %v6847_v45 }
 0x807   : > { %v6850_v29 = vmul.f32 %v8075_v24, %v6849_v46  ;;  %v13198_v46 = vld [vmem:[#allocation5_spill] sm:$0xff] }
 0x809   : > { %v6851_v57 = vmul.f32 0.5, %v6850_v29 }
 0x80b   : > { %v6852_v1 = vsub.f32 1.5, %v6851_v57  ;;  %v13199_v57 = vld [vmem:[#allocation21_spill] sm:$0xff] }
 0x80d   : > { %v6853_v2 = vmul.f32 %v8075_v24, %v6852_v1 }
 0x80f   : > { %v6854_v38 = vmul.f32 %v6853_v2, %v6847_v45  ;;  %v13200_v2 = vld [vmem:[#allocation4_spill] sm:$0xff] }
 0x811   : > { %v6856_v17 = vsel %vm6855_vm3, %v6847_v45, %v6854_v38  ;;  %v13197_v45 = vld [vmem:[#allocation3_spill] sm:$0xff] }
 0x812   : > { %v6859_v35 = vsel %vm6857_vm1, %v6858_v56, %v6856_v17 }
 0x813   : > { %v6860_v4 = vadd.f32 1e-06, %v6859_v35 }
 0x815   : > { %8076 = vrcp.f32 %v6860_v4  ;;  %v6873_v63 = vand.u32 2147483648, %v6860_v4  ;;  %v6871_v41 = vand.u32 2147483647, %v6860_v4  ;;  %vm6867_vm7 = vweird.f32 %v6860_v4 }
 0x817   : > { %v6874_v51 = vor.u32 1.1754944e-38, %v6873_v63  ;;  %vm6872_vm12 = vcmp.eq.f32.partialorder %v6871_v41, 8.507059e+37  ;;  %v13203_v41 = vld [vmem:[#allocation13_spill] sm:$0xff] }
 0x81b   : > { %v8077_v54 = vpop.eup %8076 }
 0x81c   : > { %v6863_v7 = vmul.f32 %v8077_v54, %v6860_v4  ;;  %vm6868_vm2 = vweird.f32 %v8077_v54  ;;  %v13202_v4 = vld [vmem:[#allocation31_spill] sm:$0xff] }
 0x81d   : > { %vm6869_vm9 = vmor %vm6867_vm7, %vm6868_vm2 }
 0x81e   : > { %v6864_v20 = vsub.f32 1.0, %v6863_v7 }
 0x820   : > { %v6865_v39 = vmul.f32 %v8077_v54, %v6864_v20 }
 0x822   : > { %v6866_v21 = vadd.f32 %v8077_v54, %v6865_v39 }
 0x824   : > { %v6870_v22 = vsel %vm6869_vm9, %v8077_v54, %v6866_v21 }
 0x825   : > { %v6875_v62 = vsel %vm6872_vm12, %v6874_v51, %v6870_v22 }
 0x826   : > { %v6876_v58 = vmul.f32 %v6875_v62, %v6861_v33 }
 0x828   : > { %v6878_v0 = vmul.f32 %v6876_v58, %v6842_v19  ;;  %v12325_v10 = vperm.slane %v6876_v58, 0  ;;  %v13201_v19 = vld [vmem:[#allocation7_spill] sm:$0xff] }
 0x829   : > { %v13205_v58 = vld [vmem:[#allocation23_spill] sm:$0xff] }
 0x82a   : > { %v6879_v44 = vsub.f32 %v6877_v14, %v6878_v0  ;;  %v7136_v24 = vmul.f32 %v12325_v10, %v13197_v45  ;;  %v7137_v29 = vmul.f32 %v12325_v10, %v13198_v46  ;;  %v7138_v1 = vmul.f32 %v12325_v10, %v13199_v57  ;;  %v13206_v0 = vld [vmem:[#allocation25_spill] sm:$0xff] }
 0x82b   : > { %v7139_v38 = vmul.f32 %v12325_v10, %v13200_v2  ;;  %v7140_v56 = vmul.f32 %v12325_v10, %v13201_v19  ;;  %v7141_v54 = vmul.f32 %v12325_v10, %v13202_v4  ;;  %v7142_v63 = vmul.f32 %v12325_v10, %v11918_v60  ;;  %v13204_v60 = vld [vmem:[#allocation38_spill] sm:$0xff]  ;;  %v13210_v19 = vld [vmem:[#allocation40_spill] sm:$0xff]  ;;  %v13211_v4 = vld [vmem:[#allocation41_spill] sm:$0xff] }
 0x82c   : > { %v12327_v31 = vperm.slane %v6879_v44, 0  ;;  %v7143_v21 = vmul.f32 %v12325_v10, %v13203_v41  ;;  %v7144_v51 = vmul.f32 %v12325_v10, %v11930_v43  ;;  %v7145_v44 = vmul.f32 %v12325_v10, %v13206_v0  ;;  %v13209_v43 = vld [vmem:[#allocation29_spill] sm:$0xff]  ;;  %v13213_v41 = vld [vmem:[#allocation42_spill] sm:$0xff]  ;;  %v13216_v0 = vld [vmem:[#allocation44_spill] sm:$0xff] }
 0x82d   : > { %v7146_v2 = vmul.f32 %v12325_v10, %v13209_v43 }
 0x82e   : > { %v7171_v17 = vadd.f32 %v12327_v31, %v7136_v24  ;;  %v7172_v35 = vadd.f32 %v12327_v31, %v7137_v29  ;;  %v7173_v7 = vadd.f32 %v12327_v31, %v7138_v1  ;;  %v7174_v20 = vadd.f32 %v12327_v31, %v7139_v38  ;;  %v13207_v24 = vld [vmem:[#allocation39_spill] sm:$0xff]  ;;  %v13208_v29 = vld [vmem:[#allocation26_spill] sm:$0xff]  ;;  %v12369_v1 = vpop.f32.mrf.mxu2 }
 0x82f   : > { %v7175_v39 = vadd.f32 %v12327_v31, %v7140_v56  ;;  %v7176_v33 = vadd.f32 %v12327_v31, %v7141_v54  ;;  %v7177_v22 = vadd.f32 %v12327_v31, %v7142_v63  ;;  %v7178_v45 = vadd.f32 %v12327_v31, %v7143_v21 }
 0x830   : > { %v7203_v62 = vadd.f32 %v7171_v17, %v13204_v60  ;;  %v7204_v14 = vadd.f32 %v7172_v35, %v13205_v58  ;;  %v7205_v46 = vadd.f32 %v7173_v7, %v13207_v24  ;;  %v7206_v57 = vadd.f32 %v7174_v20, %v13208_v29  ;;  %v13212_v7 = vld [vmem:[#allocation18_spill] sm:$0xff]  ;;  %v13215_v58 = vld [vmem:[#allocation36_spill] sm:$0xff] }
 0x831   : > { %v7179_v38 = vadd.f32 %v12327_v31, %v7144_v51  ;;  %v7207_v56 = vadd.f32 %v7175_v39, %v13210_v19  ;;  %v7147_v17 = vmul.f32 %v12325_v10, %v11952_v59  ;;  %v7180_v35 = vadd.f32 %v12327_v31, %v7145_v44  ;;  %v13214_v51 = vld [vmem:[#allocation43_spill] sm:$0xff]  ;;  %v13217_v24 = vld [vmem:[#allocation22_spill] sm:$0xff]  ;;  %v13219_v19 = vld [vmem:[#allocation33_spill] sm:$0xff] }
 0x832   : > { %7235 = vst.msk [vmem:[%s12354_s24] sm:$0xff] %vm6671_vm6, %v7203_v62  ;;  %v7208_v54 = vadd.f32 %v7176_v33, %v13211_v4  ;;  %v7148_v20 = vmul.f32 %v12325_v10, %v13212_v7  ;;  %v7181_v63 = vadd.f32 %v12327_v31, %v7146_v2  ;;  %v7209_v39 = vadd.f32 %v7177_v22, %v13213_v41 }
 0x833   : > { %7236 = vst.msk [vmem:[%s12354_s24 + $0x8] sm:$0xff] %vm6671_vm6, %v7204_v14  ;;  %v7149_v59 = vmul.f32 %v12325_v10, %v11966_v47  ;;  %v7182_v21 = vadd.f32 %v12327_v31, %v7147_v17  ;;  %v7210_v33 = vadd.f32 %v7178_v45, %v13214_v51  ;;  %v7150_v60 = vmul.f32 %v12325_v10, %v11974_v9 }
 0x834   : > { %7237 = vst.msk [vmem:[%s12354_s24 + $0x10] sm:$0xff] %vm6671_vm6, %v7205_v46  ;;  %v7183_v62 = vadd.f32 %v12327_v31, %v7148_v20  ;;  %v7211_v22 = vadd.f32 %v7179_v38, %v13215_v58  ;;  %v7151_v14 = vmul.f32 %v12325_v10, %v11982_v40  ;;  %v7212_v44 = vadd.f32 %v7180_v35, %v13216_v0 }
 0x835   : > { %7238 = vst.msk [vmem:[%s12354_s24 + $0x18] sm:$0xff] %vm6671_vm6, %v7206_v57  ;;  %v7184_v47 = vadd.f32 %v12327_v31, %v7149_v59  ;;  %v7152_v45 = vmul.f32 %v12325_v10, %v11990_v13  ;;  %v7185_v9 = vadd.f32 %v12327_v31, %v7150_v60  ;;  %v7213_v46 = vadd.f32 %v7181_v63, %v13217_v24  ;;  %v13218_v57 = vld [vmem:[#allocation45_spill] sm:$0xff] }
 0x836   : > { %7239 = vst.msk [vmem:[%s12354_s24 + $0x20] sm:$0xff] %vm6671_vm6, %v7207_v56  ;;  %v7153_v40 = vmul.f32 %v12325_v10, %v11996_v42  ;;  %v7186_v29 = vadd.f32 %v12327_v31, %v7151_v14  ;;  %v7214_v43 = vadd.f32 %v7182_v21, %v13218_v57  ;;  %v7118_v2 = vpop.f32.mrf.mxu2  ;;  %v7154_v13 = vmul.f32 %v12325_v10, %v12004_v49 }
 0x837   : > { %7240 = vst.msk [vmem:[%s12354_s24 + $0x28] sm:$0xff] %vm6671_vm6, %v7208_v54  ;;  %v7187_v38 = vadd.f32 %v12327_v31, %v7152_v45  ;;  %v7215_v56 = vadd.f32 %v7183_v62, %v13219_v19  ;;  %v7155_v42 = vmul.f32 %v12325_v10, %v12014_v37  ;;  %v7216_v35 = vadd.f32 %v7184_v47, %v12161_v55 }
 0x838   : > { %7241 = vst.msk [vmem:[%s12354_s24 + $0x30] sm:$0xff] %vm6671_vm6, %v7209_v39  ;;  %v7188_v17 = vadd.f32 %v12327_v31, %v7153_v40  ;;  %v7156_v49 = vmul.f32 %v12325_v10, %v12023_v26  ;;  %v7189_v4 = vadd.f32 %v12327_v31, %v7154_v13  ;;  %v7217_v54 = vadd.f32 %v7185_v9, %v12209_v52 }
 0x839   : > { %7242 = vst.msk [vmem:[%s12354_s24 + $0x38] sm:$0xff] %vm6671_vm6, %v7210_v33  ;;  %v7157_v37 = vmul.f32 %v12325_v10, %v12189_v12  ;;  %v7190_v7 = vadd.f32 %v12327_v31, %v7155_v42  ;;  %v7218_v55 = vadd.f32 %v7186_v29, %v12255_v30  ;;  %v7158_v26 = vmul.f32 %v12325_v10, %v12200_v8 }
 0x83a   : > { %7243 = vst.msk [vmem:[%s12354_s24 + $0x40] sm:$0xff] %vm6671_vm6, %v7211_v22  ;;  %v7191_v20 = vadd.f32 %v12327_v31, %v7156_v49  ;;  %v7219_v52 = vadd.f32 %v7187_v38, %v12290_v50  ;;  %v7159_v12 = vmul.f32 %v12325_v10, %v12212_v32  ;;  %v7220_v30 = vadd.f32 %v7188_v17, %v12303_v48 }
 0x83b   : > { %7244 = vst.msk [vmem:[%s12354_s24 + $0x48] sm:$0xff] %vm6671_vm6, %v7212_v44  ;;  %v7192_v63 = vadd.f32 %v12327_v31, %v7157_v37  ;;  %v7193_v41 = vadd.f32 %v12327_v31, %v7158_v26  ;;  %v7221_v8 = vadd.f32 %v7189_v4, %v12305_v11  ;;  %v7160_v50 = vmul.f32 %v12325_v10, %v12223_v61 }
 0x83c   : > { %7245 = vst.msk [vmem:[%s12354_s24 + $0x50] sm:$0xff] %vm6671_vm6, %v7213_v46  ;;  %v7194_v39 = vadd.f32 %v12327_v31, %v7159_v12  ;;  %v7222_v32 = vadd.f32 %v7190_v7, %v12307_v36  ;;  %v7161_v48 = vmul.f32 %v12325_v10, %v12234_v18  ;;  %v7223_v11 = vadd.f32 %v7191_v20, %v12309_v28 }
 0x83d   : > { %7246 = vst.msk [vmem:[%s12354_s24 + $0x58] sm:$0xff] %vm6671_vm6, %v7214_v43  ;;  %v7195_v21 = vadd.f32 %v12327_v31, %v7160_v50  ;;  %v7162_v61 = vmul.f32 %v12325_v10, %v12243_v15  ;;  %v7224_v36 = vadd.f32 %v7192_v63, %v12311_v25  ;;  %v7163_v18 = vmul.f32 %v12325_v10, %v12253_v5 }
 0x83e   : > { %7247 = vst.msk [vmem:[%s12354_s24 + $0x60] sm:$0xff] %vm6671_vm6, %v7215_v56  ;;  %v7120_v59 = vpop.f32.mrf.mxu2  ;;  %v7196_v51 = vadd.f32 %v12327_v31, %v7161_v48  ;;  %v7225_v28 = vadd.f32 %v7193_v41, %v12313_v53  ;;  %v7164_v15 = vmul.f32 %v12325_v10, %v12262_v16  ;;  %v7226_v25 = vadd.f32 %v7194_v39, %v12323_v34 }
 0x83f   : > { %7248 = vst.msk [vmem:[%s12354_s24 + $0x68] sm:$0xff] %vm6671_vm6, %v7216_v35  ;;  %v7197_v33 = vadd.f32 %v12327_v31, %v7162_v61  ;;  %v7198_v60 = vadd.f32 %v12327_v31, %v7163_v18  ;;  %v7227_v5 = vadd.f32 %v7195_v21, %v12329_v23  ;;  %v7165_v23 = vmul.f32 %v12325_v10, %v12271_v6 }
 0x840   : > { %7249 = vst.msk [vmem:[%s12354_s24 + $0x70] sm:$0xff] %vm6671_vm6, %v7217_v54  ;;  %v7199_v53 = vadd.f32 %v12327_v31, %v7164_v15  ;;  %v7228_v16 = vadd.f32 %v7196_v51, %v12369_v1  ;;  %v7166_v0 = vmul.f32 %v12325_v10, %v12278_v27  ;;  %v7167_v6 = vmul.f32 %v12325_v10, %v12296_v3 }
 0x841   : > { %7250 = vst.msk [vmem:[%s12354_s24 + $0x78] sm:$0xff] %vm6671_vm6, %v7218_v55  ;;  %v7229_v34 = vadd.f32 %v7197_v33, %v7118_v2  ;;  %v7230_v62 = vadd.f32 %v7198_v60, %v7120_v59  ;;  %v7200_v1 = vadd.f32 %v12327_v31, %v7165_v23 }
 0x842   : > { %7251 = vst.msk [vmem:[%s12354_s24 + $0x80] sm:$0xff] %vm6671_vm6, %v7219_v52  ;;  %v7201_v44 = vadd.f32 %v12327_v31, %v7166_v0  ;;  %v7202_v24 = vadd.f32 %v12327_v31, %v7167_v6 }
 0x843   : > { %7252 = vst.msk [vmem:[%s12354_s24 + $0x88] sm:$0xff] %vm6671_vm6, %v7220_v30 }
 0x844   : > { %7253 = vst.msk [vmem:[%s12354_s24 + $0x90] sm:$0xff] %vm6671_vm6, %v7221_v8 }
 0x845   : > { %7254 = vst.msk [vmem:[%s12354_s24 + $0x98] sm:$0xff] %vm6671_vm6, %v7222_v32 }
 0x846   : > { %7255 = vst.msk [vmem:[%s12354_s24 + $0xa0] sm:$0xff] %vm6671_vm6, %v7223_v11  ;;  %v7123_v58 = vpop.f32.mrf.mxu2 }
 0x847   : > { %7256 = vst.msk [vmem:[%s12354_s24 + $0xa8] sm:$0xff] %vm6671_vm6, %v7224_v36  ;;  %v7231_v22 = vadd.f32 %v7199_v53, %v7123_v58 }
 0x848   : > { %7257 = vst.msk [vmem:[%s12354_s24 + $0xb0] sm:$0xff] %vm6671_vm6, %v7225_v28 }
 0x849   : > { %7258 = vst.msk [vmem:[%s12354_s24 + $0xb8] sm:$0xff] %vm6671_vm6, %v7226_v25 }
 0x84a   : > { %7259 = vst.msk [vmem:[%s12354_s24 + $0xc0] sm:$0xff] %vm6671_vm6, %v7227_v5 }
 0x84b   : > { %7260 = vst.msk [vmem:[%s12354_s24 + $0xc8] sm:$0xff] %vm6671_vm6, %v7228_v16 }
 0x84c   : > { %7261 = vst.msk [vmem:[%s12354_s24 + $0xd0] sm:$0xff] %vm6671_vm6, %v7229_v34 }
 0x84d   : > { %7262 = vst.msk [vmem:[%s12354_s24 + $0xd8] sm:$0xff] %vm6671_vm6, %v7230_v62 }
 0x84e   : > { %7263 = vst.msk [vmem:[%s12354_s24 + $0xe0] sm:$0xff] %vm6671_vm6, %v7231_v22  ;;  %v7125_v14 = vpop.f32.mrf.mxu2 }
 0x84f   : > { %v7232_v47 = vadd.f32 %v7200_v1, %v7125_v14 }
 0x851   : > { %7264 = vst.msk [vmem:[%s12354_s24 + $0xe8] sm:$0xff] %vm6671_vm6, %v7232_v47 }
 0x856   : > { %v7128_v45 = vpop.f32.mrf.mxu2 }
 0x857   : > { %v7233_v9 = vadd.f32 %v7201_v44, %v7128_v45 }
 0x859   : > { %7265 = vst.msk [vmem:[%s12354_s24 + $0xf0] sm:$0xff] %vm6671_vm6, %v7233_v9 }
 0x85e   : > { %v7130_v46 = vpop.f32.mrf.mxu2 }
 0x85f   : > { %v7234_v40 = vadd.f32 %v7202_v24, %v7130_v46 }
 0x861   : > { %7266 = vst.msk [vmem:[%s12354_s24 + $0xf8] sm:$0xff] %vm6671_vm6, %v7234_v40 }
 0x862 PF: > { %s18_s27 = sadd.s32 1, %s8109_s27  }
 0x863   : > { %p15_p4 = scmp.ge.s32.totalorder %s18_s27, 4  }
 0x865   :  { %17 = sbr.rel (!%p15_p4) target bundleno = 1 (0x1), region = 112 }

</bundles_post_ra>
